<compile_context>
chip_gen: v5e
topology: v5e:2x2
jax: 0.10.0
libtpu: 0.0.40
codegen_flags: <defaults>
</compile_context>

<pallas_src>
import functools

import jax
import jax.numpy as jnp
from jax.experimental import pallas as pl
from jax.experimental.pallas import tpu as pltpu


def _round_up(x, m):
    return ((x + m - 1) // m) * m


# ----------------------------- Pallas kernel -------------------------------

def _matmul_act_kernel(a_ref, b_ref, o_ref, acc_ref, *, act):
    """Grid = (M tiles, N tiles, K reduction).

    Accumulates bf16 x bf16 -> f32 into acc_ref (VMEM scratch); writes the
    bf16 output block (with fused activation) only on the last K step.
    """
    k = pl.program_id(2)

    @pl.when(k == 0)
    def _():
        acc_ref[...] = jnp.zeros_like(acc_ref)

    acc_ref[...] += jnp.dot(a_ref[...], b_ref[...],
                            preferred_element_type=jnp.float32)

    @pl.when(k == pl.num_programs(2) - 1)
    def _():
        y = acc_ref[...]
        if act == "leaky_relu":
            y = jnp.maximum(y, 0.2 * y)
        elif act == "sigmoid":
            y = 1.0 / (1.0 + jnp.exp(-y))
        o_ref[...] = y.astype(o_ref.dtype)


def matmul_act(a, b, act):
    """a: (M, K) bf16, b: (K, N) bf16 -> (M, N) bf16 with fused activation."""
    M, K = a.shape
    K2, N = b.shape
    assert K == K2

    # ---- M tiling: round to 16 (bf16 sublane packing); bigger tiles when
    # the layer is small-K / memory-bound.
    m16 = _round_up(M, 16)
    tm_cap = 512 if K <= 128 else 256
    if m16 <= tm_cap:
        tm, Mp = m16, m16
    else:
        tm, Mp = tm_cap, _round_up(M, tm_cap)

    # ---- K tiling: single full-K step whenever it fits (<= 4096); no HBM
    # padding of the patch matrix (full-dim blocks are legal for any K).
    if K <= 4096:
        tk, Kp = K, K
    else:
        Kp = _round_up(K, 128)
        tk = 4096
        while Kp % tk != 0:
            tk //= 2

    # ---- N tiling: no padding needed for OC in {64,128,256,512}; split to
    # 128-lane tiles when M fits one tile so both v7x cores get a program.
    if N <= 128:
        tn, Np = N, N
    else:
        Np = _round_up(N, 128)
        if Mp // tm == 1:
            tn = 128
        elif Np % 256 == 0:
            tn = 256
        else:
            tn = 128

    a_p = a if (Mp == M and Kp == K) else jnp.pad(a, ((0, Mp - M), (0, Kp - K)))
    b_p = b if (Kp == K and Np == N) else jnp.pad(b, ((0, Kp - K), (0, Np - N)))

    grid = (Mp // tm, Np // tn, Kp // tk)
    kernel = functools.partial(_matmul_act_kernel, act=act)

    out = pl.pallas_call(
        kernel,
        out_shape=jax.ShapeDtypeStruct((Mp, Np), jnp.bfloat16),
        grid_spec=pltpu.PrefetchScalarGridSpec(
            num_scalar_prefetch=0,
            grid=grid,
            in_specs=[
                pl.BlockSpec((tm, tk), lambda i, j, k: (i, k)),
                pl.BlockSpec((tk, tn), lambda i, j, k: (k, j)),
            ],
            out_specs=pl.BlockSpec((tm, tn), lambda i, j, k: (i, j)),
            scratch_shapes=[pltpu.VMEM((tm, tn), jnp.float32)],
        ),
        compiler_params=pltpu.CompilerParams(
            dimension_semantics=("parallel", "parallel", "arbitrary"),
            vmem_limit_bytes=32 * 1024 * 1024),
    )(a_p, b_p)

    if Mp != M or Np != N:
        out = out[:M, :N]
    return out


# ------------------------------ glue (JAX) ----------------------------------

def im2col_nhwc(x, kh, kw, stride, pad):
    """x: (N, H, W, C) bf16 -> patches (N*OH*OW, KH*KW*C), ordering (kh,kw,c)."""
    n, h, w, c = x.shape
    oh = (h + 2 * pad - kh) // stride + 1
    ow = (w + 2 * pad - kw) // stride + 1
    xp = jnp.pad(x, ((0, 0), (pad, pad), (pad, pad), (0, 0)))
    cols = [xp[:, i:i + stride * oh:stride, j:j + stride * ow:stride, :]
            for i in range(kh) for j in range(kw)]
    p = jnp.concatenate(cols, axis=-1)                 # (N, OH, OW, KH*KW*C)
    return p.reshape(n * oh * ow, kh * kw * c), oh, ow


def conv2d_nhwc(x, wmat, kh, kw, stride, pad, act="leaky_relu"):
    """Conv2d on NHWC bf16 activations; wmat is pre-packed (KH*KW*IC, OC) bf16."""
    n = x.shape[0]
    oc = wmat.shape[1]
    patches, oh, ow = im2col_nhwc(x, kh, kw, stride, pad)
    out = matmul_act(patches, wmat, act)               # (N*OH*OW, OC) bf16
    return out.reshape(n, oh, ow, oc)


def spectral_normalize(w, n_iter=1, eps=1e-12):
    """torch.nn.utils.spectral_norm semantics: one power iteration, W / sigma."""
    # TODO(synk): PyTorch keeps a randomly-initialized persistent `u` buffer;
    # a deterministic surrogate is used here, so sigma differs numerically.
    oc = w.shape[0]
    wm = w.reshape(oc, -1)
    u = jnp.cos(jnp.arange(oc, dtype=jnp.float32) * 0.7 + 0.3)
    u = u / (jnp.linalg.norm(u) + eps)
    v = None
    for _ in range(n_iter):
        v = wm.T @ u
        v = v / (jnp.linalg.norm(v) + eps)
        u = wm @ v
        u = u / (jnp.linalg.norm(u) + eps)
    sigma = u @ (wm @ v)
    return w / sigma


# ------------------------------ model setup ---------------------------------

def _init_conv_weight(key, shape):
    # PyTorch Conv2d default init: U(-1/sqrt(fan_in), 1/sqrt(fan_in))
    fan_in = shape[1] * shape[2] * shape[3]
    bound = 1.0 / jnp.sqrt(jnp.float32(fan_in))
    return jax.random.uniform(key, shape, jnp.float32, -bound, bound)


def make_params(key):
    ks = jax.random.split(key, 6)
    w1 = _init_conv_weight(ks[0], (64, 3, 4, 4))                        # bias=False
    w2 = spectral_normalize(_init_conv_weight(ks[1], (128, 64, 4, 4)))  # bias=False
    w3 = spectral_normalize(_init_conv_weight(ks[2], (256, 128, 4, 4)))
    w4 = spectral_normalize(_init_conv_weight(ks[3], (512, 256, 4, 4)))
    w5 = _init_conv_weight(ks[4], (1, 512, 4, 4))                       # bias=True
    bnd = 1.0 / jnp.sqrt(jnp.float32(512 * 4 * 4))
    b5 = jax.random.uniform(ks[5], (1,), jnp.float32, -bnd, bnd)
    return (w1, w2, w3, w4, w5, b5)


def _pack_conv_weight(w):
    """OIHW f32 -> im2col layout (KH*KW*IC, OC), bf16."""
    oc, ic, kh, kw = w.shape
    return w.transpose(2, 3, 1, 0).reshape(kh * kw * ic, oc).astype(jnp.bfloat16)


def prepare_params(params):
    """One-time weight repacking (layout + bf16) so the forward does no
    per-call transpose / pad / cast of the weights."""
    w1, w2, w3, w4, w5, b5 = params
    wm1 = _pack_conv_weight(w1)                 # (  48,  64)
    wm2 = _pack_conv_weight(w2)                 # (1024, 128)
    wm3 = _pack_conv_weight(w3)                 # (2048, 256)
    wm4 = _pack_conv_weight(w4)                 # (4096, 512)
    wv5 = _pack_conv_weight(w5).reshape(-1)     # (8192,)  -- OC=1 head
    return (wm1, wm2, wm3, wm4, wv5, b5.astype(jnp.float32))


def discriminator(x_nchw, prepared):
    wm1, wm2, wm3, wm4, wv5, b5 = prepared
    # NCHW -> NHWC and cast to bf16 once, at model entry.
    h = x_nchw.transpose(0, 2, 3, 1).astype(jnp.bfloat16)
    h = conv2d_nhwc(h, wm1, 4, 4, 2, 1)          # (N, 32, 32,  64)
    h = conv2d_nhwc(h, wm2, 4, 4, 2, 1)          # (N, 16, 16, 128)
    h = conv2d_nhwc(h, wm3, 4, 4, 2, 1)          # (N,  8,  8, 256)
    h = conv2d_nhwc(h, wm4, 4, 4, 2, 1)          # (N,  4,  4, 512)
    # OC=1 head: the 4x4 valid conv covers the whole 4x4 map, so it is a plain
    # per-sample reduction (per perf review; avoids padding N from 1 to 128).
    n = h.shape[0]
    flat = h.reshape(n, -1)                      # (N, 8192), (h,w,c)==(kh,kw,ic)
    logits = jnp.dot(flat, wv5, preferred_element_type=jnp.float32) + b5[0]
    out = jax.nn.sigmoid(logits).astype(jnp.float32)
    return out.reshape(n, 1, 1, 1)               # back to NCHW


if __name__ == "__main__":
    key = jax.random.PRNGKey(0)
    pkey, xkey = jax.random.split(key)
    prepared = prepare_params(make_params(pkey))
    # Smallest spatial size compatible with the architecture (final 4x4 valid conv).
    x = jax.random.normal(xkey, (2, 3, 64, 64), jnp.float32)

    out = jax.jit(lambda x: discriminator(x, prepared))(x)
    jax.block_until_ready(out)
    assert out.shape == (2, 1, 1, 1)
    assert bool(jnp.all((out >= 0.0) & (out <= 1.0)))
    print("KERNEL_OK")
</pallas_src>

<mosaic_0001>
module attributes {stable_mosaic.version = 11 : i64} {
  func.func @_matmul_act_kernel(%arg0: i32, %arg1: i32, %arg2: i32, %arg3: memref<512x48xbf16, #tpu.memory_space<vmem>>, %arg4: memref<48x64xbf16, #tpu.memory_space<vmem>>, %arg5: memref<512x64xbf16, #tpu.memory_space<vmem>>, %arg6: memref<512x64xf32, #tpu.memory_space<vmem>>) attributes {dimension_semantics = [#tpu.dimension_semantics<parallel>, #tpu.dimension_semantics<parallel>, #tpu.dimension_semantics<arbitrary>], iteration_bounds = array<i64: 4, 1, 1>, scalar_prefetch = 0 : i64, scratch_operands = 1 : i64, tpu.core_type = #tpu.core_type<tc>, window_params = [{transform_indices = @transform_0, window_bounds = array<i64: 512, 48>}, {transform_indices = @transform_1, window_bounds = array<i64: 48, 64>}, {transform_indices = @transform_2, window_bounds = array<i64: 512, 64>}]} {
    %c0_i32 = arith.constant 0 : i32
    %0 = arith.cmpi eq, %arg2, %c0_i32 : i32
    %1 = arith.extui %0 : i1 to i32
    %c0_i32_0 = arith.constant 0 : i32
    %2 = arith.cmpi ne, %1, %c0_i32_0 : i32
    scf.if %2 {
      %cst_10 = arith.constant 0.000000e+00 : f32
      %12 = vector.broadcast %cst_10 : f32 to vector<512x64xf32>
      %c0_11 = arith.constant 0 : index
      %c0_12 = arith.constant 0 : index
      %13 = vector.load %arg6[%c0_11, %c0_12] : memref<512x64xf32, #tpu.memory_space<vmem>>, vector<512x64xf32>
      tpu.vector_store %arg6[%c0_11, %c0_12], %12 {strides = array<i32>} : memref<512x64xf32, #tpu.memory_space<vmem>>, vector<512x64xf32>,
    } else {
    }
    %c0 = arith.constant 0 : index
    %c0_1 = arith.constant 0 : index
    %3 = vector.load %arg6[%c0, %c0_1] : memref<512x64xf32, #tpu.memory_space<vmem>>, vector<512x64xf32>
    %c0_2 = arith.constant 0 : index
    %c0_3 = arith.constant 0 : index
    %4 = vector.load %arg3[%c0_2, %c0_3] : memref<512x48xbf16, #tpu.memory_space<vmem>>, vector<512x48xbf16>
    %c0_4 = arith.constant 0 : index
    %c0_5 = arith.constant 0 : index
    %5 = vector.load %arg4[%c0_4, %c0_5] : memref<48x64xbf16, #tpu.memory_space<vmem>>, vector<48x64xbf16>
    %cst = arith.constant dense<0.000000e+00> : vector<512x64xf32>
    %6 = tpu.matmul %4, %5, %cst {dimension_numbers = #tpu.dot_dimension_numbers<[1], [0], [0], [1], [0, 0, 1, 1], [], []>} : vector<512x48xbf16>, vector<48x64xbf16>, vector<512x64xf32> -> vector<512x64xf32>
    %7 = arith.addf %3, %6 : vector<512x64xf32>
    %c0_6 = arith.constant 0 : index
    %c0_7 = arith.constant 0 : index
    %8 = vector.load %arg6[%c0_6, %c0_7] : memref<512x64xf32, #tpu.memory_space<vmem>>, vector<512x64xf32>
    tpu.vector_store %arg6[%c0_6, %c0_7], %7 {strides = array<i32>} : memref<512x64xf32, #tpu.memory_space<vmem>>, vector<512x64xf32>,
    %c0_i32_8 = arith.constant 0 : i32
    %9 = arith.cmpi eq, %arg2, %c0_i32_8 : i32
    %10 = arith.extui %9 : i1 to i32
    %c0_i32_9 = arith.constant 0 : i32
    %11 = arith.cmpi ne, %10, %c0_i32_9 : i32
    scf.if %11 {
      %c0_10 = arith.constant 0 : index
      %c0_11 = arith.constant 0 : index
      %12 = vector.load %arg6[%c0_10, %c0_11] : memref<512x64xf32, #tpu.memory_space<vmem>>, vector<512x64xf32>
      %cst_12 = arith.constant 2.000000e-01 : f32
      %13 = vector.broadcast %cst_12 : f32 to vector<512x64xf32>
      %14 = arith.mulf %13, %12 : vector<512x64xf32>
      %15 = arith.maximumf %12, %14 : vector<512x64xf32>
      %16 = arith.truncf %15 : vector<512x64xf32> to vector<512x64xbf16>
      %c0_13 = arith.constant 0 : index
      %c0_14 = arith.constant 0 : index
      %17 = vector.load %arg5[%c0_13, %c0_14] : memref<512x64xbf16, #tpu.memory_space<vmem>>, vector<512x64xbf16>
      tpu.vector_store %arg5[%c0_13, %c0_14], %16 {strides = array<i32>} : memref<512x64xbf16, #tpu.memory_space<vmem>>, vector<512x64xbf16>,
    } else {
    }
    return
  }
  func.func @transform_0(%arg0: i32, %arg1: i32, %arg2: i32) -> (i32, i32) {
    %c0_i32 = arith.constant 0 : i32
    return %arg0, %arg2 : i32, i32
  }
  func.func @transform_1(%arg0: i32, %arg1: i32, %arg2: i32) -> (i32, i32) {
    %c0_i32 = arith.constant 0 : i32
    return %arg2, %arg1 : i32, i32
  }
  func.func @transform_2(%arg0: i32, %arg1: i32, %arg2: i32) -> (i32, i32) {
    %c0_i32 = arith.constant 0 : i32
    return %arg0, %arg1 : i32, i32
  }
}

module attributes {stable_mosaic.version = 11 : i64} {
  func.func @_matmul_act_kernel(%arg0: i32, %arg1: i32, %arg2: i32, %arg3: memref<256x1024xbf16, #tpu.memory_space<vmem>>, %arg4: memref<1024x128xbf16, #tpu.memory_space<vmem>>, %arg5: memref<256x128xbf16, #tpu.memory_space<vmem>>, %arg6: memref<256x128xf32, #tpu.memory_space<vmem>>) attributes {dimension_semantics = [#tpu.dimension_semantics<parallel>, #tpu.dimension_semantics<parallel>, #tpu.dimension_semantics<arbitrary>], iteration_bounds = array<i64: 2, 1, 1>, scalar_prefetch = 0 : i64, scratch_operands = 1 : i64, tpu.core_type = #tpu.core_type<tc>, window_params = [{transform_indices = @transform_0, window_bounds = array<i64: 256, 1024>}, {transform_indices = @transform_1, window_bounds = array<i64: 1024, 128>}, {transform_indices = @transform_2, window_bounds = array<i64: 256, 128>}]} {
    %c0_i32 = arith.constant 0 : i32
    %0 = arith.cmpi eq, %arg2, %c0_i32 : i32
    %1 = arith.extui %0 : i1 to i32
    %c0_i32_0 = arith.constant 0 : i32
    %2 = arith.cmpi ne, %1, %c0_i32_0 : i32
    scf.if %2 {
      %cst_10 = arith.constant 0.000000e+00 : f32
      %12 = vector.broadcast %cst_10 : f32 to vector<256x128xf32>
      %c0_11 = arith.constant 0 : index
      %c0_12 = arith.constant 0 : index
      %13 = vector.load %arg6[%c0_11, %c0_12] : memref<256x128xf32, #tpu.memory_space<vmem>>, vector<256x128xf32>
      tpu.vector_store %arg6[%c0_11, %c0_12], %12 {strides = array<i32>} : memref<256x128xf32, #tpu.memory_space<vmem>>, vector<256x128xf32>,
    } else {
    }
    %c0 = arith.constant 0 : index
    %c0_1 = arith.constant 0 : index
    %3 = vector.load %arg6[%c0, %c0_1] : memref<256x128xf32, #tpu.memory_space<vmem>>, vector<256x128xf32>
    %c0_2 = arith.constant 0 : index
    %c0_3 = arith.constant 0 : index
    %4 = vector.load %arg3[%c0_2, %c0_3] : memref<256x1024xbf16, #tpu.memory_space<vmem>>, vector<256x1024xbf16>
    %c0_4 = arith.constant 0 : index
    %c0_5 = arith.constant 0 : index
    %5 = vector.load %arg4[%c0_4, %c0_5] : memref<1024x128xbf16, #tpu.memory_space<vmem>>, vector<1024x128xbf16>
    %cst = arith.constant dense<0.000000e+00> : vector<256x128xf32>
    %6 = tpu.matmul %4, %5, %cst {dimension_numbers = #tpu.dot_dimension_numbers<[1], [0], [0], [1], [0, 0, 1, 1], [], []>} : vector<256x1024xbf16>, vector<1024x128xbf16>, vector<256x128xf32> -> vector<256x128xf32>
    %7 = arith.addf %3, %6 : vector<256x128xf32>
    %c0_6 = arith.constant 0 : index
    %c0_7 = arith.constant 0 : index
    %8 = vector.load %arg6[%c0_6, %c0_7] : memref<256x128xf32, #tpu.memory_space<vmem>>, vector<256x128xf32>
    tpu.vector_store %arg6[%c0_6, %c0_7], %7 {strides = array<i32>} : memref<256x128xf32, #tpu.memory_space<vmem>>, vector<256x128xf32>,
    %c0_i32_8 = arith.constant 0 : i32
    %9 = arith.cmpi eq, %arg2, %c0_i32_8 : i32
    %10 = arith.extui %9 : i1 to i32
    %c0_i32_9 = arith.constant 0 : i32
    %11 = arith.cmpi ne, %10, %c0_i32_9 : i32
    scf.if %11 {
      %c0_10 = arith.constant 0 : index
      %c0_11 = arith.constant 0 : index
      %12 = vector.load %arg6[%c0_10, %c0_11] : memref<256x128xf32, #tpu.memory_space<vmem>>, vector<256x128xf32>
      %cst_12 = arith.constant 2.000000e-01 : f32
      %13 = vector.broadcast %cst_12 : f32 to vector<256x128xf32>
      %14 = arith.mulf %13, %12 : vector<256x128xf32>
      %15 = arith.maximumf %12, %14 : vector<256x128xf32>
      %16 = arith.truncf %15 : vector<256x128xf32> to vector<256x128xbf16>
      %c0_13 = arith.constant 0 : index
      %c0_14 = arith.constant 0 : index
      %17 = vector.load %arg5[%c0_13, %c0_14] : memref<256x128xbf16, #tpu.memory_space<vmem>>, vector<256x128xbf16>
      tpu.vector_store %arg5[%c0_13, %c0_14], %16 {strides = array<i32>} : memref<256x128xbf16, #tpu.memory_space<vmem>>, vector<256x128xbf16>,
    } else {
    }
    return
  }
  func.func @transform_0(%arg0: i32, %arg1: i32, %arg2: i32) -> (i32, i32) {
    %c0_i32 = arith.constant 0 : i32
    return %arg0, %arg2 : i32, i32
  }
  func.func @transform_1(%arg0: i32, %arg1: i32, %arg2: i32) -> (i32, i32) {
    %c0_i32 = arith.constant 0 : i32
    return %arg2, %arg1 : i32, i32
  }
  func.func @transform_2(%arg0: i32, %arg1: i32, %arg2: i32) -> (i32, i32) {
    %c0_i32 = arith.constant 0 : i32
    return %arg0, %arg1 : i32, i32
  }
}

module attributes {stable_mosaic.version = 11 : i64} {
  func.func @_matmul_act_kernel(%arg0: i32, %arg1: i32, %arg2: i32, %arg3: memref<128x2048xbf16, #tpu.memory_space<vmem>>, %arg4: memref<2048x128xbf16, #tpu.memory_space<vmem>>, %arg5: memref<128x128xbf16, #tpu.memory_space<vmem>>, %arg6: memref<128x128xf32, #tpu.memory_space<vmem>>) attributes {dimension_semantics = [#tpu.dimension_semantics<parallel>, #tpu.dimension_semantics<parallel>, #tpu.dimension_semantics<arbitrary>], iteration_bounds = array<i64: 1, 2, 1>, scalar_prefetch = 0 : i64, scratch_operands = 1 : i64, tpu.core_type = #tpu.core_type<tc>, window_params = [{transform_indices = @transform_0, window_bounds = array<i64: 128, 2048>}, {transform_indices = @transform_1, window_bounds = array<i64: 2048, 128>}, {transform_indices = @transform_2, window_bounds = array<i64: 128, 128>}]} {
    %c0_i32 = arith.constant 0 : i32
    %0 = arith.cmpi eq, %arg2, %c0_i32 : i32
    %1 = arith.extui %0 : i1 to i32
    %c0_i32_0 = arith.constant 0 : i32
    %2 = arith.cmpi ne, %1, %c0_i32_0 : i32
    scf.if %2 {
      %cst_10 = arith.constant 0.000000e+00 : f32
      %12 = vector.broadcast %cst_10 : f32 to vector<128x128xf32>
      %c0_11 = arith.constant 0 : index
      %c0_12 = arith.constant 0 : index
      %13 = vector.load %arg6[%c0_11, %c0_12] : memref<128x128xf32, #tpu.memory_space<vmem>>, vector<128x128xf32>
      tpu.vector_store %arg6[%c0_11, %c0_12], %12 {strides = array<i32>} : memref<128x128xf32, #tpu.memory_space<vmem>>, vector<128x128xf32>,
    } else {
    }
    %c0 = arith.constant 0 : index
    %c0_1 = arith.constant 0 : index
    %3 = vector.load %arg6[%c0, %c0_1] : memref<128x128xf32, #tpu.memory_space<vmem>>, vector<128x128xf32>
    %c0_2 = arith.constant 0 : index
    %c0_3 = arith.constant 0 : index
    %4 = vector.load %arg3[%c0_2, %c0_3] : memref<128x2048xbf16, #tpu.memory_space<vmem>>, vector<128x2048xbf16>
    %c0_4 = arith.constant 0 : index
    %c0_5 = arith.constant 0 : index
    %5 = vector.load %arg4[%c0_4, %c0_5] : memref<2048x128xbf16, #tpu.memory_space<vmem>>, vector<2048x128xbf16>
    %cst = arith.constant dense<0.000000e+00> : vector<128x128xf32>
    %6 = tpu.matmul %4, %5, %cst {dimension_numbers = #tpu.dot_dimension_numbers<[1], [0], [0], [1], [0, 0, 1, 1], [], []>} : vector<128x2048xbf16>, vector<2048x128xbf16>, vector<128x128xf32> -> vector<128x128xf32>
    %7 = arith.addf %3, %6 : vector<128x128xf32>
    %c0_6 = arith.constant 0 : index
    %c0_7 = arith.constant 0 : index
    %8 = vector.load %arg6[%c0_6, %c0_7] : memref<128x128xf32, #tpu.memory_space<vmem>>, vector<128x128xf32>
    tpu.vector_store %arg6[%c0_6, %c0_7], %7 {strides = array<i32>} : memref<128x128xf32, #tpu.memory_space<vmem>>, vector<128x128xf32>,
    %c0_i32_8 = arith.constant 0 : i32
    %9 = arith.cmpi eq, %arg2, %c0_i32_8 : i32
    %10 = arith.extui %9 : i1 to i32
    %c0_i32_9 = arith.constant 0 : i32
    %11 = arith.cmpi ne, %10, %c0_i32_9 : i32
    scf.if %11 {
      %c0_10 = arith.constant 0 : index
      %c0_11 = arith.constant 0 : index
      %12 = vector.load %arg6[%c0_10, %c0_11] : memref<128x128xf32, #tpu.memory_space<vmem>>, vector<128x128xf32>
      %cst_12 = arith.constant 2.000000e-01 : f32
      %13 = vector.broadcast %cst_12 : f32 to vector<128x128xf32>
      %14 = arith.mulf %13, %12 : vector<128x128xf32>
      %15 = arith.maximumf %12, %14 : vector<128x128xf32>
      %16 = arith.truncf %15 : vector<128x128xf32> to vector<128x128xbf16>
      %c0_13 = arith.constant 0 : index
      %c0_14 = arith.constant 0 : index
      %17 = vector.load %arg5[%c0_13, %c0_14] : memref<128x128xbf16, #tpu.memory_space<vmem>>, vector<128x128xbf16>
      tpu.vector_store %arg5[%c0_13, %c0_14], %16 {strides = array<i32>} : memref<128x128xbf16, #tpu.memory_space<vmem>>, vector<128x128xbf16>,
    } else {
    }
    return
  }
  func.func @transform_0(%arg0: i32, %arg1: i32, %arg2: i32) -> (i32, i32) {
    %c0_i32 = arith.constant 0 : i32
    return %arg0, %arg2 : i32, i32
  }
  func.func @transform_1(%arg0: i32, %arg1: i32, %arg2: i32) -> (i32, i32) {
    %c0_i32 = arith.constant 0 : i32
    return %arg2, %arg1 : i32, i32
  }
  func.func @transform_2(%arg0: i32, %arg1: i32, %arg2: i32) -> (i32, i32) {
    %c0_i32 = arith.constant 0 : i32
    return %arg0, %arg1 : i32, i32
  }
}

module attributes {stable_mosaic.version = 11 : i64} {
  func.func @_matmul_act_kernel(%arg0: i32, %arg1: i32, %arg2: i32, %arg3: memref<32x4096xbf16, #tpu.memory_space<vmem>>, %arg4: memref<4096x128xbf16, #tpu.memory_space<vmem>>, %arg5: memref<32x128xbf16, #tpu.memory_space<vmem>>, %arg6: memref<32x128xf32, #tpu.memory_space<vmem>>) attributes {dimension_semantics = [#tpu.dimension_semantics<parallel>, #tpu.dimension_semantics<parallel>, #tpu.dimension_semantics<arbitrary>], iteration_bounds = array<i64: 1, 4, 1>, scalar_prefetch = 0 : i64, scratch_operands = 1 : i64, tpu.core_type = #tpu.core_type<tc>, window_params = [{transform_indices = @transform_0, window_bounds = array<i64: 32, 4096>}, {transform_indices = @transform_1, window_bounds = array<i64: 4096, 128>}, {transform_indices = @transform_2, window_bounds = array<i64: 32, 128>}]} {
    %c0_i32 = arith.constant 0 : i32
    %0 = arith.cmpi eq, %arg2, %c0_i32 : i32
    %1 = arith.extui %0 : i1 to i32
    %c0_i32_0 = arith.constant 0 : i32
    %2 = arith.cmpi ne, %1, %c0_i32_0 : i32
    scf.if %2 {
      %cst_10 = arith.constant 0.000000e+00 : f32
      %12 = vector.broadcast %cst_10 : f32 to vector<32x128xf32>
      %c0_11 = arith.constant 0 : index
      %c0_12 = arith.constant 0 : index
      %13 = vector.load %arg6[%c0_11, %c0_12] : memref<32x128xf32, #tpu.memory_space<vmem>>, vector<32x128xf32>
      tpu.vector_store %arg6[%c0_11, %c0_12], %12 {strides = array<i32>} : memref<32x128xf32, #tpu.memory_space<vmem>>, vector<32x128xf32>,
    } else {
    }
    %c0 = arith.constant 0 : index
    %c0_1 = arith.constant 0 : index
    %3 = vector.load %arg6[%c0, %c0_1] : memref<32x128xf32, #tpu.memory_space<vmem>>, vector<32x128xf32>
    %c0_2 = arith.constant 0 : index
    %c0_3 = arith.constant 0 : index
    %4 = vector.load %arg3[%c0_2, %c0_3] : memref<32x4096xbf16, #tpu.memory_space<vmem>>, vector<32x4096xbf16>
    %c0_4 = arith.constant 0 : index
    %c0_5 = arith.constant 0 : index
    %5 = vector.load %arg4[%c0_4, %c0_5] : memref<4096x128xbf16, #tpu.memory_space<vmem>>, vector<4096x128xbf16>
    %cst = arith.constant dense<0.000000e+00> : vector<32x128xf32>
    %6 = tpu.matmul %4, %5, %cst {dimension_numbers = #tpu.dot_dimension_numbers<[1], [0], [0], [1], [0, 0, 1, 1], [], []>} : vector<32x4096xbf16>, vector<4096x128xbf16>, vector<32x128xf32> -> vector<32x128xf32>
    %7 = arith.addf %3, %6 : vector<32x128xf32>
    %c0_6 = arith.constant 0 : index
    %c0_7 = arith.constant 0 : index
    %8 = vector.load %arg6[%c0_6, %c0_7] : memref<32x128xf32, #tpu.memory_space<vmem>>, vector<32x128xf32>
    tpu.vector_store %arg6[%c0_6, %c0_7], %7 {strides = array<i32>} : memref<32x128xf32, #tpu.memory_space<vmem>>, vector<32x128xf32>,
    %c0_i32_8 = arith.constant 0 : i32
    %9 = arith.cmpi eq, %arg2, %c0_i32_8 : i32
    %10 = arith.extui %9 : i1 to i32
    %c0_i32_9 = arith.constant 0 : i32
    %11 = arith.cmpi ne, %10, %c0_i32_9 : i32
    scf.if %11 {
      %c0_10 = arith.constant 0 : index
      %c0_11 = arith.constant 0 : index
      %12 = vector.load %arg6[%c0_10, %c0_11] : memref<32x128xf32, #tpu.memory_space<vmem>>, vector<32x128xf32>
      %cst_12 = arith.constant 2.000000e-01 : f32
      %13 = vector.broadcast %cst_12 : f32 to vector<32x128xf32>
      %14 = arith.mulf %13, %12 : vector<32x128xf32>
      %15 = arith.maximumf %12, %14 : vector<32x128xf32>
      %16 = arith.truncf %15 : vector<32x128xf32> to vector<32x128xbf16>
      %c0_13 = arith.constant 0 : index
      %c0_14 = arith.constant 0 : index
      %17 = vector.load %arg5[%c0_13, %c0_14] : memref<32x128xbf16, #tpu.memory_space<vmem>>, vector<32x128xbf16>
      tpu.vector_store %arg5[%c0_13, %c0_14], %16 {strides = array<i32>} : memref<32x128xbf16, #tpu.memory_space<vmem>>, vector<32x128xbf16>,
    } else {
    }
    return
  }
  func.func @transform_0(%arg0: i32, %arg1: i32, %arg2: i32) -> (i32, i32) {
    %c0_i32 = arith.constant 0 : i32
    return %arg0, %arg2 : i32, i32
  }
  func.func @transform_1(%arg0: i32, %arg1: i32, %arg2: i32) -> (i32, i32) {
    %c0_i32 = arith.constant 0 : i32
    return %arg2, %arg1 : i32, i32
  }
  func.func @transform_2(%arg0: i32, %arg1: i32, %arg2: i32) -> (i32, i32) {
    %c0_i32 = arith.constant 0 : i32
    return %arg0, %arg1 : i32, i32
  }
}

</mosaic_0001>

<bundles_post_ra>
// kernel: _lambda_.4
= control target key start
LH: loop header
LB: loop body
LE: loop exit
PB: predicated region body
PF: predicated region fallthrough
CT: control target
= control target key end

     0   :  { %s1711_s9 = smov 0   ;;  %s1713_s10 = smov 0   ;;  %s2181_s0 = inlined_call_operand.vmem [shape: bf16[2048,48], index: 0, kind: input, shape index: {}]   ;;  %s2182_s1 = inlined_call_operand.vmem [shape: bf16[48,64], index: 1, kind: input, shape index: {}]   ;;  %s2183_s2 = inlined_call_operand.vmem [shape: bf16[2048,64], index: 2, kind: output, shape index: {}]  }
   0x1   :  { %s1715_s11 = smov 0  }
   0x2 LB: > { %s31_s12 = sadd.s32 1, %s1689_s10  ;;  %p1423_p0 = scmp.ge.s32.totalorder %s1693_s11, 1  ;;  %s1693_s11 = sphi %s1715_s11, %s12_s11   ;;  %s1689_s10 = sphi %s1713_s10, %s2185_s10   ;;  %s1685_s9 = sphi %s1711_s9, %s2184_s9  }
   0x3   : > { %p33_p1 = scmp.ge.s32.totalorder %s31_s12, 4  ;;  %p155_p2 = scmp.lt.s32.totalorder %s1693_s11, 5 }
   0x5   : > { %s2187_s12 = smov (%p33_p1, %s31_s12), 0  ;;  %p156_p3 = pnand %p1423_p0, %p155_p2 }
   0x6   : > { %s1424_s15 = sshll.u32 (!%p156_p3), %s1685_s9, 6 }
   0x7   : > { %159 = sbr.rel (%p156_p3) target bundleno = 301 (0x12d), region = 28  ;;  %p192_p4 = scmp.lt.s32.totalorder (!%p156_p3), %s1424_s15, 255 }
   0xc   : > { %v1636_v0 = vld [vmem:[%s2182_s1 + $0x10] sm:$0xff]  ;;  %v1635_v1 = vld [vmem:[%s2182_s1 + $0x8] sm:$0xff]  ;;  %s2189_s15 = smov (!%p192_p4, %s1424_s15), 255  ;;  %v1634_v2 = vld [vmem:[%s2182_s1] sm:$0xff]  ;;  %vm600_vm0 = vcmask 392192   ;;  %vm223_vm1 = vcmask 523264  }
   0xd   : > { %702 = vmatpush.bf16.msra.mxu0 %v1636_v0  ;;  %1637 = vmatpush.bf16.msra.mxu1 %v1636_v0  ;;  %s1425_s18 = sshll.u32 %s2189_s15, 2  ;;  %v1695_v27 = vmov 0.0   ;;  %vm1254_vm2 = vcmask 519168  }
   0xe   : > { %1638 = vmatpush.bf16.msra.mxu2 %v1636_v0  ;;  %1639 = vmatpush.bf16.msra.mxu3 %v1636_v0  ;;  %s1746_s23 = scalar_lea.vmem %s2181_s0, %s1425_s18  ;;  %224 = vst.msk [vmem:[#allocation2] sm:$0xff] %vm223_vm1, %v1695_v27  ;;  %s1930_s26 = scalar_lea.vmem %s2183_s2, %s1425_s18 }
   0xf   : > { %v1602_v3 = vld [vmem:[%s1746_s23] sm:$0xff]  ;;  %v1603_v7 = vld [vmem:[%s1746_s23 + $0x8] sm:$0xff]  ;;  %v1604_v11 = vld [vmem:[%s1746_s23 + $0x10] sm:$0xff]  ;;  %225 = vst.msk [vmem:[#allocation2 + $0x8] sm:$0xff] %vm223_vm1, %v1695_v27 }
  0x10   : > { %v1610_v4 = vld [vmem:[%s1746_s23 + $0x40] sm:$0xff]  ;;  %v1611_v8 = vld [vmem:[%s1746_s23 + $0x48] sm:$0xff]  ;;  %v1612_v12 = vld [vmem:[%s1746_s23 + $0x50] sm:$0xff]  ;;  %226 = vst.msk [vmem:[#allocation2 + $0x10] sm:$0xff] %vm223_vm1, %v1695_v27 }
  0x11   : > { %703 = vmatpush.bf16.msra.mxu0 %v1635_v1  ;;  %1640 = vmatpush.bf16.msra.mxu1 %v1635_v1  ;;  %v1618_v5 = vld [vmem:[%s1746_s23 + $0x80] sm:$0xff]  ;;  %v1619_v9 = vld [vmem:[%s1746_s23 + $0x88] sm:$0xff]  ;;  %v1620_v13 = vld [vmem:[%s1746_s23 + $0x90] sm:$0xff]  ;;  %227 = vst.msk [vmem:[#allocation2 + $0x18] sm:$0xff] %vm223_vm1, %v1695_v27 }
  0x12   : > { %1641 = vmatpush.bf16.msra.mxu2 %v1635_v1  ;;  %1642 = vmatpush.bf16.msra.mxu3 %v1635_v1  ;;  %v1626_v6 = vld [vmem:[%s1746_s23 + $0xc0] sm:$0xff]  ;;  %v1627_v10 = vld [vmem:[%s1746_s23 + $0xc8] sm:$0xff]  ;;  %v1628_v14 = vld [vmem:[%s1746_s23 + $0xd0] sm:$0xff]  ;;  %228 = vst.msk [vmem:[#allocation2 + $0x20] sm:$0xff] %vm223_vm1, %v1695_v27 }
  0x13   : > { %v1605_v15 = vld [vmem:[%s1746_s23 + $0x18] sm:$0xff]  ;;  %v1606_v19 = vld [vmem:[%s1746_s23 + $0x20] sm:$0xff]  ;;  %v1607_v23 = vld [vmem:[%s1746_s23 + $0x28] sm:$0xff]  ;;  %229 = vst.msk [vmem:[#allocation2 + $0x28] sm:$0xff] %vm223_vm1, %v1695_v27 }
  0x14   : > { %v1613_v16 = vld [vmem:[%s1746_s23 + $0x58] sm:$0xff]  ;;  %v1614_v20 = vld [vmem:[%s1746_s23 + $0x60] sm:$0xff]  ;;  %v1615_v24 = vld [vmem:[%s1746_s23 + $0x68] sm:$0xff]  ;;  %230 = vst.msk [vmem:[#allocation2 + $0x30] sm:$0xff] %vm223_vm1, %v1695_v27 }
  0x15   : > { %704 = vmatpush.bf16.msra.mxu0 %v1634_v2  ;;  %1643 = vmatpush.bf16.msra.mxu1 %v1634_v2  ;;  %v1621_v17 = vld [vmem:[%s1746_s23 + $0x98] sm:$0xff]  ;;  %v1622_v21 = vld [vmem:[%s1746_s23 + $0xa0] sm:$0xff]  ;;  %v1623_v25 = vld [vmem:[%s1746_s23 + $0xa8] sm:$0xff]  ;;  %231 = vst.msk [vmem:[#allocation2 + $0x38] sm:$0xff] %vm223_vm1, %v1695_v27 }
  0x16   : > { %1644 = vmatpush.bf16.msra.mxu2 %v1634_v2  ;;  %1645 = vmatpush.bf16.msra.mxu3 %v1634_v2  ;;  %v1629_v18 = vld [vmem:[%s1746_s23 + $0xd8] sm:$0xff]  ;;  %v1630_v22 = vld [vmem:[%s1746_s23 + $0xe0] sm:$0xff]  ;;  %v1631_v26 = vld [vmem:[%s1746_s23 + $0xe8] sm:$0xff]  ;;  %232 = vst.msk [vmem:[#allocation2 + $0x40] sm:$0xff] %vm223_vm1, %v1695_v27 }
  0x17   : > { %233 = vst.msk [vmem:[#allocation2 + $0x48] sm:$0xff] %vm223_vm1, %v1695_v27  ;;  %v1608_v28 = vld [vmem:[%s1746_s23 + $0x30] sm:$0xff]  ;;  %v1609_v32 = vld [vmem:[%s1746_s23 + $0x38] sm:$0xff]  ;;  %v288_v36 = vld [vmem:[#allocation2] sm:$0xff] }
  0x18   : > { %1568 = vmatmul.msk.bf16.vlgmr.msra.gmra.mxu0 %vm600_vm0, %v1602_v3  ;;  %1576 = vmatmul.msk.bf16.vlgmr.msra.gmra.mxu1 %vm600_vm0, %v1610_v4  ;;  %v1616_v29 = vld [vmem:[%s1746_s23 + $0x70] sm:$0xff]  ;;  %234 = vst.msk [vmem:[#allocation2 + $0x50] sm:$0xff] %vm223_vm1, %v1695_v27  ;;  %v1617_v33 = vld [vmem:[%s1746_s23 + $0x78] sm:$0xff]  ;;  %v289_v56 = vld [vmem:[#allocation2 + $0x8] sm:$0xff] }
  0x19   : > { %1584 = vmatmul.msk.bf16.vlgmr.msra.gmra.mxu2 %vm600_vm0, %v1618_v5  ;;  %1592 = vmatmul.msk.bf16.vlgmr.msra.gmra.mxu3 %vm600_vm0, %v1626_v6  ;;  %v1624_v30 = vld [vmem:[%s1746_s23 + $0xb0] sm:$0xff]  ;;  %235 = vst.msk [vmem:[#allocation2 + $0x58] sm:$0xff] %vm223_vm1, %v1695_v27  ;;  %v1625_v34 = vld [vmem:[%s1746_s23 + $0xb8] sm:$0xff] }
  0x1a   : > { %v1632_v31 = vld [vmem:[%s1746_s23 + $0xf0] sm:$0xff]  ;;  %236 = vst.msk [vmem:[#allocation2 + $0x60] sm:$0xff] %vm223_vm1, %v1695_v27  ;;  %v1633_v35 = vld [vmem:[%s1746_s23 + $0xf8] sm:$0xff] }
  0x1b   : > { %237 = vst.msk [vmem:[#allocation2 + $0x68] sm:$0xff] %vm223_vm1, %v1695_v27  ;;  %v290_v0 = vld [vmem:[#allocation2 + $0x10] sm:$0xff] }
  0x1c   : > { %238 = vst.msk [vmem:[#allocation2 + $0x70] sm:$0xff] %vm223_vm1, %v1695_v27 }
  0x1d   : > { %239 = vst.msk [vmem:[#allocation2 + $0x78] sm:$0xff] %vm223_vm1, %v1695_v27 }
  0x1e   : > { %240 = vst.msk [vmem:[#allocation2 + $0x80] sm:$0xff] %vm223_vm1, %v1695_v27 }
  0x1f   : > { %241 = vst.msk [vmem:[#allocation2 + $0x88] sm:$0xff] %vm223_vm1, %v1695_v27 }
  0x20   : > { %242 = vst.msk [vmem:[#allocation2 + $0x90] sm:$0xff] %vm223_vm1, %v1695_v27 }
  0x21   : > { %243 = vst.msk [vmem:[#allocation2 + $0x98] sm:$0xff] %vm223_vm1, %v1695_v27 }
  0x22   : > { %244 = vst.msk [vmem:[#allocation2 + $0xa0] sm:$0xff] %vm223_vm1, %v1695_v27 }
  0x23   : > { %245 = vst.msk [vmem:[#allocation2 + $0xa8] sm:$0xff] %vm223_vm1, %v1695_v27 }
  0x24   : > { %246 = vst.msk [vmem:[#allocation2 + $0xb0] sm:$0xff] %vm223_vm1, %v1695_v27 }
  0x25   : > { %247 = vst.msk [vmem:[#allocation2 + $0xb8] sm:$0xff] %vm223_vm1, %v1695_v27  ;;  %v304_v50 = vld [vmem:[#allocation2 + $0x80] sm:$0xff] }
  0x26   : > { %248 = vst.msk [vmem:[#allocation2 + $0xc0] sm:$0xff] %vm223_vm1, %v1695_v27  ;;  %v305_v58 = vld [vmem:[#allocation2 + $0x88] sm:$0xff] }
  0x27   : > { %249 = vst.msk [vmem:[#allocation2 + $0xc8] sm:$0xff] %vm223_vm1, %v1695_v27  ;;  %v306_v4 = vld [vmem:[#allocation2 + $0x90] sm:$0xff] }
  0x28   : > { %1569 = vmatmul.msk.bf16.gmra.mxu0 %vm600_vm0, %v1603_v7  ;;  %1577 = vmatmul.msk.bf16.gmra.mxu1 %vm600_vm0, %v1611_v8  ;;  %250 = vst.msk [vmem:[#allocation2 + $0xd0] sm:$0xff] %vm223_vm1, %v1695_v27 }
  0x29   : > { %1585 = vmatmul.msk.bf16.gmra.mxu2 %vm600_vm0, %v1619_v9  ;;  %1593 = vmatmul.msk.bf16.gmra.mxu3 %vm600_vm0, %v1627_v10  ;;  %251 = vst.msk [vmem:[#allocation2 + $0xd8] sm:$0xff] %vm223_vm1, %v1695_v27 }
  0x2a   : > { %252 = vst.msk [vmem:[#allocation2 + $0xe0] sm:$0xff] %vm223_vm1, %v1695_v27 }
  0x2b   : > { %253 = vst.msk [vmem:[#allocation2 + $0xe8] sm:$0xff] %vm223_vm1, %v1695_v27 }
  0x2c   : > { %254 = vst.msk [vmem:[#allocation2 + $0xf0] sm:$0xff] %vm223_vm1, %v1695_v27 }
  0x2d   : > { %255 = vst.msk [vmem:[#allocation2 + $0xf8] sm:$0xff] %vm223_vm1, %v1695_v27 }
  0x2e   : > { %256 = vst.msk [vmem:[#allocation2 + $0x100] sm:$0xff] %vm223_vm1, %v1695_v27 }
  0x2f   : > { %257 = vst.msk [vmem:[#allocation2 + $0x108] sm:$0xff] %vm223_vm1, %v1695_v27 }
  0x30   : > { %258 = vst.msk [vmem:[#allocation2 + $0x110] sm:$0xff] %vm223_vm1, %v1695_v27 }
  0x31   : > { %259 = vst.msk [vmem:[#allocation2 + $0x118] sm:$0xff] %vm223_vm1, %v1695_v27 }
  0x32   : > { %260 = vst.msk [vmem:[#allocation2 + $0x120] sm:$0xff] %vm223_vm1, %v1695_v27 }
  0x33   : > { %261 = vst.msk [vmem:[#allocation2 + $0x128] sm:$0xff] %vm223_vm1, %v1695_v27 }
  0x34   : > { %262 = vst.msk [vmem:[#allocation2 + $0x130] sm:$0xff] %vm223_vm1, %v1695_v27 }
  0x35   : > { %263 = vst.msk [vmem:[#allocation2 + $0x138] sm:$0xff] %vm223_vm1, %v1695_v27  ;;  %v320_v53 = vld [vmem:[#allocation2 + $0x100] sm:$0xff] }
  0x36   : > { %264 = vst.msk [vmem:[#allocation2 + $0x140] sm:$0xff] %vm223_vm1, %v1695_v27  ;;  %v321_v60 = vld [vmem:[#allocation2 + $0x108] sm:$0xff] }
  0x37   : > { %265 = vst.msk [vmem:[#allocation2 + $0x148] sm:$0xff] %vm223_vm1, %v1695_v27  ;;  %v322_v8 = vld [vmem:[#allocation2 + $0x110] sm:$0xff] }
  0x38   : > { %1570 = vmatmul.msk.bf16.gmra.mxu0 %vm600_vm0, %v1604_v11  ;;  %1578 = vmatmul.msk.bf16.gmra.mxu1 %vm600_vm0, %v1612_v12  ;;  %266 = vst.msk [vmem:[#allocation2 + $0x150] sm:$0xff] %vm223_vm1, %v1695_v27  ;;  %v291_v12 = vld [vmem:[#allocation2 + $0x18] sm:$0xff] }
  0x39   : > { %1586 = vmatmul.msk.bf16.gmra.mxu2 %vm600_vm0, %v1620_v13  ;;  %1594 = vmatmul.msk.bf16.gmra.mxu3 %vm600_vm0, %v1628_v14  ;;  %267 = vst.msk [vmem:[#allocation2 + $0x158] sm:$0xff] %vm223_vm1, %v1695_v27  ;;  %v307_v14 = vld [vmem:[#allocation2 + $0x98] sm:$0xff] }
  0x3a   : > { %268 = vst.msk [vmem:[#allocation2 + $0x160] sm:$0xff] %vm223_vm1, %v1695_v27 }
  0x3b   : > { %269 = vst.msk [vmem:[#allocation2 + $0x168] sm:$0xff] %vm223_vm1, %v1695_v27 }
  0x3c   : > { %270 = vst.msk [vmem:[#allocation2 + $0x170] sm:$0xff] %vm223_vm1, %v1695_v27 }
  0x3d   : > { %271 = vst.msk [vmem:[#allocation2 + $0x178] sm:$0xff] %vm223_vm1, %v1695_v27 }
  0x3e   : > { %272 = vst.msk [vmem:[#allocation2 + $0x180] sm:$0xff] %vm223_vm1, %v1695_v27 }
  0x3f   : > { %273 = vst.msk [vmem:[#allocation2 + $0x188] sm:$0xff] %vm223_vm1, %v1695_v27 }
  0x40   : > { %274 = vst.msk [vmem:[#allocation2 + $0x190] sm:$0xff] %vm223_vm1, %v1695_v27 }
  0x41   : > { %275 = vst.msk [vmem:[#allocation2 + $0x198] sm:$0xff] %vm223_vm1, %v1695_v27 }
  0x42   : > { %276 = vst.msk [vmem:[#allocation2 + $0x1a0] sm:$0xff] %vm223_vm1, %v1695_v27 }
  0x43   : > { %277 = vst.msk [vmem:[#allocation2 + $0x1a8] sm:$0xff] %vm223_vm1, %v1695_v27 }
  0x44   : > { %278 = vst.msk [vmem:[#allocation2 + $0x1b0] sm:$0xff] %vm223_vm1, %v1695_v27 }
  0x45   : > { %279 = vst.msk [vmem:[#allocation2 + $0x1b8] sm:$0xff] %vm223_vm1, %v1695_v27  ;;  %v336_v54 = vld [vmem:[#allocation2 + $0x180] sm:$0xff] }
  0x46   : > { %280 = vst.msk [vmem:[#allocation2 + $0x1c0] sm:$0xff] %vm223_vm1, %v1695_v27  ;;  %v337_v62 = vld [vmem:[#allocation2 + $0x188] sm:$0xff] }
  0x47   : > { %281 = vst.msk [vmem:[#allocation2 + $0x1c8] sm:$0xff] %vm223_vm1, %v1695_v27  ;;  %v338_v10 = vld [vmem:[#allocation2 + $0x190] sm:$0xff] }
  0x48   : > { %1571 = vmatmul.msk.bf16.gmra.mxu0 %vm600_vm0, %v1605_v15  ;;  %1579 = vmatmul.msk.bf16.gmra.mxu1 %vm600_vm0, %v1613_v16  ;;  %282 = vst.msk [vmem:[#allocation2 + $0x1d0] sm:$0xff] %vm223_vm1, %v1695_v27  ;;  %v323_v16 = vld [vmem:[#allocation2 + $0x118] sm:$0xff] }
  0x49   : > { %1587 = vmatmul.msk.bf16.gmra.mxu2 %vm600_vm0, %v1621_v17  ;;  %1595 = vmatmul.msk.bf16.gmra.mxu3 %vm600_vm0, %v1629_v18  ;;  %283 = vst.msk [vmem:[#allocation2 + $0x1d8] sm:$0xff] %vm223_vm1, %v1695_v27 }
  0x4a   : > { %284 = vst.msk [vmem:[#allocation2 + $0x1e0] sm:$0xff] %vm223_vm1, %v1695_v27 }
  0x4b   : > { %285 = vst.msk [vmem:[#allocation2 + $0x1e8] sm:$0xff] %vm223_vm1, %v1695_v27 }
  0x4c   : > { %286 = vst.msk [vmem:[#allocation2 + $0x1f0] sm:$0xff] %vm223_vm1, %v1695_v27 }
  0x4d   : > { %287 = vst.msk [vmem:[#allocation2 + $0x1f8] sm:$0xff] %vm223_vm1, %v1695_v27 }
  0x58   : > { %1572 = vmatmul.msk.bf16.gmra.mxu0 %vm600_vm0, %v1606_v19  ;;  %1580 = vmatmul.msk.bf16.gmra.mxu1 %vm600_vm0, %v1614_v20 }
  0x59   : > { %1588 = vmatmul.msk.bf16.gmra.mxu2 %vm600_vm0, %v1622_v21  ;;  %1596 = vmatmul.msk.bf16.gmra.mxu3 %vm600_vm0, %v1630_v22 }
  0x68   : > { %1573 = vmatmul.msk.bf16.gmra.mxu0 %vm600_vm0, %v1607_v23  ;;  %1581 = vmatmul.msk.bf16.gmra.mxu1 %vm600_vm0, %v1615_v24 }
  0x69   : > { %1589 = vmatmul.msk.bf16.gmra.mxu2 %vm600_vm0, %v1623_v25  ;;  %1597 = vmatmul.msk.bf16.gmra.mxu3 %vm600_vm0, %v1631_v26 }
  0x78   : > { %1574 = vmatmul.msk.bf16.gmra.mxu0 %vm600_vm0, %v1608_v28  ;;  %1582 = vmatmul.msk.bf16.gmra.mxu1 %vm600_vm0, %v1616_v29 }
  0x79   : > { %1590 = vmatmul.msk.bf16.gmra.mxu2 %vm600_vm0, %v1624_v30  ;;  %1598 = vmatmul.msk.bf16.gmra.mxu3 %vm600_vm0, %v1632_v31 }
  0x88   : > { %1575 = vmatmul.msk.bf16.gmra.mxu0 %vm600_vm0, %v1609_v32  ;;  %1583 = vmatmul.msk.bf16.gmra.mxu1 %vm600_vm0, %v1617_v33 }
  0x89   : > { %1591 = vmatmul.msk.bf16.gmra.mxu2 %vm600_vm0, %v1625_v34  ;;  %1599 = vmatmul.msk.bf16.gmra.mxu3 %vm600_vm0, %v1633_v35 }
  0x95   : > { %v706_v37 = vpop.f32.mrf.mxu0  ;;  %v746_v38 = vpop.f32.mrf.mxu1 }
  0x96   : > { %v866_v39 = vadd.f32 %v706_v37, %v288_v36  ;;  %v882_v55 = vadd.f32 %v746_v38, %v304_v50 }
  0x98   : > { %931 = vst.msk [vmem:[#allocation2] sm:$0xff] %vm223_vm1, %v866_v39 }
  0x99   : > { %947 = vst.msk [vmem:[#allocation2 + $0x80] sm:$0xff] %vm223_vm1, %v882_v55 }
  0x9c   : > { %v786_v40 = vpop.f32.mrf.mxu2  ;;  %v826_v41 = vpop.f32.mrf.mxu3 }
  0x9d   : > { %v708_v42 = vpop.f32.mrf.mxu0  ;;  %v748_v43 = vpop.f32.mrf.mxu1  ;;  %v898_v57 = vadd.f32 %v786_v40, %v320_v53  ;;  %v914_v59 = vadd.f32 %v826_v41, %v336_v54 }
  0x9e   : > { %v867_v61 = vadd.f32 %v708_v42, %v289_v56  ;;  %v883_v63 = vadd.f32 %v748_v43, %v305_v58 }
  0x9f   : > { %v998_v44 = vld [vmem:[#allocation2] sm:$0xff]  ;;  %963 = vst.msk [vmem:[#allocation2 + $0x100] sm:$0xff] %vm223_vm1, %v898_v57 }
  0xa0   : > { %v1062_v45 = vmul.f32 0.2, %v998_v44  ;;  %979 = vst.msk [vmem:[#allocation2 + $0x180] sm:$0xff] %vm223_vm1, %v914_v59  ;;  %v1014_v17 = vld [vmem:[#allocation2 + $0x80] sm:$0xff] }
  0xa1   : > { %932 = vst.msk [vmem:[#allocation2 + $0x8] sm:$0xff] %vm223_vm1, %v867_v61  ;;  %v1078_v19 = vmul.f32 0.2, %v1014_v17 }
  0xa2   : > { %v1126_v46 = vmax.f32 %v998_v44, %v1062_v45  ;;  %948 = vst.msk [vmem:[#allocation2 + $0x88] sm:$0xff] %vm223_vm1, %v883_v63 }
  0xa3   : > { %v1142_v29 = vmax.f32 %v1014_v17, %v1078_v19  ;;  %v292_v17 = vld [vmem:[#allocation2 + $0x20] sm:$0xff] }
  0xa4   : > { %v1190_v47 = vpack.c.bf16 %v1126_v46, %v1126_v46  ;;  %v788_v48 = vpop.f32.mrf.mxu2  ;;  %v828_v49 = vpop.f32.mrf.mxu3 }
  0xa5   : > { %v711_v51 = vpop.f32.mrf.mxu0  ;;  %v751_v52 = vpop.f32.mrf.mxu1  ;;  %v899_v3 = vadd.f32 %v788_v48, %v321_v60  ;;  %v915_v7 = vadd.f32 %v828_v49, %v337_v62  ;;  %v1206_v35 = vpack.c.bf16 %v1142_v29, %v1142_v29 }
  0xa6   : > { %1255 = vst.msk [vmem:[%s1930_s26] sm:$0xf] %vm1254_vm2, %v1190_v47  ;;  %v868_v9 = vadd.f32 %v711_v51, %v290_v0  ;;  %v884_v11 = vadd.f32 %v751_v52, %v306_v4  ;;  %v1030_v20 = vld [vmem:[#allocation2 + $0x100] sm:$0xff] }
  0xa7   : > { %964 = vst.msk [vmem:[#allocation2 + $0x108] sm:$0xff] %vm223_vm1, %v899_v3  ;;  %v1094_v24 = vmul.f32 0.2, %v1030_v20  ;;  %v1046_v25 = vld [vmem:[#allocation2 + $0x180] sm:$0xff] }
  0xa8   : > { %980 = vst.msk [vmem:[#allocation2 + $0x188] sm:$0xff] %vm223_vm1, %v915_v7  ;;  %v1110_v30 = vmul.f32 0.2, %v1046_v25  ;;  %v999_v31 = vld [vmem:[#allocation2 + $0x8] sm:$0xff] }
  0xa9   : > { %933 = vst.msk [vmem:[#allocation2 + $0x10] sm:$0xff] %vm223_vm1, %v868_v9  ;;  %v1158_v32 = vmax.f32 %v1030_v20, %v1094_v24  ;;  %v1063_v33 = vmul.f32 0.2, %v999_v31  ;;  %v1015_v34 = vld [vmem:[#allocation2 + $0x88] sm:$0xff]  ;;  %v308_v20 = vld [vmem:[#allocation2 + $0xa0] sm:$0xff] }
  0xaa   : > { %949 = vst.msk [vmem:[#allocation2 + $0x90] sm:$0xff] %vm223_vm1, %v884_v11  ;;  %v1174_v36 = vmax.f32 %v1046_v25, %v1110_v30  ;;  %v1079_v37 = vmul.f32 0.2, %v1015_v34  ;;  %v324_v24 = vld [vmem:[#allocation2 + $0x120] sm:$0xff] }
  0xab   : > { %v1222_v39 = vpack.c.bf16 %v1158_v32, %v1158_v32  ;;  %v1127_v40 = vmax.f32 %v999_v31, %v1063_v33  ;;  %1271 = vst.msk [vmem:[%s1930_s26 + $0x40] sm:$0xf] %vm1254_vm2, %v1206_v35  ;;  %v340_v31 = vld [vmem:[#allocation2 + $0x1a0] sm:$0xff]  ;;  %v293_v35 = vld [vmem:[#allocation2 + $0x28] sm:$0xff] }
  0xac   : > { %v791_v1 = vpop.f32.mrf.mxu2  ;;  %v831_v2 = vpop.f32.mrf.mxu3  ;;  %v1238_v43 = vpack.c.bf16 %v1174_v36, %v1174_v36  ;;  %v1143_v44 = vmax.f32 %v1015_v34, %v1079_v37 }
  0xad   : > { %v713_v5 = vpop.f32.mrf.mxu0  ;;  %v753_v6 = vpop.f32.mrf.mxu1  ;;  %v900_v13 = vadd.f32 %v791_v1, %v322_v8  ;;  %v916_v15 = vadd.f32 %v831_v2, %v338_v10  ;;  %1287 = vst.msk [vmem:[%s1930_s26 + $0x80] sm:$0xf] %vm1254_vm2, %v1222_v39  ;;  %v1191_v47 = vpack.c.bf16 %v1127_v40, %v1127_v40 }
  0xae   : > { %v869_v18 = vadd.f32 %v713_v5, %v291_v12  ;;  %v885_v21 = vadd.f32 %v753_v6, %v307_v14  ;;  %v1031_v38 = vld [vmem:[#allocation2 + $0x108] sm:$0xff]  ;;  %1303 = vst.msk [vmem:[%s1930_s26 + $0xc0] sm:$0xf] %vm1254_vm2, %v1238_v43  ;;  %v1207_v51 = vpack.c.bf16 %v1143_v44, %v1143_v44  ;;  %v339_v14 = vld [vmem:[#allocation2 + $0x198] sm:$0xff]  ;;  %v326_v44 = vld [vmem:[#allocation2 + $0x130] sm:$0xff] }
  0xaf   : > { %965 = vst.msk [vmem:[#allocation2 + $0x110] sm:$0xff] %vm223_vm1, %v900_v13  ;;  %v1095_v41 = vmul.f32 0.2, %v1031_v38  ;;  %v1047_v42 = vld [vmem:[#allocation2 + $0x188] sm:$0xff] }
  0xb0   : > { %981 = vst.msk [vmem:[#allocation2 + $0x190] sm:$0xff] %vm223_vm1, %v916_v15  ;;  %v1111_v45 = vmul.f32 0.2, %v1047_v42  ;;  %v1000_v46 = vld [vmem:[#allocation2 + $0x10] sm:$0xff] }
  0xb1   : > { %934 = vst.msk [vmem:[#allocation2 + $0x18] sm:$0xff] %vm223_vm1, %v869_v18  ;;  %v1159_v48 = vmax.f32 %v1031_v38, %v1095_v41  ;;  %v1064_v49 = vmul.f32 0.2, %v1000_v46  ;;  %v1016_v50 = vld [vmem:[#allocation2 + $0x90] sm:$0xff]  ;;  %v325_v38 = vld [vmem:[#allocation2 + $0x128] sm:$0xff] }
  0xb2   : > { %950 = vst.msk [vmem:[#allocation2 + $0x98] sm:$0xff] %vm223_vm1, %v885_v21  ;;  %v1175_v52 = vmax.f32 %v1047_v42, %v1111_v45  ;;  %v1080_v53 = vmul.f32 0.2, %v1016_v50  ;;  %v294_v41 = vld [vmem:[#allocation2 + $0x30] sm:$0xff] }
  0xb3   : > { %1256 = vst.msk [vmem:[%s1930_s26 + $0x4] sm:$0xf] %vm1254_vm2, %v1191_v47  ;;  %v1223_v57 = vpack.c.bf16 %v1159_v48, %v1159_v48  ;;  %v1128_v58 = vmax.f32 %v1000_v46, %v1064_v49  ;;  %v310_v42 = vld [vmem:[#allocation2 + $0xb0] sm:$0xff] }
  0xb4   : > { %v793_v22 = vpop.f32.mrf.mxu2  ;;  %v1959_v23 = vpop.f32.mrf.mxu3  ;;  %1272 = vst.msk [vmem:[%s1930_s26 + $0x44] sm:$0xf] %vm1254_vm2, %v1207_v51  ;;  %v1239_v63 = vpack.c.bf16 %v1175_v52, %v1175_v52  ;;  %v1144_v0 = vmax.f32 %v1016_v50, %v1080_v53  ;;  %v342_v48 = vld [vmem:[#allocation2 + $0x1b0] sm:$0xff]  ;;  %v295_v52 = vld [vmem:[#allocation2 + $0x38] sm:$0xff] }
  0xb5   : > { %v901_v26 = vadd.f32 %v793_v22, %v323_v16  ;;  %v1962_v27 = vpop.f32.mrf.mxu0  ;;  %v1964_v28 = vpop.f32.mrf.mxu1  ;;  %1288 = vst.msk [vmem:[%s1930_s26 + $0x84] sm:$0xf] %vm1254_vm2, %v1223_v57  ;;  %v1192_v3 = vpack.c.bf16 %v1128_v58, %v1128_v58  ;;  %v917_v22 = vadd.f32 %v1959_v23, %v339_v14  ;;  %v309_v23 = vld [vmem:[#allocation2 + $0xa8] sm:$0xff] }
  0xb6   : > { %v1032_v54 = vld [vmem:[#allocation2 + $0x110] sm:$0xff]  ;;  %1304 = vst.msk [vmem:[%s1930_s26 + $0xc4] sm:$0xf] %vm1254_vm2, %v1239_v63  ;;  %v1208_v7 = vpack.c.bf16 %v1144_v0, %v1144_v0  ;;  %v870_v30 = vadd.f32 %v1962_v27, %v292_v17  ;;  %v886_v34 = vadd.f32 %v1964_v28, %v308_v20  ;;  %v341_v27 = vld [vmem:[#allocation2 + $0x1a8] sm:$0xff] }
  0xb7   : > { %966 = vst.msk [vmem:[#allocation2 + $0x118] sm:$0xff] %vm223_vm1, %v901_v26  ;;  %v1096_v59 = vmul.f32 0.2, %v1032_v54  ;;  %v1048_v60 = vld [vmem:[#allocation2 + $0x190] sm:$0xff] }
  0xb8   : > { %v1112_v1 = vmul.f32 0.2, %v1048_v60  ;;  %v1001_v2 = vld [vmem:[#allocation2 + $0x18] sm:$0xff]  ;;  %1257 = vst.msk [vmem:[%s1930_s26 + $0x8] sm:$0xf] %vm1254_vm2, %v1192_v3 }
  0xb9   : > { %v1160_v4 = vmax.f32 %v1032_v54, %v1096_v59  ;;  %v1065_v5 = vmul.f32 0.2, %v1001_v2  ;;  %v1017_v6 = vld [vmem:[#allocation2 + $0x98] sm:$0xff]  ;;  %1273 = vst.msk [vmem:[%s1930_s26 + $0x48] sm:$0xf] %vm1254_vm2, %v1208_v7 }
  0xba   : > { %v1176_v8 = vmax.f32 %v1048_v60, %v1112_v1  ;;  %v1081_v9 = vmul.f32 0.2, %v1017_v6  ;;  %982 = vst.msk [vmem:[#allocation2 + $0x198] sm:$0xff] %vm223_vm1, %v917_v22 }
  0xbb   : > { %v1224_v11 = vpack.c.bf16 %v1160_v4, %v1160_v4  ;;  %v1129_v12 = vmax.f32 %v1001_v2, %v1065_v5  ;;  %935 = vst.msk [vmem:[#allocation2 + $0x20] sm:$0xff] %vm223_vm1, %v870_v30 }
  0xbc   : > { %v796_v55 = vpop.f32.mrf.mxu2  ;;  %v836_v56 = vpop.f32.mrf.mxu3  ;;  %v1240_v15 = vpack.c.bf16 %v1176_v8, %v1176_v8  ;;  %v1145_v16 = vmax.f32 %v1017_v6, %v1081_v9  ;;  %951 = vst.msk [vmem:[#allocation2 + $0xa0] sm:$0xff] %vm223_vm1, %v886_v34 }
  0xbd   : > { %v718_v61 = vpop.f32.mrf.mxu0  ;;  %v758_v62 = vpop.f32.mrf.mxu1  ;;  %1289 = vst.msk [vmem:[%s1930_s26 + $0x88] sm:$0xf] %vm1254_vm2, %v1224_v11  ;;  %v1193_v18 = vpack.c.bf16 %v1129_v12, %v1129_v12  ;;  %v902_v36 = vadd.f32 %v796_v55, %v324_v24  ;;  %v918_v37 = vadd.f32 %v836_v56, %v340_v31 }
  0xbe   : > { %v1033_v10 = vld [vmem:[#allocation2 + $0x118] sm:$0xff]  ;;  %1305 = vst.msk [vmem:[%s1930_s26 + $0xc8] sm:$0xf] %vm1254_vm2, %v1240_v15  ;;  %v1209_v21 = vpack.c.bf16 %v1145_v16, %v1145_v16  ;;  %v871_v39 = vadd.f32 %v718_v61, %v293_v35  ;;  %v887_v40 = vadd.f32 %v758_v62, %v309_v23 }
  0xbf   : > { %v1097_v13 = vmul.f32 0.2, %v1033_v10  ;;  %1258 = vst.msk [vmem:[%s1930_s26 + $0xc] sm:$0xf] %vm1254_vm2, %v1193_v18 }
  0xc0   : > { %1274 = vst.msk [vmem:[%s1930_s26 + $0x4c] sm:$0xf] %vm1254_vm2, %v1209_v21 }
  0xc1   : > { %v1161_v19 = vmax.f32 %v1033_v10, %v1097_v13  ;;  %967 = vst.msk [vmem:[#allocation2 + $0x120] sm:$0xff] %vm223_vm1, %v902_v36  ;;  %v1049_v53 = vld [vmem:[#allocation2 + $0x198] sm:$0xff] }
  0xc2   : > { %983 = vst.msk [vmem:[#allocation2 + $0x1a0] sm:$0xff] %vm223_vm1, %v918_v37  ;;  %v1113_v55 = vmul.f32 0.2, %v1049_v53  ;;  %v1002_v56 = vld [vmem:[#allocation2 + $0x20] sm:$0xff] }
  0xc3   : > { %v1225_v29 = vpack.c.bf16 %v1161_v19, %v1161_v19  ;;  %936 = vst.msk [vmem:[#allocation2 + $0x28] sm:$0xff] %vm223_vm1, %v871_v39  ;;  %v1066_v58 = vmul.f32 0.2, %v1002_v56  ;;  %v1018_v59 = vld [vmem:[#allocation2 + $0xa0] sm:$0xff] }
  0xc4   : > { %v798_v25 = vpop.f32.mrf.mxu2  ;;  %v838_v26 = vpop.f32.mrf.mxu3  ;;  %952 = vst.msk [vmem:[#allocation2 + $0xa8] sm:$0xff] %vm223_vm1, %v887_v40  ;;  %v1177_v61 = vmax.f32 %v1049_v53, %v1113_v55  ;;  %v1082_v62 = vmul.f32 0.2, %v1018_v59 }
  0xc5   : > { %v721_v32 = vpop.f32.mrf.mxu0  ;;  %v761_v33 = vpop.f32.mrf.mxu1  ;;  %1290 = vst.msk [vmem:[%s1930_s26 + $0x8c] sm:$0xf] %vm1254_vm2, %v1225_v29  ;;  %v903_v28 = vadd.f32 %v798_v25, %v325_v38  ;;  %v919_v43 = vadd.f32 %v838_v26, %v341_v27  ;;  %v1130_v0 = vmax.f32 %v1002_v56, %v1066_v58 }
  0xc6   : > { %v872_v47 = vadd.f32 %v721_v32, %v294_v41  ;;  %v888_v51 = vadd.f32 %v761_v33, %v310_v42  ;;  %v1241_v3 = vpack.c.bf16 %v1177_v61, %v1177_v61  ;;  %v1146_v4 = vmax.f32 %v1018_v59, %v1082_v62 }
  0xc7   : > { %968 = vst.msk [vmem:[#allocation2 + $0x128] sm:$0xff] %vm223_vm1, %v903_v28  ;;  %v1194_v9 = vpack.c.bf16 %v1130_v0, %v1130_v0 }
  0xc8   : > { %984 = vst.msk [vmem:[#allocation2 + $0x1a8] sm:$0xff] %vm223_vm1, %v919_v43  ;;  %v1034_v63 = vld [vmem:[#allocation2 + $0x120] sm:$0xff]  ;;  %v1210_v15 = vpack.c.bf16 %v1146_v4, %v1146_v4  ;;  %v297_v4 = vld [vmem:[#allocation2 + $0x48] sm:$0xff] }
  0xc9   : > { %937 = vst.msk [vmem:[#allocation2 + $0x30] sm:$0xff] %vm223_vm1, %v872_v47  ;;  %v1098_v1 = vmul.f32 0.2, %v1034_v63  ;;  %v1050_v2 = vld [vmem:[#allocation2 + $0x1a0] sm:$0xff] }
  0xca   : > { %953 = vst.msk [vmem:[#allocation2 + $0xb0] sm:$0xff] %vm223_vm1, %v888_v51  ;;  %v1114_v5 = vmul.f32 0.2, %v1050_v2  ;;  %v1003_v6 = vld [vmem:[#allocation2 + $0x28] sm:$0xff] }
  0xcb   : > { %v1162_v10 = vmax.f32 %v1034_v63, %v1098_v1  ;;  %v1067_v11 = vmul.f32 0.2, %v1003_v6  ;;  %v1019_v12 = vld [vmem:[#allocation2 + $0xa8] sm:$0xff]  ;;  %1306 = vst.msk [vmem:[%s1930_s26 + $0xcc] sm:$0xf] %vm1254_vm2, %v1241_v3  ;;  %v312_v63 = vld [vmem:[#allocation2 + $0xc0] sm:$0xff] }
  0xcc   : > { %v801_v45 = vpop.f32.mrf.mxu2  ;;  %v841_v46 = vpop.f32.mrf.mxu3  ;;  %v1178_v16 = vmax.f32 %v1050_v2, %v1114_v5  ;;  %v1083_v17 = vmul.f32 0.2, %v1019_v12  ;;  %1259 = vst.msk [vmem:[%s1930_s26 + $0x10] sm:$0xf] %vm1254_vm2, %v1194_v9  ;;  %v328_v1 = vld [vmem:[#allocation2 + $0x140] sm:$0xff]  ;;  %v313_v9 = vld [vmem:[#allocation2 + $0xc8] sm:$0xff] }
  0xcd   : > { %v723_v49 = vpop.f32.mrf.mxu0  ;;  %v2007_v50 = vpop.f32.mrf.mxu1  ;;  %v904_v54 = vadd.f32 %v801_v45, %v326_v44  ;;  %v920_v57 = vadd.f32 %v841_v46, %v342_v48  ;;  %v1226_v19 = vpack.c.bf16 %v1162_v10, %v1162_v10  ;;  %v1131_v20 = vmax.f32 %v1003_v6, %v1067_v11  ;;  %1275 = vst.msk [vmem:[%s1930_s26 + $0x50] sm:$0xf] %vm1254_vm2, %v1210_v15  ;;  %v311_v48 = vld [vmem:[#allocation2 + $0xb8] sm:$0xff]  ;;  %v344_v3 = vld [vmem:[#allocation2 + $0x1c0] sm:$0xff]  ;;  %v345_v15 = vld [vmem:[#allocation2 + $0x1c8] sm:$0xff] }
  0xce   : > { %v873_v60 = vadd.f32 %v723_v49, %v295_v52  ;;  %v1035_v18 = vld [vmem:[#allocation2 + $0x128] sm:$0xff]  ;;  %v1242_v24 = vpack.c.bf16 %v1178_v16, %v1178_v16  ;;  %v1147_v25 = vmax.f32 %v1019_v12, %v1083_v17  ;;  %v889_v59 = vadd.f32 %v2007_v50, %v311_v48  ;;  %v298_v16 = vld [vmem:[#allocation2 + $0x50] sm:$0xff] }
  0xcf   : > { %969 = vst.msk [vmem:[#allocation2 + $0x130] sm:$0xff] %vm223_vm1, %v904_v54  ;;  %v1099_v21 = vmul.f32 0.2, %v1035_v18  ;;  %v1051_v22 = vld [vmem:[#allocation2 + $0x1a8] sm:$0xff]  ;;  %v1195_v30 = vpack.c.bf16 %v1131_v20, %v1131_v20  ;;  %v327_v54 = vld [vmem:[#allocation2 + $0x138] sm:$0xff]  ;;  %v330_v20 = vld [vmem:[#allocation2 + $0x150] sm:$0xff] }
  0xd0   : > { %985 = vst.msk [vmem:[#allocation2 + $0x1b0] sm:$0xff] %vm223_vm1, %v920_v57  ;;  %v1115_v26 = vmul.f32 0.2, %v1051_v22  ;;  %v1004_v29 = vld [vmem:[#allocation2 + $0x30] sm:$0xff]  ;;  %v1211_v34 = vpack.c.bf16 %v1147_v25, %v1147_v25  ;;  %v343_v57 = vld [vmem:[#allocation2 + $0x1b8] sm:$0xff]  ;;  %v329_v12 = vld [vmem:[#allocation2 + $0x148] sm:$0xff] }
  0xd1   : > { %938 = vst.msk [vmem:[#allocation2 + $0x38] sm:$0xff] %vm223_vm1, %v873_v60  ;;  %v1163_v31 = vmax.f32 %v1035_v18, %v1099_v21  ;;  %v1068_v32 = vmul.f32 0.2, %v1004_v29  ;;  %v1020_v33 = vld [vmem:[#allocation2 + $0xb0] sm:$0xff]  ;;  %v296_v60 = vld [vmem:[#allocation2 + $0x40] sm:$0xff] }
  0xd2   : > { %1291 = vst.msk [vmem:[%s1930_s26 + $0x90] sm:$0xf] %vm1254_vm2, %v1226_v19  ;;  %v1179_v35 = vmax.f32 %v1051_v22, %v1115_v26  ;;  %v1084_v36 = vmul.f32 0.2, %v1020_v33  ;;  %v314_v18 = vld [vmem:[#allocation2 + $0xd0] sm:$0xff] }
  0xd3   : > { %1307 = vst.msk [vmem:[%s1930_s26 + $0xd0] sm:$0xf] %vm1254_vm2, %v1242_v24  ;;  %v1227_v37 = vpack.c.bf16 %v1163_v31, %v1163_v31  ;;  %v1132_v38 = vmax.f32 %v1004_v29, %v1068_v32 }
  0xd4   : > { %v2016_v7 = vpop.f32.mrf.mxu2  ;;  %v2018_v8 = vpop.f32.mrf.mxu3  ;;  %1260 = vst.msk [vmem:[%s1930_s26 + $0x14] sm:$0xf] %vm1254_vm2, %v1195_v30  ;;  %v1243_v40 = vpack.c.bf16 %v1179_v35, %v1179_v35  ;;  %v1148_v41 = vmax.f32 %v1020_v33, %v1084_v36 }
  0xd5   : > { %v2021_v13 = vpop.f32.mrf.mxu0  ;;  %v2023_v14 = vpop.f32.mrf.mxu1  ;;  %1276 = vst.msk [vmem:[%s1930_s26 + $0x54] sm:$0xf] %vm1254_vm2, %v1211_v34  ;;  %v1196_v45 = vpack.c.bf16 %v1132_v38, %v1132_v38  ;;  %v905_v62 = vadd.f32 %v2016_v7, %v327_v54  ;;  %v921_v0 = vadd.f32 %v2018_v8, %v343_v57 }
  0xd6   : > { %v1036_v23 = vld [vmem:[#allocation2 + $0x130] sm:$0xff]  ;;  %1292 = vst.msk [vmem:[%s1930_s26 + $0x94] sm:$0xf] %vm1254_vm2, %v1227_v37  ;;  %v1212_v52 = vpack.c.bf16 %v1148_v41, %v1148_v41  ;;  %v874_v2 = vadd.f32 %v2021_v13, %v296_v60  ;;  %v890_v50 = vadd.f32 %v2023_v14, %v312_v63 }
  0xd7   : > { %v1100_v39 = vmul.f32 0.2, %v1036_v23  ;;  %v1052_v27 = vld [vmem:[#allocation2 + $0x1b0] sm:$0xff]  ;;  %1308 = vst.msk [vmem:[%s1930_s26 + $0xd4] sm:$0xf] %vm1254_vm2, %v1243_v40 }
  0xd8   : > { %v1116_v28 = vmul.f32 0.2, %v1052_v27  ;;  %v1005_v42 = vld [vmem:[#allocation2 + $0x38] sm:$0xff]  ;;  %1261 = vst.msk [vmem:[%s1930_s26 + $0x18] sm:$0xf] %vm1254_vm2, %v1196_v45 }
  0xd9   : > { %v1164_v46 = vmax.f32 %v1036_v23, %v1100_v39  ;;  %v1069_v47 = vmul.f32 0.2, %v1005_v42  ;;  %1277 = vst.msk [vmem:[%s1930_s26 + $0x58] sm:$0xf] %vm1254_vm2, %v1212_v52 }
  0xda   : > { %v1180_v53 = vmax.f32 %v1052_v27, %v1116_v28  ;;  %954 = vst.msk [vmem:[#allocation2 + $0xb8] sm:$0xff] %vm223_vm1, %v889_v59 }
  0xdb   : > { %v1228_v55 = vpack.c.bf16 %v1164_v46, %v1164_v46  ;;  %v1133_v56 = vmax.f32 %v1005_v42, %v1069_v47  ;;  %970 = vst.msk [vmem:[#allocation2 + $0x138] sm:$0xff] %vm223_vm1, %v905_v62 }
  0xdc   : > { %v806_v43 = vpop.f32.mrf.mxu2  ;;  %v846_v44 = vpop.f32.mrf.mxu3  ;;  %v1244_v58 = vpack.c.bf16 %v1180_v53, %v1180_v53  ;;  %986 = vst.msk [vmem:[#allocation2 + $0x1b8] sm:$0xff] %vm223_vm1, %v921_v0 }
  0xdd   : > { %v728_v49 = vpop.f32.mrf.mxu0  ;;  %v768_v51 = vpop.f32.mrf.mxu1  ;;  %1293 = vst.msk [vmem:[%s1930_s26 + $0x98] sm:$0xf] %vm1254_vm2, %v1228_v55  ;;  %v1197_v61 = vpack.c.bf16 %v1133_v56, %v1133_v56  ;;  %v906_v7 = vadd.f32 %v806_v43, %v328_v1  ;;  %v922_v8 = vadd.f32 %v846_v44, %v344_v3 }
  0xde   : > { %1309 = vst.msk [vmem:[%s1930_s26 + $0xd8] sm:$0xf] %vm1254_vm2, %v1244_v58  ;;  %v875_v13 = vadd.f32 %v728_v49, %v297_v4  ;;  %v891_v14 = vadd.f32 %v768_v51, %v313_v9 }
  0xdf   : > { %1262 = vst.msk [vmem:[%s1930_s26 + $0x1c] sm:$0xf] %vm1254_vm2, %v1197_v61 }
  0xe0   : > { %939 = vst.msk [vmem:[#allocation2 + $0x40] sm:$0xff] %vm223_vm1, %v874_v2 }
  0xe1   : > { %955 = vst.msk [vmem:[#allocation2 + $0xc0] sm:$0xff] %vm223_vm1, %v890_v50  ;;  %v1021_v21 = vld [vmem:[#allocation2 + $0xb8] sm:$0xff] }
  0xe2   : > { %971 = vst.msk [vmem:[#allocation2 + $0x140] sm:$0xff] %vm223_vm1, %v906_v7  ;;  %v1085_v24 = vmul.f32 0.2, %v1021_v21  ;;  %v1037_v25 = vld [vmem:[#allocation2 + $0x138] sm:$0xff] }
  0xe3   : > { %987 = vst.msk [vmem:[#allocation2 + $0x1c0] sm:$0xff] %vm223_vm1, %v922_v8  ;;  %v1101_v31 = vmul.f32 0.2, %v1037_v25  ;;  %v1053_v32 = vld [vmem:[#allocation2 + $0x1b8] sm:$0xff] }
  0xe4   : > { %v808_v5 = vpop.f32.mrf.mxu2  ;;  %v848_v6 = vpop.f32.mrf.mxu3  ;;  %940 = vst.msk [vmem:[#allocation2 + $0x48] sm:$0xff] %vm223_vm1, %v875_v13  ;;  %v1149_v35 = vmax.f32 %v1021_v21, %v1085_v24  ;;  %v1117_v36 = vmul.f32 0.2, %v1053_v32  ;;  %v299_v21 = vld [vmem:[#allocation2 + $0x58] sm:$0xff] }
  0xe5   : > { %v731_v10 = vpop.f32.mrf.mxu0  ;;  %v771_v11 = vpop.f32.mrf.mxu1  ;;  %v907_v17 = vadd.f32 %v808_v5, %v329_v12  ;;  %v923_v19 = vadd.f32 %v848_v6, %v345_v15  ;;  %956 = vst.msk [vmem:[#allocation2 + $0xc8] sm:$0xff] %vm223_vm1, %v891_v14  ;;  %v1165_v37 = vmax.f32 %v1037_v25, %v1101_v31  ;;  %v315_v25 = vld [vmem:[#allocation2 + $0xd8] sm:$0xff] }
  0xe6   : > { %v876_v22 = vadd.f32 %v731_v10, %v298_v16  ;;  %v892_v26 = vadd.f32 %v771_v11, %v314_v18  ;;  %v1213_v40 = vpack.c.bf16 %v1149_v35, %v1149_v35  ;;  %v1181_v41 = vmax.f32 %v1053_v32, %v1117_v36  ;;  %v331_v31 = vld [vmem:[#allocation2 + $0x158] sm:$0xff] }
  0xe7   : > { %972 = vst.msk [vmem:[#allocation2 + $0x148] sm:$0xff] %vm223_vm1, %v907_v17  ;;  %v1006_v23 = vld [vmem:[#allocation2 + $0x40] sm:$0xff]  ;;  %v1229_v43 = vpack.c.bf16 %v1165_v37, %v1165_v37  ;;  %v346_v17 = vld [vmem:[#allocation2 + $0x1d0] sm:$0xff] }
  0xe8   : > { %988 = vst.msk [vmem:[#allocation2 + $0x1c8] sm:$0xff] %vm223_vm1, %v923_v19  ;;  %v1070_v38 = vmul.f32 0.2, %v1006_v23  ;;  %v1022_v39 = vld [vmem:[#allocation2 + $0xc0] sm:$0xff]  ;;  %v1245_v47 = vpack.c.bf16 %v1181_v41, %v1181_v41 }
  0xe9   : > { %941 = vst.msk [vmem:[#allocation2 + $0x50] sm:$0xff] %vm223_vm1, %v876_v22  ;;  %v1086_v28 = vmul.f32 0.2, %v1022_v39  ;;  %v1038_v42 = vld [vmem:[#allocation2 + $0x140] sm:$0xff] }
  0xea   : > { %957 = vst.msk [vmem:[#allocation2 + $0xd0] sm:$0xff] %vm223_vm1, %v892_v26  ;;  %v1134_v44 = vmax.f32 %v1006_v23, %v1070_v38  ;;  %v1102_v45 = vmul.f32 0.2, %v1038_v42  ;;  %v1054_v46 = vld [vmem:[#allocation2 + $0x1c0] sm:$0xff]  ;;  %v347_v23 = vld [vmem:[#allocation2 + $0x1d8] sm:$0xff] }
  0xeb   : > { %1278 = vst.msk [vmem:[%s1930_s26 + $0x5c] sm:$0xf] %vm1254_vm2, %v1213_v40  ;;  %v1150_v48 = vmax.f32 %v1022_v39, %v1086_v28  ;;  %v1118_v49 = vmul.f32 0.2, %v1054_v46  ;;  %v1007_v51 = vld [vmem:[#allocation2 + $0x48] sm:$0xff]  ;;  %v300_v38 = vld [vmem:[#allocation2 + $0x60] sm:$0xff] }
  0xec   : > { %v811_v29 = vpop.f32.mrf.mxu2  ;;  %v2067_v30 = vpop.f32.mrf.mxu3  ;;  %1294 = vst.msk [vmem:[%s1930_s26 + $0x9c] sm:$0xf] %vm1254_vm2, %v1229_v43  ;;  %v1198_v52 = vpack.c.bf16 %v1134_v44, %v1134_v44  ;;  %v1166_v53 = vmax.f32 %v1038_v42, %v1102_v45  ;;  %v1071_v54 = vmul.f32 0.2, %v1007_v51  ;;  %v1023_v55 = vld [vmem:[#allocation2 + $0xc8] sm:$0xff]  ;;  %v316_v41 = vld [vmem:[#allocation2 + $0xe0] sm:$0xff] }
  0xed   : > { %v908_v33 = vadd.f32 %v811_v29, %v330_v20  ;;  %v2070_v34 = vpop.f32.mrf.mxu0  ;;  %v2074_v27 = vpop.f32.mrf.mxu1  ;;  %1310 = vst.msk [vmem:[%s1930_s26 + $0xdc] sm:$0xf] %vm1254_vm2, %v1245_v47  ;;  %v1214_v56 = vpack.c.bf16 %v1150_v48, %v1150_v48  ;;  %v1182_v57 = vmax.f32 %v1054_v46, %v1118_v49  ;;  %v1087_v58 = vmul.f32 0.2, %v1023_v55  ;;  %v332_v28 = vld [vmem:[#allocation2 + $0x160] sm:$0xff]  ;;  %v301_v44 = vld [vmem:[#allocation2 + $0x68] sm:$0xff] }
  0xee   : > { %v1039_v59 = vld [vmem:[#allocation2 + $0x148] sm:$0xff]  ;;  %1263 = vst.msk [vmem:[%s1930_s26 + $0x20] sm:$0xf] %vm1254_vm2, %v1198_v52  ;;  %v1230_v62 = vpack.c.bf16 %v1166_v53, %v1166_v53  ;;  %v1135_v63 = vmax.f32 %v1007_v51, %v1071_v54  ;;  %v924_v29 = vadd.f32 %v2067_v30, %v346_v17  ;;  %v877_v36 = vadd.f32 %v2070_v34, %v299_v21  ;;  %v348_v43 = vld [vmem:[#allocation2 + $0x1e0] sm:$0xff] }
  0xef   : > { %973 = vst.msk [vmem:[#allocation2 + $0x150] sm:$0xff] %vm223_vm1, %v908_v33  ;;  %v1103_v0 = vmul.f32 0.2, %v1039_v59  ;;  %v1055_v1 = vld [vmem:[#allocation2 + $0x1c8] sm:$0xff]  ;;  %v1246_v3 = vpack.c.bf16 %v1182_v57, %v1182_v57  ;;  %v1151_v50 = vmax.f32 %v1023_v55, %v1087_v58  ;;  %v893_v37 = vadd.f32 %v2074_v27, %v315_v25  ;;  %v302_v55 = vld [vmem:[#allocation2 + $0x70] sm:$0xff] }
  0xf0   : > { %1279 = vst.msk [vmem:[%s1930_s26 + $0x60] sm:$0xf] %vm1254_vm2, %v1214_v56  ;;  %v1119_v4 = vmul.f32 0.2, %v1055_v1  ;;  %v1008_v5 = vld [vmem:[#allocation2 + $0x50] sm:$0xff]  ;;  %v1199_v6 = vpack.c.bf16 %v1135_v63, %v1135_v63  ;;  %v317_v45 = vld [vmem:[#allocation2 + $0xe8] sm:$0xff] }
  0xf1   : > { %1295 = vst.msk [vmem:[%s1930_s26 + $0xa0] sm:$0xf] %vm1254_vm2, %v1230_v62  ;;  %v1167_v7 = vmax.f32 %v1039_v59, %v1103_v0  ;;  %v1072_v9 = vmul.f32 0.2, %v1008_v5  ;;  %v1024_v10 = vld [vmem:[#allocation2 + $0xd0] sm:$0xff]  ;;  %v1215_v11 = vpack.c.bf16 %v1151_v50, %v1151_v50  ;;  %v333_v48 = vld [vmem:[#allocation2 + $0x168] sm:$0xff] }
  0xf2   : > { %1311 = vst.msk [vmem:[%s1930_s26 + $0xe0] sm:$0xf] %vm1254_vm2, %v1246_v3  ;;  %v1183_v8 = vmax.f32 %v1055_v1, %v1119_v4  ;;  %v1088_v12 = vmul.f32 0.2, %v1024_v10  ;;  %v349_v52 = vld [vmem:[#allocation2 + $0x1e8] sm:$0xff] }
  0xf3   : > { %1264 = vst.msk [vmem:[%s1930_s26 + $0x24] sm:$0xf] %vm1254_vm2, %v1199_v6  ;;  %v1231_v15 = vpack.c.bf16 %v1167_v7, %v1167_v7  ;;  %v1136_v14 = vmax.f32 %v1008_v5, %v1072_v9 }
  0xf4   : > { %v813_v60 = vpop.f32.mrf.mxu2  ;;  %v853_v61 = vpop.f32.mrf.mxu3  ;;  %1280 = vst.msk [vmem:[%s1930_s26 + $0x64] sm:$0xf] %vm1254_vm2, %v1215_v11  ;;  %v1247_v19 = vpack.c.bf16 %v1183_v8, %v1183_v8  ;;  %v1152_v20 = vmax.f32 %v1024_v10, %v1088_v12 }
  0xf5   : > { %v736_v2 = vpop.f32.mrf.mxu0  ;;  %v776_v18 = vpop.f32.mrf.mxu1  ;;  %1296 = vst.msk [vmem:[%s1930_s26 + $0xa4] sm:$0xf] %vm1254_vm2, %v1231_v15  ;;  %v1200_v22 = vpack.c.bf16 %v1136_v14, %v1136_v14  ;;  %v909_v40 = vadd.f32 %v813_v60, %v331_v31  ;;  %v925_v30 = vadd.f32 %v853_v61, %v347_v23 }
  0xf6   : > { %v1040_v13 = vld [vmem:[#allocation2 + $0x150] sm:$0xff]  ;;  %1312 = vst.msk [vmem:[%s1930_s26 + $0xe4] sm:$0xf] %vm1254_vm2, %v1247_v19  ;;  %v1216_v26 = vpack.c.bf16 %v1152_v20, %v1152_v20  ;;  %v878_v42 = vadd.f32 %v736_v2, %v300_v38  ;;  %v894_v34 = vadd.f32 %v776_v18, %v316_v41 }
  0xf7   : > { %v1104_v16 = vmul.f32 0.2, %v1040_v13  ;;  %1265 = vst.msk [vmem:[%s1930_s26 + $0x28] sm:$0xf] %vm1254_vm2, %v1200_v22 }
  0xf8   : > { %1281 = vst.msk [vmem:[%s1930_s26 + $0x68] sm:$0xf] %vm1254_vm2, %v1216_v26 }
  0xf9   : > { %v1168_v24 = vmax.f32 %v1040_v13, %v1104_v16  ;;  %989 = vst.msk [vmem:[#allocation2 + $0x1d0] sm:$0xff] %vm223_vm1, %v924_v29 }
  0xfa   : > { %942 = vst.msk [vmem:[#allocation2 + $0x58] sm:$0xff] %vm223_vm1, %v877_v36 }
  0xfb   : > { %v1232_v35 = vpack.c.bf16 %v1168_v24, %v1168_v24  ;;  %958 = vst.msk [vmem:[#allocation2 + $0xd8] sm:$0xff] %vm223_vm1, %v893_v37 }
  0xfc   : > { %v816_v32 = vpop.f32.mrf.mxu2  ;;  %v856_v33 = vpop.f32.mrf.mxu3  ;;  %974 = vst.msk [vmem:[#allocation2 + $0x158] sm:$0xff] %vm223_vm1, %v909_v40 }
  0xfd   : > { %v738_v39 = vpop.f32.mrf.mxu0  ;;  %1297 = vst.msk [vmem:[%s1930_s26 + $0xa8] sm:$0xf] %vm1254_vm2, %v1232_v35  ;;  %v910_v27 = vadd.f32 %v816_v32, %v332_v28  ;;  %v778_v46 = vpop.f32.mrf.mxu1  ;;  %v926_v47 = vadd.f32 %v856_v33, %v348_v43 }
  0xfe   : > { %990 = vst.msk [vmem:[#allocation2 + $0x1d8] sm:$0xff] %vm223_vm1, %v925_v30  ;;  %v879_v51 = vadd.f32 %v738_v39, %v301_v44  ;;  %v895_v54 = vadd.f32 %v778_v46, %v317_v45 }
  0xff   : > { %943 = vst.msk [vmem:[#allocation2 + $0x60] sm:$0xff] %vm223_vm1, %v878_v42 }
 0x100   : > { %959 = vst.msk [vmem:[#allocation2 + $0xe0] sm:$0xff] %vm223_vm1, %v894_v34  ;;  %v1056_v56 = vld [vmem:[#allocation2 + $0x1d0] sm:$0xff] }
 0x101   : > { %975 = vst.msk [vmem:[#allocation2 + $0x160] sm:$0xff] %vm223_vm1, %v910_v27  ;;  %v1120_v58 = vmul.f32 0.2, %v1056_v56  ;;  %v1009_v59 = vld [vmem:[#allocation2 + $0x58] sm:$0xff] }
 0x102   : > { %991 = vst.msk [vmem:[#allocation2 + $0x1e0] sm:$0xff] %vm223_vm1, %v926_v47  ;;  %v1073_v62 = vmul.f32 0.2, %v1009_v59  ;;  %v1025_v63 = vld [vmem:[#allocation2 + $0xd8] sm:$0xff] }
 0x103   : > { %944 = vst.msk [vmem:[#allocation2 + $0x68] sm:$0xff] %vm223_vm1, %v879_v51  ;;  %v1184_v1 = vmax.f32 %v1056_v56, %v1120_v58  ;;  %v1089_v2 = vmul.f32 0.2, %v1025_v63  ;;  %v1041_v3 = vld [vmem:[#allocation2 + $0x158] sm:$0xff] }
 0x104   : > { %v818_v49 = vpop.f32.mrf.mxu2  ;;  %v858_v53 = vpop.f32.mrf.mxu3  ;;  %960 = vst.msk [vmem:[#allocation2 + $0xe8] sm:$0xff] %vm223_vm1, %v895_v54  ;;  %v1137_v50 = vmax.f32 %v1009_v59, %v1073_v62  ;;  %v1105_v4 = vmul.f32 0.2, %v1041_v3  ;;  %v303_v58 = vld [vmem:[#allocation2 + $0x78] sm:$0xff] }
 0x105   : > { %v911_v57 = vadd.f32 %v818_v49, %v333_v48  ;;  %v927_v60 = vadd.f32 %v858_v53, %v349_v52  ;;  %v741_v61 = vpop.f32.mrf.mxu0  ;;  %v1057_v5 = vld [vmem:[#allocation2 + $0x1d8] sm:$0xff]  ;;  %v1248_v6 = vpack.c.bf16 %v1184_v1, %v1184_v1  ;;  %v1153_v7 = vmax.f32 %v1025_v63, %v1089_v2  ;;  %v781_v22 = vpop.f32.mrf.mxu1  ;;  %v318_v48 = vld [vmem:[#allocation2 + $0xf0] sm:$0xff] }
 0x106   : > { %v880_v0 = vadd.f32 %v741_v61, %v302_v55  ;;  %v1121_v9 = vmul.f32 0.2, %v1057_v5  ;;  %v1010_v10 = vld [vmem:[#allocation2 + $0x60] sm:$0xff]  ;;  %v1201_v11 = vpack.c.bf16 %v1137_v50, %v1137_v50  ;;  %v1169_v8 = vmax.f32 %v1041_v3, %v1105_v4  ;;  %v334_v52 = vld [vmem:[#allocation2 + $0x170] sm:$0xff]  ;;  %v319_v62 = vld [vmem:[#allocation2 + $0xf8] sm:$0xff] }
 0x107   : > { %976 = vst.msk [vmem:[#allocation2 + $0x168] sm:$0xff] %vm223_vm1, %v911_v57  ;;  %v1074_v12 = vmul.f32 0.2, %v1010_v10  ;;  %v1026_v13 = vld [vmem:[#allocation2 + $0xe0] sm:$0xff]  ;;  %v1217_v15 = vpack.c.bf16 %v1153_v7, %v1153_v7  ;;  %v350_v55 = vld [vmem:[#allocation2 + $0x1f0] sm:$0xff]  ;;  %v896_v57 = vadd.f32 %v781_v22, %v318_v48  ;;  %v335_v1 = vld [vmem:[#allocation2 + $0x178] sm:$0xff] }
 0x108   : > { %992 = vst.msk [vmem:[#allocation2 + $0x1e8] sm:$0xff] %vm223_vm1, %v927_v60  ;;  %v1185_v14 = vmax.f32 %v1057_v5, %v1121_v9  ;;  %v1090_v16 = vmul.f32 0.2, %v1026_v13  ;;  %v1042_v17 = vld [vmem:[#allocation2 + $0x160] sm:$0xff]  ;;  %v1233_v18 = vpack.c.bf16 %v1169_v8, %v1169_v8  ;;  %v351_v50 = vld [vmem:[#allocation2 + $0x1f8] sm:$0xff] }
 0x109   : > { %945 = vst.msk [vmem:[#allocation2 + $0x70] sm:$0xff] %vm223_vm1, %v880_v0  ;;  %v1138_v19 = vmax.f32 %v1010_v10, %v1074_v12  ;;  %v1106_v20 = vmul.f32 0.2, %v1042_v17  ;;  %v1058_v21 = vld [vmem:[#allocation2 + $0x1e0] sm:$0xff] }
 0x10a   : > { %1313 = vst.msk [vmem:[%s1930_s26 + $0xe8] sm:$0xf] %vm1254_vm2, %v1248_v6  ;;  %v1249_v24 = vpack.c.bf16 %v1185_v14, %v1185_v14  ;;  %v1154_v25 = vmax.f32 %v1026_v13, %v1090_v16  ;;  %v1122_v26 = vmul.f32 0.2, %v1058_v21  ;;  %v1011_v29 = vld [vmem:[#allocation2 + $0x68] sm:$0xff] }
 0x10b   : > { %1266 = vst.msk [vmem:[%s1930_s26 + $0x2c] sm:$0xf] %vm1254_vm2, %v1201_v11  ;;  %v1202_v32 = vpack.c.bf16 %v1138_v19, %v1138_v19  ;;  %v1170_v33 = vmax.f32 %v1042_v17, %v1106_v20  ;;  %v1075_v35 = vmul.f32 0.2, %v1011_v29  ;;  %v1027_v36 = vld [vmem:[#allocation2 + $0xe8] sm:$0xff] }
 0x10c   : > { %1282 = vst.msk [vmem:[%s1930_s26 + $0x6c] sm:$0xf] %vm1254_vm2, %v1217_v15  ;;  %v821_v31 = vpop.f32.mrf.mxu2  ;;  %v861_v23 = vpop.f32.mrf.mxu3  ;;  %v1218_v37 = vpack.c.bf16 %v1154_v25, %v1154_v25  ;;  %v1186_v38 = vmax.f32 %v1058_v21, %v1122_v26  ;;  %v1091_v39 = vmul.f32 0.2, %v1027_v36 }
 0x10d   : > { %1298 = vst.msk [vmem:[%s1930_s26 + $0xac] sm:$0xf] %vm1254_vm2, %v1233_v18  ;;  %v1234_v41 = vpack.c.bf16 %v1170_v33, %v1170_v33  ;;  %v1139_v30 = vmax.f32 %v1011_v29, %v1075_v35  ;;  %v743_v59 = vpop.f32.mrf.mxu0  ;;  %v912_v61 = vadd.f32 %v821_v31, %v334_v52  ;;  %v783_v63 = vpop.f32.mrf.mxu1  ;;  %v928_v0 = vadd.f32 %v861_v23, %v350_v55 }
 0x10e   : > { %1314 = vst.msk [vmem:[%s1930_s26 + $0xec] sm:$0xf] %vm1254_vm2, %v1249_v24  ;;  %v1043_v40 = vld [vmem:[#allocation2 + $0x168] sm:$0xff]  ;;  %v1250_v43 = vpack.c.bf16 %v1186_v38, %v1186_v38  ;;  %v1155_v34 = vmax.f32 %v1027_v36, %v1091_v39  ;;  %v881_v3 = vadd.f32 %v743_v59, %v303_v58  ;;  %v897_v5 = vadd.f32 %v783_v63, %v319_v62 }
 0x10f   : > { %1267 = vst.msk [vmem:[%s1930_s26 + $0x30] sm:$0xf] %vm1254_vm2, %v1202_v32  ;;  %v1107_v28 = vmul.f32 0.2, %v1043_v40  ;;  %v1059_v42 = vld [vmem:[#allocation2 + $0x1e8] sm:$0xff]  ;;  %v1203_v45 = vpack.c.bf16 %v1139_v30, %v1139_v30 }
 0x110   : > { %1283 = vst.msk [vmem:[%s1930_s26 + $0x70] sm:$0xf] %vm1254_vm2, %v1218_v37  ;;  %v1123_v44 = vmul.f32 0.2, %v1059_v42  ;;  %v1012_v27 = vld [vmem:[#allocation2 + $0x70] sm:$0xff]  ;;  %v1219_v49 = vpack.c.bf16 %v1155_v34, %v1155_v34 }
 0x111   : > { %1299 = vst.msk [vmem:[%s1930_s26 + $0xb0] sm:$0xf] %vm1254_vm2, %v1234_v41  ;;  %v1171_v46 = vmax.f32 %v1043_v40, %v1107_v28  ;;  %v1076_v47 = vmul.f32 0.2, %v1012_v27 }
 0x112   : > { %1315 = vst.msk [vmem:[%s1930_s26 + $0xf0] sm:$0xf] %vm1254_vm2, %v1250_v43  ;;  %v1187_v51 = vmax.f32 %v1059_v42, %v1123_v44 }
 0x113   : > { %1268 = vst.msk [vmem:[%s1930_s26 + $0x34] sm:$0xf] %vm1254_vm2, %v1203_v45  ;;  %v1235_v53 = vpack.c.bf16 %v1171_v46, %v1171_v46  ;;  %v1140_v54 = vmax.f32 %v1012_v27, %v1076_v47 }
 0x114   : > { %1284 = vst.msk [vmem:[%s1930_s26 + $0x74] sm:$0xf] %vm1254_vm2, %v1219_v49  ;;  %v1251_v56 = vpack.c.bf16 %v1187_v51, %v1187_v51  ;;  %v823_v2 = vpop.f32.mrf.mxu2  ;;  %v863_v4 = vpop.f32.mrf.mxu3 }
 0x115   : > { %1300 = vst.msk [vmem:[%s1930_s26 + $0xb4] sm:$0xf] %vm1254_vm2, %v1235_v53  ;;  %v1204_v60 = vpack.c.bf16 %v1140_v54, %v1140_v54  ;;  %v913_v6 = vadd.f32 %v823_v2, %v335_v1  ;;  %v929_v7 = vadd.f32 %v863_v4, %v351_v50 }
 0x116   : > { %1316 = vst.msk [vmem:[%s1930_s26 + $0xf4] sm:$0xf] %vm1254_vm2, %v1251_v56 }
 0x117   : > { %1269 = vst.msk [vmem:[%s1930_s26 + $0x38] sm:$0xf] %vm1254_vm2, %v1204_v60 }
 0x118   : > { %961 = vst.msk [vmem:[#allocation2 + $0xf0] sm:$0xff] %vm223_vm1, %v896_v57 }
 0x119   : > { %977 = vst.msk [vmem:[#allocation2 + $0x170] sm:$0xff] %vm223_vm1, %v912_v61 }
 0x11a   : > { %993 = vst.msk [vmem:[#allocation2 + $0x1f0] sm:$0xff] %vm223_vm1, %v928_v0 }
 0x11b   : > { %946 = vst.msk [vmem:[#allocation2 + $0x78] sm:$0xff] %vm223_vm1, %v881_v3 }
 0x11c   : > { %962 = vst.msk [vmem:[#allocation2 + $0xf8] sm:$0xff] %vm223_vm1, %v897_v5 }
 0x11d   : > { %978 = vst.msk [vmem:[#allocation2 + $0x178] sm:$0xff] %vm223_vm1, %v913_v6 }
 0x11e   : > { %994 = vst.msk [vmem:[#allocation2 + $0x1f8] sm:$0xff] %vm223_vm1, %v929_v7 }
 0x11f   : > { %v1028_v9 = vld [vmem:[#allocation2 + $0xf0] sm:$0xff] }
 0x120   : > { %v1092_v10 = vmul.f32 0.2, %v1028_v9  ;;  %v1044_v11 = vld [vmem:[#allocation2 + $0x170] sm:$0xff] }
 0x121   : > { %v1108_v8 = vmul.f32 0.2, %v1044_v11  ;;  %v1060_v12 = vld [vmem:[#allocation2 + $0x1f0] sm:$0xff] }
 0x122   : > { %v1156_v13 = vmax.f32 %v1028_v9, %v1092_v10  ;;  %v1124_v15 = vmul.f32 0.2, %v1060_v12  ;;  %v1013_v14 = vld [vmem:[#allocation2 + $0x78] sm:$0xff] }
 0x123   : > { %v1172_v16 = vmax.f32 %v1044_v11, %v1108_v8  ;;  %v1077_v17 = vmul.f32 0.2, %v1013_v14  ;;  %v1029_v18 = vld [vmem:[#allocation2 + $0xf8] sm:$0xff] }
 0x124   : > { %v1220_v19 = vpack.c.bf16 %v1156_v13, %v1156_v13  ;;  %v1188_v20 = vmax.f32 %v1060_v12, %v1124_v15  ;;  %v1093_v21 = vmul.f32 0.2, %v1029_v18  ;;  %v1045_v22 = vld [vmem:[#allocation2 + $0x178] sm:$0xff] }
 0x125   : > { %v1236_v24 = vpack.c.bf16 %v1172_v16, %v1172_v16  ;;  %v1141_v25 = vmax.f32 %v1013_v14, %v1077_v17  ;;  %v1109_v26 = vmul.f32 0.2, %v1045_v22  ;;  %v1061_v29 = vld [vmem:[#allocation2 + $0x1f8] sm:$0xff] }
 0x126   : > { %1285 = vst.msk [vmem:[%s1930_s26 + $0x78] sm:$0xf] %vm1254_vm2, %v1220_v19  ;;  %v1252_v31 = vpack.c.bf16 %v1188_v20, %v1188_v20  ;;  %v1157_v32 = vmax.f32 %v1029_v18, %v1093_v21  ;;  %v1125_v33 = vmul.f32 0.2, %v1061_v29 }
 0x127   : > { %1301 = vst.msk [vmem:[%s1930_s26 + $0xb8] sm:$0xf] %vm1254_vm2, %v1236_v24  ;;  %v1205_v35 = vpack.c.bf16 %v1141_v25, %v1141_v25  ;;  %v1173_v36 = vmax.f32 %v1045_v22, %v1109_v26 }
 0x128   : > { %1317 = vst.msk [vmem:[%s1930_s26 + $0xf8] sm:$0xf] %vm1254_vm2, %v1252_v31  ;;  %v1221_v23 = vpack.c.bf16 %v1157_v32, %v1157_v32  ;;  %v1189_v37 = vmax.f32 %v1061_v29, %v1125_v33 }
 0x129   : > { %1270 = vst.msk [vmem:[%s1930_s26 + $0x3c] sm:$0xf] %vm1254_vm2, %v1205_v35  ;;  %v1237_v38 = vpack.c.bf16 %v1173_v36, %v1173_v36 }
 0x12a   : > { %1286 = vst.msk [vmem:[%s1930_s26 + $0x7c] sm:$0xf] %vm1254_vm2, %v1221_v23  ;;  %v1253_v39 = vpack.c.bf16 %v1189_v37, %v1189_v37 }
 0x12b   : > { %1302 = vst.msk [vmem:[%s1930_s26 + $0xbc] sm:$0xf] %vm1254_vm2, %v1237_v38 }
 0x12c   : > { %1318 = vst.msk [vmem:[%s1930_s26 + $0xfc] sm:$0xf] %vm1254_vm2, %v1253_v39 }
 0x12d PF: > { %s12_s11 = sadd.s32 1, %s1693_s11   ;;  %s2184_s9 = smov %s1689_s10 }
 0x12e   : > { %p9_p5 = scmp.ge.s32.totalorder %s12_s11, 6   ;;  %s2185_s10 = smov %s2187_s12 }
 0x130   :  { %11 = sbr.rel (!%p9_p5) target bundleno = 2 (0x2), region = 69 }

// kernel: _lambda_.5
= control target key start
LH: loop header
LB: loop body
LE: loop exit
PB: predicated region body
PF: predicated region fallthrough
CT: control target
= control target key end

     0   :  { %s3747_s9 = smov 0   ;;  %s3749_s10 = smov 0   ;;  %s4351_s0 = inlined_call_operand.vmem [shape: bf16[512,1024], index: 0, kind: input, shape index: {}]   ;;  %s4352_s1 = inlined_call_operand.vmem [shape: bf16[1024,128], index: 1, kind: input, shape index: {}]   ;;  %s4353_s2 = inlined_call_operand.vmem [shape: bf16[512,128], index: 2, kind: output, shape index: {}]  }
   0x1   :  { %s3751_s11 = smov 0  }
   0x2 LB: > { %s31_s12 = sadd.s32 1, %s3726_s10  ;;  %p2620_p0 = scmp.ge.s32.totalorder %s3730_s11, 1  ;;  %s3730_s11 = sphi %s3751_s11, %s12_s11   ;;  %s3726_s10 = sphi %s3749_s10, %s4355_s10   ;;  %s3722_s9 = sphi %s3747_s9, %s4354_s9  }
   0x3   : > { %p33_p1 = scmp.ge.s32.totalorder %s31_s12, 2  ;;  %p158_p2 = scmp.lt.s32.totalorder %s3730_s11, 3 }
   0x5   : > { %s4357_s12 = smov (%p33_p1, %s31_s12), 0  ;;  %p159_p3 = pnand %p2620_p0, %p158_p2 }
   0x6   : > { %s2621_s13 = sshll.u32 (!%p159_p3), %s3722_s9, 5 }
   0x7   : > { %162 = sbr.rel (%p159_p3) target bundleno = 693 (0x2b5), region = 28  ;;  %p198_p4 = scmp.lt.s32.totalorder (!%p159_p3), %s2621_s13, 63 }
   0xc   : > { %v3532_v0 = vld [vmem:[%s4352_s1 + $0x38] sm:$0xff]  ;;  %v3531_v4 = vld [vmem:[%s4352_s1 + $0x30] sm:$0xff]  ;;  %v3530_v8 = vld [vmem:[%s4352_s1 + $0x28] sm:$0xff]  ;;  %s4359_s13 = smov (!%p198_p4, %s2621_s13), 63 }
   0xd   : > { %v3540_v1 = vld [vmem:[%s4352_s1 + $0x78] sm:$0xff]  ;;  %1574 = vmatpush.bf16.msra.mxu0 %v3532_v0  ;;  %v3539_v5 = vld [vmem:[%s4352_s1 + $0x70] sm:$0xff]  ;;  %v3538_v9 = vld [vmem:[%s4352_s1 + $0x68] sm:$0xff]  ;;  %s3396_s14 = sshll.u32 %s4359_s13, 5  ;;  %s2625_s28 = sshll.u32 %s4359_s13, 2 }
   0xe   : > { %v3548_v2 = vld [vmem:[%s4352_s1 + $0xb8] sm:$0xff]  ;;  %1663 = vmatpush.bf16.msra.mxu1 %v3540_v1  ;;  %v3547_v6 = vld [vmem:[%s4352_s1 + $0xb0] sm:$0xff]  ;;  %v3546_v10 = vld [vmem:[%s4352_s1 + $0xa8] sm:$0xff]  ;;  %s3852_s21 = scalar_lea.vmem %s4351_s0, %s3396_s14  ;;  %s4247_s3 = scalar_lea.vmem %s4353_s2, %s2625_s28 }
   0xf   : > { %v3556_v3 = vld [vmem:[%s4352_s1 + $0xf8] sm:$0xff]  ;;  %1752 = vmatpush.bf16.msra.mxu2 %v3548_v2  ;;  %v3555_v7 = vld [vmem:[%s4352_s1 + $0xf0] sm:$0xff]  ;;  %v3554_v11 = vld [vmem:[%s4352_s1 + $0xe8] sm:$0xff] }
  0x10   : > { %1841 = vmatpush.bf16.msra.mxu3 %v3556_v3  ;;  %v3529_v12 = vld [vmem:[%s4352_s1 + $0x20] sm:$0xff]  ;;  %v3528_v16 = vld [vmem:[%s4352_s1 + $0x18] sm:$0xff]  ;;  %v3527_v20 = vld [vmem:[%s4352_s1 + $0x10] sm:$0xff] }
  0x11   : > { %1575 = vmatpush.bf16.msra.mxu0 %v3531_v4  ;;  %v3537_v13 = vld [vmem:[%s4352_s1 + $0x60] sm:$0xff]  ;;  %v3536_v17 = vld [vmem:[%s4352_s1 + $0x58] sm:$0xff]  ;;  %v3535_v21 = vld [vmem:[%s4352_s1 + $0x50] sm:$0xff] }
  0x12   : > { %1664 = vmatpush.bf16.msra.mxu1 %v3539_v5  ;;  %v3545_v14 = vld [vmem:[%s4352_s1 + $0xa0] sm:$0xff]  ;;  %v3544_v18 = vld [vmem:[%s4352_s1 + $0x98] sm:$0xff]  ;;  %v3543_v22 = vld [vmem:[%s4352_s1 + $0x90] sm:$0xff] }
  0x13   : > { %1753 = vmatpush.bf16.msra.mxu2 %v3547_v6  ;;  %v3553_v15 = vld [vmem:[%s4352_s1 + $0xe0] sm:$0xff]  ;;  %v3552_v19 = vld [vmem:[%s4352_s1 + $0xd8] sm:$0xff]  ;;  %v3551_v23 = vld [vmem:[%s4352_s1 + $0xd0] sm:$0xff] }
  0x14   : > { %1842 = vmatpush.bf16.msra.mxu3 %v3555_v7  ;;  %v3526_v24 = vld [vmem:[%s4352_s1 + $0x8] sm:$0xff]  ;;  %v3525_v28 = vld [vmem:[%s4352_s1] sm:$0xff]  ;;  %v3580_v40 = vld [vmem:[%s4352_s1 + $0x1b8] sm:$0xff] }
  0x15   : > { %1576 = vmatpush.bf16.msra.mxu0 %v3530_v8  ;;  %v3534_v25 = vld [vmem:[%s4352_s1 + $0x48] sm:$0xff]  ;;  %v3533_v29 = vld [vmem:[%s4352_s1 + $0x40] sm:$0xff]  ;;  %v3564_v41 = vld [vmem:[%s4352_s1 + $0x138] sm:$0xff] }
  0x16   : > { %1665 = vmatpush.bf16.msra.mxu1 %v3538_v9  ;;  %v3542_v26 = vld [vmem:[%s4352_s1 + $0x88] sm:$0xff]  ;;  %v3541_v30 = vld [vmem:[%s4352_s1 + $0x80] sm:$0xff]  ;;  %v3588_v46 = vld [vmem:[%s4352_s1 + $0x1f8] sm:$0xff] }
  0x17   : > { %1754 = vmatpush.bf16.msra.mxu2 %v3546_v10  ;;  %v3550_v27 = vld [vmem:[%s4352_s1 + $0xc8] sm:$0xff]  ;;  %v3549_v31 = vld [vmem:[%s4352_s1 + $0xc0] sm:$0xff]  ;;  %v3572_v47 = vld [vmem:[%s4352_s1 + $0x178] sm:$0xff] }
  0x18   : > { %1843 = vmatpush.bf16.msra.mxu3 %v3554_v11  ;;  %v2628_v32 = vld [vmem:[%s3852_s21] sm:$0xf]  ;;  %v3397_v34 = vld [vmem:[%s3852_s21 + $0x4] sm:$0xf]  ;;  %v2636_v36 = vld [vmem:[%s3852_s21 + $0x8] sm:$0xf] }
  0x19   : > { %1577 = vmatpush.bf16.msra.mxu0 %v3529_v12  ;;  %v3401_v33 = vld [vmem:[%s3852_s21 + $0x1c] sm:$0xf0]  ;;  %v2630_v35 = vld [vmem:[%s3852_s21 + $0x20] sm:$0xf0]  ;;  %v3402_v37 = vld [vmem:[%s3852_s21 + $0x24] sm:$0xf0] }
  0x1a   : > { %1666 = vmatpush.bf16.msra.mxu1 %v3537_v13  ;;  %v3398_v38 = vld [vmem:[%s3852_s21 + $0xc] sm:$0xf]  ;;  %v2629_v42 = vor.u32 %v3401_v33, %v2628_v32  ;;  %v2633_v43 = vor.u32 %v3397_v34, %v2630_v35  ;;  %v2637_v44 = vor.u32 %v3402_v37, %v2636_v36  ;;  %v3579_v48 = vld [vmem:[%s4352_s1 + $0x1b0] sm:$0xff]  ;;  %v2660_v52 = vld [vmem:[%s3852_s21 + $0x40] sm:$0xf] }
  0x1b   : > { %1755 = vmatpush.bf16.msra.mxu2 %v3545_v14  ;;  %v2638_v39 = vld [vmem:[%s3852_s21 + $0x28] sm:$0xf0]  ;;  %v3563_v49 = vld [vmem:[%s4352_s1 + $0x130] sm:$0xff]  ;;  %v3409_v53 = vld [vmem:[%s3852_s21 + $0x5c] sm:$0xf0] }
  0x1c   : > { %1844 = vmatpush.bf16.msra.mxu3 %v3553_v15  ;;  %v2641_v45 = vor.u32 %v3398_v38, %v2638_v39  ;;  %v3587_v50 = vld [vmem:[%s4352_s1 + $0x1f0] sm:$0xff]  ;;  %v3405_v54 = vld [vmem:[%s3852_s21 + $0x44] sm:$0xf]  ;;  %v2668_v56 = vld [vmem:[%s3852_s21 + $0x48] sm:$0xf]  ;;  %v2661_v60 = vor.u32 %v3409_v53, %v2660_v52 }
  0x1d   : > { %1578 = vmatpush.bf16.msra.mxu0 %v3528_v16  ;;  %v3571_v51 = vld [vmem:[%s4352_s1 + $0x170] sm:$0xff]  ;;  %v2662_v55 = vld [vmem:[%s3852_s21 + $0x60] sm:$0xf0]  ;;  %v3410_v57 = vld [vmem:[%s3852_s21 + $0x64] sm:$0xf0] }
  0x1e   : > { %1667 = vmatpush.bf16.msra.mxu1 %v3536_v17  ;;  %v3406_v58 = vld [vmem:[%s3852_s21 + $0x4c] sm:$0xf]  ;;  %v2665_v61 = vor.u32 %v3405_v54, %v2662_v55  ;;  %v2669_v62 = vor.u32 %v3410_v57, %v2668_v56  ;;  %v2692_v0 = vld [vmem:[%s3852_s21 + $0x80] sm:$0xf]  ;;  %v3413_v2 = vld [vmem:[%s3852_s21 + $0x84] sm:$0xf] }
  0x1f   : > { %1756 = vmatpush.bf16.msra.mxu2 %v3544_v18  ;;  %v2670_v59 = vld [vmem:[%s3852_s21 + $0x68] sm:$0xf0]  ;;  %v3417_v1 = vld [vmem:[%s3852_s21 + $0x9c] sm:$0xf0]  ;;  %v2694_v3 = vld [vmem:[%s3852_s21 + $0xa0] sm:$0xf0] }
  0x20   : > { %1845 = vmatpush.bf16.msra.mxu3 %v3552_v19  ;;  %v2673_v63 = vor.u32 %v3406_v58, %v2670_v59  ;;  %v2700_v4 = vld [vmem:[%s3852_s21 + $0x88] sm:$0xf]  ;;  %v3414_v6 = vld [vmem:[%s3852_s21 + $0x8c] sm:$0xf]  ;;  %v2693_v8 = vor.u32 %v3417_v1, %v2692_v0  ;;  %v2697_v9 = vor.u32 %v3413_v2, %v2694_v3  ;;  %v2724_v16 = vld [vmem:[%s3852_s21 + $0xc0] sm:$0xf] }
  0x21   : > { %1579 = vmatpush.bf16.msra.mxu0 %v3527_v20  ;;  %v3418_v5 = vld [vmem:[%s3852_s21 + $0xa4] sm:$0xf0]  ;;  %v2702_v7 = vld [vmem:[%s3852_s21 + $0xa8] sm:$0xf0]  ;;  %v3425_v17 = vld [vmem:[%s3852_s21 + $0xdc] sm:$0xf0] }
  0x22   : > { %1668 = vmatpush.bf16.msra.mxu1 %v3535_v21  ;;  %v2701_v10 = vor.u32 %v3418_v5, %v2700_v4  ;;  %v2705_v11 = vor.u32 %v3414_v6, %v2702_v7  ;;  %v3578_v12 = vld [vmem:[%s4352_s1 + $0x1a8] sm:$0xff]  ;;  %v3421_v18 = vld [vmem:[%s3852_s21 + $0xc4] sm:$0xf]  ;;  %v2820_v56 = vld [vmem:[%s3852_s21 + $0x180] sm:$0xf] }
  0x23   : > { %1757 = vmatpush.bf16.msra.mxu2 %v3543_v22  ;;  %v3562_v13 = vld [vmem:[%s4352_s1 + $0x128] sm:$0xff]  ;;  %v2726_v19 = vld [vmem:[%s3852_s21 + $0xe0] sm:$0xf0]  ;;  %v3449_v57 = vld [vmem:[%s3852_s21 + $0x19c] sm:$0xf0] }
  0x24   : > { %1846 = vmatpush.bf16.msra.mxu3 %v3551_v23  ;;  %v3586_v14 = vld [vmem:[%s4352_s1 + $0x1e8] sm:$0xff]  ;;  %v3445_v58 = vld [vmem:[%s3852_s21 + $0x184] sm:$0xf]  ;;  %v2821_v0 = vor.u32 %v3449_v57, %v2820_v56  ;;  %v3576_v4 = vld [vmem:[%s4352_s1 + $0x198] sm:$0xff] }
  0x25   : > { %1580 = vmatpush.bf16.msra.mxu0 %v3526_v24  ;;  %v3570_v15 = vld [vmem:[%s4352_s1 + $0x168] sm:$0xff]  ;;  %v2725_v24 = vor.u32 %v3425_v17, %v2724_v16  ;;  %v2822_v59 = vld [vmem:[%s3852_s21 + $0x1a0] sm:$0xf0]  ;;  %v3560_v5 = vld [vmem:[%s4352_s1 + $0x118] sm:$0xff] }
  0x26   : > { %1669 = vmatpush.bf16.msra.mxu1 %v3534_v25  ;;  %v2732_v20 = vld [vmem:[%s3852_s21 + $0xc8] sm:$0xf]  ;;  %v3422_v22 = vld [vmem:[%s3852_s21 + $0xcc] sm:$0xf]  ;;  %v2729_v25 = vor.u32 %v3421_v18, %v2726_v19  ;;  %v2825_v1 = vor.u32 %v3445_v58, %v2822_v59  ;;  %v3584_v6 = vld [vmem:[%s4352_s1 + $0x1d8] sm:$0xff] }
  0x27   : > { %1758 = vmatpush.bf16.msra.mxu2 %v3542_v26  ;;  %v3426_v21 = vld [vmem:[%s3852_s21 + $0xe4] sm:$0xf0]  ;;  %v2734_v23 = vld [vmem:[%s3852_s21 + $0xe8] sm:$0xf0]  ;;  %v3568_v7 = vld [vmem:[%s4352_s1 + $0x158] sm:$0xff] }
  0x28   : > { %1847 = vmatpush.bf16.msra.mxu3 %v3550_v27  ;;  %v2733_v26 = vor.u32 %v3426_v21, %v2732_v20  ;;  %v2737_v27 = vor.u32 %v3422_v22, %v2734_v23  ;;  %v2764_v32 = vld [vmem:[%s3852_s21 + $0x108] sm:$0xf]  ;;  %v3430_v34 = vld [vmem:[%s3852_s21 + $0x10c] sm:$0xf]  ;;  %v2884_v20 = vld [vmem:[%s3852_s21 + $0x200] sm:$0xf] }
  0x29   : > { %1581 = vmatpush.bf16.msra.mxu0 %v3525_v28  ;;  %v2756_v28 = vld [vmem:[%s3852_s21 + $0x100] sm:$0xf]  ;;  %v3434_v33 = vld [vmem:[%s3852_s21 + $0x124] sm:$0xf0]  ;;  %v2766_v35 = vld [vmem:[%s3852_s21 + $0x128] sm:$0xf0] }
  0x2a   : > { %1670 = vmatpush.bf16.msra.mxu1 %v3533_v29  ;;  %v3433_v29 = vld [vmem:[%s3852_s21 + $0x11c] sm:$0xf0]  ;;  %v2765_v38 = vor.u32 %v3434_v33, %v2764_v32  ;;  %v2769_v39 = vor.u32 %v3430_v34, %v2766_v35  ;;  %v3461_v22 = vld [vmem:[%s3852_s21 + $0x204] sm:$0xf]  ;;  %v3575_v35 = vld [vmem:[%s4352_s1 + $0x190] sm:$0xff] }
  0x2b   : > { %1759 = vmatpush.bf16.msra.mxu2 %v3541_v30  ;;  %v3429_v30 = vld [vmem:[%s3852_s21 + $0x104] sm:$0xf]  ;;  %v2757_v36 = vor.u32 %v3433_v29, %v2756_v28  ;;  %v3465_v21 = vld [vmem:[%s3852_s21 + $0x21c] sm:$0xf0] }
  0x2c   : > { %1848 = vmatpush.bf16.msra.mxu3 %v3549_v31  ;;  %1582 = vmatmul.bf16.vlgmr.msra.gmra.mxu0 %v2629_v42  ;;  %v2758_v31 = vld [vmem:[%s3852_s21 + $0x120] sm:$0xf0]  ;;  %v2885_v28 = vor.u32 %v3465_v21, %v2884_v20 }
  0x2d   : > { %1930 = vmatpush.bf16.msrb.mxu0 %v3564_v41  ;;  %1671 = vmatmul.bf16.vlgmr.msra.gmra.mxu1 %v2633_v43  ;;  %v2761_v37 = vor.u32 %v3429_v30, %v2758_v31  ;;  %v3561_v41 = vld [vmem:[%s4352_s1 + $0x120] sm:$0xff] }
  0x2e   : > { %1760 = vmatmul.bf16.vlgmr.msra.gmra.mxu2 %v2637_v44  ;;  %2019 = vmatpush.bf16.msrb.mxu1 %v3572_v47  ;;  %v3585_v42 = vld [vmem:[%s4352_s1 + $0x1e0] sm:$0xff] }
  0x2f   : > { %2108 = vmatpush.bf16.msrb.mxu2 %v3580_v40  ;;  %1849 = vmatmul.bf16.vlgmr.msra.gmra.mxu3 %v2641_v45  ;;  %v3577_v40 = vld [vmem:[%s4352_s1 + $0x1a0] sm:$0xff] }
  0x30   : > { %2197 = vmatpush.bf16.msrb.mxu3 %v3588_v46  ;;  %v3569_v43 = vld [vmem:[%s4352_s1 + $0x160] sm:$0xff] }
  0x31   : > { %1931 = vmatpush.bf16.msrb.mxu0 %v3563_v49  ;;  %v2788_v44 = vld [vmem:[%s3852_s21 + $0x140] sm:$0xf]  ;;  %v3437_v46 = vld [vmem:[%s3852_s21 + $0x144] sm:$0xf]  ;;  %v3442_v49 = vld [vmem:[%s3852_s21 + $0x164] sm:$0xf0] }
  0x32   : > { %2020 = vmatpush.bf16.msrb.mxu1 %v3571_v51  ;;  %v3441_v45 = vld [vmem:[%s3852_s21 + $0x15c] sm:$0xf0]  ;;  %v2790_v47 = vld [vmem:[%s3852_s21 + $0x160] sm:$0xf0]  ;;  %v2798_v51 = vld [vmem:[%s3852_s21 + $0x168] sm:$0xf0] }
  0x33   : > { %2109 = vmatpush.bf16.msrb.mxu2 %v3579_v48  ;;  %v2796_v48 = vld [vmem:[%s3852_s21 + $0x148] sm:$0xf]  ;;  %v2789_v52 = vor.u32 %v3441_v45, %v2788_v44  ;;  %v2793_v53 = vor.u32 %v3437_v46, %v2790_v47  ;;  %v2886_v23 = vld [vmem:[%s3852_s21 + $0x220] sm:$0xf0]  ;;  %v3567_v45 = vld [vmem:[%s4352_s1 + $0x150] sm:$0xff] }
  0x34   : > { %2198 = vmatpush.bf16.msrb.mxu3 %v3587_v50  ;;  %v3438_v50 = vld [vmem:[%s3852_s21 + $0x14c] sm:$0xf]  ;;  %v2797_v54 = vor.u32 %v3442_v49, %v2796_v48  ;;  %v2889_v29 = vor.u32 %v3461_v22, %v2886_v23  ;;  %v2916_v46 = vld [vmem:[%s3852_s21 + $0x240] sm:$0xf]  ;;  %v3469_v48 = vld [vmem:[%s3852_s21 + $0x244] sm:$0xf] }
  0x35   : > { %1932 = vmatpush.bf16.msrb.mxu0 %v3562_v13  ;;  %v2801_v55 = vor.u32 %v3438_v50, %v2798_v51  ;;  %v3458_v13 = vld [vmem:[%s3852_s21 + $0x1e4] sm:$0xf0]  ;;  %v3473_v47 = vld [vmem:[%s3852_s21 + $0x25c] sm:$0xf0]  ;;  %v2918_v49 = vld [vmem:[%s3852_s21 + $0x260] sm:$0xf0] }
  0x36   : > { %2021 = vmatpush.bf16.msrb.mxu1 %v3570_v15  ;;  %v2862_v15 = vld [vmem:[%s3852_s21 + $0x1e8] sm:$0xf0]  ;;  %v2924_v50 = vld [vmem:[%s3852_s21 + $0x248] sm:$0xf]  ;;  %v2917_v56 = vor.u32 %v3473_v47, %v2916_v46  ;;  %v2921_v57 = vor.u32 %v3469_v48, %v2918_v49 }
  0x37   : > { %2110 = vmatpush.bf16.msrb.mxu2 %v3578_v12  ;;  %v2860_v12 = vld [vmem:[%s3852_s21 + $0x1c8] sm:$0xf]  ;;  %v2990_v46 = vld [vmem:[%s3852_s21 + $0x2e8] sm:$0xf0] }
  0x38   : > { %2199 = vmatpush.bf16.msrb.mxu3 %v3586_v14  ;;  %v3454_v14 = vld [vmem:[%s3852_s21 + $0x1cc] sm:$0xf]  ;;  %v2861_v18 = vor.u32 %v3458_v13, %v2860_v12  ;;  %v3474_v51 = vld [vmem:[%s3852_s21 + $0x264] sm:$0xf0] }
  0x39   : > { %1933 = vmatpush.bf16.msrb.mxu0 %v3561_v41  ;;  %v2865_v19 = vor.u32 %v3454_v14, %v2862_v15  ;;  %v2956_v12 = vld [vmem:[%s3852_s21 + $0x288] sm:$0xf]  ;;  %v3478_v14 = vld [vmem:[%s3852_s21 + $0x28c] sm:$0xf] }
  0x3a   : > { %2022 = vmatpush.bf16.msrb.mxu1 %v3569_v43  ;;  %v3482_v13 = vld [vmem:[%s3852_s21 + $0x2a4] sm:$0xf0]  ;;  %v2958_v15 = vld [vmem:[%s3852_s21 + $0x2a8] sm:$0xf0] }
  0x3b   : > { %2111 = vmatpush.bf16.msrb.mxu2 %v3577_v40  ;;  %v2957_v23 = vor.u32 %v3482_v13, %v2956_v12 }
  0x3c   : > { %1587 = vmatmul.bf16.gmra.mxu0 %v2661_v60  ;;  %2200 = vmatpush.bf16.msrb.mxu3 %v3585_v42  ;;  %v2828_v60 = vld [vmem:[%s3852_s21 + $0x188] sm:$0xf] }
  0x3d   : > { %1676 = vmatmul.bf16.gmra.mxu1 %v2665_v61  ;;  %v3450_v61 = vld [vmem:[%s3852_s21 + $0x1a4] sm:$0xf0]  ;;  %1934 = vmatpush.bf16.msrb.mxu0 %v3560_v5 }
  0x3e   : > { %1765 = vmatmul.bf16.gmra.mxu2 %v2669_v62  ;;  %v3446_v62 = vld [vmem:[%s3852_s21 + $0x18c] sm:$0xf]  ;;  %v2829_v2 = vor.u32 %v3450_v61, %v2828_v60  ;;  %2023 = vmatpush.bf16.msrb.mxu1 %v3568_v7  ;;  %v2925_v61 = vor.u32 %v3474_v51, %v2924_v50 }
  0x3f   : > { %1854 = vmatmul.bf16.gmra.mxu3 %v2673_v63  ;;  %v2830_v63 = vld [vmem:[%s3852_s21 + $0x1a8] sm:$0xf0]  ;;  %2112 = vmatpush.bf16.msrb.mxu2 %v3576_v4 }
  0x40   : > { %v2833_v3 = vor.u32 %v3446_v62, %v2830_v63  ;;  %2201 = vmatpush.bf16.msrb.mxu3 %v3584_v6 }
  0x42   : > { %2024 = vmatpush.bf16.msrb.mxu1 %v3567_v45  ;;  %v3486_v45 = vld [vmem:[%s3852_s21 + $0x2cc] sm:$0xf] }
  0x43   : > { %2113 = vmatpush.bf16.msrb.mxu2 %v3575_v35 }
  0x4c   : > { %1592 = vmatmul.bf16.gmra.mxu0 %v2693_v8  ;;  %v2852_v8 = vld [vmem:[%s3852_s21 + $0x1c0] sm:$0xf] }
  0x4d   : > { %1681 = vmatmul.bf16.gmra.mxu1 %v2697_v9  ;;  %v3457_v9 = vld [vmem:[%s3852_s21 + $0x1dc] sm:$0xf0] }
  0x4e   : > { %1770 = vmatmul.bf16.gmra.mxu2 %v2701_v10  ;;  %v3453_v10 = vld [vmem:[%s3852_s21 + $0x1c4] sm:$0xf]  ;;  %v2853_v16 = vor.u32 %v3457_v9, %v2852_v8  ;;  %v2948_v8 = vld [vmem:[%s3852_s21 + $0x280] sm:$0xf] }
  0x4f   : > { %1859 = vmatmul.bf16.gmra.mxu3 %v2705_v11  ;;  %v2854_v11 = vld [vmem:[%s3852_s21 + $0x1e0] sm:$0xf0]  ;;  %v3481_v9 = vld [vmem:[%s3852_s21 + $0x29c] sm:$0xf0] }
  0x50   : > { %v2857_v17 = vor.u32 %v3453_v10, %v2854_v11  ;;  %v3477_v10 = vld [vmem:[%s3852_s21 + $0x284] sm:$0xf] }
  0x51   : > { %v2950_v11 = vld [vmem:[%s3852_s21 + $0x2a0] sm:$0xf0] }
  0x5c   : > { %1597 = vmatmul.bf16.gmra.mxu0 %v2725_v24  ;;  %v2892_v24 = vld [vmem:[%s3852_s21 + $0x208] sm:$0xf] }
  0x5d   : > { %1686 = vmatmul.bf16.gmra.mxu1 %v2729_v25  ;;  %v3466_v25 = vld [vmem:[%s3852_s21 + $0x224] sm:$0xf0] }
  0x5e   : > { %1775 = vmatmul.bf16.gmra.mxu2 %v2733_v26  ;;  %v3462_v26 = vld [vmem:[%s3852_s21 + $0x20c] sm:$0xf]  ;;  %v2893_v32 = vor.u32 %v3466_v25, %v2892_v24  ;;  %v2961_v24 = vor.u32 %v3478_v14, %v2958_v15 }
  0x5f   : > { %1864 = vmatmul.bf16.gmra.mxu3 %v2737_v27  ;;  %v2894_v27 = vld [vmem:[%s3852_s21 + $0x228] sm:$0xf0] }
  0x60   : > { %v2897_v33 = vor.u32 %v3462_v26, %v2894_v27  ;;  %v3574_v27 = vld [vmem:[%s4352_s1 + $0x188] sm:$0xff] }
  0x61   : > { %2114 = vmatpush.bf16.msrb.mxu2 %v3574_v27 }
  0x6c   : > { %1602 = vmatmul.bf16.gmra.mxu0 %v2757_v36  ;;  %v3559_v36 = vld [vmem:[%s4352_s1 + $0x110] sm:$0xff] }
  0x6d   : > { %1691 = vmatmul.bf16.gmra.mxu1 %v2761_v37  ;;  %v3583_v37 = vld [vmem:[%s4352_s1 + $0x1d0] sm:$0xff]  ;;  %1935 = vmatpush.bf16.msrb.mxu0 %v3559_v36 }
  0x6e   : > { %1780 = vmatmul.bf16.gmra.mxu2 %v2765_v38  ;;  %2202 = vmatpush.bf16.msrb.mxu3 %v3583_v37  ;;  %v3566_v37 = vld [vmem:[%s4352_s1 + $0x148] sm:$0xff] }
  0x6f   : > { %1869 = vmatmul.bf16.gmra.mxu3 %v2769_v39  ;;  %2025 = vmatpush.bf16.msrb.mxu1 %v3566_v37  ;;  %v3501_v37 = vld [vmem:[%s3852_s21 + $0x344] sm:$0xf] }
  0x7c   : > { %1607 = vmatmul.bf16.gmra.mxu0 %v2789_v52  ;;  %v3470_v52 = vld [vmem:[%s3852_s21 + $0x24c] sm:$0xf] }
  0x7d   : > { %1696 = vmatmul.bf16.gmra.mxu1 %v2793_v53  ;;  %v2926_v53 = vld [vmem:[%s3852_s21 + $0x268] sm:$0xf0] }
  0x7e   : > { %1785 = vmatmul.bf16.gmra.mxu2 %v2797_v54  ;;  %v2929_v62 = vor.u32 %v3470_v52, %v2926_v53 }
  0x7f   : > { %1874 = vmatmul.bf16.gmra.mxu3 %v2801_v55 }
  0x8c   : > { %1612 = vmatmul.bf16.gmra.mxu0 %v2821_v0 }
  0x8d   : > { %1701 = vmatmul.bf16.gmra.mxu1 %v2825_v1 }
  0x8e   : > { %1790 = vmatmul.bf16.gmra.mxu2 %v2829_v2 }
  0x8f   : > { %1879 = vmatmul.bf16.gmra.mxu3 %v2833_v3 }
  0x9c   : > { %1617 = vmatmul.bf16.gmra.mxu0 %v2853_v16 }
  0x9d   : > { %1706 = vmatmul.bf16.gmra.mxu1 %v2857_v17 }
  0x9e   : > { %1795 = vmatmul.bf16.gmra.mxu2 %v2861_v18  ;;  %v2949_v18 = vor.u32 %v3481_v9, %v2948_v8  ;;  %v3498_v8 = vld [vmem:[%s3852_s21 + $0x324] sm:$0xf0]  ;;  %v3494_v9 = vld [vmem:[%s3852_s21 + $0x30c] sm:$0xf] }
  0x9f   : > { %1884 = vmatmul.bf16.gmra.mxu3 %v2865_v19  ;;  %v2953_v19 = vor.u32 %v3477_v10, %v2950_v11  ;;  %v3022_v10 = vld [vmem:[%s3852_s21 + $0x328] sm:$0xf0] }
  0xa9   : > { %v1583_v30 = vpop.f32.mrf.mxu0 }
  0xaa   : > { %v1672_v31 = vpop.f32.mrf.mxu1 }
  0xab   : > { %v1673_v34 = vadd.f32 %v1672_v31, %v1583_v30 }
  0xac   : > { %1622 = vmatmul.bf16.gmra.mxu0 %v2885_v28  ;;  %v3558_v28 = vld [vmem:[%s4352_s1 + $0x108] sm:$0xff] }
  0xad   : > { %1711 = vmatmul.bf16.gmra.mxu1 %v2889_v29  ;;  %v3582_v29 = vld [vmem:[%s4352_s1 + $0x1c8] sm:$0xff]  ;;  %1936 = vmatpush.bf16.msrb.mxu0 %v3558_v28 }
  0xae   : > { %1800 = vmatmul.bf16.gmra.mxu2 %v2893_v32  ;;  %2203 = vmatpush.bf16.msrb.mxu3 %v3582_v29 }
  0xaf   : > { %1889 = vmatmul.bf16.gmra.mxu3 %v2897_v33 }
  0xb1   : > { %v1761_v38 = vpop.f32.mrf.mxu2  ;;  %v1585_v41 = vpop.f32.mrf.mxu0 }
  0xb2   : > { %v1850_v39 = vpop.f32.mrf.mxu3  ;;  %v1762_v40 = vadd.f32 %v1761_v38, %v1673_v34  ;;  %v1674_v42 = vpop.f32.mrf.mxu1  ;;  %v2980_v38 = vld [vmem:[%s3852_s21 + $0x2c0] sm:$0xf] }
  0xb3   : > { %v1675_v43 = vadd.f32 %v1674_v42, %v1585_v41  ;;  %v2982_v41 = vld [vmem:[%s3852_s21 + $0x2e0] sm:$0xf0]  ;;  %v2988_v42 = vld [vmem:[%s3852_s21 + $0x2c8] sm:$0xf] }
  0xb4   : > { %v4013_v44 = vadd.f32 %v1850_v39, %v1762_v40  ;;  %v3489_v39 = vld [vmem:[%s3852_s21 + $0x2dc] sm:$0xf0]  ;;  %v3485_v40 = vld [vmem:[%s3852_s21 + $0x2c4] sm:$0xf] }
  0xb5   : > { %v2981_v49 = vor.u32 %v3489_v39, %v2980_v38  ;;  %v2985_v50 = vor.u32 %v3485_v40, %v2982_v41  ;;  %v3046_v38 = vld [vmem:[%s3852_s21 + $0x360] sm:$0xf0]  ;;  %v3052_v39 = vld [vmem:[%s3852_s21 + $0x348] sm:$0xf]  ;;  %v3502_v41 = vld [vmem:[%s3852_s21 + $0x34c] sm:$0xf] }
  0xb6   : > { %v3506_v40 = vld [vmem:[%s3852_s21 + $0x364] sm:$0xf0] }
  0xb9   : > { %v1763_v54 = vpop.f32.mrf.mxu2  ;;  %v1588_v59 = vpop.f32.mrf.mxu0 }
  0xba   : > { %v1852_v55 = vpop.f32.mrf.mxu3  ;;  %v1764_v58 = vadd.f32 %v1763_v54, %v1675_v43  ;;  %v1677_v60 = vpop.f32.mrf.mxu1  ;;  %v3490_v43 = vld [vmem:[%s3852_s21 + $0x2e4] sm:$0xf0] }
  0xbb   : > { %v1678_v63 = vadd.f32 %v1677_v60, %v1588_v59  ;;  %v2989_v54 = vor.u32 %v3490_v43, %v2988_v42  ;;  %v3054_v42 = vld [vmem:[%s3852_s21 + $0x368] sm:$0xf0] }
  0xbc   : > { %v4026_v0 = vadd.f32 %v1852_v55, %v1764_v58  ;;  %1627 = vmatmul.bf16.gmra.mxu0 %v2917_v56  ;;  %v2993_v55 = vor.u32 %v3486_v45, %v2990_v46 }
  0xbd   : > { %1716 = vmatmul.bf16.gmra.mxu1 %v2921_v57 }
  0xbe   : > { %1805 = vmatmul.bf16.gmra.mxu2 %v2925_v61 }
  0xbf   : > { %1894 = vmatmul.bf16.gmra.mxu3 %v2929_v62 }
  0xc1   : > { %v1766_v1 = vpop.f32.mrf.mxu2  ;;  %v1590_v4 = vpop.f32.mrf.mxu0 }
  0xc2   : > { %v1855_v2 = vpop.f32.mrf.mxu3  ;;  %v1767_v3 = vadd.f32 %v1766_v1, %v1678_v63  ;;  %v1679_v5 = vpop.f32.mrf.mxu1 }
  0xc3   : > { %v1680_v6 = vadd.f32 %v1679_v5, %v1590_v4  ;;  %v3493_v4 = vld [vmem:[%s3852_s21 + $0x304] sm:$0xf] }
  0xc4   : > { %v4028_v7 = vadd.f32 %v1855_v2, %v1767_v3  ;;  %v3012_v2 = vld [vmem:[%s3852_s21 + $0x300] sm:$0xf]  ;;  %v3014_v5 = vld [vmem:[%s3852_s21 + $0x320] sm:$0xf0] }
  0xc5   : > { %v3497_v3 = vld [vmem:[%s3852_s21 + $0x31c] sm:$0xf0]  ;;  %v3017_v14 = vor.u32 %v3493_v4, %v3014_v5  ;;  %v3078_v4 = vld [vmem:[%s3852_s21 + $0x3a0] sm:$0xf0]  ;;  %v3084_v5 = vld [vmem:[%s3852_s21 + $0x388] sm:$0xf] }
  0xc6   : > { %v3013_v13 = vor.u32 %v3497_v3, %v3012_v2  ;;  %v3513_v2 = vld [vmem:[%s3852_s21 + $0x39c] sm:$0xf0]  ;;  %v3509_v3 = vld [vmem:[%s3852_s21 + $0x384] sm:$0xf] }
  0xc9   : > { %v1768_v16 = vpop.f32.mrf.mxu2  ;;  %v1593_v21 = vpop.f32.mrf.mxu0 }
  0xca   : > { %v1857_v17 = vpop.f32.mrf.mxu3  ;;  %v1769_v20 = vadd.f32 %v1768_v16, %v1680_v6  ;;  %v1682_v22 = vpop.f32.mrf.mxu1  ;;  %v3020_v6 = vld [vmem:[%s3852_s21 + $0x308] sm:$0xf] }
  0xcb   : > { %v1683_v25 = vadd.f32 %v1682_v22, %v1593_v21  ;;  %v3573_v22 = vld [vmem:[%s4352_s1 + $0x180] sm:$0xff] }
  0xcc   : > { %v4038_v26 = vadd.f32 %v1857_v17, %v1769_v20  ;;  %1632 = vmatmul.bf16.gmra.mxu0 %v2949_v18  ;;  %v3021_v18 = vor.u32 %v3498_v8, %v3020_v6  ;;  %2115 = vmatpush.bf16.msrb.mxu2 %v3573_v22  ;;  %v3514_v6 = vld [vmem:[%s3852_s21 + $0x3a4] sm:$0xf0]  ;;  %v3510_v8 = vld [vmem:[%s3852_s21 + $0x38c] sm:$0xf] }
  0xcd   : > { %1721 = vmatmul.bf16.gmra.mxu1 %v2953_v19  ;;  %v3025_v19 = vor.u32 %v3494_v9, %v3022_v10  ;;  %v3086_v9 = vld [vmem:[%s3852_s21 + $0x3a8] sm:$0xf0] }
  0xce   : > { %1810 = vmatmul.bf16.gmra.mxu2 %v2957_v23  ;;  %v3557_v23 = vld [vmem:[%s4352_s1 + $0x100] sm:$0xff] }
  0xcf   : > { %1899 = vmatmul.bf16.gmra.mxu3 %v2961_v24  ;;  %v3581_v24 = vld [vmem:[%s4352_s1 + $0x1c0] sm:$0xff]  ;;  %1937 = vmatpush.bf16.msrb.mxu0 %v3557_v23 }
  0xd0   : > { %2204 = vmatpush.bf16.msrb.mxu3 %v3581_v24 }
  0xd1   : > { %v1771_v30 = vpop.f32.mrf.mxu2  ;;  %v1595_v33 = vpop.f32.mrf.mxu0 }
  0xd2   : > { %v1860_v31 = vpop.f32.mrf.mxu3  ;;  %v1772_v32 = vadd.f32 %v1771_v30, %v1683_v25  ;;  %v1684_v34 = vpop.f32.mrf.mxu1 }
  0xd3   : > { %v1685_v35 = vadd.f32 %v1684_v34, %v1595_v33  ;;  %v3565_v33 = vld [vmem:[%s4352_s1 + $0x140] sm:$0xff] }
  0xd4   : > { %v4049_v36 = vadd.f32 %v1860_v31, %v1772_v32  ;;  %v3044_v34 = vld [vmem:[%s3852_s21 + $0x340] sm:$0xf]  ;;  %2026 = vmatpush.bf16.msrb.mxu1 %v3565_v33  ;;  %v3517_v33 = vld [vmem:[%s3852_s21 + $0x3c4] sm:$0xf] }
  0xd9   : > { %v1773_v47 = vpop.f32.mrf.mxu2  ;;  %v1598_v52 = vpop.f32.mrf.mxu0 }
  0xda   : > { %v1862_v48 = vpop.f32.mrf.mxu3  ;;  %v1774_v51 = vadd.f32 %v1773_v47, %v1685_v35  ;;  %v1687_v53 = vpop.f32.mrf.mxu1  ;;  %v3505_v35 = vld [vmem:[%s3852_s21 + $0x35c] sm:$0xf0]  ;;  %v3049_v47 = vor.u32 %v3501_v37, %v3046_v38  ;;  %v3522_v37 = vld [vmem:[%s3852_s21 + $0x3e4] sm:$0xf0]  ;;  %v3518_v38 = vld [vmem:[%s3852_s21 + $0x3cc] sm:$0xf] }
  0xdb   : > { %v1688_v56 = vadd.f32 %v1687_v53, %v1598_v52  ;;  %v3045_v46 = vor.u32 %v3505_v35, %v3044_v34  ;;  %v3057_v52 = vor.u32 %v3502_v41, %v3054_v42  ;;  %v3110_v34 = vld [vmem:[%s3852_s21 + $0x3e0] sm:$0xf0]  ;;  %v3116_v35 = vld [vmem:[%s3852_s21 + $0x3c8] sm:$0xf] }
  0xdc   : > { %v4062_v57 = vadd.f32 %v1862_v48, %v1774_v51  ;;  %1637 = vmatmul.bf16.gmra.mxu0 %v2981_v49  ;;  %v3053_v51 = vor.u32 %v3506_v40, %v3052_v39  ;;  %v3118_v39 = vld [vmem:[%s3852_s21 + $0x3e8] sm:$0xf0] }
  0xdd   : > { %1726 = vmatmul.bf16.gmra.mxu1 %v2985_v50 }
  0xde   : > { %1815 = vmatmul.bf16.gmra.mxu2 %v2989_v54 }
  0xdf   : > { %1904 = vmatmul.bf16.gmra.mxu3 %v2993_v55 }
  0xe1   : > { %v1776_v58 = vpop.f32.mrf.mxu2  ;;  %v1600_v61 = vpop.f32.mrf.mxu0 }
  0xe2   : > { %v1865_v59 = vpop.f32.mrf.mxu3  ;;  %v1777_v60 = vadd.f32 %v1776_v58, %v1688_v56  ;;  %v1689_v62 = vpop.f32.mrf.mxu1 }
  0xe3   : > { %v1690_v63 = vadd.f32 %v1689_v62, %v1600_v61 }
  0xe4   : > { %v4064_v1 = vadd.f32 %v1865_v59, %v1777_v60 }
  0xe9   : > { %v1778_v11 = vpop.f32.mrf.mxu2  ;;  %v1603_v16 = vpop.f32.mrf.mxu0 }
  0xea   : > { %v1867_v12 = vpop.f32.mrf.mxu3  ;;  %v1779_v15 = vadd.f32 %v1778_v11, %v1690_v63  ;;  %v1692_v17 = vpop.f32.mrf.mxu1  ;;  %v3076_v63 = vld [vmem:[%s3852_s21 + $0x380] sm:$0xf] }
  0xeb   : > { %v1693_v20 = vadd.f32 %v1692_v17, %v1603_v16  ;;  %v3085_v17 = vor.u32 %v3514_v6, %v3084_v5  ;;  %v3404_v5 = vld [vmem:[%s3852_s21 + $0x34] sm:$0xf0]  ;;  %v3400_v6 = vld [vmem:[%s3852_s21 + $0x1c] sm:$0xf] }
  0xec   : > { %v4074_v21 = vadd.f32 %v1867_v12, %v1779_v15  ;;  %1642 = vmatmul.bf16.gmra.mxu0 %v3013_v13  ;;  %v3077_v12 = vor.u32 %v3513_v2, %v3076_v63  ;;  %v3081_v13 = vor.u32 %v3509_v3, %v3078_v4  ;;  %v3403_v63 = vld [vmem:[%s3852_s21 + $0x2c] sm:$0xf0]  ;;  %v3399_v2 = vld [vmem:[%s3852_s21 + $0x14] sm:$0xf]  ;;  %v2652_v4 = vld [vmem:[%s3852_s21 + $0x18] sm:$0xf] }
  0xed   : > { %1731 = vmatmul.bf16.gmra.mxu1 %v3017_v14  ;;  %v2646_v3 = vld [vmem:[%s3852_s21 + $0x30] sm:$0xf0] }
  0xee   : > { %1820 = vmatmul.bf16.gmra.mxu2 %v3021_v18  ;;  %v3089_v18 = vor.u32 %v3510_v8, %v3086_v9  ;;  %v2654_v8 = vld [vmem:[%s3852_s21 + $0x38] sm:$0xf0] }
  0xef   : > { %1909 = vmatmul.bf16.gmra.mxu3 %v3025_v19 }
  0xf1   : > { %v1781_v25 = vpop.f32.mrf.mxu2  ;;  %v1605_v29 = vpop.f32.mrf.mxu0 }
  0xf2   : > { %v1870_v27 = vpop.f32.mrf.mxu3  ;;  %v1782_v28 = vadd.f32 %v1781_v25, %v1693_v20  ;;  %v1694_v30 = vpop.f32.mrf.mxu1 }
  0xf3   : > { %v1695_v31 = vadd.f32 %v1694_v30, %v1605_v29  ;;  %v3108_v30 = vld [vmem:[%s3852_s21 + $0x3c0] sm:$0xf] }
  0xf4   : > { %v4085_v32 = vadd.f32 %v1870_v27, %v1782_v28 }
  0xf9   : > { %v1783_v43 = vpop.f32.mrf.mxu2  ;;  %v1608_v49 = vpop.f32.mrf.mxu0 }
  0xfa   : > { %v1872_v45 = vpop.f32.mrf.mxu3  ;;  %v1784_v48 = vadd.f32 %v1783_v43, %v1695_v31  ;;  %v1697_v50 = vpop.f32.mrf.mxu1  ;;  %v3521_v31 = vld [vmem:[%s3852_s21 + $0x3dc] sm:$0xf0]  ;;  %v3113_v43 = vor.u32 %v3517_v33, %v3110_v34  ;;  %v3411_v33 = vld [vmem:[%s3852_s21 + $0x6c] sm:$0xf0]  ;;  %v3407_v34 = vld [vmem:[%s3852_s21 + $0x54] sm:$0xf] }
  0xfb   : > { %v1698_v53 = vadd.f32 %v1697_v50, %v1608_v49  ;;  %v3109_v42 = vor.u32 %v3521_v31, %v3108_v30  ;;  %v3121_v49 = vor.u32 %v3518_v38, %v3118_v39  ;;  %v2676_v31 = vld [vmem:[%s3852_s21 + $0x50] sm:$0xf]  ;;  %v3412_v38 = vld [vmem:[%s3852_s21 + $0x74] sm:$0xf0]  ;;  %v3408_v39 = vld [vmem:[%s3852_s21 + $0x5c] sm:$0xf] }
  0xfc   : > { %v4098_v54 = vadd.f32 %v1872_v45, %v1784_v48  ;;  %1647 = vmatmul.bf16.gmra.mxu0 %v3045_v46  ;;  %v3117_v48 = vor.u32 %v3522_v37, %v3116_v35  ;;  %v2678_v35 = vld [vmem:[%s3852_s21 + $0x70] sm:$0xf0]  ;;  %v2684_v37 = vld [vmem:[%s3852_s21 + $0x58] sm:$0xf] }
  0xfd   : > { %1736 = vmatmul.bf16.gmra.mxu1 %v3049_v47 }
  0xfe   : > { %1825 = vmatmul.bf16.gmra.mxu2 %v3053_v51 }
  0xff   : > { %1914 = vmatmul.bf16.gmra.mxu3 %v3057_v52 }
 0x101   : > { %v1786_v55 = vpop.f32.mrf.mxu2  ;;  %v1610_v59 = vpop.f32.mrf.mxu0 }
 0x102   : > { %v1875_v56 = vpop.f32.mrf.mxu3  ;;  %v1787_v58 = vadd.f32 %v1786_v55, %v1698_v53  ;;  %v1699_v60 = vpop.f32.mrf.mxu1 }
 0x103   : > { %v1700_v61 = vadd.f32 %v1699_v60, %v1610_v59 }
 0x104   : > { %v4100_v62 = vadd.f32 %v1875_v56, %v1787_v58 }
 0x109   : > { %v1788_v10 = vpop.f32.mrf.mxu2  ;;  %v1613_v15 = vpop.f32.mrf.mxu0 }
 0x10a   : > { %v1877_v11 = vpop.f32.mrf.mxu3  ;;  %v1789_v14 = vadd.f32 %v1788_v10, %v1700_v61  ;;  %v1702_v16 = vpop.f32.mrf.mxu1  ;;  %v2644_v61 = vld [vmem:[%s3852_s21 + $0x10] sm:$0xf] }
 0x10b   : > { %v1703_v19 = vadd.f32 %v1702_v16, %v1613_v15  ;;  %v2653_v16 = vor.u32 %v3404_v5, %v2652_v4  ;;  %v3419_v4 = vld [vmem:[%s3852_s21 + $0xac] sm:$0xf0]  ;;  %v3415_v5 = vld [vmem:[%s3852_s21 + $0x94] sm:$0xf] }
 0x10c   : > { %v4110_v20 = vadd.f32 %v1877_v11, %v1789_v14  ;;  %1652 = vmatmul.bf16.gmra.mxu0 %v3077_v12  ;;  %v2645_v11 = vor.u32 %v3403_v63, %v2644_v61  ;;  %v2649_v12 = vor.u32 %v3399_v2, %v2646_v3  ;;  %v2708_v3 = vld [vmem:[%s3852_s21 + $0x90] sm:$0xf] }
 0x10d   : > { %1741 = vmatmul.bf16.gmra.mxu1 %v3081_v13 }
 0x10e   : > { %1830 = vmatmul.bf16.gmra.mxu2 %v3085_v17  ;;  %v2657_v17 = vor.u32 %v3400_v6, %v2654_v8  ;;  %v2710_v6 = vld [vmem:[%s3852_s21 + $0xb0] sm:$0xf0]  ;;  %v2716_v8 = vld [vmem:[%s3852_s21 + $0x98] sm:$0xf] }
 0x10f   : > { %1919 = vmatmul.bf16.gmra.mxu3 %v3089_v18 }
 0x111   : > { %v1791_v22 = vpop.f32.mrf.mxu2  ;;  %v1615_v25 = vpop.f32.mrf.mxu0 }
 0x112   : > { %v1880_v23 = vpop.f32.mrf.mxu3  ;;  %v1792_v24 = vadd.f32 %v1791_v22, %v1703_v19  ;;  %v1704_v27 = vpop.f32.mrf.mxu1 }
 0x113   : > { %v1705_v28 = vadd.f32 %v1704_v27, %v1615_v25 }
 0x114   : > { %v4112_v29 = vadd.f32 %v1880_v23, %v1792_v24 }
 0x119   : > { %v1793_v40 = vpop.f32.mrf.mxu2  ;;  %v1618_v46 = vpop.f32.mrf.mxu0 }
 0x11a   : > { %v1882_v41 = vpop.f32.mrf.mxu3  ;;  %v1794_v45 = vadd.f32 %v1793_v40, %v1705_v28  ;;  %v1707_v47 = vpop.f32.mrf.mxu1  ;;  %v2686_v40 = vld [vmem:[%s3852_s21 + $0x78] sm:$0xf0] }
 0x11b   : > { %v1708_v50 = vadd.f32 %v1707_v47, %v1618_v46 }
 0x11c   : > { %v4122_v51 = vadd.f32 %v1882_v41, %v1794_v45  ;;  %1657 = vmatmul.bf16.gmra.mxu0 %v3109_v42  ;;  %v2681_v45 = vor.u32 %v3407_v34, %v2678_v35 }
 0x11d   : > { %1746 = vmatmul.bf16.gmra.mxu1 %v3113_v43  ;;  %v2677_v43 = vor.u32 %v3411_v33, %v2676_v31 }
 0x11e   : > { %1835 = vmatmul.bf16.gmra.mxu2 %v3117_v48 }
 0x11f   : > { %1924 = vmatmul.bf16.gmra.mxu3 %v3121_v49  ;;  %v2685_v49 = vor.u32 %v3412_v38, %v2684_v37  ;;  %v2740_v38 = vld [vmem:[%s3852_s21 + $0xd0] sm:$0xf] }
 0x121   : > { %v1796_v52 = vpop.f32.mrf.mxu2  ;;  %v1620_v56 = vpop.f32.mrf.mxu0 }
 0x122   : > { %v1885_v53 = vpop.f32.mrf.mxu3  ;;  %v1797_v55 = vadd.f32 %v1796_v52, %v1708_v50  ;;  %v1709_v58 = vpop.f32.mrf.mxu1  ;;  %v2689_v50 = vor.u32 %v3408_v39, %v2686_v40  ;;  %v3427_v39 = vld [vmem:[%s3852_s21 + $0xec] sm:$0xf0]  ;;  %v3423_v40 = vld [vmem:[%s3852_s21 + $0xd4] sm:$0xf] }
 0x123   : > { %v1710_v59 = vadd.f32 %v1709_v58, %v1620_v56 }
 0x124   : > { %v4124_v60 = vadd.f32 %v1885_v53, %v1797_v55 }
 0x129   : > { %v1798_v9 = vpop.f32.mrf.mxu2  ;;  %v1623_v14 = vpop.f32.mrf.mxu0 }
 0x12a   : > { %v1887_v10 = vpop.f32.mrf.mxu3  ;;  %v1799_v13 = vadd.f32 %v1798_v9, %v1710_v59  ;;  %v1712_v15 = vpop.f32.mrf.mxu1  ;;  %v3420_v9 = vld [vmem:[%s3852_s21 + $0xb4] sm:$0xf0] }
 0x12b   : > { %v1713_v18 = vadd.f32 %v1712_v15, %v1623_v14  ;;  %v2709_v14 = vor.u32 %v3419_v4, %v2708_v3  ;;  %v2713_v15 = vor.u32 %v3415_v5, %v2710_v6 }
 0x12c   : > { %v4134_v19 = vadd.f32 %v1887_v10, %v1799_v13  ;;  %1938 = vmatmul.bf16.vlgmr.msrb.gmra.mxu0 %v2645_v11  ;;  %v3416_v10 = vld [vmem:[%s3852_s21 + $0x9c] sm:$0xf] }
 0x12d   : > { %2027 = vmatmul.bf16.vlgmr.msrb.gmra.mxu1 %v2649_v12  ;;  %v2718_v11 = vld [vmem:[%s3852_s21 + $0xb8] sm:$0xf0] }
 0x12e   : > { %2116 = vmatmul.bf16.vlgmr.msrb.gmra.mxu2 %v2653_v16 }
 0x12f   : > { %2205 = vmatmul.bf16.vlgmr.msrb.gmra.mxu3 %v2657_v17 }
 0x131   : > { %v1801_v22 = vpop.f32.mrf.mxu2  ;;  %v1625_v25 = vpop.f32.mrf.mxu0 }
 0x132   : > { %v1890_v23 = vpop.f32.mrf.mxu3  ;;  %v1802_v24 = vadd.f32 %v1801_v22, %v1713_v18  ;;  %v1714_v27 = vpop.f32.mrf.mxu1  ;;  %v2717_v22 = vor.u32 %v3420_v9, %v2716_v8 }
 0x133   : > { %v1715_v28 = vadd.f32 %v1714_v27, %v1625_v25 }
 0x134   : > { %v4136_v30 = vadd.f32 %v1890_v23, %v1802_v24  ;;  %v2721_v23 = vor.u32 %v3416_v10, %v2718_v11  ;;  %v2772_v11 = vld [vmem:[%s3852_s21 + $0x110] sm:$0xf] }
 0x139   : > { %v1803_v41 = vpop.f32.mrf.mxu2  ;;  %v1628_v47 = vpop.f32.mrf.mxu0 }
 0x13a   : > { %v1892_v42 = vpop.f32.mrf.mxu3  ;;  %v1804_v46 = vadd.f32 %v1803_v41, %v1715_v28  ;;  %v1717_v48 = vpop.f32.mrf.mxu1  ;;  %v2742_v41 = vld [vmem:[%s3852_s21 + $0xf0] sm:$0xf0] }
 0x13b   : > { %v1718_v52 = vadd.f32 %v1717_v48, %v1628_v47 }
 0x13c   : > { %v4146_v53 = vadd.f32 %v1892_v42, %v1804_v46  ;;  %1943 = vmatmul.bf16.gmra.mxu0 %v2677_v43  ;;  %v2748_v42 = vld [vmem:[%s3852_s21 + $0xd8] sm:$0xf]  ;;  %v2750_v46 = vld [vmem:[%s3852_s21 + $0xf8] sm:$0xf0] }
 0x13d   : > { %2032 = vmatmul.bf16.gmra.mxu1 %v2681_v45  ;;  %v3428_v43 = vld [vmem:[%s3852_s21 + $0xf4] sm:$0xf0]  ;;  %v3424_v45 = vld [vmem:[%s3852_s21 + $0xdc] sm:$0xf] }
 0x13e   : > { %2121 = vmatmul.bf16.gmra.mxu2 %v2685_v49  ;;  %v2741_v49 = vor.u32 %v3427_v39, %v2740_v38 }
 0x13f   : > { %2210 = vmatmul.bf16.gmra.mxu3 %v2689_v50  ;;  %v2745_v50 = vor.u32 %v3423_v40, %v2742_v41 }
 0x141   : > { %v1806_v55 = vpop.f32.mrf.mxu2  ;;  %v1630_v59 = vpop.f32.mrf.mxu0 }
 0x142   : > { %v1895_v56 = vpop.f32.mrf.mxu3  ;;  %v1807_v58 = vadd.f32 %v1806_v55, %v1718_v52  ;;  %v1719_v61 = vpop.f32.mrf.mxu1 }
 0x143   : > { %v1720_v63 = vadd.f32 %v1719_v61, %v1630_v59  ;;  %v2753_v59 = vor.u32 %v3424_v45, %v2750_v46 }
 0x144   : > { %v4148_v2 = vadd.f32 %v1895_v56, %v1807_v58  ;;  %v2749_v58 = vor.u32 %v3428_v43, %v2748_v42 }
 0x149   : > { %v1808_v12 = vpop.f32.mrf.mxu2  ;;  %v1633_v17 = vpop.f32.mrf.mxu0 }
 0x14a   : > { %v1897_v13 = vpop.f32.mrf.mxu3  ;;  %v1809_v16 = vadd.f32 %v1808_v12, %v1720_v63  ;;  %v1722_v18 = vpop.f32.mrf.mxu1  ;;  %v3435_v12 = vld [vmem:[%s3852_s21 + $0x12c] sm:$0xf0] }
 0x14b   : > { %v1723_v24 = vadd.f32 %v1722_v18, %v1633_v17  ;;  %v3432_v17 = vld [vmem:[%s3852_s21 + $0x11c] sm:$0xf] }
 0x14c   : > { %v4158_v25 = vadd.f32 %v1897_v13, %v1809_v16  ;;  %1948 = vmatmul.bf16.gmra.mxu0 %v2709_v14  ;;  %v3431_v13 = vld [vmem:[%s3852_s21 + $0x114] sm:$0xf]  ;;  %v3436_v16 = vld [vmem:[%s3852_s21 + $0x134] sm:$0xf0]  ;;  %v2782_v18 = vld [vmem:[%s3852_s21 + $0x138] sm:$0xf0] }
 0x14d   : > { %2037 = vmatmul.bf16.gmra.mxu1 %v2713_v15  ;;  %v2774_v14 = vld [vmem:[%s3852_s21 + $0x130] sm:$0xf0]  ;;  %v2780_v15 = vld [vmem:[%s3852_s21 + $0x118] sm:$0xf] }
 0x14e   : > { %2126 = vmatmul.bf16.gmra.mxu2 %v2717_v22 }
 0x14f   : > { %2215 = vmatmul.bf16.gmra.mxu3 %v2721_v23 }
 0x151   : > { %v1811_v27 = vpop.f32.mrf.mxu2  ;;  %v1635_v33 = vpop.f32.mrf.mxu0 }
 0x152   : > { %v1900_v28 = vpop.f32.mrf.mxu3  ;;  %v1812_v31 = vadd.f32 %v1811_v27, %v1723_v24  ;;  %v1724_v34 = vpop.f32.mrf.mxu1  ;;  %v2773_v24 = vor.u32 %v3435_v12, %v2772_v11  ;;  %v2777_v27 = vor.u32 %v3431_v13, %v2774_v14 }
 0x153   : > { %v1725_v35 = vadd.f32 %v1724_v34, %v1635_v33  ;;  %v2781_v34 = vor.u32 %v3436_v16, %v2780_v15 }
 0x154   : > { %v4160_v37 = vadd.f32 %v1900_v28, %v1812_v31 }
 0x159   : > { %v1813_v47 = vpop.f32.mrf.mxu2  ;;  %v1638_v55 = vpop.f32.mrf.mxu0 }
 0x15a   : > { %v1902_v48 = vpop.f32.mrf.mxu3  ;;  %v1814_v52 = vadd.f32 %v1813_v47, %v1725_v35  ;;  %v1727_v56 = vpop.f32.mrf.mxu1  ;;  %v2785_v35 = vor.u32 %v3432_v17, %v2782_v18 }
 0x15b   : > { %v1728_v61 = vadd.f32 %v1727_v56, %v1638_v55  ;;  %v2812_v55 = vld [vmem:[%s3852_s21 + $0x158] sm:$0xf] }
 0x15c   : > { %v4170_v63 = vadd.f32 %v1902_v48, %v1814_v52  ;;  %1953 = vmatmul.bf16.gmra.mxu0 %v2741_v49  ;;  %v2804_v48 = vld [vmem:[%s3852_s21 + $0x150] sm:$0xf]  ;;  %v2806_v52 = vld [vmem:[%s3852_s21 + $0x170] sm:$0xf0]  ;;  %v3444_v56 = vld [vmem:[%s3852_s21 + $0x174] sm:$0xf0] }
 0x15d   : > { %2042 = vmatmul.bf16.gmra.mxu1 %v2745_v50  ;;  %v3443_v49 = vld [vmem:[%s3852_s21 + $0x16c] sm:$0xf0]  ;;  %v3439_v50 = vld [vmem:[%s3852_s21 + $0x154] sm:$0xf]  ;;  %v2813_v11 = vor.u32 %v3444_v56, %v2812_v55 }
 0x15e   : > { %2131 = vmatmul.bf16.gmra.mxu2 %v2749_v58  ;;  %v3440_v58 = vld [vmem:[%s3852_s21 + $0x15c] sm:$0xf] }
 0x15f   : > { %2220 = vmatmul.bf16.gmra.mxu3 %v2753_v59  ;;  %v2814_v59 = vld [vmem:[%s3852_s21 + $0x178] sm:$0xf0] }
 0x160   : > { %v2817_v12 = vor.u32 %v3440_v58, %v2814_v59 }
 0x161   : > { %v1816_v3 = vpop.f32.mrf.mxu2  ;;  %v1640_v6 = vpop.f32.mrf.mxu0 }
 0x162   : > { %v1905_v4 = vpop.f32.mrf.mxu3  ;;  %v1817_v5 = vadd.f32 %v1816_v3, %v1728_v61  ;;  %v1729_v8 = vpop.f32.mrf.mxu1 }
 0x163   : > { %v1730_v9 = vadd.f32 %v1729_v8, %v1640_v6 }
 0x164   : > { %v4172_v10 = vadd.f32 %v1905_v4, %v1817_v5  ;;  %v2805_v4 = vor.u32 %v3443_v49, %v2804_v48  ;;  %v2809_v5 = vor.u32 %v3439_v50, %v2806_v52 }
 0x169   : > { %v1818_v22 = vpop.f32.mrf.mxu2  ;;  %v1643_v31 = vpop.f32.mrf.mxu0 }
 0x16a   : > { %v1907_v23 = vpop.f32.mrf.mxu3  ;;  %v1819_v28 = vadd.f32 %v1818_v22, %v1730_v9  ;;  %v1732_v33 = vpop.f32.mrf.mxu1 }
 0x16b   : > { %v1733_v38 = vadd.f32 %v1732_v33, %v1643_v31  ;;  %v3447_v31 = vld [vmem:[%s3852_s21 + $0x194] sm:$0xf] }
 0x16c   : > { %v4182_v39 = vadd.f32 %v1907_v23, %v1819_v28  ;;  %1958 = vmatmul.bf16.gmra.mxu0 %v2773_v24  ;;  %v3451_v28 = vld [vmem:[%s3852_s21 + $0x1ac] sm:$0xf0]  ;;  %v2838_v33 = vld [vmem:[%s3852_s21 + $0x1b0] sm:$0xf0] }
 0x16d   : > { %2047 = vmatmul.bf16.gmra.mxu1 %v2777_v27  ;;  %v2836_v27 = vld [vmem:[%s3852_s21 + $0x190] sm:$0xf] }
 0x16e   : > { %2136 = vmatmul.bf16.gmra.mxu2 %v2781_v34  ;;  %v2844_v34 = vld [vmem:[%s3852_s21 + $0x198] sm:$0xf] }
 0x16f   : > { %2225 = vmatmul.bf16.gmra.mxu3 %v2785_v35  ;;  %v3452_v35 = vld [vmem:[%s3852_s21 + $0x1b4] sm:$0xf0] }
 0x170   : > { %v2845_v50 = vor.u32 %v3452_v35, %v2844_v34 }
 0x171   : > { %v1821_v40 = vpop.f32.mrf.mxu2  ;;  %v1645_v43 = vpop.f32.mrf.mxu0 }
 0x172   : > { %v1910_v41 = vpop.f32.mrf.mxu3  ;;  %v1822_v42 = vadd.f32 %v1821_v40, %v1733_v38  ;;  %v1734_v45 = vpop.f32.mrf.mxu1  ;;  %v3448_v38 = vld [vmem:[%s3852_s21 + $0x19c] sm:$0xf] }
 0x173   : > { %v1735_v46 = vadd.f32 %v1734_v45, %v1645_v43  ;;  %v2846_v40 = vld [vmem:[%s3852_s21 + $0x1b8] sm:$0xf0]  ;;  %v2837_v43 = vor.u32 %v3451_v28, %v2836_v27  ;;  %v2841_v45 = vor.u32 %v3447_v31, %v2838_v33 }
 0x174   : > { %v4184_v47 = vadd.f32 %v1910_v41, %v1822_v42  ;;  %v2849_v52 = vor.u32 %v3448_v38, %v2846_v40 }
 0x179   : > { %v1823_v61 = vpop.f32.mrf.mxu2  ;;  %v1648_v8 = vpop.f32.mrf.mxu0 }
 0x17a   : > { %v1912_v3 = vpop.f32.mrf.mxu3  ;;  %v1824_v6 = vadd.f32 %v1823_v61, %v1735_v46  ;;  %v1737_v9 = vpop.f32.mrf.mxu1 }
 0x17b   : > { %v1738_v13 = vadd.f32 %v1737_v9, %v1648_v8  ;;  %v2868_v8 = vld [vmem:[%s3852_s21 + $0x1d0] sm:$0xf] }
 0x17c   : > { %v4194_v14 = vadd.f32 %v1912_v3, %v1824_v6  ;;  %1963 = vmatmul.bf16.gmra.mxu0 %v2805_v4  ;;  %v3459_v9 = vld [vmem:[%s3852_s21 + $0x1ec] sm:$0xf0] }
 0x17d   : > { %2052 = vmatmul.bf16.gmra.mxu1 %v2809_v5 }
 0x17e   : > { %2141 = vmatmul.bf16.gmra.mxu2 %v2813_v11  ;;  %v3455_v11 = vld [vmem:[%s3852_s21 + $0x1d4] sm:$0xf] }
 0x17f   : > { %2230 = vmatmul.bf16.gmra.mxu3 %v2817_v12  ;;  %v2870_v12 = vld [vmem:[%s3852_s21 + $0x1f0] sm:$0xf0] }
 0x180   : > { %v2873_v27 = vor.u32 %v3455_v11, %v2870_v12 }
 0x181   : > { %v1826_v15 = vpop.f32.mrf.mxu2  ;;  %v1650_v18 = vpop.f32.mrf.mxu0 }
 0x182   : > { %v1915_v16 = vpop.f32.mrf.mxu3  ;;  %v1827_v17 = vadd.f32 %v1826_v15, %v1738_v13  ;;  %v1739_v22 = vpop.f32.mrf.mxu1  ;;  %v2876_v13 = vld [vmem:[%s3852_s21 + $0x1d8] sm:$0xf] }
 0x183   : > { %v1740_v23 = vadd.f32 %v1739_v22, %v1650_v18  ;;  %v3460_v15 = vld [vmem:[%s3852_s21 + $0x1f4] sm:$0xf0] }
 0x184   : > { %v4196_v24 = vadd.f32 %v1915_v16, %v1827_v17  ;;  %v3456_v16 = vld [vmem:[%s3852_s21 + $0x1dc] sm:$0xf]  ;;  %v2877_v34 = vor.u32 %v3460_v15, %v2876_v13 }
 0x185   : > { %v2878_v17 = vld [vmem:[%s3852_s21 + $0x1f8] sm:$0xf0] }
 0x186   : > { %v2881_v35 = vor.u32 %v3456_v16, %v2878_v17 }
 0x189   : > { %v1828_v41 = vpop.f32.mrf.mxu2  ;;  %v1653_v48 = vpop.f32.mrf.mxu0 }
 0x18a   : > { %v1917_v42 = vpop.f32.mrf.mxu3  ;;  %v1829_v46 = vadd.f32 %v1828_v41, %v1740_v23  ;;  %v1742_v49 = vpop.f32.mrf.mxu1  ;;  %v2869_v23 = vor.u32 %v3459_v9, %v2868_v8 }
 0x18b   : > { %v1743_v55 = vadd.f32 %v1742_v49, %v1653_v48 }
 0x18c   : > { %v4206_v56 = vadd.f32 %v1917_v42, %v1829_v46  ;;  %1968 = vmatmul.bf16.gmra.mxu0 %v2837_v43 }
 0x18d   : > { %2057 = vmatmul.bf16.gmra.mxu1 %v2841_v45 }
 0x18e   : > { %2146 = vmatmul.bf16.gmra.mxu2 %v2845_v50  ;;  %v2900_v50 = vld [vmem:[%s3852_s21 + $0x210] sm:$0xf] }
 0x18f   : > { %2235 = vmatmul.bf16.gmra.mxu3 %v2849_v52  ;;  %v3467_v52 = vld [vmem:[%s3852_s21 + $0x22c] sm:$0xf0] }
 0x190   : > { %v2901_v9 = vor.u32 %v3467_v52, %v2900_v50 }
 0x191   : > { %v1831_v58 = vpop.f32.mrf.mxu2  ;;  %v1655_v3 = vpop.f32.mrf.mxu0 }
 0x192   : > { %v1920_v59 = vpop.f32.mrf.mxu3  ;;  %v1832_v61 = vadd.f32 %v1831_v58, %v1743_v55  ;;  %v1744_v4 = vpop.f32.mrf.mxu1  ;;  %v3463_v55 = vld [vmem:[%s3852_s21 + $0x214] sm:$0xf] }
 0x193   : > { %v1745_v5 = vadd.f32 %v1744_v4, %v1655_v3  ;;  %v2902_v58 = vld [vmem:[%s3852_s21 + $0x230] sm:$0xf0]  ;;  %v3464_v3 = vld [vmem:[%s3852_s21 + $0x21c] sm:$0xf] }
 0x194   : > { %v4208_v6 = vadd.f32 %v1920_v59, %v1832_v61  ;;  %v2908_v59 = vld [vmem:[%s3852_s21 + $0x218] sm:$0xf]  ;;  %v2910_v4 = vld [vmem:[%s3852_s21 + $0x238] sm:$0xf0]  ;;  %v2905_v11 = vor.u32 %v3463_v55, %v2902_v58 }
 0x195   : > { %v3468_v61 = vld [vmem:[%s3852_s21 + $0x234] sm:$0xf0]  ;;  %v2913_v17 = vor.u32 %v3464_v3, %v2910_v4 }
 0x196   : > { %v2909_v16 = vor.u32 %v3468_v61, %v2908_v59 }
 0x199   : > { %v1833_v18 = vpop.f32.mrf.mxu2  ;;  %v1658_v31 = vpop.f32.mrf.mxu0 }
 0x19a   : > { %v1922_v22 = vpop.f32.mrf.mxu3  ;;  %v1834_v28 = vadd.f32 %v1833_v18, %v1745_v5  ;;  %v1747_v33 = vpop.f32.mrf.mxu1 }
 0x19b   : > { %v1748_v38 = vadd.f32 %v1747_v33, %v1658_v31 }
 0x19c   : > { %v4218_v40 = vadd.f32 %v1922_v22, %v1834_v28  ;;  %1973 = vmatmul.bf16.gmra.mxu0 %v2869_v23 }
 0x19d   : > { %2062 = vmatmul.bf16.gmra.mxu1 %v2873_v27 }
 0x19e   : > { %2151 = vmatmul.bf16.gmra.mxu2 %v2877_v34 }
 0x19f   : > { %2240 = vmatmul.bf16.gmra.mxu3 %v2881_v35 }
 0x1a1   : > { %v1836_v41 = vpop.f32.mrf.mxu2  ;;  %v1660_v45 = vpop.f32.mrf.mxu0 }
 0x1a2   : > { %v1925_v42 = vpop.f32.mrf.mxu3  ;;  %v1837_v43 = vadd.f32 %v1836_v41, %v1748_v38  ;;  %v1749_v46 = vpop.f32.mrf.mxu1  ;;  %v2932_v38 = vld [vmem:[%s3852_s21 + $0x250] sm:$0xf] }
 0x1a3   : > { %v1750_v48 = vadd.f32 %v1749_v46, %v1660_v45  ;;  %v3475_v41 = vld [vmem:[%s3852_s21 + $0x26c] sm:$0xf0]  ;;  %v2940_v45 = vld [vmem:[%s3852_s21 + $0x258] sm:$0xf] }
 0x1a4   : > { %v4220_v49 = vadd.f32 %v1925_v42, %v1837_v43  ;;  %v3471_v42 = vld [vmem:[%s3852_s21 + $0x254] sm:$0xf]  ;;  %v3476_v46 = vld [vmem:[%s3852_s21 + $0x274] sm:$0xf0]  ;;  %v2933_v59 = vor.u32 %v3475_v41, %v2932_v38 }
 0x1a5   : > { %v2934_v43 = vld [vmem:[%s3852_s21 + $0x270] sm:$0xf0] }
 0x1a6   : > { %v2937_v61 = vor.u32 %v3471_v42, %v2934_v43  ;;  %v3479_v38 = vld [vmem:[%s3852_s21 + $0x294] sm:$0xf]  ;;  %v2972_v42 = vld [vmem:[%s3852_s21 + $0x298] sm:$0xf] }
 0x1a7   : > { %v2966_v41 = vld [vmem:[%s3852_s21 + $0x2b0] sm:$0xf0]  ;;  %v3484_v43 = vld [vmem:[%s3852_s21 + $0x2b4] sm:$0xf0] }
 0x1a9   : > { %v1838_v5 = vpop.f32.mrf.mxu2  ;;  %v1939_v13 = vpop.f32.mrf.mxu0 }
 0x1aa   : > { %v1927_v8 = vpop.f32.mrf.mxu3  ;;  %v1839_v12 = vadd.f32 %v1838_v5, %v1750_v48  ;;  %v2028_v15 = vpop.f32.mrf.mxu1  ;;  %v1940_v22 = vadd.f32 %v1939_v13, %v4013_v44  ;;  %v3472_v48 = vld [vmem:[%s3852_s21 + $0x25c] sm:$0xf] }
 0x1ab   : > { %v2942_v44 = vld [vmem:[%s3852_s21 + $0x278] sm:$0xf0] }
 0x1ac   : > { %v4230_v18 = vadd.f32 %v1927_v8, %v1839_v12  ;;  %1978 = vmatmul.bf16.gmra.mxu0 %v2901_v9  ;;  %v2029_v28 = vadd.f32 %v2028_v15, %v1940_v22  ;;  %v2941_v8 = vor.u32 %v3476_v46, %v2940_v45  ;;  %v3480_v45 = vld [vmem:[%s3852_s21 + $0x29c] sm:$0xf] }
 0x1ad   : > { %2067 = vmatmul.bf16.gmra.mxu1 %v2905_v11  ;;  %v2974_v46 = vld [vmem:[%s3852_s21 + $0x2b8] sm:$0xf0] }
 0x1ae   : > { %2156 = vmatmul.bf16.gmra.mxu2 %v2909_v16 }
 0x1af   : > { %2245 = vmatmul.bf16.gmra.mxu3 %v2913_v17 }
 0x1b1   : > { %v2117_v23 = vpop.f32.mrf.mxu2  ;;  %v1941_v31 = vpop.f32.mrf.mxu0 }
 0x1b2   : > { %v2206_v27 = vpop.f32.mrf.mxu3  ;;  %v2030_v33 = vpop.f32.mrf.mxu1  ;;  %v2118_v34 = vadd.f32 %v2117_v23, %v2029_v28  ;;  %v1942_v35 = vadd.f32 %v1941_v31, %v4026_v0  ;;  %v2945_v0 = vor.u32 %v3472_v48, %v2942_v44 }
 0x1b4   : > { %v2207_v50 = vadd.f32 %v2206_v27, %v2118_v34  ;;  %v2031_v52 = vadd.f32 %v2030_v33, %v1942_v35  ;;  %v2964_v34 = vld [vmem:[%s3852_s21 + $0x290] sm:$0xf] }
 0x1b5   : > { %v3483_v35 = vld [vmem:[%s3852_s21 + $0x2ac] sm:$0xf0] }
 0x1b6   : > { %v2385_v9 = vmul.f32 0.2, %v2207_v50 }
 0x1b8   : > { %v2417_v15 = vmax.f32 %v2207_v50, %v2385_v9 }
 0x1b9   : > { %v2119_v55 = vpop.f32.mrf.mxu2  ;;  %v1944_v4 = vpop.f32.mrf.mxu0 }
 0x1ba   : > { %v2208_v58 = vpop.f32.mrf.mxu3  ;;  %v2120_v3 = vadd.f32 %v2119_v55, %v2031_v52  ;;  %v2033_v5 = vpop.f32.mrf.mxu1  ;;  %v1945_v13 = vadd.f32 %v1944_v4, %v4028_v7  ;;  %v2965_v55 = vor.u32 %v3483_v35, %v2964_v34  ;;  %v2973_v4 = vor.u32 %v3484_v43, %v2972_v42  ;;  %v3004_v34 = vld [vmem:[%s3852_s21 + $0x2d8] sm:$0xf] }
 0x1bb   : > { %v3492_v35 = vld [vmem:[%s3852_s21 + $0x2f4] sm:$0xf0] }
 0x1bc   : > { %v2209_v11 = vadd.f32 %v2208_v58, %v2120_v3  ;;  %1983 = vmatmul.bf16.gmra.mxu0 %v2933_v59  ;;  %v2034_v23 = vadd.f32 %v2033_v5, %v1945_v13  ;;  %v2969_v58 = vor.u32 %v3479_v38, %v2966_v41  ;;  %v2977_v5 = vor.u32 %v3480_v45, %v2974_v46  ;;  %v3488_v38 = vld [vmem:[%s3852_s21 + $0x2dc] sm:$0xf] }
 0x1bd   : > { %2072 = vmatmul.bf16.gmra.mxu1 %v2937_v61  ;;  %v3006_v41 = vld [vmem:[%s3852_s21 + $0x2f8] sm:$0xf0] }
 0x1be   : > { %v2386_v12 = vmul.f32 0.2, %v2209_v11  ;;  %2161 = vmatmul.bf16.gmra.mxu2 %v2941_v8 }
 0x1bf   : > { %2250 = vmatmul.bf16.gmra.mxu3 %v2945_v0 }
 0x1c0   : > { %v2418_v16 = vmax.f32 %v2209_v11, %v2386_v12 }
 0x1c1   : > { %v2122_v17 = vpop.f32.mrf.mxu2  ;;  %v1946_v27 = vpop.f32.mrf.mxu0 }
 0x1c2   : > { %v2211_v22 = vpop.f32.mrf.mxu3  ;;  %v3592_v7 = vpack.c.bf16 %v2418_v16, %v2417_v15  ;;  %v2035_v28 = vpop.f32.mrf.mxu1  ;;  %v2123_v31 = vadd.f32 %v2122_v17, %v2034_v23  ;;  %v1947_v33 = vadd.f32 %v1946_v27, %v4038_v26  ;;  %v2996_v27 = vld [vmem:[%s3852_s21 + $0x2d0] sm:$0xf] }
 0x1c4   : > { %3593 = vst [vmem:[%s4247_s3] sm:$0xff] %v3592_v7   ;;  %v2212_v48 = vadd.f32 %v2211_v22, %v2123_v31  ;;  %v2036_v44 = vadd.f32 %v2035_v28, %v1947_v33  ;;  %v3491_v28 = vld [vmem:[%s3852_s21 + $0x2ec] sm:$0xf0]  ;;  %v3487_v31 = vld [vmem:[%s3852_s21 + $0x2d4] sm:$0xf] }
 0x1c5   : > { %v2998_v33 = vld [vmem:[%s3852_s21 + $0x2f0] sm:$0xf0] }
 0x1c6   : > { %v2387_v26 = vmul.f32 0.2, %v2212_v48 }
 0x1c8   : > { %v2419_v11 = vmax.f32 %v2212_v48, %v2387_v26  ;;  %v2997_v48 = vor.u32 %v3491_v28, %v2996_v27  ;;  %v3496_v27 = vld [vmem:[%s3852_s21 + $0x31c] sm:$0xf] }
 0x1c9   : > { %v2124_v50 = vpop.f32.mrf.mxu2  ;;  %v1949_v61 = vpop.f32.mrf.mxu0  ;;  %v3038_v28 = vld [vmem:[%s3852_s21 + $0x338] sm:$0xf0] }
 0x1ca   : > { %v2213_v52 = vpop.f32.mrf.mxu3  ;;  %v2125_v59 = vadd.f32 %v2124_v50, %v2036_v44  ;;  %v2038_v3 = vpop.f32.mrf.mxu1  ;;  %v1950_v9 = vadd.f32 %v1949_v61, %v4049_v36  ;;  %v3001_v44 = vor.u32 %v3487_v31, %v2998_v33 }
 0x1cc   : > { %v2214_v8 = vadd.f32 %v2213_v52, %v2125_v59  ;;  %1988 = vmatmul.bf16.gmra.mxu0 %v2965_v55  ;;  %v2039_v17 = vadd.f32 %v2038_v3, %v1950_v9  ;;  %v3009_v59 = vor.u32 %v3488_v38, %v3006_v41 }
 0x1cd   : > { %2077 = vmatmul.bf16.gmra.mxu1 %v2969_v58  ;;  %v3005_v58 = vor.u32 %v3492_v35, %v3004_v34 }
 0x1ce   : > { %v2388_v0 = vmul.f32 0.2, %v2214_v8  ;;  %2166 = vmatmul.bf16.gmra.mxu2 %v2973_v4 }
 0x1cf   : > { %2255 = vmatmul.bf16.gmra.mxu3 %v2977_v5 }
 0x1d0   : > { %v2420_v12 = vmax.f32 %v2214_v8, %v2388_v0 }
 0x1d1   : > { %v2127_v13 = vpop.f32.mrf.mxu2  ;;  %v1951_v22 = vpop.f32.mrf.mxu0 }
 0x1d2   : > { %v2216_v15 = vpop.f32.mrf.mxu3  ;;  %v3597_v16 = vpack.c.bf16 %v2420_v12, %v2419_v11  ;;  %v2040_v7 = vpop.f32.mrf.mxu1  ;;  %v2128_v23 = vadd.f32 %v2127_v13, %v2039_v17  ;;  %v1952_v36 = vadd.f32 %v1951_v22, %v4062_v57  ;;  %v3499_v17 = vld [vmem:[%s3852_s21 + $0x32c] sm:$0xf0]  ;;  %v3495_v22 = vld [vmem:[%s3852_s21 + $0x314] sm:$0xf] }
 0x1d4   : > { %3669 = vst [vmem:[%s4247_s3 + $0x8] sm:$0xff] %v3597_v16   ;;  %v2217_v42 = vadd.f32 %v2216_v15, %v2128_v23  ;;  %v2041_v43 = vadd.f32 %v2040_v7, %v1952_v36  ;;  %v3028_v16 = vld [vmem:[%s3852_s21 + $0x310] sm:$0xf]  ;;  %v3030_v7 = vld [vmem:[%s3852_s21 + $0x330] sm:$0xf0] }
 0x1d5   : > { %v3036_v23 = vld [vmem:[%s3852_s21 + $0x318] sm:$0xf]  ;;  %v3029_v38 = vor.u32 %v3499_v17, %v3028_v16  ;;  %v3033_v41 = vor.u32 %v3495_v22, %v3030_v7 }
 0x1d6   : > { %v2389_v57 = vmul.f32 0.2, %v2217_v42  ;;  %v3500_v36 = vld [vmem:[%s3852_s21 + $0x334] sm:$0xf0] }
 0x1d8   : > { %v2421_v5 = vmax.f32 %v2217_v42, %v2389_v57 }
 0x1d9   : > { %v2129_v45 = vpop.f32.mrf.mxu2  ;;  %v1954_v52 = vpop.f32.mrf.mxu0 }
 0x1da   : > { %v2218_v46 = vpop.f32.mrf.mxu3  ;;  %v2130_v50 = vadd.f32 %v2129_v45, %v2041_v43  ;;  %v2043_v55 = vpop.f32.mrf.mxu1  ;;  %v1955_v4 = vadd.f32 %v1954_v52, %v4064_v1 }
 0x1dc   : > { %v2219_v61 = vadd.f32 %v2218_v46, %v2130_v50  ;;  %1993 = vmatmul.bf16.gmra.mxu0 %v2997_v48  ;;  %v2044_v11 = vadd.f32 %v2043_v55, %v1955_v4  ;;  %v3037_v46 = vor.u32 %v3500_v36, %v3036_v23  ;;  %v3041_v48 = vor.u32 %v3496_v27, %v3038_v28 }
 0x1dd   : > { %2082 = vmatmul.bf16.gmra.mxu1 %v3001_v44 }
 0x1de   : > { %v2390_v3 = vmul.f32 0.2, %v2219_v61  ;;  %2171 = vmatmul.bf16.gmra.mxu2 %v3005_v58 }
 0x1df   : > { %2260 = vmatmul.bf16.gmra.mxu3 %v3009_v59 }
 0x1e0   : > { %v2422_v26 = vmax.f32 %v2219_v61, %v2390_v3 }
 0x1e1   : > { %v2132_v8 = vpop.f32.mrf.mxu2  ;;  %v1956_v12 = vpop.f32.mrf.mxu0 }
 0x1e2   : > { %v2221_v0 = vpop.f32.mrf.mxu3  ;;  %v3602_v9 = vpack.c.bf16 %v2422_v26, %v2421_v5  ;;  %v2045_v13 = vpop.f32.mrf.mxu1  ;;  %v2133_v15 = vadd.f32 %v2132_v8, %v2044_v11  ;;  %v1957_v1 = vadd.f32 %v1956_v12, %v4074_v21  ;;  %v3060_v8 = vld [vmem:[%s3852_s21 + $0x350] sm:$0xf]  ;;  %v3062_v11 = vld [vmem:[%s3852_s21 + $0x370] sm:$0xf0]  ;;  %v3068_v12 = vld [vmem:[%s3852_s21 + $0x358] sm:$0xf] }
 0x1e4   : > { %3670 = vst [vmem:[%s4247_s3 + $0x10] sm:$0xff] %v3602_v9   ;;  %v2222_v31 = vadd.f32 %v2221_v0, %v2133_v15  ;;  %v2046_v33 = vadd.f32 %v2045_v13, %v1957_v1  ;;  %v3507_v0 = vld [vmem:[%s3852_s21 + $0x36c] sm:$0xf0]  ;;  %v3503_v9 = vld [vmem:[%s3852_s21 + $0x354] sm:$0xf] }
 0x1e5   : > { %v3508_v13 = vld [vmem:[%s3852_s21 + $0x374] sm:$0xf0]  ;;  %v3504_v15 = vld [vmem:[%s3852_s21 + $0x35c] sm:$0xf]  ;;  %v3061_v23 = vor.u32 %v3507_v0, %v3060_v8  ;;  %v3065_v36 = vor.u32 %v3503_v9, %v3062_v11 }
 0x1e6   : > { %v2391_v21 = vmul.f32 0.2, %v2222_v31  ;;  %v3070_v1 = vld [vmem:[%s3852_s21 + $0x378] sm:$0xf0] }
 0x1e8   : > { %v2423_v55 = vmax.f32 %v2222_v31, %v2391_v21 }
 0x1e9   : > { %v2134_v34 = vpop.f32.mrf.mxu2  ;;  %v1959_v43 = vpop.f32.mrf.mxu0 }
 0x1ea   : > { %v2223_v35 = vpop.f32.mrf.mxu3  ;;  %v2135_v42 = vadd.f32 %v2134_v34, %v2046_v33  ;;  %v2048_v45 = vpop.f32.mrf.mxu1  ;;  %v1960_v52 = vadd.f32 %v1959_v43, %v4085_v32  ;;  %v3069_v33 = vor.u32 %v3508_v13, %v3068_v12  ;;  %v3073_v34 = vor.u32 %v3504_v15, %v3070_v1 }
 0x1ec   : > { %v2224_v44 = vadd.f32 %v2223_v35, %v2135_v42  ;;  %1998 = vmatmul.bf16.gmra.mxu0 %v3029_v38  ;;  %v2049_v3 = vadd.f32 %v2048_v45, %v1960_v52 }
 0x1ed   : > { %2087 = vmatmul.bf16.gmra.mxu1 %v3033_v41 }
 0x1ee   : > { %v2392_v50 = vmul.f32 0.2, %v2224_v44  ;;  %2176 = vmatmul.bf16.gmra.mxu2 %v3037_v46 }
 0x1ef   : > { %2265 = vmatmul.bf16.gmra.mxu3 %v3041_v48 }
 0x1f0   : > { %v2424_v58 = vmax.f32 %v2224_v44, %v2392_v50 }
 0x1f1   : > { %v2137_v59 = vpop.f32.mrf.mxu2  ;;  %v1961_v4 = vpop.f32.mrf.mxu0 }
 0x1f2   : > { %v2226_v57 = vpop.f32.mrf.mxu3  ;;  %v3607_v61 = vpack.c.bf16 %v2424_v58, %v2423_v55  ;;  %v2050_v5 = vpop.f32.mrf.mxu1  ;;  %v2138_v26 = vadd.f32 %v2137_v59, %v2049_v3  ;;  %v1962_v32 = vadd.f32 %v1961_v4, %v4098_v54  ;;  %v3092_v55 = vld [vmem:[%s3852_s21 + $0x390] sm:$0xf]  ;;  %v3511_v59 = vld [vmem:[%s3852_s21 + $0x394] sm:$0xf]  ;;  %v3516_v3 = vld [vmem:[%s3852_s21 + $0x3b4] sm:$0xf0] }
 0x1f3   : > { %v3515_v58 = vld [vmem:[%s3852_s21 + $0x3ac] sm:$0xf0]  ;;  %v3512_v4 = vld [vmem:[%s3852_s21 + $0x39c] sm:$0xf] }
 0x1f4   : > { %3671 = vst [vmem:[%s4247_s3 + $0x18] sm:$0xff] %v3607_v61   ;;  %v2227_v16 = vadd.f32 %v2226_v57, %v2138_v26  ;;  %v2051_v17 = vadd.f32 %v2050_v5, %v1962_v32  ;;  %v3094_v57 = vld [vmem:[%s3852_s21 + $0x3b0] sm:$0xf0]  ;;  %v3100_v61 = vld [vmem:[%s3852_s21 + $0x398] sm:$0xf]  ;;  %v3093_v9 = vor.u32 %v3515_v58, %v3092_v55 }
 0x1f5   : > { %v3102_v5 = vld [vmem:[%s3852_s21 + $0x3b8] sm:$0xf0]  ;;  %v3097_v11 = vor.u32 %v3511_v59, %v3094_v57  ;;  %v3101_v1 = vor.u32 %v3516_v3, %v3100_v61 }
 0x1f6   : > { %v2393_v54 = vmul.f32 0.2, %v2227_v16 }
 0x1f8   : > { %v2425_v42 = vmax.f32 %v2227_v16, %v2393_v54  ;;  %v3105_v16 = vor.u32 %v3512_v4, %v3102_v5 }
 0x1f9   : > { %v2139_v22 = vpop.f32.mrf.mxu2  ;;  %v1964_v28 = vpop.f32.mrf.mxu0 }
 0x1fa   : > { %v2228_v7 = vpop.f32.mrf.mxu3  ;;  %v2140_v27 = vadd.f32 %v2139_v22, %v2051_v17  ;;  %v2053_v31 = vpop.f32.mrf.mxu1  ;;  %v1965_v41 = vadd.f32 %v1964_v28, %v4100_v62 }
 0x1fc   : > { %v2229_v35 = vadd.f32 %v2228_v7, %v2140_v27  ;;  %2003 = vmatmul.bf16.gmra.mxu0 %v3061_v23  ;;  %v2054_v21 = vadd.f32 %v2053_v31, %v1965_v41  ;;  %v3523_v41 = vld [vmem:[%s3852_s21 + $0x3ec] sm:$0xf0] }
 0x1fd   : > { %2092 = vmatmul.bf16.gmra.mxu1 %v3065_v36 }
 0x1fe   : > { %v2394_v38 = vmul.f32 0.2, %v2229_v35  ;;  %2181 = vmatmul.bf16.gmra.mxu2 %v3069_v33 }
 0x1ff   : > { %2270 = vmatmul.bf16.gmra.mxu3 %v3073_v34 }
 0x200   : > { %v2426_v43 = vmax.f32 %v2229_v35, %v2394_v38  ;;  %v3124_v38 = vld [vmem:[%s3852_s21 + $0x3d0] sm:$0xf] }
 0x201   : > { %v2142_v45 = vpop.f32.mrf.mxu2  ;;  %v1966_v44 = vpop.f32.mrf.mxu0  ;;  %v3125_v55 = vor.u32 %v3523_v41, %v3124_v38 }
 0x202   : > { %v2231_v46 = vpop.f32.mrf.mxu3  ;;  %v3612_v48 = vpack.c.bf16 %v2426_v43, %v2425_v42  ;;  %v2055_v50 = vpop.f32.mrf.mxu1  ;;  %v2143_v52 = vadd.f32 %v2142_v45, %v2054_v21  ;;  %v1967_v62 = vadd.f32 %v1966_v44, %v4110_v20  ;;  %v3519_v42 = vld [vmem:[%s3852_s21 + $0x3d4] sm:$0xf]  ;;  %v3132_v45 = vld [vmem:[%s3852_s21 + $0x3d8] sm:$0xf]  ;;  %v3134_v21 = vld [vmem:[%s3852_s21 + $0x3f8] sm:$0xf0] }
 0x203   : > { %v3126_v43 = vld [vmem:[%s3852_s21 + $0x3f0] sm:$0xf0] }
 0x204   : > { %3672 = vst [vmem:[%s4247_s3 + $0x20] sm:$0xff] %v3612_v48   ;;  %v2232_v26 = vadd.f32 %v2231_v46, %v2143_v52  ;;  %v2056_v32 = vadd.f32 %v2055_v50, %v1967_v62  ;;  %v3524_v46 = vld [vmem:[%s3852_s21 + $0x3f4] sm:$0xf0]  ;;  %v3520_v48 = vld [vmem:[%s3852_s21 + $0x3dc] sm:$0xf]  ;;  %v3129_v58 = vor.u32 %v3519_v42, %v3126_v43 }
 0x205   : > { %v3133_v3 = vor.u32 %v3524_v46, %v3132_v45  ;;  %v3137_v4 = vor.u32 %v3520_v48, %v3134_v21 }
 0x206   : > { %v2395_v20 = vmul.f32 0.2, %v2232_v26 }
 0x208   : > { %v2427_v23 = vmax.f32 %v2232_v26, %v2395_v20 }
 0x209   : > { %v2144_v8 = vpop.f32.mrf.mxu2  ;;  %v1969_v13 = vpop.f32.mrf.mxu0 }
 0x20a   : > { %v2233_v0 = vpop.f32.mrf.mxu3  ;;  %v2145_v12 = vadd.f32 %v2144_v8, %v2056_v32  ;;  %v2058_v15 = vpop.f32.mrf.mxu1  ;;  %v1970_v7 = vadd.f32 %v1969_v13, %v4112_v29 }
 0x20c   : > { %v2234_v17 = vadd.f32 %v2233_v0, %v2145_v12  ;;  %2008 = vmatmul.bf16.gmra.mxu0 %v3093_v9  ;;  %v2059_v33 = vadd.f32 %v2058_v15, %v1970_v7 }
 0x20d   : > { %2097 = vmatmul.bf16.gmra.mxu1 %v3097_v11 }
 0x20e   : > { %v2396_v22 = vmul.f32 0.2, %v2234_v17  ;;  %2186 = vmatmul.bf16.gmra.mxu2 %v3101_v1 }
 0x20f   : > { %2275 = vmatmul.bf16.gmra.mxu3 %v3105_v16 }
 0x210   : > { %v2428_v36 = vmax.f32 %v2234_v17, %v2396_v22 }
 0x211   : > { %v2147_v27 = vpop.f32.mrf.mxu2  ;;  %v1971_v34 = vpop.f32.mrf.mxu0 }
 0x212   : > { %v2236_v28 = vpop.f32.mrf.mxu3  ;;  %v3617_v31 = vpack.c.bf16 %v2428_v36, %v2427_v23  ;;  %v2060_v54 = vpop.f32.mrf.mxu1  ;;  %v2148_v35 = vadd.f32 %v2147_v27, %v2059_v33  ;;  %v1972_v29 = vadd.f32 %v1971_v34, %v4122_v51 }
 0x214   : > { %3673 = vst [vmem:[%s4247_s3 + $0x28] sm:$0xff] %v3617_v31   ;;  %v2237_v44 = vadd.f32 %v2236_v28, %v2148_v35  ;;  %v2061_v50 = vadd.f32 %v2060_v54, %v1972_v29 }
 0x216   : > { %v2397_v51 = vmul.f32 0.2, %v2237_v44 }
 0x218   : > { %v2429_v8 = vmax.f32 %v2237_v44, %v2397_v51 }
 0x219   : > { %v2149_v52 = vpop.f32.mrf.mxu2  ;;  %v1974_v57 = vpop.f32.mrf.mxu0 }
 0x21a   : > { %v2238_v62 = vpop.f32.mrf.mxu3  ;;  %v2150_v59 = vadd.f32 %v2149_v52, %v2061_v50  ;;  %v2063_v61 = vpop.f32.mrf.mxu1  ;;  %v1975_v32 = vadd.f32 %v1974_v57, %v4124_v60 }
 0x21c   : > { %v2239_v5 = vadd.f32 %v2238_v62, %v2150_v59  ;;  %2013 = vmatmul.bf16.gmra.mxu0 %v3125_v55  ;;  %v2064_v13 = vadd.f32 %v2063_v61, %v1975_v32 }
 0x21d   : > { %2102 = vmatmul.bf16.gmra.mxu1 %v3129_v58 }
 0x21e   : > { %v2398_v26 = vmul.f32 0.2, %v2239_v5  ;;  %2191 = vmatmul.bf16.gmra.mxu2 %v3133_v3 }
 0x21f   : > { %2280 = vmatmul.bf16.gmra.mxu3 %v3137_v4 }
 0x220   : > { %v2430_v0 = vmax.f32 %v2239_v5, %v2398_v26 }
 0x221   : > { %v2152_v9 = vpop.f32.mrf.mxu2  ;;  %v1976_v15 = vpop.f32.mrf.mxu0 }
 0x222   : > { %v2241_v11 = vpop.f32.mrf.mxu3  ;;  %v3622_v12 = vpack.c.bf16 %v2430_v0, %v2429_v8  ;;  %v2065_v1 = vpop.f32.mrf.mxu1  ;;  %v2153_v16 = vadd.f32 %v2152_v9, %v2064_v13  ;;  %v1977_v20 = vadd.f32 %v1976_v15, %v4134_v19 }
 0x224   : > { %3674 = vst [vmem:[%s4247_s3 + $0x30] sm:$0xff] %v3622_v12   ;;  %v2242_v17 = vadd.f32 %v2241_v11, %v2153_v16  ;;  %v2066_v22 = vadd.f32 %v2065_v1, %v1977_v20 }
 0x226   : > { %v2399_v28 = vmul.f32 0.2, %v2242_v17 }
 0x228   : > { %v2431_v54 = vmax.f32 %v2242_v17, %v2399_v28 }
 0x229   : > { %v2154_v7 = vpop.f32.mrf.mxu2  ;;  %v1979_v36 = vpop.f32.mrf.mxu0 }
 0x22a   : > { %v2243_v23 = vpop.f32.mrf.mxu3  ;;  %v2155_v60 = vadd.f32 %v2154_v7, %v2066_v22  ;;  %v2068_v27 = vpop.f32.mrf.mxu1  ;;  %v1980_v34 = vadd.f32 %v1979_v36, %v4136_v30 }
 0x22c   : > { %v2244_v31 = vadd.f32 %v2243_v23, %v2155_v60  ;;  %v2069_v42 = vadd.f32 %v2068_v27, %v1980_v34 }
 0x22e   : > { %v2400_v33 = vmul.f32 0.2, %v2244_v31 }
 0x230   : > { %v2432_v35 = vmax.f32 %v2244_v31, %v2400_v33 }
 0x231   : > { %v2157_v29 = vpop.f32.mrf.mxu2  ;;  %v1981_v19 = vpop.f32.mrf.mxu0 }
 0x232   : > { %v2246_v38 = vpop.f32.mrf.mxu3  ;;  %v3627_v41 = vpack.c.bf16 %v2432_v35, %v2431_v54  ;;  %v2070_v43 = vpop.f32.mrf.mxu1  ;;  %v2158_v45 = vadd.f32 %v2157_v29, %v2069_v42  ;;  %v1982_v46 = vadd.f32 %v1981_v19, %v4146_v53 }
 0x234   : > { %3675 = vst [vmem:[%s4247_s3 + $0x38] sm:$0xff] %v3627_v41   ;;  %v2247_v48 = vadd.f32 %v2246_v38, %v2158_v45  ;;  %v2071_v21 = vadd.f32 %v2070_v43, %v1982_v46 }
 0x236   : > { %v2401_v55 = vmul.f32 0.2, %v2247_v48 }
 0x238   : > { %v2433_v61 = vmax.f32 %v2247_v48, %v2401_v55 }
 0x239   : > { %v2159_v44 = vpop.f32.mrf.mxu2  ;;  %v1984_v62 = vpop.f32.mrf.mxu0 }
 0x23a   : > { %v2248_v50 = vpop.f32.mrf.mxu3  ;;  %v2160_v52 = vadd.f32 %v2159_v44, %v2071_v21  ;;  %v2073_v30 = vpop.f32.mrf.mxu1  ;;  %v1985_v57 = vadd.f32 %v1984_v62, %v4148_v2 }
 0x23c   : > { %v2249_v58 = vadd.f32 %v2248_v50, %v2160_v52  ;;  %v2074_v26 = vadd.f32 %v2073_v30, %v1985_v57 }
 0x23e   : > { %v2402_v59 = vmul.f32 0.2, %v2249_v58 }
 0x240   : > { %v2434_v3 = vmax.f32 %v2249_v58, %v2402_v59 }
 0x241   : > { %v2162_v4 = vpop.f32.mrf.mxu2  ;;  %v1986_v53 = vpop.f32.mrf.mxu0 }
 0x242   : > { %v2251_v51 = vpop.f32.mrf.mxu3  ;;  %v3632_v5 = vpack.c.bf16 %v2434_v3, %v2433_v61  ;;  %v2075_v32 = vpop.f32.mrf.mxu1  ;;  %v2163_v8 = vadd.f32 %v2162_v4, %v2074_v26  ;;  %v1987_v0 = vadd.f32 %v1986_v53, %v4158_v25 }
 0x244   : > { %3676 = vst [vmem:[%s4247_s3 + $0x40] sm:$0xff] %v3632_v5   ;;  %v2252_v9 = vadd.f32 %v2251_v51, %v2163_v8  ;;  %v2076_v11 = vadd.f32 %v2075_v32, %v1987_v0 }
 0x246   : > { %v2403_v16 = vmul.f32 0.2, %v2252_v9 }
 0x248   : > { %v2435_v7 = vmax.f32 %v2252_v9, %v2403_v16 }
 0x249   : > { %v2164_v12 = vpop.f32.mrf.mxu2  ;;  %v1989_v1 = vpop.f32.mrf.mxu0 }
 0x24a   : > { %v2253_v13 = vpop.f32.mrf.mxu3  ;;  %v2165_v15 = vadd.f32 %v2164_v12, %v2076_v11  ;;  %v2078_v2 = vpop.f32.mrf.mxu1  ;;  %v1990_v22 = vadd.f32 %v1989_v1, %v4160_v37 }
 0x24c   : > { %v2254_v20 = vadd.f32 %v2253_v13, %v2165_v15  ;;  %v2079_v28 = vadd.f32 %v2078_v2, %v1990_v22 }
 0x24e   : > { %v2404_v17 = vmul.f32 0.2, %v2254_v20 }
 0x250   : > { %v2436_v23 = vmax.f32 %v2254_v20, %v2404_v17 }
 0x251   : > { %v2167_v60 = vpop.f32.mrf.mxu2  ;;  %v1991_v25 = vpop.f32.mrf.mxu0 }
 0x252   : > { %v2256_v36 = vpop.f32.mrf.mxu3  ;;  %v3637_v27 = vpack.c.bf16 %v2436_v23, %v2435_v7  ;;  %v2080_v31 = vpop.f32.mrf.mxu1  ;;  %v2168_v33 = vadd.f32 %v2167_v60, %v2079_v28  ;;  %v1992_v34 = vadd.f32 %v1991_v25, %v4170_v63 }
 0x254   : > { %3677 = vst [vmem:[%s4247_s3 + $0x48] sm:$0xff] %v3637_v27   ;;  %v2257_v54 = vadd.f32 %v2256_v36, %v2168_v33  ;;  %v2081_v35 = vadd.f32 %v2080_v31, %v1992_v34 }
 0x256   : > { %v2405_v19 = vmul.f32 0.2, %v2257_v54 }
 0x258   : > { %v2437_v48 = vmax.f32 %v2257_v54, %v2405_v19 }
 0x259   : > { %v2169_v29 = vpop.f32.mrf.mxu2  ;;  %v1994_v42 = vpop.f32.mrf.mxu0 }
 0x25a   : > { %v2258_v38 = vpop.f32.mrf.mxu3  ;;  %v2170_v41 = vadd.f32 %v2169_v29, %v2081_v35  ;;  %v2083_v37 = vpop.f32.mrf.mxu1  ;;  %v1995_v46 = vadd.f32 %v1994_v42, %v4172_v10 }
 0x25c   : > { %v2259_v43 = vadd.f32 %v2258_v38, %v2170_v41  ;;  %v2084_v62 = vadd.f32 %v2083_v37, %v1995_v46 }
 0x25e   : > { %v2406_v45 = vmul.f32 0.2, %v2259_v43 }
 0x260   : > { %v2438_v21 = vmax.f32 %v2259_v43, %v2406_v45 }
 0x261   : > { %v2172_v44 = vpop.f32.mrf.mxu2  ;;  %v1996_v63 = vpop.f32.mrf.mxu0 }
 0x262   : > { %v2261_v50 = vpop.f32.mrf.mxu3  ;;  %v3642_v52 = vpack.c.bf16 %v2438_v21, %v2437_v48  ;;  %v2085_v30 = vpop.f32.mrf.mxu1  ;;  %v2173_v55 = vadd.f32 %v2172_v44, %v2084_v62  ;;  %v1997_v58 = vadd.f32 %v1996_v63, %v4182_v39 }
 0x264   : > { %3678 = vst [vmem:[%s4247_s3 + $0x50] sm:$0xff] %v3642_v52   ;;  %v2262_v59 = vadd.f32 %v2261_v50, %v2173_v55  ;;  %v2086_v57 = vadd.f32 %v2085_v30, %v1997_v58 }
 0x266   : > { %v2407_v5 = vmul.f32 0.2, %v2262_v59 }
 0x268   : > { %v2439_v8 = vmax.f32 %v2262_v59, %v2407_v5 }
 0x269   : > { %v2174_v61 = vpop.f32.mrf.mxu2  ;;  %v1999_v51 = vpop.f32.mrf.mxu0 }
 0x26a   : > { %v2263_v3 = vpop.f32.mrf.mxu3  ;;  %v2175_v4 = vadd.f32 %v2174_v61, %v2086_v57  ;;  %v2088_v10 = vpop.f32.mrf.mxu1  ;;  %v2000_v32 = vadd.f32 %v1999_v51, %v4184_v47 }
 0x26c   : > { %v2264_v26 = vadd.f32 %v2263_v3, %v2175_v4  ;;  %v2089_v13 = vadd.f32 %v2088_v10, %v2000_v32 }
 0x26e   : > { %v2408_v53 = vmul.f32 0.2, %v2264_v26 }
 0x270   : > { %v2440_v0 = vmax.f32 %v2264_v26, %v2408_v53 }
 0x271   : > { %v2177_v9 = vpop.f32.mrf.mxu2  ;;  %v2001_v39 = vpop.f32.mrf.mxu0 }
 0x272   : > { %v2266_v11 = vpop.f32.mrf.mxu3  ;;  %v3647_v12 = vpack.c.bf16 %v2440_v0, %v2439_v8  ;;  %v2090_v15 = vpop.f32.mrf.mxu1  ;;  %v2178_v1 = vadd.f32 %v2177_v9, %v2089_v13  ;;  %v2002_v2 = vadd.f32 %v2001_v39, %v4194_v14 }
 0x274   : > { %3679 = vst [vmem:[%s4247_s3 + $0x58] sm:$0xff] %v3647_v12   ;;  %v2267_v16 = vadd.f32 %v2266_v11, %v2178_v1  ;;  %v2091_v20 = vadd.f32 %v2090_v15, %v2002_v2 }
 0x276   : > { %v2409_v60 = vmul.f32 0.2, %v2267_v16 }
 0x278   : > { %v2441_v25 = vmax.f32 %v2267_v16, %v2409_v60 }
 0x279   : > { %v2179_v17 = vpop.f32.mrf.mxu2  ;;  %v2004_v23 = vpop.f32.mrf.mxu0 }
 0x27a   : > { %v2268_v22 = vpop.f32.mrf.mxu3  ;;  %v2180_v7 = vadd.f32 %v2179_v17, %v2091_v20  ;;  %v2093_v47 = vpop.f32.mrf.mxu1  ;;  %v2005_v28 = vadd.f32 %v2004_v23, %v4196_v24 }
 0x27c   : > { %v2269_v36 = vadd.f32 %v2268_v22, %v2180_v7  ;;  %v2094_v35 = vadd.f32 %v2093_v47, %v2005_v28 }
 0x27e   : > { %v2410_v27 = vmul.f32 0.2, %v2269_v36 }
 0x280   : > { %v2442_v31 = vmax.f32 %v2269_v36, %v2410_v27 }
 0x281   : > { %v2182_v33 = vpop.f32.mrf.mxu2  ;;  %v2006_v14 = vpop.f32.mrf.mxu0 }
 0x282   : > { %v2271_v34 = vpop.f32.mrf.mxu3  ;;  %v3652_v54 = vpack.c.bf16 %v2442_v31, %v2441_v25  ;;  %v2095_v29 = vpop.f32.mrf.mxu1  ;;  %v2183_v38 = vadd.f32 %v2182_v33, %v2094_v35  ;;  %v2007_v41 = vadd.f32 %v2006_v14, %v4206_v56 }
 0x284   : > { %3680 = vst [vmem:[%s4247_s3 + $0x60] sm:$0xff] %v3652_v54   ;;  %v2272_v42 = vadd.f32 %v2271_v34, %v2183_v38  ;;  %v2096_v37 = vadd.f32 %v2095_v29, %v2007_v41 }
 0x286   : > { %v2411_v48 = vmul.f32 0.2, %v2272_v42 }
 0x288   : > { %v2443_v52 = vmax.f32 %v2272_v42, %v2411_v48 }
 0x289   : > { %v2184_v19 = vpop.f32.mrf.mxu2  ;;  %v2009_v46 = vpop.f32.mrf.mxu0 }
 0x28a   : > { %v2273_v43 = vpop.f32.mrf.mxu3  ;;  %v2185_v45 = vadd.f32 %v2184_v19, %v2096_v37  ;;  %v2098_v24 = vpop.f32.mrf.mxu1  ;;  %v2010_v50 = vadd.f32 %v2009_v46, %v4208_v6 }
 0x28c   : > { %v2274_v21 = vadd.f32 %v2273_v43, %v2185_v45  ;;  %v2099_v58 = vadd.f32 %v2098_v24, %v2010_v50 }
 0x28e   : > { %v2412_v44 = vmul.f32 0.2, %v2274_v21 }
 0x290   : > { %v2444_v62 = vmax.f32 %v2274_v21, %v2412_v44 }
 0x291   : > { %v2187_v63 = vpop.f32.mrf.mxu2  ;;  %v2011_v56 = vpop.f32.mrf.mxu0 }
 0x292   : > { %v2276_v30 = vpop.f32.mrf.mxu3  ;;  %v3657_v55 = vpack.c.bf16 %v2444_v62, %v2443_v52  ;;  %v2100_v59 = vpop.f32.mrf.mxu1  ;;  %v2188_v57 = vadd.f32 %v2187_v63, %v2099_v58  ;;  %v2012_v61 = vadd.f32 %v2011_v56, %v4218_v40 }
 0x294   : > { %3681 = vst [vmem:[%s4247_s3 + $0x68] sm:$0xff] %v3657_v55   ;;  %v2277_v3 = vadd.f32 %v2276_v30, %v2188_v57  ;;  %v2101_v4 = vadd.f32 %v2100_v59, %v2012_v61 }
 0x296   : > { %v2413_v6 = vmul.f32 0.2, %v2277_v3 }
 0x298   : > { %v2445_v9 = vmax.f32 %v2277_v3, %v2413_v6 }
 0x299   : > { %v2189_v51 = vpop.f32.mrf.mxu2  ;;  %v2014_v26 = vpop.f32.mrf.mxu0 }
 0x29a   : > { %v2278_v10 = vpop.f32.mrf.mxu3  ;;  %v2190_v5 = vadd.f32 %v2189_v51, %v2101_v4  ;;  %v2103_v32 = vpop.f32.mrf.mxu1  ;;  %v2015_v0 = vadd.f32 %v2014_v26, %v4220_v49 }
 0x29c   : > { %v2279_v53 = vadd.f32 %v2278_v10, %v2190_v5  ;;  %v2104_v15 = vadd.f32 %v2103_v32, %v2015_v0 }
 0x29e   : > { %v2414_v8 = vmul.f32 0.2, %v2279_v53 }
 0x2a0   : > { %v2446_v11 = vmax.f32 %v2279_v53, %v2414_v8 }
 0x2a1   : > { %v2192_v12 = vpop.f32.mrf.mxu2  ;;  %v2016_v40 = vpop.f32.mrf.mxu0 }
 0x2a2   : > { %v2281_v13 = vpop.f32.mrf.mxu3  ;;  %v3662_v39 = vpack.c.bf16 %v2446_v11, %v2445_v9  ;;  %v2193_v1 = vadd.f32 %v2192_v12, %v2104_v15  ;;  %v2017_v2 = vadd.f32 %v2016_v40, %v4230_v18  ;;  %v2105_v16 = vpop.f32.mrf.mxu1 }
 0x2a4   : > { %3682 = vst [vmem:[%s4247_s3 + $0x70] sm:$0xff] %v3662_v39   ;;  %v2282_v20 = vadd.f32 %v2281_v13, %v2193_v1  ;;  %v2106_v17 = vadd.f32 %v2105_v16, %v2017_v2 }
 0x2a6   : > { %v2415_v47 = vmul.f32 0.2, %v2282_v20 }
 0x2a8   : > { %v2447_v36 = vmax.f32 %v2282_v20, %v2415_v47 }
 0x2a9   : > { %v2194_v22 = vpop.f32.mrf.mxu2 }
 0x2aa   : > { %v2195_v7 = vadd.f32 %v2194_v22, %v2106_v17  ;;  %v2283_v23 = vpop.f32.mrf.mxu3 }
 0x2ac   : > { %v2284_v49 = vadd.f32 %v2283_v23, %v2195_v7 }
 0x2ae   : > { %v2416_v60 = vmul.f32 0.2, %v2284_v49 }
 0x2b0   : > { %v2448_v27 = vmax.f32 %v2284_v49, %v2416_v60 }
 0x2b2   : > { %v3667_v28 = vpack.c.bf16 %v2448_v27, %v2447_v36 }
 0x2b4   : > { %3683 = vst [vmem:[%s4247_s3 + $0x78] sm:$0xff] %v3667_v28  }
 0x2b5 PF: > { %s12_s11 = sadd.s32 1, %s3730_s11   ;;  %s4354_s9 = smov %s3726_s10 }
 0x2b6   : > { %p9_p5 = scmp.ge.s32.totalorder %s12_s11, 4   ;;  %s4355_s10 = smov %s4357_s12 }
 0x2b8   :  { %11 = sbr.rel (!%p9_p5) target bundleno = 2 (0x2), region = 69 }

// kernel: _lambda_.6
= control target key start
LH: loop header
LB: loop body
LE: loop exit
PB: predicated region body
PF: predicated region fallthrough
CT: control target
= control target key end

     0   :  { %s6697_s9 = smov 0   ;;  %s6699_s10 = smov 0   ;;  %s8357_s0 = inlined_call_operand.vmem [shape: bf16[128,2048], index: 0, kind: input, shape index: {}]   ;;  %s8358_s1 = inlined_call_operand.vmem [shape: bf16[2048,256], index: 1, kind: input, shape index: {}]   ;;  %s8359_s2 = inlined_call_operand.vmem [shape: bf16[128,256], index: 2, kind: output, shape index: {}]  }
   0x1   :  { %s6701_s11 = smov 0   ;;  %s6703_s12 = smov 0  }
   0x2   :  { %s6705_s13 = smov 0  }
   0x3 LB: > { %s27_s14 = sadd.s32 1, %s6676_s12  ;;  %s5261_s15 = sadd.s32 4294967295, %s6680_s13   ;;  %s6680_s13 = sphi %s6705_s13, %s12_s13   ;;  %s6676_s12 = sphi %s6703_s12, %s8364_s12   ;;  %s6672_s11 = sphi %s6701_s11, %s8363_s11   ;;  %s6668_s10 = sphi %s6699_s10, %s8362_s10   ;;  %s6664_s9 = sphi %s6697_s9, %s8361_s9  }
   0x4   : > { %p29_p0 = scmp.ge.s32.totalorder %s27_s14, 2  ;;  %p75_p1 = scmp.ne.s32.totalorder %s6668_s10, %s6664_s9 }
   0x5   : > { %p76_p2 = scmp.eq.s32.totalorder %s6680_s13, 0  ;;  %p107_p4 = scmp.eq.s32.totalorder %s5261_s15, 1 }
   0x6   : > { %s8366_s14 = smov (%p29_p0, %s27_s14), 0  ;;  %s68_s17 = sadd.s32 1, %s6668_s10 }
   0x7   : > { %p77_p3 = por %p76_p2, %p75_p1  ;;  %s64_s16 = ssub.s32 %s6676_s12, %s8366_s14 }
   0x8   : > { %p66_p5 = scmp.eq.s32.totalorder %s64_s16, 0  ;;  %p6732_p6 = por %p107_p4, %p75_p1 }
   0x9   : > { %p5265_p7 = scmp.ge.s32.totalorder %s6680_s13, 2 }
   0xa   : > { %s6737_s19 = scalar_select %p66_p5, %s6668_s10, %s68_s17  }
   0xb   : > { %144 = sbr.rel (%p5265_p7) target bundleno = 276 (0x114), region = 20 }
  0x10   : > { %147 = sbr.rel (!%p77_p3) target bundleno = 276 (0x114), region = 24  ;;  %s149_s20 = sand.u32 (%p77_p3), 1, %s6668_s10  }
  0x11   : > { %s5267_s21 = sshll.u32 (%p77_p3), %s6676_s12, 2  ;;  %s5266_s22 = sshll.u32 (%p77_p3), %s149_s20, 10 }
  0x12   : > { %s6745_s25 = scalar_lea.vmem (%p77_p3), %s8358_s1, %s5267_s21  ;;  %s6749_s26 = scalar_lea.vmem (%p77_p3), [#allocation3], %s5266_s22 }
  0x13   : > { %v173_v0 = vld [vmem:[%s6745_s25] sm:$0xf] (%p77_p3)  ;;  %v175_v1 = vld [vmem:[%s6745_s25 + $0x8] sm:$0xf] (%p77_p3)  ;;  %v177_v2 = vld [vmem:[%s6745_s25 + $0x10] sm:$0xf] (%p77_p3) }
  0x14   : > { %174 = vst [vmem:[%s6749_s26] sm:$0xf] (%p77_p3), %v173_v0  ;;  %v179_v3 = vld [vmem:[%s6745_s25 + $0x18] sm:$0xf] (%p77_p3)  ;;  %v181_v4 = vld [vmem:[%s6745_s25 + $0x20] sm:$0xf] (%p77_p3) }
  0x15   : > { %176 = vst [vmem:[%s6749_s26 + $0x4] sm:$0xf] %v175_v1  ;;  %v183_v5 = vld [vmem:[%s6745_s25 + $0x28] sm:$0xf]  ;;  %v185_v6 = vld [vmem:[%s6745_s25 + $0x30] sm:$0xf] }
  0x16   : > { %178 = vst [vmem:[%s6749_s26 + $0x8] sm:$0xf] %v177_v2  ;;  %v187_v7 = vld [vmem:[%s6745_s25 + $0x38] sm:$0xf]  ;;  %v189_v8 = vld [vmem:[%s6745_s25 + $0x40] sm:$0xf] }
  0x17   : > { %180 = vst [vmem:[%s6749_s26 + $0xc] sm:$0xf] %v179_v3  ;;  %v191_v9 = vld [vmem:[%s6745_s25 + $0x48] sm:$0xf]  ;;  %v193_v10 = vld [vmem:[%s6745_s25 + $0x50] sm:$0xf] }
  0x18   : > { %182 = vst [vmem:[%s6749_s26 + $0x10] sm:$0xf] %v181_v4  ;;  %v195_v11 = vld [vmem:[%s6745_s25 + $0x58] sm:$0xf]  ;;  %v197_v12 = vld [vmem:[%s6745_s25 + $0x60] sm:$0xf] }
  0x19   : > { %184 = vst [vmem:[%s6749_s26 + $0x14] sm:$0xf] %v183_v5  ;;  %v199_v13 = vld [vmem:[%s6745_s25 + $0x68] sm:$0xf]  ;;  %v201_v14 = vld [vmem:[%s6745_s25 + $0x70] sm:$0xf] }
  0x1a   : > { %186 = vst [vmem:[%s6749_s26 + $0x18] sm:$0xf] %v185_v6  ;;  %v203_v15 = vld [vmem:[%s6745_s25 + $0x78] sm:$0xf]  ;;  %v205_v16 = vld [vmem:[%s6745_s25 + $0x80] sm:$0xf] }
  0x1b   : > { %188 = vst [vmem:[%s6749_s26 + $0x1c] sm:$0xf] %v187_v7  ;;  %v207_v17 = vld [vmem:[%s6745_s25 + $0x88] sm:$0xf]  ;;  %v209_v18 = vld [vmem:[%s6745_s25 + $0x90] sm:$0xf] }
  0x1c   : > { %190 = vst [vmem:[%s6749_s26 + $0x20] sm:$0xf] %v189_v8  ;;  %v211_v19 = vld [vmem:[%s6745_s25 + $0x98] sm:$0xf]  ;;  %v213_v20 = vld [vmem:[%s6745_s25 + $0xa0] sm:$0xf] }
  0x1d   : > { %192 = vst [vmem:[%s6749_s26 + $0x24] sm:$0xf] %v191_v9  ;;  %v215_v21 = vld [vmem:[%s6745_s25 + $0xa8] sm:$0xf]  ;;  %v217_v22 = vld [vmem:[%s6745_s25 + $0xb0] sm:$0xf] }
  0x1e   : > { %194 = vst [vmem:[%s6749_s26 + $0x28] sm:$0xf] %v193_v10  ;;  %v219_v23 = vld [vmem:[%s6745_s25 + $0xb8] sm:$0xf]  ;;  %v221_v24 = vld [vmem:[%s6745_s25 + $0xc0] sm:$0xf] }
  0x1f   : > { %196 = vst [vmem:[%s6749_s26 + $0x2c] sm:$0xf] %v195_v11  ;;  %v223_v25 = vld [vmem:[%s6745_s25 + $0xc8] sm:$0xf]  ;;  %v225_v26 = vld [vmem:[%s6745_s25 + $0xd0] sm:$0xf] }
  0x20   : > { %198 = vst [vmem:[%s6749_s26 + $0x30] sm:$0xf] %v197_v12  ;;  %v227_v27 = vld [vmem:[%s6745_s25 + $0xd8] sm:$0xf]  ;;  %v229_v28 = vld [vmem:[%s6745_s25 + $0xe0] sm:$0xf] }
  0x21   : > { %200 = vst [vmem:[%s6749_s26 + $0x34] sm:$0xf] %v199_v13  ;;  %v231_v29 = vld [vmem:[%s6745_s25 + $0xe8] sm:$0xf]  ;;  %v233_v30 = vld [vmem:[%s6745_s25 + $0xf0] sm:$0xf] }
  0x22   : > { %202 = vst [vmem:[%s6749_s26 + $0x38] sm:$0xf] %v201_v14  ;;  %v235_v31 = vld [vmem:[%s6745_s25 + $0xf8] sm:$0xf]  ;;  %v237_v32 = vld [vmem:[%s6745_s25 + $0x100] sm:$0xf] }
  0x23   : > { %204 = vst [vmem:[%s6749_s26 + $0x3c] sm:$0xf] %v203_v15  ;;  %v239_v33 = vld [vmem:[%s6745_s25 + $0x108] sm:$0xf]  ;;  %v241_v34 = vld [vmem:[%s6745_s25 + $0x110] sm:$0xf] }
  0x24   : > { %206 = vst [vmem:[%s6749_s26 + $0x40] sm:$0xf] %v205_v16  ;;  %v243_v35 = vld [vmem:[%s6745_s25 + $0x118] sm:$0xf]  ;;  %v245_v36 = vld [vmem:[%s6745_s25 + $0x120] sm:$0xf] }
  0x25   : > { %208 = vst [vmem:[%s6749_s26 + $0x44] sm:$0xf] %v207_v17  ;;  %v247_v37 = vld [vmem:[%s6745_s25 + $0x128] sm:$0xf]  ;;  %v249_v38 = vld [vmem:[%s6745_s25 + $0x130] sm:$0xf] }
  0x26   : > { %210 = vst [vmem:[%s6749_s26 + $0x48] sm:$0xf] %v209_v18  ;;  %v251_v39 = vld [vmem:[%s6745_s25 + $0x138] sm:$0xf]  ;;  %v253_v40 = vld [vmem:[%s6745_s25 + $0x140] sm:$0xf] }
  0x27   : > { %212 = vst [vmem:[%s6749_s26 + $0x4c] sm:$0xf] %v211_v19  ;;  %v255_v41 = vld [vmem:[%s6745_s25 + $0x148] sm:$0xf]  ;;  %v257_v42 = vld [vmem:[%s6745_s25 + $0x150] sm:$0xf] }
  0x28   : > { %214 = vst [vmem:[%s6749_s26 + $0x50] sm:$0xf] %v213_v20  ;;  %v259_v43 = vld [vmem:[%s6745_s25 + $0x158] sm:$0xf]  ;;  %v261_v44 = vld [vmem:[%s6745_s25 + $0x160] sm:$0xf] }
  0x29   : > { %216 = vst [vmem:[%s6749_s26 + $0x54] sm:$0xf] %v215_v21  ;;  %v263_v45 = vld [vmem:[%s6745_s25 + $0x168] sm:$0xf]  ;;  %v265_v46 = vld [vmem:[%s6745_s25 + $0x170] sm:$0xf] }
  0x2a   : > { %218 = vst [vmem:[%s6749_s26 + $0x58] sm:$0xf] %v217_v22  ;;  %v267_v47 = vld [vmem:[%s6745_s25 + $0x178] sm:$0xf]  ;;  %v269_v48 = vld [vmem:[%s6745_s25 + $0x180] sm:$0xf] }
  0x2b   : > { %220 = vst [vmem:[%s6749_s26 + $0x5c] sm:$0xf] %v219_v23  ;;  %v271_v49 = vld [vmem:[%s6745_s25 + $0x188] sm:$0xf]  ;;  %v273_v50 = vld [vmem:[%s6745_s25 + $0x190] sm:$0xf] }
  0x2c   : > { %222 = vst [vmem:[%s6749_s26 + $0x60] sm:$0xf] %v221_v24  ;;  %v275_v51 = vld [vmem:[%s6745_s25 + $0x198] sm:$0xf]  ;;  %v277_v52 = vld [vmem:[%s6745_s25 + $0x1a0] sm:$0xf] }
  0x2d   : > { %224 = vst [vmem:[%s6749_s26 + $0x64] sm:$0xf] %v223_v25  ;;  %v279_v53 = vld [vmem:[%s6745_s25 + $0x1a8] sm:$0xf]  ;;  %v281_v54 = vld [vmem:[%s6745_s25 + $0x1b0] sm:$0xf] }
  0x2e   : > { %226 = vst [vmem:[%s6749_s26 + $0x68] sm:$0xf] %v225_v26  ;;  %v283_v55 = vld [vmem:[%s6745_s25 + $0x1b8] sm:$0xf]  ;;  %v285_v56 = vld [vmem:[%s6745_s25 + $0x1c0] sm:$0xf] }
  0x2f   : > { %228 = vst [vmem:[%s6749_s26 + $0x6c] sm:$0xf] %v227_v27  ;;  %v287_v57 = vld [vmem:[%s6745_s25 + $0x1c8] sm:$0xf]  ;;  %v289_v58 = vld [vmem:[%s6745_s25 + $0x1d0] sm:$0xf] }
  0x30   : > { %230 = vst [vmem:[%s6749_s26 + $0x70] sm:$0xf] %v229_v28  ;;  %v291_v59 = vld [vmem:[%s6745_s25 + $0x1d8] sm:$0xf]  ;;  %v293_v60 = vld [vmem:[%s6745_s25 + $0x1e0] sm:$0xf] }
  0x31   : > { %232 = vst [vmem:[%s6749_s26 + $0x74] sm:$0xf] %v231_v29  ;;  %v295_v61 = vld [vmem:[%s6745_s25 + $0x1e8] sm:$0xf]  ;;  %v297_v62 = vld [vmem:[%s6745_s25 + $0x1f0] sm:$0xf] }
  0x32   : > { %234 = vst [vmem:[%s6749_s26 + $0x78] sm:$0xf] %v233_v30  ;;  %v299_v63 = vld [vmem:[%s6745_s25 + $0x1f8] sm:$0xf]  ;;  %v301_v0 = vld [vmem:[%s6745_s25 + $0x200] sm:$0xf] }
  0x33   : > { %236 = vst [vmem:[%s6749_s26 + $0x7c] sm:$0xf] %v235_v31  ;;  %v303_v1 = vld [vmem:[%s6745_s25 + $0x208] sm:$0xf]  ;;  %v305_v2 = vld [vmem:[%s6745_s25 + $0x210] sm:$0xf] }
  0x34   : > { %238 = vst [vmem:[%s6749_s26 + $0x80] sm:$0xf] %v237_v32  ;;  %v307_v3 = vld [vmem:[%s6745_s25 + $0x218] sm:$0xf]  ;;  %v309_v4 = vld [vmem:[%s6745_s25 + $0x220] sm:$0xf] }
  0x35   : > { %240 = vst [vmem:[%s6749_s26 + $0x84] sm:$0xf] %v239_v33  ;;  %v311_v5 = vld [vmem:[%s6745_s25 + $0x228] sm:$0xf]  ;;  %v313_v6 = vld [vmem:[%s6745_s25 + $0x230] sm:$0xf] }
  0x36   : > { %242 = vst [vmem:[%s6749_s26 + $0x88] sm:$0xf] %v241_v34  ;;  %v315_v7 = vld [vmem:[%s6745_s25 + $0x238] sm:$0xf]  ;;  %v317_v8 = vld [vmem:[%s6745_s25 + $0x240] sm:$0xf] }
  0x37   : > { %244 = vst [vmem:[%s6749_s26 + $0x8c] sm:$0xf] %v243_v35  ;;  %v319_v9 = vld [vmem:[%s6745_s25 + $0x248] sm:$0xf]  ;;  %v321_v10 = vld [vmem:[%s6745_s25 + $0x250] sm:$0xf] }
  0x38   : > { %246 = vst [vmem:[%s6749_s26 + $0x90] sm:$0xf] %v245_v36  ;;  %v323_v11 = vld [vmem:[%s6745_s25 + $0x258] sm:$0xf]  ;;  %v325_v12 = vld [vmem:[%s6745_s25 + $0x260] sm:$0xf] }
  0x39   : > { %248 = vst [vmem:[%s6749_s26 + $0x94] sm:$0xf] %v247_v37  ;;  %v327_v13 = vld [vmem:[%s6745_s25 + $0x268] sm:$0xf]  ;;  %v329_v14 = vld [vmem:[%s6745_s25 + $0x270] sm:$0xf] }
  0x3a   : > { %250 = vst [vmem:[%s6749_s26 + $0x98] sm:$0xf] %v249_v38  ;;  %v331_v15 = vld [vmem:[%s6745_s25 + $0x278] sm:$0xf]  ;;  %v333_v16 = vld [vmem:[%s6745_s25 + $0x280] sm:$0xf] }
  0x3b   : > { %252 = vst [vmem:[%s6749_s26 + $0x9c] sm:$0xf] %v251_v39  ;;  %v335_v17 = vld [vmem:[%s6745_s25 + $0x288] sm:$0xf]  ;;  %v337_v18 = vld [vmem:[%s6745_s25 + $0x290] sm:$0xf] }
  0x3c   : > { %254 = vst [vmem:[%s6749_s26 + $0xa0] sm:$0xf] %v253_v40  ;;  %v339_v19 = vld [vmem:[%s6745_s25 + $0x298] sm:$0xf]  ;;  %v341_v20 = vld [vmem:[%s6745_s25 + $0x2a0] sm:$0xf] }
  0x3d   : > { %256 = vst [vmem:[%s6749_s26 + $0xa4] sm:$0xf] %v255_v41  ;;  %v343_v21 = vld [vmem:[%s6745_s25 + $0x2a8] sm:$0xf]  ;;  %v345_v22 = vld [vmem:[%s6745_s25 + $0x2b0] sm:$0xf] }
  0x3e   : > { %258 = vst [vmem:[%s6749_s26 + $0xa8] sm:$0xf] %v257_v42  ;;  %v347_v23 = vld [vmem:[%s6745_s25 + $0x2b8] sm:$0xf]  ;;  %v349_v24 = vld [vmem:[%s6745_s25 + $0x2c0] sm:$0xf] }
  0x3f   : > { %260 = vst [vmem:[%s6749_s26 + $0xac] sm:$0xf] %v259_v43  ;;  %v351_v25 = vld [vmem:[%s6745_s25 + $0x2c8] sm:$0xf]  ;;  %v353_v26 = vld [vmem:[%s6745_s25 + $0x2d0] sm:$0xf] }
  0x40   : > { %262 = vst [vmem:[%s6749_s26 + $0xb0] sm:$0xf] %v261_v44  ;;  %v355_v27 = vld [vmem:[%s6745_s25 + $0x2d8] sm:$0xf]  ;;  %v357_v28 = vld [vmem:[%s6745_s25 + $0x2e0] sm:$0xf] }
  0x41   : > { %264 = vst [vmem:[%s6749_s26 + $0xb4] sm:$0xf] %v263_v45  ;;  %v359_v29 = vld [vmem:[%s6745_s25 + $0x2e8] sm:$0xf]  ;;  %v361_v30 = vld [vmem:[%s6745_s25 + $0x2f0] sm:$0xf] }
  0x42   : > { %266 = vst [vmem:[%s6749_s26 + $0xb8] sm:$0xf] %v265_v46  ;;  %v363_v31 = vld [vmem:[%s6745_s25 + $0x2f8] sm:$0xf]  ;;  %v365_v32 = vld [vmem:[%s6745_s25 + $0x300] sm:$0xf] }
  0x43   : > { %268 = vst [vmem:[%s6749_s26 + $0xbc] sm:$0xf] %v267_v47  ;;  %v367_v33 = vld [vmem:[%s6745_s25 + $0x308] sm:$0xf]  ;;  %v369_v34 = vld [vmem:[%s6745_s25 + $0x310] sm:$0xf] }
  0x44   : > { %270 = vst [vmem:[%s6749_s26 + $0xc0] sm:$0xf] %v269_v48  ;;  %v371_v35 = vld [vmem:[%s6745_s25 + $0x318] sm:$0xf]  ;;  %v373_v36 = vld [vmem:[%s6745_s25 + $0x320] sm:$0xf] }
  0x45   : > { %272 = vst [vmem:[%s6749_s26 + $0xc4] sm:$0xf] %v271_v49  ;;  %v375_v37 = vld [vmem:[%s6745_s25 + $0x328] sm:$0xf]  ;;  %v377_v38 = vld [vmem:[%s6745_s25 + $0x330] sm:$0xf] }
  0x46   : > { %274 = vst [vmem:[%s6749_s26 + $0xc8] sm:$0xf] %v273_v50  ;;  %v379_v39 = vld [vmem:[%s6745_s25 + $0x338] sm:$0xf]  ;;  %v381_v40 = vld [vmem:[%s6745_s25 + $0x340] sm:$0xf] }
  0x47   : > { %276 = vst [vmem:[%s6749_s26 + $0xcc] sm:$0xf] %v275_v51  ;;  %v383_v41 = vld [vmem:[%s6745_s25 + $0x348] sm:$0xf]  ;;  %v385_v42 = vld [vmem:[%s6745_s25 + $0x350] sm:$0xf] }
  0x48   : > { %278 = vst [vmem:[%s6749_s26 + $0xd0] sm:$0xf] %v277_v52  ;;  %v387_v43 = vld [vmem:[%s6745_s25 + $0x358] sm:$0xf]  ;;  %v389_v44 = vld [vmem:[%s6745_s25 + $0x360] sm:$0xf] }
  0x49   : > { %280 = vst [vmem:[%s6749_s26 + $0xd4] sm:$0xf] %v279_v53  ;;  %v391_v45 = vld [vmem:[%s6745_s25 + $0x368] sm:$0xf]  ;;  %v393_v46 = vld [vmem:[%s6745_s25 + $0x370] sm:$0xf] }
  0x4a   : > { %282 = vst [vmem:[%s6749_s26 + $0xd8] sm:$0xf] %v281_v54  ;;  %v395_v47 = vld [vmem:[%s6745_s25 + $0x378] sm:$0xf]  ;;  %v397_v48 = vld [vmem:[%s6745_s25 + $0x380] sm:$0xf] }
  0x4b   : > { %284 = vst [vmem:[%s6749_s26 + $0xdc] sm:$0xf] %v283_v55  ;;  %v399_v49 = vld [vmem:[%s6745_s25 + $0x388] sm:$0xf]  ;;  %v401_v50 = vld [vmem:[%s6745_s25 + $0x390] sm:$0xf] }
  0x4c   : > { %286 = vst [vmem:[%s6749_s26 + $0xe0] sm:$0xf] %v285_v56  ;;  %v403_v51 = vld [vmem:[%s6745_s25 + $0x398] sm:$0xf]  ;;  %v405_v52 = vld [vmem:[%s6745_s25 + $0x3a0] sm:$0xf] }
  0x4d   : > { %288 = vst [vmem:[%s6749_s26 + $0xe4] sm:$0xf] %v287_v57  ;;  %v407_v53 = vld [vmem:[%s6745_s25 + $0x3a8] sm:$0xf]  ;;  %v409_v54 = vld [vmem:[%s6745_s25 + $0x3b0] sm:$0xf] }
  0x4e   : > { %290 = vst [vmem:[%s6749_s26 + $0xe8] sm:$0xf] %v289_v58  ;;  %v411_v55 = vld [vmem:[%s6745_s25 + $0x3b8] sm:$0xf]  ;;  %v413_v56 = vld [vmem:[%s6745_s25 + $0x3c0] sm:$0xf] }
  0x4f   : > { %292 = vst [vmem:[%s6749_s26 + $0xec] sm:$0xf] %v291_v59  ;;  %v415_v57 = vld [vmem:[%s6745_s25 + $0x3c8] sm:$0xf]  ;;  %v417_v58 = vld [vmem:[%s6745_s25 + $0x3d0] sm:$0xf] }
  0x50   : > { %294 = vst [vmem:[%s6749_s26 + $0xf0] sm:$0xf] %v293_v60  ;;  %v419_v59 = vld [vmem:[%s6745_s25 + $0x3d8] sm:$0xf]  ;;  %v421_v60 = vld [vmem:[%s6745_s25 + $0x3e0] sm:$0xf] }
  0x51   : > { %296 = vst [vmem:[%s6749_s26 + $0xf4] sm:$0xf] %v295_v61  ;;  %v423_v61 = vld [vmem:[%s6745_s25 + $0x3e8] sm:$0xf] }
  0x52   : > { %298 = vst [vmem:[%s6749_s26 + $0xf8] sm:$0xf] %v297_v62  ;;  %v425_v62 = vld [vmem:[%s6745_s25 + $0x3f0] sm:$0xf] }
  0x53   : > { %300 = vst [vmem:[%s6749_s26 + $0xfc] sm:$0xf] %v299_v63  ;;  %v427_v63 = vld [vmem:[%s6745_s25 + $0x3f8] sm:$0xf] }
  0x54   : > { %302 = vst [vmem:[%s6749_s26 + $0x100] sm:$0xf] %v301_v0  ;;  %v429_v0 = vld [vmem:[%s6745_s25 + $0x400] sm:$0xf] }
  0x55   : > { %304 = vst [vmem:[%s6749_s26 + $0x104] sm:$0xf] %v303_v1  ;;  %v431_v1 = vld [vmem:[%s6745_s25 + $0x408] sm:$0xf] }
  0x56   : > { %306 = vst [vmem:[%s6749_s26 + $0x108] sm:$0xf] %v305_v2  ;;  %v433_v2 = vld [vmem:[%s6745_s25 + $0x410] sm:$0xf] }
  0x57   : > { %308 = vst [vmem:[%s6749_s26 + $0x10c] sm:$0xf] %v307_v3  ;;  %v435_v3 = vld [vmem:[%s6745_s25 + $0x418] sm:$0xf] }
  0x58   : > { %310 = vst [vmem:[%s6749_s26 + $0x110] sm:$0xf] %v309_v4  ;;  %v437_v4 = vld [vmem:[%s6745_s25 + $0x420] sm:$0xf] }
  0x59   : > { %312 = vst [vmem:[%s6749_s26 + $0x114] sm:$0xf] %v311_v5  ;;  %v439_v5 = vld [vmem:[%s6745_s25 + $0x428] sm:$0xf] }
  0x5a   : > { %314 = vst [vmem:[%s6749_s26 + $0x118] sm:$0xf] %v313_v6  ;;  %v441_v6 = vld [vmem:[%s6745_s25 + $0x430] sm:$0xf] }
  0x5b   : > { %316 = vst [vmem:[%s6749_s26 + $0x11c] sm:$0xf] %v315_v7  ;;  %v443_v7 = vld [vmem:[%s6745_s25 + $0x438] sm:$0xf] }
  0x5c   : > { %318 = vst [vmem:[%s6749_s26 + $0x120] sm:$0xf] %v317_v8  ;;  %v445_v8 = vld [vmem:[%s6745_s25 + $0x440] sm:$0xf] }
  0x5d   : > { %320 = vst [vmem:[%s6749_s26 + $0x124] sm:$0xf] %v319_v9  ;;  %v447_v9 = vld [vmem:[%s6745_s25 + $0x448] sm:$0xf] }
  0x5e   : > { %322 = vst [vmem:[%s6749_s26 + $0x128] sm:$0xf] %v321_v10  ;;  %v449_v10 = vld [vmem:[%s6745_s25 + $0x450] sm:$0xf] }
  0x5f   : > { %324 = vst [vmem:[%s6749_s26 + $0x12c] sm:$0xf] %v323_v11  ;;  %v451_v11 = vld [vmem:[%s6745_s25 + $0x458] sm:$0xf] }
  0x60   : > { %326 = vst [vmem:[%s6749_s26 + $0x130] sm:$0xf] %v325_v12  ;;  %v453_v12 = vld [vmem:[%s6745_s25 + $0x460] sm:$0xf] }
  0x61   : > { %328 = vst [vmem:[%s6749_s26 + $0x134] sm:$0xf] %v327_v13  ;;  %v455_v13 = vld [vmem:[%s6745_s25 + $0x468] sm:$0xf] }
  0x62   : > { %330 = vst [vmem:[%s6749_s26 + $0x138] sm:$0xf] %v329_v14  ;;  %v457_v14 = vld [vmem:[%s6745_s25 + $0x470] sm:$0xf] }
  0x63   : > { %332 = vst [vmem:[%s6749_s26 + $0x13c] sm:$0xf] %v331_v15  ;;  %v459_v15 = vld [vmem:[%s6745_s25 + $0x478] sm:$0xf] }
  0x64   : > { %334 = vst [vmem:[%s6749_s26 + $0x140] sm:$0xf] %v333_v16  ;;  %v461_v16 = vld [vmem:[%s6745_s25 + $0x480] sm:$0xf] }
  0x65   : > { %336 = vst [vmem:[%s6749_s26 + $0x144] sm:$0xf] %v335_v17  ;;  %v463_v17 = vld [vmem:[%s6745_s25 + $0x488] sm:$0xf] }
  0x66   : > { %338 = vst [vmem:[%s6749_s26 + $0x148] sm:$0xf] %v337_v18  ;;  %v465_v18 = vld [vmem:[%s6745_s25 + $0x490] sm:$0xf] }
  0x67   : > { %340 = vst [vmem:[%s6749_s26 + $0x14c] sm:$0xf] %v339_v19  ;;  %v467_v19 = vld [vmem:[%s6745_s25 + $0x498] sm:$0xf] }
  0x68   : > { %342 = vst [vmem:[%s6749_s26 + $0x150] sm:$0xf] %v341_v20  ;;  %v469_v20 = vld [vmem:[%s6745_s25 + $0x4a0] sm:$0xf] }
  0x69   : > { %344 = vst [vmem:[%s6749_s26 + $0x154] sm:$0xf] %v343_v21  ;;  %v471_v21 = vld [vmem:[%s6745_s25 + $0x4a8] sm:$0xf] }
  0x6a   : > { %346 = vst [vmem:[%s6749_s26 + $0x158] sm:$0xf] %v345_v22  ;;  %v473_v22 = vld [vmem:[%s6745_s25 + $0x4b0] sm:$0xf] }
  0x6b   : > { %348 = vst [vmem:[%s6749_s26 + $0x15c] sm:$0xf] %v347_v23  ;;  %v475_v23 = vld [vmem:[%s6745_s25 + $0x4b8] sm:$0xf] }
  0x6c   : > { %350 = vst [vmem:[%s6749_s26 + $0x160] sm:$0xf] %v349_v24  ;;  %v477_v24 = vld [vmem:[%s6745_s25 + $0x4c0] sm:$0xf] }
  0x6d   : > { %352 = vst [vmem:[%s6749_s26 + $0x164] sm:$0xf] %v351_v25  ;;  %v479_v25 = vld [vmem:[%s6745_s25 + $0x4c8] sm:$0xf] }
  0x6e   : > { %354 = vst [vmem:[%s6749_s26 + $0x168] sm:$0xf] %v353_v26  ;;  %v481_v26 = vld [vmem:[%s6745_s25 + $0x4d0] sm:$0xf] }
  0x6f   : > { %356 = vst [vmem:[%s6749_s26 + $0x16c] sm:$0xf] %v355_v27  ;;  %v483_v27 = vld [vmem:[%s6745_s25 + $0x4d8] sm:$0xf] }
  0x70   : > { %358 = vst [vmem:[%s6749_s26 + $0x170] sm:$0xf] %v357_v28  ;;  %v485_v28 = vld [vmem:[%s6745_s25 + $0x4e0] sm:$0xf] }
  0x71   : > { %360 = vst [vmem:[%s6749_s26 + $0x174] sm:$0xf] %v359_v29  ;;  %v487_v29 = vld [vmem:[%s6745_s25 + $0x4e8] sm:$0xf] }
  0x72   : > { %362 = vst [vmem:[%s6749_s26 + $0x178] sm:$0xf] %v361_v30  ;;  %v489_v30 = vld [vmem:[%s6745_s25 + $0x4f0] sm:$0xf] }
  0x73   : > { %364 = vst [vmem:[%s6749_s26 + $0x17c] sm:$0xf] %v363_v31  ;;  %v491_v31 = vld [vmem:[%s6745_s25 + $0x4f8] sm:$0xf] }
  0x74   : > { %366 = vst [vmem:[%s6749_s26 + $0x180] sm:$0xf] %v365_v32  ;;  %v493_v32 = vld [vmem:[%s6745_s25 + $0x500] sm:$0xf] }
  0x75   : > { %368 = vst [vmem:[%s6749_s26 + $0x184] sm:$0xf] %v367_v33  ;;  %v495_v33 = vld [vmem:[%s6745_s25 + $0x508] sm:$0xf] }
  0x76   : > { %370 = vst [vmem:[%s6749_s26 + $0x188] sm:$0xf] %v369_v34  ;;  %v497_v34 = vld [vmem:[%s6745_s25 + $0x510] sm:$0xf] }
  0x77   : > { %372 = vst [vmem:[%s6749_s26 + $0x18c] sm:$0xf] %v371_v35  ;;  %v499_v35 = vld [vmem:[%s6745_s25 + $0x518] sm:$0xf] }
  0x78   : > { %374 = vst [vmem:[%s6749_s26 + $0x190] sm:$0xf] %v373_v36  ;;  %v501_v36 = vld [vmem:[%s6745_s25 + $0x520] sm:$0xf] }
  0x79   : > { %376 = vst [vmem:[%s6749_s26 + $0x194] sm:$0xf] %v375_v37  ;;  %v503_v37 = vld [vmem:[%s6745_s25 + $0x528] sm:$0xf] }
  0x7a   : > { %378 = vst [vmem:[%s6749_s26 + $0x198] sm:$0xf] %v377_v38  ;;  %v505_v38 = vld [vmem:[%s6745_s25 + $0x530] sm:$0xf] }
  0x7b   : > { %380 = vst [vmem:[%s6749_s26 + $0x19c] sm:$0xf] %v379_v39  ;;  %v507_v39 = vld [vmem:[%s6745_s25 + $0x538] sm:$0xf] }
  0x7c   : > { %382 = vst [vmem:[%s6749_s26 + $0x1a0] sm:$0xf] %v381_v40  ;;  %v509_v40 = vld [vmem:[%s6745_s25 + $0x540] sm:$0xf] }
  0x7d   : > { %384 = vst [vmem:[%s6749_s26 + $0x1a4] sm:$0xf] %v383_v41  ;;  %v511_v41 = vld [vmem:[%s6745_s25 + $0x548] sm:$0xf] }
  0x7e   : > { %386 = vst [vmem:[%s6749_s26 + $0x1a8] sm:$0xf] %v385_v42  ;;  %v513_v42 = vld [vmem:[%s6745_s25 + $0x550] sm:$0xf] }
  0x7f   : > { %388 = vst [vmem:[%s6749_s26 + $0x1ac] sm:$0xf] %v387_v43  ;;  %v515_v43 = vld [vmem:[%s6745_s25 + $0x558] sm:$0xf] }
  0x80   : > { %390 = vst [vmem:[%s6749_s26 + $0x1b0] sm:$0xf] %v389_v44  ;;  %v517_v44 = vld [vmem:[%s6745_s25 + $0x560] sm:$0xf] }
  0x81   : > { %392 = vst [vmem:[%s6749_s26 + $0x1b4] sm:$0xf] %v391_v45  ;;  %v519_v45 = vld [vmem:[%s6745_s25 + $0x568] sm:$0xf] }
  0x82   : > { %394 = vst [vmem:[%s6749_s26 + $0x1b8] sm:$0xf] %v393_v46  ;;  %v521_v46 = vld [vmem:[%s6745_s25 + $0x570] sm:$0xf] }
  0x83   : > { %396 = vst [vmem:[%s6749_s26 + $0x1bc] sm:$0xf] %v395_v47  ;;  %v523_v47 = vld [vmem:[%s6745_s25 + $0x578] sm:$0xf] }
  0x84   : > { %398 = vst [vmem:[%s6749_s26 + $0x1c0] sm:$0xf] %v397_v48  ;;  %v525_v48 = vld [vmem:[%s6745_s25 + $0x580] sm:$0xf] }
  0x85   : > { %400 = vst [vmem:[%s6749_s26 + $0x1c4] sm:$0xf] %v399_v49  ;;  %v527_v49 = vld [vmem:[%s6745_s25 + $0x588] sm:$0xf] }
  0x86   : > { %402 = vst [vmem:[%s6749_s26 + $0x1c8] sm:$0xf] %v401_v50  ;;  %v529_v50 = vld [vmem:[%s6745_s25 + $0x590] sm:$0xf] }
  0x87   : > { %404 = vst [vmem:[%s6749_s26 + $0x1cc] sm:$0xf] %v403_v51  ;;  %v531_v51 = vld [vmem:[%s6745_s25 + $0x598] sm:$0xf] }
  0x88   : > { %406 = vst [vmem:[%s6749_s26 + $0x1d0] sm:$0xf] %v405_v52  ;;  %v533_v52 = vld [vmem:[%s6745_s25 + $0x5a0] sm:$0xf] }
  0x89   : > { %408 = vst [vmem:[%s6749_s26 + $0x1d4] sm:$0xf] %v407_v53  ;;  %v535_v53 = vld [vmem:[%s6745_s25 + $0x5a8] sm:$0xf] }
  0x8a   : > { %410 = vst [vmem:[%s6749_s26 + $0x1d8] sm:$0xf] %v409_v54  ;;  %v537_v54 = vld [vmem:[%s6745_s25 + $0x5b0] sm:$0xf] }
  0x8b   : > { %412 = vst [vmem:[%s6749_s26 + $0x1dc] sm:$0xf] %v411_v55  ;;  %v539_v55 = vld [vmem:[%s6745_s25 + $0x5b8] sm:$0xf] }
  0x8c   : > { %414 = vst [vmem:[%s6749_s26 + $0x1e0] sm:$0xf] %v413_v56  ;;  %v541_v56 = vld [vmem:[%s6745_s25 + $0x5c0] sm:$0xf] }
  0x8d   : > { %416 = vst [vmem:[%s6749_s26 + $0x1e4] sm:$0xf] %v415_v57  ;;  %v543_v57 = vld [vmem:[%s6745_s25 + $0x5c8] sm:$0xf] }
  0x8e   : > { %418 = vst [vmem:[%s6749_s26 + $0x1e8] sm:$0xf] %v417_v58  ;;  %v545_v58 = vld [vmem:[%s6745_s25 + $0x5d0] sm:$0xf] }
  0x8f   : > { %420 = vst [vmem:[%s6749_s26 + $0x1ec] sm:$0xf] %v419_v59  ;;  %v547_v59 = vld [vmem:[%s6745_s25 + $0x5d8] sm:$0xf] }
  0x90   : > { %422 = vst [vmem:[%s6749_s26 + $0x1f0] sm:$0xf] %v421_v60  ;;  %v549_v60 = vld [vmem:[%s6745_s25 + $0x5e0] sm:$0xf] }
  0x91   : > { %424 = vst [vmem:[%s6749_s26 + $0x1f4] sm:$0xf] %v423_v61  ;;  %v551_v61 = vld [vmem:[%s6745_s25 + $0x5e8] sm:$0xf] }
  0x92   : > { %426 = vst [vmem:[%s6749_s26 + $0x1f8] sm:$0xf] %v425_v62  ;;  %v553_v62 = vld [vmem:[%s6745_s25 + $0x5f0] sm:$0xf] }
  0x93   : > { %428 = vst [vmem:[%s6749_s26 + $0x1fc] sm:$0xf] %v427_v63  ;;  %v555_v63 = vld [vmem:[%s6745_s25 + $0x5f8] sm:$0xf] }
  0x94   : > { %430 = vst [vmem:[%s6749_s26 + $0x200] sm:$0xf] %v429_v0  ;;  %v557_v0 = vld [vmem:[%s6745_s25 + $0x600] sm:$0xf] }
  0x95   : > { %432 = vst [vmem:[%s6749_s26 + $0x204] sm:$0xf] %v431_v1  ;;  %v559_v1 = vld [vmem:[%s6745_s25 + $0x608] sm:$0xf] }
  0x96   : > { %434 = vst [vmem:[%s6749_s26 + $0x208] sm:$0xf] %v433_v2  ;;  %v561_v2 = vld [vmem:[%s6745_s25 + $0x610] sm:$0xf] }
  0x97   : > { %436 = vst [vmem:[%s6749_s26 + $0x20c] sm:$0xf] %v435_v3  ;;  %v563_v3 = vld [vmem:[%s6745_s25 + $0x618] sm:$0xf] }
  0x98   : > { %438 = vst [vmem:[%s6749_s26 + $0x210] sm:$0xf] %v437_v4  ;;  %v565_v4 = vld [vmem:[%s6745_s25 + $0x620] sm:$0xf] }
  0x99   : > { %440 = vst [vmem:[%s6749_s26 + $0x214] sm:$0xf] %v439_v5  ;;  %v567_v5 = vld [vmem:[%s6745_s25 + $0x628] sm:$0xf] }
  0x9a   : > { %442 = vst [vmem:[%s6749_s26 + $0x218] sm:$0xf] %v441_v6  ;;  %v569_v6 = vld [vmem:[%s6745_s25 + $0x630] sm:$0xf] }
  0x9b   : > { %444 = vst [vmem:[%s6749_s26 + $0x21c] sm:$0xf] %v443_v7  ;;  %v571_v7 = vld [vmem:[%s6745_s25 + $0x638] sm:$0xf] }
  0x9c   : > { %446 = vst [vmem:[%s6749_s26 + $0x220] sm:$0xf] %v445_v8  ;;  %v573_v8 = vld [vmem:[%s6745_s25 + $0x640] sm:$0xf] }
  0x9d   : > { %448 = vst [vmem:[%s6749_s26 + $0x224] sm:$0xf] %v447_v9  ;;  %v575_v9 = vld [vmem:[%s6745_s25 + $0x648] sm:$0xf] }
  0x9e   : > { %450 = vst [vmem:[%s6749_s26 + $0x228] sm:$0xf] %v449_v10  ;;  %v577_v10 = vld [vmem:[%s6745_s25 + $0x650] sm:$0xf] }
  0x9f   : > { %452 = vst [vmem:[%s6749_s26 + $0x22c] sm:$0xf] %v451_v11  ;;  %v579_v11 = vld [vmem:[%s6745_s25 + $0x658] sm:$0xf] }
  0xa0   : > { %454 = vst [vmem:[%s6749_s26 + $0x230] sm:$0xf] %v453_v12  ;;  %v581_v12 = vld [vmem:[%s6745_s25 + $0x660] sm:$0xf] }
  0xa1   : > { %456 = vst [vmem:[%s6749_s26 + $0x234] sm:$0xf] %v455_v13  ;;  %v583_v13 = vld [vmem:[%s6745_s25 + $0x668] sm:$0xf] }
  0xa2   : > { %458 = vst [vmem:[%s6749_s26 + $0x238] sm:$0xf] %v457_v14  ;;  %v585_v14 = vld [vmem:[%s6745_s25 + $0x670] sm:$0xf] }
  0xa3   : > { %460 = vst [vmem:[%s6749_s26 + $0x23c] sm:$0xf] %v459_v15  ;;  %v587_v15 = vld [vmem:[%s6745_s25 + $0x678] sm:$0xf] }
  0xa4   : > { %462 = vst [vmem:[%s6749_s26 + $0x240] sm:$0xf] %v461_v16  ;;  %v589_v16 = vld [vmem:[%s6745_s25 + $0x680] sm:$0xf] }
  0xa5   : > { %464 = vst [vmem:[%s6749_s26 + $0x244] sm:$0xf] %v463_v17  ;;  %v591_v17 = vld [vmem:[%s6745_s25 + $0x688] sm:$0xf] }
  0xa6   : > { %466 = vst [vmem:[%s6749_s26 + $0x248] sm:$0xf] %v465_v18  ;;  %v593_v18 = vld [vmem:[%s6745_s25 + $0x690] sm:$0xf] }
  0xa7   : > { %468 = vst [vmem:[%s6749_s26 + $0x24c] sm:$0xf] %v467_v19  ;;  %v595_v19 = vld [vmem:[%s6745_s25 + $0x698] sm:$0xf] }
  0xa8   : > { %470 = vst [vmem:[%s6749_s26 + $0x250] sm:$0xf] %v469_v20  ;;  %v597_v20 = vld [vmem:[%s6745_s25 + $0x6a0] sm:$0xf] }
  0xa9   : > { %472 = vst [vmem:[%s6749_s26 + $0x254] sm:$0xf] %v471_v21  ;;  %v599_v21 = vld [vmem:[%s6745_s25 + $0x6a8] sm:$0xf] }
  0xaa   : > { %474 = vst [vmem:[%s6749_s26 + $0x258] sm:$0xf] %v473_v22  ;;  %v601_v22 = vld [vmem:[%s6745_s25 + $0x6b0] sm:$0xf] }
  0xab   : > { %476 = vst [vmem:[%s6749_s26 + $0x25c] sm:$0xf] %v475_v23  ;;  %v603_v23 = vld [vmem:[%s6745_s25 + $0x6b8] sm:$0xf] }
  0xac   : > { %478 = vst [vmem:[%s6749_s26 + $0x260] sm:$0xf] %v477_v24  ;;  %v605_v24 = vld [vmem:[%s6745_s25 + $0x6c0] sm:$0xf] }
  0xad   : > { %480 = vst [vmem:[%s6749_s26 + $0x264] sm:$0xf] %v479_v25  ;;  %v607_v25 = vld [vmem:[%s6745_s25 + $0x6c8] sm:$0xf] }
  0xae   : > { %482 = vst [vmem:[%s6749_s26 + $0x268] sm:$0xf] %v481_v26  ;;  %v609_v26 = vld [vmem:[%s6745_s25 + $0x6d0] sm:$0xf] }
  0xaf   : > { %484 = vst [vmem:[%s6749_s26 + $0x26c] sm:$0xf] %v483_v27  ;;  %v611_v27 = vld [vmem:[%s6745_s25 + $0x6d8] sm:$0xf] }
  0xb0   : > { %486 = vst [vmem:[%s6749_s26 + $0x270] sm:$0xf] %v485_v28  ;;  %v613_v28 = vld [vmem:[%s6745_s25 + $0x6e0] sm:$0xf] }
  0xb1   : > { %488 = vst [vmem:[%s6749_s26 + $0x274] sm:$0xf] %v487_v29  ;;  %v615_v29 = vld [vmem:[%s6745_s25 + $0x6e8] sm:$0xf] }
  0xb2   : > { %490 = vst [vmem:[%s6749_s26 + $0x278] sm:$0xf] %v489_v30  ;;  %v617_v30 = vld [vmem:[%s6745_s25 + $0x6f0] sm:$0xf] }
  0xb3   : > { %492 = vst [vmem:[%s6749_s26 + $0x27c] sm:$0xf] %v491_v31  ;;  %v619_v31 = vld [vmem:[%s6745_s25 + $0x6f8] sm:$0xf] }
  0xb4   : > { %494 = vst [vmem:[%s6749_s26 + $0x280] sm:$0xf] %v493_v32  ;;  %v621_v32 = vld [vmem:[%s6745_s25 + $0x700] sm:$0xf] }
  0xb5   : > { %496 = vst [vmem:[%s6749_s26 + $0x284] sm:$0xf] %v495_v33  ;;  %v623_v33 = vld [vmem:[%s6745_s25 + $0x708] sm:$0xf] }
  0xb6   : > { %498 = vst [vmem:[%s6749_s26 + $0x288] sm:$0xf] %v497_v34  ;;  %v625_v34 = vld [vmem:[%s6745_s25 + $0x710] sm:$0xf] }
  0xb7   : > { %500 = vst [vmem:[%s6749_s26 + $0x28c] sm:$0xf] %v499_v35  ;;  %v627_v35 = vld [vmem:[%s6745_s25 + $0x718] sm:$0xf] }
  0xb8   : > { %502 = vst [vmem:[%s6749_s26 + $0x290] sm:$0xf] %v501_v36  ;;  %v629_v36 = vld [vmem:[%s6745_s25 + $0x720] sm:$0xf] }
  0xb9   : > { %504 = vst [vmem:[%s6749_s26 + $0x294] sm:$0xf] %v503_v37  ;;  %v631_v37 = vld [vmem:[%s6745_s25 + $0x728] sm:$0xf] }
  0xba   : > { %506 = vst [vmem:[%s6749_s26 + $0x298] sm:$0xf] %v505_v38  ;;  %v633_v38 = vld [vmem:[%s6745_s25 + $0x730] sm:$0xf] }
  0xbb   : > { %508 = vst [vmem:[%s6749_s26 + $0x29c] sm:$0xf] %v507_v39  ;;  %v635_v39 = vld [vmem:[%s6745_s25 + $0x738] sm:$0xf] }
  0xbc   : > { %510 = vst [vmem:[%s6749_s26 + $0x2a0] sm:$0xf] %v509_v40  ;;  %v637_v40 = vld [vmem:[%s6745_s25 + $0x740] sm:$0xf] }
  0xbd   : > { %512 = vst [vmem:[%s6749_s26 + $0x2a4] sm:$0xf] %v511_v41  ;;  %v639_v41 = vld [vmem:[%s6745_s25 + $0x748] sm:$0xf] }
  0xbe   : > { %514 = vst [vmem:[%s6749_s26 + $0x2a8] sm:$0xf] %v513_v42  ;;  %v641_v42 = vld [vmem:[%s6745_s25 + $0x750] sm:$0xf] }
  0xbf   : > { %516 = vst [vmem:[%s6749_s26 + $0x2ac] sm:$0xf] %v515_v43  ;;  %v643_v43 = vld [vmem:[%s6745_s25 + $0x758] sm:$0xf] }
  0xc0   : > { %518 = vst [vmem:[%s6749_s26 + $0x2b0] sm:$0xf] %v517_v44  ;;  %v645_v44 = vld [vmem:[%s6745_s25 + $0x760] sm:$0xf] }
  0xc1   : > { %520 = vst [vmem:[%s6749_s26 + $0x2b4] sm:$0xf] %v519_v45  ;;  %v647_v45 = vld [vmem:[%s6745_s25 + $0x768] sm:$0xf] }
  0xc2   : > { %522 = vst [vmem:[%s6749_s26 + $0x2b8] sm:$0xf] %v521_v46  ;;  %v649_v46 = vld [vmem:[%s6745_s25 + $0x770] sm:$0xf] }
  0xc3   : > { %524 = vst [vmem:[%s6749_s26 + $0x2bc] sm:$0xf] %v523_v47  ;;  %v651_v47 = vld [vmem:[%s6745_s25 + $0x778] sm:$0xf] }
  0xc4   : > { %526 = vst [vmem:[%s6749_s26 + $0x2c0] sm:$0xf] %v525_v48  ;;  %v653_v48 = vld [vmem:[%s6745_s25 + $0x780] sm:$0xf] }
  0xc5   : > { %528 = vst [vmem:[%s6749_s26 + $0x2c4] sm:$0xf] %v527_v49  ;;  %v655_v49 = vld [vmem:[%s6745_s25 + $0x788] sm:$0xf] }
  0xc6   : > { %530 = vst [vmem:[%s6749_s26 + $0x2c8] sm:$0xf] %v529_v50  ;;  %v657_v50 = vld [vmem:[%s6745_s25 + $0x790] sm:$0xf] }
  0xc7   : > { %532 = vst [vmem:[%s6749_s26 + $0x2cc] sm:$0xf] %v531_v51  ;;  %v659_v51 = vld [vmem:[%s6745_s25 + $0x798] sm:$0xf] }
  0xc8   : > { %534 = vst [vmem:[%s6749_s26 + $0x2d0] sm:$0xf] %v533_v52  ;;  %v661_v52 = vld [vmem:[%s6745_s25 + $0x7a0] sm:$0xf] }
  0xc9   : > { %536 = vst [vmem:[%s6749_s26 + $0x2d4] sm:$0xf] %v535_v53  ;;  %v663_v53 = vld [vmem:[%s6745_s25 + $0x7a8] sm:$0xf] }
  0xca   : > { %538 = vst [vmem:[%s6749_s26 + $0x2d8] sm:$0xf] %v537_v54  ;;  %v665_v54 = vld [vmem:[%s6745_s25 + $0x7b0] sm:$0xf] }
  0xcb   : > { %540 = vst [vmem:[%s6749_s26 + $0x2dc] sm:$0xf] %v539_v55  ;;  %v667_v55 = vld [vmem:[%s6745_s25 + $0x7b8] sm:$0xf] }
  0xcc   : > { %542 = vst [vmem:[%s6749_s26 + $0x2e0] sm:$0xf] %v541_v56  ;;  %v669_v56 = vld [vmem:[%s6745_s25 + $0x7c0] sm:$0xf] }
  0xcd   : > { %544 = vst [vmem:[%s6749_s26 + $0x2e4] sm:$0xf] %v543_v57  ;;  %v671_v57 = vld [vmem:[%s6745_s25 + $0x7c8] sm:$0xf] }
  0xce   : > { %546 = vst [vmem:[%s6749_s26 + $0x2e8] sm:$0xf] %v545_v58  ;;  %v673_v58 = vld [vmem:[%s6745_s25 + $0x7d0] sm:$0xf] }
  0xcf   : > { %548 = vst [vmem:[%s6749_s26 + $0x2ec] sm:$0xf] %v547_v59  ;;  %v675_v59 = vld [vmem:[%s6745_s25 + $0x7d8] sm:$0xf] }
  0xd0   : > { %550 = vst [vmem:[%s6749_s26 + $0x2f0] sm:$0xf] %v549_v60  ;;  %v677_v60 = vld [vmem:[%s6745_s25 + $0x7e0] sm:$0xf] }
  0xd1   : > { %552 = vst [vmem:[%s6749_s26 + $0x2f4] sm:$0xf] %v551_v61  ;;  %v679_v61 = vld [vmem:[%s6745_s25 + $0x7e8] sm:$0xf] }
  0xd2   : > { %554 = vst [vmem:[%s6749_s26 + $0x2f8] sm:$0xf] %v553_v62  ;;  %v681_v62 = vld [vmem:[%s6745_s25 + $0x7f0] sm:$0xf] }
  0xd3   : > { %556 = vst [vmem:[%s6749_s26 + $0x2fc] sm:$0xf] %v555_v63  ;;  %v683_v63 = vld [vmem:[%s6745_s25 + $0x7f8] sm:$0xf] }
  0xd4   : > { %558 = vst [vmem:[%s6749_s26 + $0x300] sm:$0xf] %v557_v0 }
  0xd5   : > { %560 = vst [vmem:[%s6749_s26 + $0x304] sm:$0xf] %v559_v1 }
  0xd6   : > { %562 = vst [vmem:[%s6749_s26 + $0x308] sm:$0xf] %v561_v2 }
  0xd7   : > { %564 = vst [vmem:[%s6749_s26 + $0x30c] sm:$0xf] %v563_v3 }
  0xd8   : > { %566 = vst [vmem:[%s6749_s26 + $0x310] sm:$0xf] %v565_v4 }
  0xd9   : > { %568 = vst [vmem:[%s6749_s26 + $0x314] sm:$0xf] %v567_v5 }
  0xda   : > { %570 = vst [vmem:[%s6749_s26 + $0x318] sm:$0xf] %v569_v6 }
  0xdb   : > { %572 = vst [vmem:[%s6749_s26 + $0x31c] sm:$0xf] %v571_v7 }
  0xdc   : > { %574 = vst [vmem:[%s6749_s26 + $0x320] sm:$0xf] %v573_v8 }
  0xdd   : > { %576 = vst [vmem:[%s6749_s26 + $0x324] sm:$0xf] %v575_v9 }
  0xde   : > { %578 = vst [vmem:[%s6749_s26 + $0x328] sm:$0xf] %v577_v10 }
  0xdf   : > { %580 = vst [vmem:[%s6749_s26 + $0x32c] sm:$0xf] %v579_v11 }
  0xe0   : > { %582 = vst [vmem:[%s6749_s26 + $0x330] sm:$0xf] %v581_v12 }
  0xe1   : > { %584 = vst [vmem:[%s6749_s26 + $0x334] sm:$0xf] %v583_v13 }
  0xe2   : > { %586 = vst [vmem:[%s6749_s26 + $0x338] sm:$0xf] %v585_v14 }
  0xe3   : > { %588 = vst [vmem:[%s6749_s26 + $0x33c] sm:$0xf] %v587_v15 }
  0xe4   : > { %590 = vst [vmem:[%s6749_s26 + $0x340] sm:$0xf] %v589_v16 }
  0xe5   : > { %592 = vst [vmem:[%s6749_s26 + $0x344] sm:$0xf] %v591_v17 }
  0xe6   : > { %594 = vst [vmem:[%s6749_s26 + $0x348] sm:$0xf] %v593_v18 }
  0xe7   : > { %596 = vst [vmem:[%s6749_s26 + $0x34c] sm:$0xf] %v595_v19 }
  0xe8   : > { %598 = vst [vmem:[%s6749_s26 + $0x350] sm:$0xf] %v597_v20 }
  0xe9   : > { %600 = vst [vmem:[%s6749_s26 + $0x354] sm:$0xf] %v599_v21 }
  0xea   : > { %602 = vst [vmem:[%s6749_s26 + $0x358] sm:$0xf] %v601_v22 }
  0xeb   : > { %604 = vst [vmem:[%s6749_s26 + $0x35c] sm:$0xf] %v603_v23 }
  0xec   : > { %606 = vst [vmem:[%s6749_s26 + $0x360] sm:$0xf] %v605_v24 }
  0xed   : > { %608 = vst [vmem:[%s6749_s26 + $0x364] sm:$0xf] %v607_v25 }
  0xee   : > { %610 = vst [vmem:[%s6749_s26 + $0x368] sm:$0xf] %v609_v26 }
  0xef   : > { %612 = vst [vmem:[%s6749_s26 + $0x36c] sm:$0xf] %v611_v27 }
  0xf0   : > { %614 = vst [vmem:[%s6749_s26 + $0x370] sm:$0xf] %v613_v28 }
  0xf1   : > { %616 = vst [vmem:[%s6749_s26 + $0x374] sm:$0xf] %v615_v29 }
  0xf2   : > { %618 = vst [vmem:[%s6749_s26 + $0x378] sm:$0xf] %v617_v30 }
  0xf3   : > { %620 = vst [vmem:[%s6749_s26 + $0x37c] sm:$0xf] %v619_v31 }
  0xf4   : > { %622 = vst [vmem:[%s6749_s26 + $0x380] sm:$0xf] %v621_v32 }
  0xf5   : > { %624 = vst [vmem:[%s6749_s26 + $0x384] sm:$0xf] %v623_v33 }
  0xf6   : > { %626 = vst [vmem:[%s6749_s26 + $0x388] sm:$0xf] %v625_v34 }
  0xf7   : > { %628 = vst [vmem:[%s6749_s26 + $0x38c] sm:$0xf] %v627_v35 }
  0xf8   : > { %630 = vst [vmem:[%s6749_s26 + $0x390] sm:$0xf] %v629_v36 }
  0xf9   : > { %632 = vst [vmem:[%s6749_s26 + $0x394] sm:$0xf] %v631_v37 }
  0xfa   : > { %634 = vst [vmem:[%s6749_s26 + $0x398] sm:$0xf] %v633_v38 }
  0xfb   : > { %636 = vst [vmem:[%s6749_s26 + $0x39c] sm:$0xf] %v635_v39 }
  0xfc   : > { %638 = vst [vmem:[%s6749_s26 + $0x3a0] sm:$0xf] %v637_v40 }
  0xfd   : > { %640 = vst [vmem:[%s6749_s26 + $0x3a4] sm:$0xf] %v639_v41 }
  0xfe   : > { %642 = vst [vmem:[%s6749_s26 + $0x3a8] sm:$0xf] %v641_v42 }
  0xff   : > { %644 = vst [vmem:[%s6749_s26 + $0x3ac] sm:$0xf] %v643_v43 }
 0x100   : > { %646 = vst [vmem:[%s6749_s26 + $0x3b0] sm:$0xf] %v645_v44 }
 0x101   : > { %648 = vst [vmem:[%s6749_s26 + $0x3b4] sm:$0xf] %v647_v45 }
 0x102   : > { %650 = vst [vmem:[%s6749_s26 + $0x3b8] sm:$0xf] %v649_v46 }
 0x103   : > { %652 = vst [vmem:[%s6749_s26 + $0x3bc] sm:$0xf] %v651_v47 }
 0x104   : > { %654 = vst [vmem:[%s6749_s26 + $0x3c0] sm:$0xf] %v653_v48 }
 0x105   : > { %656 = vst [vmem:[%s6749_s26 + $0x3c4] sm:$0xf] %v655_v49 }
 0x106   : > { %658 = vst [vmem:[%s6749_s26 + $0x3c8] sm:$0xf] %v657_v50 }
 0x107   : > { %660 = vst [vmem:[%s6749_s26 + $0x3cc] sm:$0xf] %v659_v51 }
 0x108   : > { %662 = vst [vmem:[%s6749_s26 + $0x3d0] sm:$0xf] %v661_v52 }
 0x109   : > { %664 = vst [vmem:[%s6749_s26 + $0x3d4] sm:$0xf] %v663_v53 }
 0x10a   : > { %666 = vst [vmem:[%s6749_s26 + $0x3d8] sm:$0xf] %v665_v54 }
 0x10b   : > { %668 = vst [vmem:[%s6749_s26 + $0x3dc] sm:$0xf] %v667_v55 }
 0x10c   : > { %670 = vst [vmem:[%s6749_s26 + $0x3e0] sm:$0xf] %v669_v56 }
 0x10d   : > { %672 = vst [vmem:[%s6749_s26 + $0x3e4] sm:$0xf] %v671_v57 }
 0x10e   : > { %674 = vst [vmem:[%s6749_s26 + $0x3e8] sm:$0xf] %v673_v58 }
 0x10f   : > { %676 = vst [vmem:[%s6749_s26 + $0x3ec] sm:$0xf] %v675_v59 }
 0x110   : > { %678 = vst [vmem:[%s6749_s26 + $0x3f0] sm:$0xf] %v677_v60 }
 0x111   : > { %680 = vst [vmem:[%s6749_s26 + $0x3f4] sm:$0xf] %v679_v61 }
 0x112   : > { %682 = vst [vmem:[%s6749_s26 + $0x3f8] sm:$0xf] %v681_v62 }
 0x113   : > { %684 = vst [vmem:[%s6749_s26 + $0x3fc] sm:$0xf] %v683_v63 }
 0x114 PF: > { %p5268_p8 = scmp.ge.s32.totalorder %s6680_s13, 1  ;;  %p2269_p9 = scmp.lt.s32.totalorder %s6680_s13, 3 }
 0x116   : > { %p2270_p10 = pnand %p5268_p8, %p2269_p9 }
 0x117   : > { %s2276_s27 = sand.u32 (!%p2270_p10), 1, %s6664_s9  }
 0x118   : > { %2273 = sbr.rel (%p2270_p10) target bundleno = 975 (0x3cf), region = 76  ;;  %s5269_s28 = sshll.u32 (!%p2270_p10), %s2276_s27, 10 }
 0x119   : > { %s7266_s29 = scalar_lea.vmem (!%p2270_p10), [#allocation3], %s5269_s28  ;;  %s5270_s30 = sshll.u32 (!%p2270_p10), %s2276_s27, 6 }
 0x11a   : > { %s8297_s3 = scalar_lea.vmem (!%p2270_p10), [#allocation4], %s5270_s30 }
 0x11d   : > { %v6434_v0 = vld [vmem:[%s7266_s29 + $0x38] sm:$0xff]  ;;  %v6433_v4 = vld [vmem:[%s7266_s29 + $0x30] sm:$0xff]  ;;  %v6432_v8 = vld [vmem:[%s7266_s29 + $0x28] sm:$0xff]  ;;  %s6296_s9 = sshll.u32 (%p6732_p6), %s6672_s11, 2 }
 0x11e   : > { %v6442_v1 = vld [vmem:[%s7266_s29 + $0x78] sm:$0xff]  ;;  %4148 = vmatpush.bf16.msra.mxu0 %v6434_v0  ;;  %v6441_v5 = vld [vmem:[%s7266_s29 + $0x70] sm:$0xff]  ;;  %v6440_v9 = vld [vmem:[%s7266_s29 + $0x68] sm:$0xff]  ;;  %s5058_s4 = scalar_lea.vmem (%p6732_p6), %s8359_s2, %s6296_s9 }
 0x11f   : > { %v6450_v2 = vld [vmem:[%s7266_s29 + $0xb8] sm:$0xff]  ;;  %4197 = vmatpush.bf16.msra.mxu1 %v6442_v1  ;;  %v6449_v6 = vld [vmem:[%s7266_s29 + $0xb0] sm:$0xff]  ;;  %v6448_v10 = vld [vmem:[%s7266_s29 + $0xa8] sm:$0xff] }
 0x120   : > { %v6458_v3 = vld [vmem:[%s7266_s29 + $0xf8] sm:$0xff]  ;;  %4246 = vmatpush.bf16.msra.mxu2 %v6450_v2  ;;  %v6457_v7 = vld [vmem:[%s7266_s29 + $0xf0] sm:$0xff]  ;;  %v6456_v11 = vld [vmem:[%s7266_s29 + $0xe8] sm:$0xff] }
 0x121   : > { %4295 = vmatpush.bf16.msra.mxu3 %v6458_v3  ;;  %v6431_v12 = vld [vmem:[%s7266_s29 + $0x20] sm:$0xff]  ;;  %v6430_v16 = vld [vmem:[%s7266_s29 + $0x18] sm:$0xff]  ;;  %v6429_v20 = vld [vmem:[%s7266_s29 + $0x10] sm:$0xff] }
 0x122   : > { %4149 = vmatpush.bf16.msra.mxu0 %v6433_v4  ;;  %v6439_v13 = vld [vmem:[%s7266_s29 + $0x60] sm:$0xff]  ;;  %v6438_v17 = vld [vmem:[%s7266_s29 + $0x58] sm:$0xff]  ;;  %v6437_v21 = vld [vmem:[%s7266_s29 + $0x50] sm:$0xff] }
 0x123   : > { %4198 = vmatpush.bf16.msra.mxu1 %v6441_v5  ;;  %v6447_v14 = vld [vmem:[%s7266_s29 + $0xa0] sm:$0xff]  ;;  %v6446_v18 = vld [vmem:[%s7266_s29 + $0x98] sm:$0xff]  ;;  %v6445_v22 = vld [vmem:[%s7266_s29 + $0x90] sm:$0xff] }
 0x124   : > { %4247 = vmatpush.bf16.msra.mxu2 %v6449_v6  ;;  %v6455_v15 = vld [vmem:[%s7266_s29 + $0xe0] sm:$0xff]  ;;  %v6454_v19 = vld [vmem:[%s7266_s29 + $0xd8] sm:$0xff]  ;;  %v6453_v23 = vld [vmem:[%s7266_s29 + $0xd0] sm:$0xff] }
 0x125   : > { %4296 = vmatpush.bf16.msra.mxu3 %v6457_v7  ;;  %v6428_v24 = vld [vmem:[%s7266_s29 + $0x8] sm:$0xff]  ;;  %v6427_v28 = vld [vmem:[%s7266_s29] sm:$0xff]  ;;  %v6482_v40 = vld [vmem:[%s7266_s29 + $0x1b8] sm:$0xff] }
 0x126   : > { %4150 = vmatpush.bf16.msra.mxu0 %v6432_v8  ;;  %v6436_v25 = vld [vmem:[%s7266_s29 + $0x48] sm:$0xff]  ;;  %v5273_v29 = vld [vmem:[%s8357_s0] sm:$0xf]  ;;  %v6299_v34 = vld [vmem:[%s8357_s0 + $0x4] sm:$0xf] }
 0x127   : > { %4199 = vmatpush.bf16.msra.mxu1 %v6440_v9  ;;  %v6444_v26 = vld [vmem:[%s7266_s29 + $0x88] sm:$0xff]  ;;  %v6307_v30 = vld [vmem:[%s8357_s0 + $0x3c] sm:$0xf0]  ;;  %v5275_v35 = vld [vmem:[%s8357_s0 + $0x40] sm:$0xf0] }
 0x128   : > { %4248 = vmatpush.bf16.msra.mxu2 %v6448_v10  ;;  %v6452_v27 = vld [vmem:[%s7266_s29 + $0xc8] sm:$0xff]  ;;  %v6435_v31 = vld [vmem:[%s7266_s29 + $0x40] sm:$0xff]  ;;  %v6466_v41 = vld [vmem:[%s7266_s29 + $0x138] sm:$0xff]  ;;  %v5274_v42 = vor.u32 %v6307_v30, %v5273_v29  ;;  %v5278_v43 = vor.u32 %v6299_v34, %v5275_v35 }
 0x129   : > { %4297 = vmatpush.bf16.msra.mxu3 %v6456_v11  ;;  %v6443_v32 = vld [vmem:[%s7266_s29 + $0x80] sm:$0xff]  ;;  %v5281_v36 = vld [vmem:[%s8357_s0 + $0x8] sm:$0xf]  ;;  %v6300_v38 = vld [vmem:[%s8357_s0 + $0xc] sm:$0xf] }
 0x12a   : > { %4151 = vmatpush.bf16.msra.mxu0 %v6431_v12  ;;  %v6451_v33 = vld [vmem:[%s7266_s29 + $0xc0] sm:$0xff]  ;;  %v6308_v37 = vld [vmem:[%s8357_s0 + $0x44] sm:$0xf0]  ;;  %v5283_v39 = vld [vmem:[%s8357_s0 + $0x48] sm:$0xf0] }
 0x12b   : > { %4200 = vmatpush.bf16.msra.mxu1 %v6439_v13  ;;  %v5282_v44 = vor.u32 %v6308_v37, %v5281_v36  ;;  %v5286_v45 = vor.u32 %v6300_v38, %v5283_v39  ;;  %v6490_v46 = vld [vmem:[%s7266_s29 + $0x1f8] sm:$0xff]  ;;  %v6481_v48 = vld [vmem:[%s7266_s29 + $0x1b0] sm:$0xff]  ;;  %v6480_v52 = vld [vmem:[%s7266_s29 + $0x1a8] sm:$0xff] }
 0x12c   : > { %4249 = vmatpush.bf16.msra.mxu2 %v6447_v14  ;;  %v6474_v47 = vld [vmem:[%s7266_s29 + $0x178] sm:$0xff]  ;;  %v6465_v49 = vld [vmem:[%s7266_s29 + $0x130] sm:$0xff]  ;;  %v6464_v53 = vld [vmem:[%s7266_s29 + $0x128] sm:$0xff] }
 0x12d   : > { %4298 = vmatpush.bf16.msra.mxu3 %v6455_v15  ;;  %v6489_v50 = vld [vmem:[%s7266_s29 + $0x1f0] sm:$0xff]  ;;  %v6488_v54 = vld [vmem:[%s7266_s29 + $0x1e8] sm:$0xff]  ;;  %v5337_v56 = vld [vmem:[%s8357_s0 + $0x80] sm:$0xf] }
 0x12e   : > { %4152 = vmatpush.bf16.msra.mxu0 %v6430_v16  ;;  %v6473_v51 = vld [vmem:[%s7266_s29 + $0x170] sm:$0xff]  ;;  %v6472_v55 = vld [vmem:[%s7266_s29 + $0x168] sm:$0xff]  ;;  %v6323_v57 = vld [vmem:[%s8357_s0 + $0xbc] sm:$0xf0] }
 0x12f   : > { %4201 = vmatpush.bf16.msra.mxu1 %v6438_v17  ;;  %v6315_v58 = vld [vmem:[%s8357_s0 + $0x84] sm:$0xf]  ;;  %v5345_v60 = vld [vmem:[%s8357_s0 + $0x88] sm:$0xf]  ;;  %v6316_v62 = vld [vmem:[%s8357_s0 + $0x8c] sm:$0xf]  ;;  %v5338_v0 = vor.u32 %v6323_v57, %v5337_v56 }
 0x130   : > { %4250 = vmatpush.bf16.msra.mxu2 %v6446_v18  ;;  %v5339_v59 = vld [vmem:[%s8357_s0 + $0xc0] sm:$0xf0]  ;;  %v6324_v61 = vld [vmem:[%s8357_s0 + $0xc4] sm:$0xf0]  ;;  %v5347_v63 = vld [vmem:[%s8357_s0 + $0xc8] sm:$0xf0] }
 0x131   : > { %4299 = vmatpush.bf16.msra.mxu3 %v6454_v19  ;;  %v5342_v1 = vor.u32 %v6315_v58, %v5339_v59  ;;  %v5346_v2 = vor.u32 %v6324_v61, %v5345_v60  ;;  %v5350_v3 = vor.u32 %v6316_v62, %v5347_v63  ;;  %v6479_v4 = vld [vmem:[%s7266_s29 + $0x1a0] sm:$0xff]  ;;  %v5409_v12 = vld [vmem:[%s8357_s0 + $0x108] sm:$0xf]  ;;  %v6332_v14 = vld [vmem:[%s8357_s0 + $0x10c] sm:$0xf] }
 0x132   : > { %4153 = vmatpush.bf16.msra.mxu0 %v6429_v20  ;;  %v6463_v5 = vld [vmem:[%s7266_s29 + $0x120] sm:$0xff]  ;;  %v6340_v13 = vld [vmem:[%s8357_s0 + $0x144] sm:$0xf0]  ;;  %v5411_v15 = vld [vmem:[%s8357_s0 + $0x148] sm:$0xf0] }
 0x133   : > { %4202 = vmatpush.bf16.msra.mxu1 %v6437_v21  ;;  %v6487_v6 = vld [vmem:[%s7266_s29 + $0x1e0] sm:$0xff]  ;;  %v5410_v18 = vor.u32 %v6340_v13, %v5409_v12  ;;  %v5414_v19 = vor.u32 %v6332_v14, %v5411_v15  ;;  %v6478_v20 = vld [vmem:[%s7266_s29 + $0x198] sm:$0xff]  ;;  %v6356_v29 = vld [vmem:[%s8357_s0 + $0x1c4] sm:$0xf0] }
 0x134   : > { %4251 = vmatpush.bf16.msra.mxu2 %v6445_v22  ;;  %v6471_v7 = vld [vmem:[%s7266_s29 + $0x160] sm:$0xff]  ;;  %v6462_v21 = vld [vmem:[%s7266_s29 + $0x118] sm:$0xff]  ;;  %v6348_v30 = vld [vmem:[%s8357_s0 + $0x18c] sm:$0xf] }
 0x135   : > { %4300 = vmatpush.bf16.msra.mxu3 %v6453_v23  ;;  %v5401_v8 = vld [vmem:[%s8357_s0 + $0x100] sm:$0xf]  ;;  %v6331_v10 = vld [vmem:[%s8357_s0 + $0x104] sm:$0xf]  ;;  %v6486_v22 = vld [vmem:[%s7266_s29 + $0x1d8] sm:$0xff] }
 0x136   : > { %4154 = vmatpush.bf16.msra.mxu0 %v6428_v24  ;;  %v6339_v9 = vld [vmem:[%s8357_s0 + $0x13c] sm:$0xf0]  ;;  %v5403_v11 = vld [vmem:[%s8357_s0 + $0x140] sm:$0xf0]  ;;  %v6470_v23 = vld [vmem:[%s7266_s29 + $0x158] sm:$0xff] }
 0x137   : > { %4203 = vmatpush.bf16.msra.mxu1 %v6436_v25  ;;  %v5402_v16 = vor.u32 %v6339_v9, %v5401_v8  ;;  %v5406_v17 = vor.u32 %v6331_v10, %v5403_v11  ;;  %v5465_v24 = vld [vmem:[%s8357_s0 + $0x180] sm:$0xf]  ;;  %v6477_v36 = vld [vmem:[%s7266_s29 + $0x190] sm:$0xff]  ;;  %v6379_v58 = vld [vmem:[%s8357_s0 + $0x284] sm:$0xf] }
 0x138   : > { %4252 = vmatpush.bf16.msra.mxu2 %v6444_v26  ;;  %v6355_v25 = vld [vmem:[%s8357_s0 + $0x1bc] sm:$0xf0]  ;;  %v6347_v26 = vld [vmem:[%s8357_s0 + $0x184] sm:$0xf]  ;;  %v6461_v37 = vld [vmem:[%s7266_s29 + $0x110] sm:$0xff] }
 0x139   : > { %4301 = vmatpush.bf16.msra.mxu3 %v6452_v27  ;;  %v5467_v27 = vld [vmem:[%s8357_s0 + $0x1c0] sm:$0xf0]  ;;  %v6485_v38 = vld [vmem:[%s7266_s29 + $0x1d0] sm:$0xff]  ;;  %v5593_v56 = vld [vmem:[%s8357_s0 + $0x280] sm:$0xf] }
 0x13a   : > { %4155 = vmatpush.bf16.msra.mxu0 %v6427_v28  ;;  %v5473_v28 = vld [vmem:[%s8357_s0 + $0x188] sm:$0xf]  ;;  %v6469_v39 = vld [vmem:[%s7266_s29 + $0x150] sm:$0xff]  ;;  %v6387_v57 = vld [vmem:[%s8357_s0 + $0x2bc] sm:$0xf0] }
 0x13b   : > { %4204 = vmatpush.bf16.msra.mxu1 %v6435_v31  ;;  %v5475_v31 = vld [vmem:[%s8357_s0 + $0x1c8] sm:$0xf0]  ;;  %v5474_v34 = vor.u32 %v6356_v29, %v5473_v28  ;;  %v5595_v59 = vld [vmem:[%s8357_s0 + $0x2c0] sm:$0xf0]  ;;  %v5601_v60 = vld [vmem:[%s8357_s0 + $0x288] sm:$0xf] }
 0x13c   : > { %4253 = vmatpush.bf16.msra.mxu2 %v6443_v32  ;;  %v5466_v32 = vor.u32 %v6355_v25, %v5465_v24  ;;  %v5478_v35 = vor.u32 %v6348_v30, %v5475_v31  ;;  %v6388_v61 = vld [vmem:[%s8357_s0 + $0x2c4] sm:$0xf0]  ;;  %v6380_v62 = vld [vmem:[%s8357_s0 + $0x28c] sm:$0xf]  ;;  %v5657_v8 = vld [vmem:[%s8357_s0 + $0x300] sm:$0xf] }
 0x13d   : > { %4302 = vmatpush.bf16.msra.mxu3 %v6451_v33  ;;  %4156 = vmatmul.bf16.vlgmr.msra.gmra.mxu0 %v5274_v42  ;;  %v5470_v33 = vor.u32 %v6347_v26, %v5467_v27  ;;  %v6363_v42 = vld [vmem:[%s8357_s0 + $0x204] sm:$0xf]  ;;  %v5603_v63 = vld [vmem:[%s8357_s0 + $0x2c8] sm:$0xf0]  ;;  %v6403_v9 = vld [vmem:[%s8357_s0 + $0x33c] sm:$0xf0] }
 0x13e   : > { %4344 = vmatpush.bf16.msrb.mxu0 %v6466_v41  ;;  %4205 = vmatmul.bf16.vlgmr.msra.gmra.mxu1 %v5278_v43  ;;  %v6371_v41 = vld [vmem:[%s8357_s0 + $0x23c] sm:$0xf0]  ;;  %v5531_v43 = vld [vmem:[%s8357_s0 + $0x240] sm:$0xf0]  ;;  %v5665_v12 = vld [vmem:[%s8357_s0 + $0x308] sm:$0xf] }
 0x13f   : > { %4254 = vmatmul.bf16.vlgmr.msra.gmra.mxu2 %v5282_v44  ;;  %4393 = vmatpush.bf16.msrb.mxu1 %v6474_v47  ;;  %v5537_v44 = vld [vmem:[%s8357_s0 + $0x208] sm:$0xf]  ;;  %v5539_v47 = vld [vmem:[%s8357_s0 + $0x248] sm:$0xf0]  ;;  %v6395_v10 = vld [vmem:[%s8357_s0 + $0x304] sm:$0xf] }
 0x140   : > { %4442 = vmatpush.bf16.msrb.mxu2 %v6482_v40  ;;  %4303 = vmatmul.bf16.vlgmr.msra.gmra.mxu3 %v5286_v45  ;;  %v5529_v40 = vld [vmem:[%s8357_s0 + $0x200] sm:$0xf]  ;;  %v6372_v45 = vld [vmem:[%s8357_s0 + $0x244] sm:$0xf0]  ;;  %v5659_v11 = vld [vmem:[%s8357_s0 + $0x340] sm:$0xf0] }
 0x141   : > { %4491 = vmatpush.bf16.msrb.mxu3 %v6490_v46  ;;  %v6364_v46 = vld [vmem:[%s8357_s0 + $0x20c] sm:$0xf]  ;;  %v6404_v13 = vld [vmem:[%s8357_s0 + $0x344] sm:$0xf0]  ;;  %v5721_v24 = vld [vmem:[%s8357_s0 + $0x380] sm:$0xf] }
 0x142   : > { %4345 = vmatpush.bf16.msrb.mxu0 %v6465_v49  ;;  %v5534_v49 = vor.u32 %v6363_v42, %v5531_v43  ;;  %v6396_v14 = vld [vmem:[%s8357_s0 + $0x30c] sm:$0xf]  ;;  %v6419_v25 = vld [vmem:[%s8357_s0 + $0x3bc] sm:$0xf0]  ;;  %v6411_v26 = vld [vmem:[%s8357_s0 + $0x384] sm:$0xf] }
 0x143   : > { %4394 = vmatpush.bf16.msrb.mxu1 %v6473_v51  ;;  %v5542_v51 = vor.u32 %v6364_v46, %v5539_v47  ;;  %v5667_v15 = vld [vmem:[%s8357_s0 + $0x348] sm:$0xf0]  ;;  %v5723_v27 = vld [vmem:[%s8357_s0 + $0x3c0] sm:$0xf0]  ;;  %v5729_v28 = vld [vmem:[%s8357_s0 + $0x388] sm:$0xf] }
 0x144   : > { %4443 = vmatpush.bf16.msrb.mxu2 %v6481_v48  ;;  %v5530_v48 = vor.u32 %v6371_v41, %v5529_v40  ;;  %v6420_v29 = vld [vmem:[%s8357_s0 + $0x3c4] sm:$0xf0]  ;;  %v6412_v30 = vld [vmem:[%s8357_s0 + $0x38c] sm:$0xf]  ;;  %v5289_v40 = vld [vmem:[%s8357_s0 + $0x10] sm:$0xf] }
 0x145   : > { %4492 = vmatpush.bf16.msrb.mxu3 %v6489_v50  ;;  %v5538_v50 = vor.u32 %v6372_v45, %v5537_v44  ;;  %v5731_v31 = vld [vmem:[%s8357_s0 + $0x3c8] sm:$0xf0]  ;;  %v6309_v41 = vld [vmem:[%s8357_s0 + $0x4c] sm:$0xf0]  ;;  %v6301_v42 = vld [vmem:[%s8357_s0 + $0x14] sm:$0xf] }
 0x146   : > { %4346 = vmatpush.bf16.msrb.mxu0 %v6464_v53  ;;  %v6460_v53 = vld [vmem:[%s7266_s29 + $0x108] sm:$0xff]  ;;  %v5291_v43 = vld [vmem:[%s8357_s0 + $0x50] sm:$0xf0]  ;;  %v5297_v44 = vld [vmem:[%s8357_s0 + $0x18] sm:$0xf] }
 0x147   : > { %4395 = vmatpush.bf16.msrb.mxu1 %v6472_v55  ;;  %v6468_v55 = vld [vmem:[%s7266_s29 + $0x148] sm:$0xff]  ;;  %v6310_v45 = vld [vmem:[%s8357_s0 + $0x54] sm:$0xf0]  ;;  %v6302_v46 = vld [vmem:[%s8357_s0 + $0x1c] sm:$0xf] }
 0x148   : > { %4444 = vmatpush.bf16.msrb.mxu2 %v6480_v52  ;;  %v6476_v52 = vld [vmem:[%s7266_s29 + $0x188] sm:$0xff]  ;;  %v5299_v47 = vld [vmem:[%s8357_s0 + $0x58] sm:$0xf0] }
 0x149   : > { %4493 = vmatpush.bf16.msrb.mxu3 %v6488_v54  ;;  %v6484_v54 = vld [vmem:[%s7266_s29 + $0x1c8] sm:$0xff] }
 0x14a   : > { %4347 = vmatpush.bf16.msrb.mxu0 %v6463_v5  ;;  %v6459_v5 = vld [vmem:[%s7266_s29 + $0x100] sm:$0xff] }
 0x14b   : > { %4396 = vmatpush.bf16.msrb.mxu1 %v6471_v7  ;;  %v6467_v7 = vld [vmem:[%s7266_s29 + $0x140] sm:$0xff] }
 0x14c   : > { %4445 = vmatpush.bf16.msrb.mxu2 %v6479_v4  ;;  %v6475_v4 = vld [vmem:[%s7266_s29 + $0x180] sm:$0xff] }
 0x14d   : > { %4161 = vmatmul.bf16.gmra.mxu0 %v5338_v0  ;;  %4494 = vmatpush.bf16.msrb.mxu3 %v6487_v6  ;;  %v5594_v0 = vor.u32 %v6387_v57, %v5593_v56  ;;  %v6483_v6 = vld [vmem:[%s7266_s29 + $0x1c0] sm:$0xff]  ;;  %v6496_v56 = vld [vmem:[%s7266_s29 + $0x228] sm:$0xff] }
 0x14e   : > { %4210 = vmatmul.bf16.gmra.mxu1 %v5342_v1  ;;  %4348 = vmatpush.bf16.msrb.mxu0 %v6462_v21  ;;  %v5598_v1 = vor.u32 %v6379_v58, %v5595_v59  ;;  %v6498_v21 = vld [vmem:[%s7266_s29 + $0x238] sm:$0xff]  ;;  %v6520_v57 = vld [vmem:[%s7266_s29 + $0x2e8] sm:$0xff] }
 0x14f   : > { %4259 = vmatmul.bf16.gmra.mxu2 %v5346_v2  ;;  %4397 = vmatpush.bf16.msrb.mxu1 %v6470_v23  ;;  %v5602_v2 = vor.u32 %v6388_v61, %v5601_v60  ;;  %v6506_v23 = vld [vmem:[%s7266_s29 + $0x278] sm:$0xff] }
 0x150   : > { %4308 = vmatmul.bf16.gmra.mxu3 %v5350_v3  ;;  %4446 = vmatpush.bf16.msrb.mxu2 %v6478_v20  ;;  %v5606_v3 = vor.u32 %v6380_v62, %v5603_v63  ;;  %v6514_v20 = vld [vmem:[%s7266_s29 + $0x2b8] sm:$0xff] }
 0x151   : > { %4495 = vmatpush.bf16.msrb.mxu3 %v6486_v22  ;;  %v6522_v22 = vld [vmem:[%s7266_s29 + $0x2f8] sm:$0xff] }
 0x152   : > { %4349 = vmatpush.bf16.msrb.mxu0 %v6461_v37  ;;  %v6497_v37 = vld [vmem:[%s7266_s29 + $0x230] sm:$0xff] }
 0x153   : > { %4398 = vmatpush.bf16.msrb.mxu1 %v6469_v39  ;;  %v6505_v39 = vld [vmem:[%s7266_s29 + $0x270] sm:$0xff] }
 0x154   : > { %4447 = vmatpush.bf16.msrb.mxu2 %v6477_v36  ;;  %v6513_v36 = vld [vmem:[%s7266_s29 + $0x2b0] sm:$0xff] }
 0x155   : > { %4496 = vmatpush.bf16.msrb.mxu3 %v6485_v38  ;;  %v6521_v38 = vld [vmem:[%s7266_s29 + $0x2f0] sm:$0xff] }
 0x156   : > { %4350 = vmatpush.bf16.msrb.mxu0 %v6460_v53  ;;  %v5302_v53 = vor.u32 %v6302_v46, %v5299_v47 }
 0x157   : > { %4399 = vmatpush.bf16.msrb.mxu1 %v6468_v55  ;;  %v6512_v55 = vld [vmem:[%s7266_s29 + $0x2a8] sm:$0xff] }
 0x158   : > { %4448 = vmatpush.bf16.msrb.mxu2 %v6476_v52  ;;  %v5298_v52 = vor.u32 %v6310_v45, %v5297_v44 }
 0x159   : > { %4497 = vmatpush.bf16.msrb.mxu3 %v6484_v54 }
 0x15a   : > { %4351 = vmatpush.bf16.msrb.mxu0 %v6459_v5  ;;  %v5355_v5 = vld [vmem:[%s8357_s0 + $0xd0] sm:$0xf0] }
 0x15b   : > { %4400 = vmatpush.bf16.msrb.mxu1 %v6467_v7  ;;  %v6326_v7 = vld [vmem:[%s8357_s0 + $0xd4] sm:$0xf0] }
 0x15c   : > { %4449 = vmatpush.bf16.msrb.mxu2 %v6475_v4  ;;  %v6317_v4 = vld [vmem:[%s8357_s0 + $0x94] sm:$0xf] }
 0x15d   : > { %4166 = vmatmul.bf16.gmra.mxu0 %v5402_v16  ;;  %4498 = vmatpush.bf16.msrb.mxu3 %v6483_v6  ;;  %v5658_v16 = vor.u32 %v6403_v9, %v5657_v8  ;;  %v5361_v6 = vld [vmem:[%s8357_s0 + $0x98] sm:$0xf]  ;;  %v6318_v8 = vld [vmem:[%s8357_s0 + $0x9c] sm:$0xf] }
 0x15e   : > { %4215 = vmatmul.bf16.gmra.mxu1 %v5406_v17  ;;  %v5662_v17 = vor.u32 %v6395_v10, %v5659_v11  ;;  %4540 = vmatpush.bf16.msra.mxu0 %v6498_v21  ;;  %v5363_v9 = vld [vmem:[%s8357_s0 + $0xd8] sm:$0xf0]  ;;  %v6511_v21 = vld [vmem:[%s7266_s29 + $0x2a0] sm:$0xff] }
 0x15f   : > { %4264 = vmatmul.bf16.gmra.mxu2 %v5410_v18  ;;  %v5666_v18 = vor.u32 %v6404_v13, %v5665_v12  ;;  %4589 = vmatpush.bf16.msra.mxu1 %v6506_v23  ;;  %v5358_v13 = vor.u32 %v6317_v4, %v5355_v5  ;;  %v6519_v23 = vld [vmem:[%s7266_s29 + $0x2e0] sm:$0xff]  ;;  %v6358_v4 = vld [vmem:[%s8357_s0 + $0x1d4] sm:$0xf0]  ;;  %v6350_v5 = vld [vmem:[%s8357_s0 + $0x19c] sm:$0xf] }
 0x160   : > { %4313 = vmatmul.bf16.gmra.mxu3 %v5414_v19  ;;  %v5670_v19 = vor.u32 %v6396_v14, %v5667_v15  ;;  %4638 = vmatpush.bf16.msra.mxu2 %v6514_v20 }
 0x161   : > { %4687 = vmatpush.bf16.msra.mxu3 %v6522_v22  ;;  %v6495_v22 = vld [vmem:[%s7266_s29 + $0x220] sm:$0xff] }
 0x162   : > { %4541 = vmatpush.bf16.msra.mxu0 %v6497_v37  ;;  %v6342_v37 = vld [vmem:[%s8357_s0 + $0x154] sm:$0xf0] }
 0x163   : > { %4590 = vmatpush.bf16.msra.mxu1 %v6505_v39  ;;  %v5427_v39 = vld [vmem:[%s8357_s0 + $0x158] sm:$0xf0] }
 0x164   : > { %4639 = vmatpush.bf16.msra.mxu2 %v6513_v36  ;;  %v5425_v36 = vld [vmem:[%s8357_s0 + $0x118] sm:$0xf] }
 0x165   : > { %4688 = vmatpush.bf16.msra.mxu3 %v6521_v38  ;;  %v6334_v38 = vld [vmem:[%s8357_s0 + $0x11c] sm:$0xf]  ;;  %v5426_v47 = vor.u32 %v6342_v37, %v5425_v36  ;;  %v6374_v36 = vld [vmem:[%s8357_s0 + $0x254] sm:$0xf0] }
 0x166   : > { %4542 = vmatpush.bf16.msra.mxu0 %v6496_v56  ;;  %v6366_v37 = vld [vmem:[%s8357_s0 + $0x21c] sm:$0xf] }
 0x168   : > { %4640 = vmatpush.bf16.msra.mxu2 %v6512_v55 }
 0x169   : > { %4689 = vmatpush.bf16.msra.mxu3 %v6520_v57 }
 0x16a   : > { %4543 = vmatpush.bf16.msra.mxu0 %v6495_v22 }
 0x16c   : > { %4641 = vmatpush.bf16.msra.mxu2 %v6511_v21  ;;  %v6517_v21 = vld [vmem:[%s7266_s29 + $0x2d0] sm:$0xff] }
 0x16d   : > { %4171 = vmatmul.bf16.gmra.mxu0 %v5466_v32  ;;  %v5722_v32 = vor.u32 %v6419_v25, %v5721_v24  ;;  %4690 = vmatpush.bf16.msra.mxu3 %v6519_v23 }
 0x16e   : > { %4220 = vmatmul.bf16.gmra.mxu1 %v5470_v33  ;;  %v5726_v33 = vor.u32 %v6411_v26, %v5723_v27 }
 0x16f   : > { %4269 = vmatmul.bf16.gmra.mxu2 %v5474_v34  ;;  %v5730_v34 = vor.u32 %v6420_v29, %v5729_v28 }
 0x170   : > { %4318 = vmatmul.bf16.gmra.mxu3 %v5478_v35  ;;  %v5734_v35 = vor.u32 %v6412_v30, %v5731_v31  ;;  %v6503_v31 = vld [vmem:[%s7266_s29 + $0x260] sm:$0xff] }
 0x17d   : > { %4176 = vmatmul.bf16.gmra.mxu0 %v5530_v48  ;;  %v5290_v48 = vor.u32 %v6309_v41, %v5289_v40 }
 0x17e   : > { %4225 = vmatmul.bf16.gmra.mxu1 %v5534_v49  ;;  %v5294_v49 = vor.u32 %v6301_v42, %v5291_v43 }
 0x17f   : > { %4274 = vmatmul.bf16.gmra.mxu2 %v5538_v50 }
 0x180   : > { %4323 = vmatmul.bf16.gmra.mxu3 %v5542_v51 }
 0x18d   : > { %4181 = vmatmul.bf16.gmra.mxu0 %v5594_v0 }
 0x18e   : > { %4230 = vmatmul.bf16.gmra.mxu1 %v5598_v1  ;;  %v6504_v1 = vld [vmem:[%s7266_s29 + $0x268] sm:$0xff] }
 0x18f   : > { %4279 = vmatmul.bf16.gmra.mxu2 %v5602_v2  ;;  %v5353_v2 = vld [vmem:[%s8357_s0 + $0x90] sm:$0xf]  ;;  %4591 = vmatpush.bf16.msra.mxu1 %v6504_v1  ;;  %v6349_v1 = vld [vmem:[%s8357_s0 + $0x194] sm:$0xf] }
 0x190   : > { %4328 = vmatmul.bf16.gmra.mxu3 %v5606_v3  ;;  %v6325_v3 = vld [vmem:[%s8357_s0 + $0xcc] sm:$0xf0] }
 0x191   : > { %v5354_v12 = vor.u32 %v6325_v3, %v5353_v2  ;;  %v5483_v2 = vld [vmem:[%s8357_s0 + $0x1d0] sm:$0xf0]  ;;  %v5489_v3 = vld [vmem:[%s8357_s0 + $0x198] sm:$0xf] }
 0x193   : > { %4592 = vmatpush.bf16.msra.mxu1 %v6503_v31  ;;  %v5545_v31 = vld [vmem:[%s8357_s0 + $0x210] sm:$0xf] }
 0x19d   : > { %4186 = vmatmul.bf16.gmra.mxu0 %v5658_v16 }
 0x19e   : > { %4235 = vmatmul.bf16.gmra.mxu1 %v5662_v17  ;;  %v5362_v17 = vor.u32 %v6326_v7, %v5361_v6  ;;  %v5491_v6 = vld [vmem:[%s8357_s0 + $0x1d8] sm:$0xf0] }
 0x19f   : > { %4284 = vmatmul.bf16.gmra.mxu2 %v5666_v18  ;;  %v5366_v18 = vor.u32 %v6318_v8, %v5363_v9 }
 0x1a0   : > { %4333 = vmatmul.bf16.gmra.mxu3 %v5670_v19 }
 0x1ad   : > { %4191 = vmatmul.bf16.gmra.mxu0 %v5722_v32  ;;  %v5417_v32 = vld [vmem:[%s8357_s0 + $0x110] sm:$0xf] }
 0x1ae   : > { %4240 = vmatmul.bf16.gmra.mxu1 %v5726_v33  ;;  %v6341_v33 = vld [vmem:[%s8357_s0 + $0x14c] sm:$0xf0] }
 0x1af   : > { %4289 = vmatmul.bf16.gmra.mxu2 %v5730_v34  ;;  %v6333_v34 = vld [vmem:[%s8357_s0 + $0x114] sm:$0xf]  ;;  %v5418_v42 = vor.u32 %v6341_v33, %v5417_v32  ;;  %v6373_v32 = vld [vmem:[%s8357_s0 + $0x24c] sm:$0xf0] }
 0x1b0   : > { %4338 = vmatmul.bf16.gmra.mxu3 %v5734_v35  ;;  %v5419_v35 = vld [vmem:[%s8357_s0 + $0x150] sm:$0xf0] }
 0x1b1   : > { %v5422_v43 = vor.u32 %v6333_v34, %v5419_v35  ;;  %v6365_v33 = vld [vmem:[%s8357_s0 + $0x214] sm:$0xf]  ;;  %v5553_v35 = vld [vmem:[%s8357_s0 + $0x218] sm:$0xf] }
 0x1b2   : > { %v5547_v34 = vld [vmem:[%s8357_s0 + $0x250] sm:$0xf0] }
 0x1ba   : > { %v4157_v50 = vpop.f32.mrf.mxu0 }
 0x1bb   : > { %v4206_v51 = vpop.f32.mrf.mxu1 }
 0x1bc   : > { %v4207_v54 = vadd.f32 %v4206_v51, %v4157_v50  ;;  %v6510_v51 = vld [vmem:[%s7266_s29 + $0x298] sm:$0xff] }
 0x1bd   : > { %4352 = vmatmul.bf16.vlgmr.msrb.gmra.mxu0 %v5290_v48  ;;  %v5430_v48 = vor.u32 %v6334_v38, %v5427_v39  ;;  %4642 = vmatpush.bf16.msra.mxu2 %v6510_v51  ;;  %v5555_v38 = vld [vmem:[%s8357_s0 + $0x258] sm:$0xf0]  ;;  %v6508_v51 = vld [vmem:[%s7266_s29 + $0x288] sm:$0xff] }
 0x1be   : > { %4401 = vmatmul.bf16.vlgmr.msrb.gmra.mxu1 %v5294_v49 }
 0x1bf   : > { %4450 = vmatmul.bf16.vlgmr.msrb.gmra.mxu2 %v5298_v52  ;;  %v6494_v52 = vld [vmem:[%s7266_s29 + $0x218] sm:$0xff] }
 0x1c0   : > { %4499 = vmatmul.bf16.vlgmr.msrb.gmra.mxu3 %v5302_v53  ;;  %v6518_v53 = vld [vmem:[%s7266_s29 + $0x2d8] sm:$0xff]  ;;  %4544 = vmatpush.bf16.msra.mxu0 %v6494_v52  ;;  %v6492_v52 = vld [vmem:[%s7266_s29 + $0x208] sm:$0xff] }
 0x1c1   : > { %4691 = vmatpush.bf16.msra.mxu3 %v6518_v53  ;;  %v6516_v53 = vld [vmem:[%s7266_s29 + $0x2c8] sm:$0xff] }
 0x1c2   : > { %v4255_v58 = vpop.f32.mrf.mxu2  ;;  %v4159_v61 = vpop.f32.mrf.mxu0 }
 0x1c3   : > { %v4304_v59 = vpop.f32.mrf.mxu3  ;;  %v4256_v60 = vadd.f32 %v4255_v58, %v4207_v54  ;;  %v4208_v62 = vpop.f32.mrf.mxu1 }
 0x1c4   : > { %v4209_v63 = vadd.f32 %v4208_v62, %v4159_v61  ;;  %v6502_v61 = vld [vmem:[%s7266_s29 + $0x258] sm:$0xff]  ;;  %v5481_v62 = vld [vmem:[%s8357_s0 + $0x190] sm:$0xf] }
 0x1c5   : > { %v7559_v0 = vadd.f32 %v4304_v59, %v4256_v60  ;;  %4593 = vmatpush.bf16.msra.mxu1 %v6502_v61  ;;  %4692 = vmatpush.bf16.msra.mxu3 %v6517_v21  ;;  %v6507_v21 = vld [vmem:[%s7266_s29 + $0x280] sm:$0xff] }
 0x1c9   : > { %4693 = vmatpush.bf16.msra.mxu3 %v6516_v53 }
 0x1ca   : > { %v4257_v10 = vpop.f32.mrf.mxu2  ;;  %v4162_v15 = vpop.f32.mrf.mxu0 }
 0x1cb   : > { %v4306_v11 = vpop.f32.mrf.mxu3  ;;  %v4258_v14 = vadd.f32 %v4257_v10, %v4209_v63  ;;  %v4211_v16 = vpop.f32.mrf.mxu1  ;;  %v6357_v63 = vld [vmem:[%s8357_s0 + $0x1cc] sm:$0xf0]  ;;  %v5486_v10 = vor.u32 %v6349_v1, %v5483_v2  ;;  %v6381_v2 = vld [vmem:[%s8357_s0 + $0x294] sm:$0xf] }
 0x1cc   : > { %v4212_v19 = vadd.f32 %v4211_v16, %v4162_v15  ;;  %v5482_v9 = vor.u32 %v6357_v63, %v5481_v62  ;;  %v5494_v15 = vor.u32 %v6350_v5, %v5491_v6  ;;  %v6500_v62 = vld [vmem:[%s7266_s29 + $0x248] sm:$0xff]  ;;  %v5609_v63 = vld [vmem:[%s8357_s0 + $0x290] sm:$0xf]  ;;  %v6390_v5 = vld [vmem:[%s8357_s0 + $0x2d4] sm:$0xf0] }
 0x1cd   : > { %v7586_v20 = vadd.f32 %v4306_v11, %v4258_v14  ;;  %4357 = vmatmul.bf16.gmra.mxu0 %v5354_v12  ;;  %v5490_v14 = vor.u32 %v6358_v4, %v5489_v3  ;;  %v6389_v1 = vld [vmem:[%s8357_s0 + $0x2cc] sm:$0xf0]  ;;  %v5611_v3 = vld [vmem:[%s8357_s0 + $0x2d0] sm:$0xf0]  ;;  %v5617_v4 = vld [vmem:[%s8357_s0 + $0x298] sm:$0xf] }
 0x1ce   : > { %4406 = vmatmul.bf16.gmra.mxu1 %v5358_v13  ;;  %v6382_v6 = vld [vmem:[%s8357_s0 + $0x29c] sm:$0xf] }
 0x1cf   : > { %4455 = vmatmul.bf16.gmra.mxu2 %v5362_v17 }
 0x1d0   : > { %4504 = vmatmul.bf16.gmra.mxu3 %v5366_v18  ;;  %v6509_v18 = vld [vmem:[%s7266_s29 + $0x290] sm:$0xff] }
 0x1d1   : > { %4643 = vmatpush.bf16.msra.mxu2 %v6509_v18 }
 0x1d2   : > { %v4260_v24 = vpop.f32.mrf.mxu2  ;;  %v4164_v27 = vpop.f32.mrf.mxu0 }
 0x1d3   : > { %v4309_v25 = vpop.f32.mrf.mxu3  ;;  %v4261_v26 = vadd.f32 %v4260_v24, %v4212_v19  ;;  %v4213_v28 = vpop.f32.mrf.mxu1  ;;  %v6493_v19 = vld [vmem:[%s7266_s29 + $0x210] sm:$0xff] }
 0x1d4   : > { %v4214_v29 = vadd.f32 %v4213_v28, %v4164_v27  ;;  %4545 = vmatpush.bf16.msra.mxu0 %v6493_v19 }
 0x1d5   : > { %v7591_v30 = vadd.f32 %v4309_v25, %v4261_v26  ;;  %4644 = vmatpush.bf16.msra.mxu2 %v6508_v51 }
 0x1d8   : > { %4546 = vmatpush.bf16.msra.mxu0 %v6492_v52 }
 0x1d9   : > { %4645 = vmatpush.bf16.msra.mxu2 %v6507_v21 }
 0x1da   : > { %v4262_v40 = vpop.f32.mrf.mxu2  ;;  %v4167_v45 = vpop.f32.mrf.mxu0 }
 0x1db   : > { %v4311_v41 = vpop.f32.mrf.mxu3  ;;  %v4263_v44 = vadd.f32 %v4262_v40, %v4214_v29  ;;  %v4216_v46 = vpop.f32.mrf.mxu1  ;;  %v6501_v29 = vld [vmem:[%s7266_s29 + $0x250] sm:$0xff] }
 0x1dc   : > { %v4217_v49 = vadd.f32 %v4216_v46, %v4167_v45  ;;  %4594 = vmatpush.bf16.msra.mxu1 %v6501_v29  ;;  %v5554_v46 = vor.u32 %v6374_v36, %v5553_v35  ;;  %v6405_v35 = vld [vmem:[%s8357_s0 + $0x34c] sm:$0xf0]  ;;  %v6397_v36 = vld [vmem:[%s8357_s0 + $0x314] sm:$0xf] }
 0x1dd   : > { %v7618_v50 = vadd.f32 %v4311_v41, %v4263_v44  ;;  %4362 = vmatmul.bf16.gmra.mxu0 %v5418_v42  ;;  %v5546_v41 = vor.u32 %v6373_v32, %v5545_v31  ;;  %v5550_v42 = vor.u32 %v6365_v33, %v5547_v34  ;;  %v6499_v33 = vld [vmem:[%s7266_s29 + $0x240] sm:$0xff]  ;;  %v5673_v34 = vld [vmem:[%s8357_s0 + $0x310] sm:$0xf] }
 0x1de   : > { %4411 = vmatmul.bf16.gmra.mxu1 %v5422_v43 }
 0x1df   : > { %4460 = vmatmul.bf16.gmra.mxu2 %v5426_v47  ;;  %v5558_v47 = vor.u32 %v6366_v37, %v5555_v38  ;;  %v5675_v37 = vld [vmem:[%s8357_s0 + $0x350] sm:$0xf0]  ;;  %v5681_v38 = vld [vmem:[%s8357_s0 + $0x318] sm:$0xf] }
 0x1e0   : > { %4509 = vmatmul.bf16.gmra.mxu3 %v5430_v48  ;;  %4595 = vmatpush.bf16.msra.mxu1 %v6500_v62 }
 0x1e2   : > { %v4265_v54 = vpop.f32.mrf.mxu2  ;;  %v4169_v57 = vpop.f32.mrf.mxu0 }
 0x1e3   : > { %v4314_v55 = vpop.f32.mrf.mxu3  ;;  %v4266_v56 = vadd.f32 %v4265_v54, %v4217_v49  ;;  %v4218_v58 = vpop.f32.mrf.mxu1 }
 0x1e4   : > { %v4219_v59 = vadd.f32 %v4218_v58, %v4169_v57  ;;  %4596 = vmatpush.bf16.msra.mxu1 %v6499_v33 }
 0x1e5   : > { %v7623_v60 = vadd.f32 %v4314_v55, %v4266_v56 }
 0x1ea   : > { %v4267_v7 = vpop.f32.mrf.mxu2  ;;  %v4172_v12 = vpop.f32.mrf.mxu0 }
 0x1eb   : > { %v4316_v8 = vpop.f32.mrf.mxu3  ;;  %v4268_v11 = vadd.f32 %v4267_v7, %v4219_v59  ;;  %v4221_v13 = vpop.f32.mrf.mxu1  ;;  %v5619_v7 = vld [vmem:[%s8357_s0 + $0x2d8] sm:$0xf0] }
 0x1ec   : > { %v4222_v16 = vadd.f32 %v4221_v13, %v4172_v12 }
 0x1ed   : > { %v7650_v17 = vadd.f32 %v4316_v8, %v4268_v11  ;;  %4367 = vmatmul.bf16.gmra.mxu0 %v5482_v9  ;;  %v5614_v11 = vor.u32 %v6381_v2, %v5611_v3 }
 0x1ee   : > { %4416 = vmatmul.bf16.gmra.mxu1 %v5486_v10  ;;  %v5610_v10 = vor.u32 %v6389_v1, %v5609_v63 }
 0x1ef   : > { %4465 = vmatmul.bf16.gmra.mxu2 %v5490_v14 }
 0x1f0   : > { %4514 = vmatmul.bf16.gmra.mxu3 %v5494_v15  ;;  %v5618_v15 = vor.u32 %v6390_v5, %v5617_v4  ;;  %v6538_v4 = vld [vmem:[%s7266_s29 + $0x378] sm:$0xff]  ;;  %v5737_v5 = vld [vmem:[%s8357_s0 + $0x390] sm:$0xf] }
 0x1f1   : > { %4785 = vmatpush.bf16.msrb.mxu1 %v6538_v4  ;;  %v6544_v4 = vld [vmem:[%s7266_s29 + $0x3a8] sm:$0xff] }
 0x1f2   : > { %v4270_v22 = vpop.f32.mrf.mxu2  ;;  %v4174_v25 = vpop.f32.mrf.mxu0 }
 0x1f3   : > { %v4319_v23 = vpop.f32.mrf.mxu3  ;;  %v4271_v24 = vadd.f32 %v4270_v22, %v4222_v16  ;;  %v4223_v26 = vpop.f32.mrf.mxu1  ;;  %v5622_v16 = vor.u32 %v6382_v6, %v5619_v7  ;;  %v6491_v22 = vld [vmem:[%s7266_s29 + $0x200] sm:$0xff]  ;;  %v6421_v6 = vld [vmem:[%s8357_s0 + $0x3cc] sm:$0xf0]  ;;  %v6413_v7 = vld [vmem:[%s8357_s0 + $0x394] sm:$0xf] }
 0x1f4   : > { %v4224_v27 = vadd.f32 %v4223_v26, %v4174_v25  ;;  %4547 = vmatpush.bf16.msra.mxu0 %v6491_v22 }
 0x1f5   : > { %v7655_v28 = vadd.f32 %v4319_v23, %v4271_v24  ;;  %v6515_v23 = vld [vmem:[%s7266_s29 + $0x2c0] sm:$0xff] }
 0x1f6   : > { %4694 = vmatpush.bf16.msra.mxu3 %v6515_v23 }
 0x1fa   : > { %v4272_v39 = vpop.f32.mrf.mxu2  ;;  %v4177_v44 = vpop.f32.mrf.mxu0 }
 0x1fb   : > { %v4321_v40 = vpop.f32.mrf.mxu3  ;;  %v4273_v43 = vadd.f32 %v4272_v39, %v4224_v27  ;;  %v4226_v45 = vpop.f32.mrf.mxu1  ;;  %v6406_v39 = vld [vmem:[%s8357_s0 + $0x354] sm:$0xf0] }
 0x1fc   : > { %v4227_v48 = vadd.f32 %v4226_v45, %v4177_v44  ;;  %v5674_v44 = vor.u32 %v6405_v35, %v5673_v34  ;;  %v5678_v45 = vor.u32 %v6397_v36, %v5675_v37  ;;  %v5682_v51 = vor.u32 %v6406_v39, %v5681_v38 }
 0x1fd   : > { %v7682_v49 = vadd.f32 %v4321_v40, %v4273_v43  ;;  %4372 = vmatmul.bf16.gmra.mxu0 %v5546_v41  ;;  %v6398_v40 = vld [vmem:[%s8357_s0 + $0x31c] sm:$0xf] }
 0x1fe   : > { %4421 = vmatmul.bf16.gmra.mxu1 %v5550_v42  ;;  %v5683_v41 = vld [vmem:[%s8357_s0 + $0x358] sm:$0xf0] }
 0x1ff   : > { %4470 = vmatmul.bf16.gmra.mxu2 %v5554_v46  ;;  %v5686_v52 = vor.u32 %v6398_v40, %v5683_v41  ;;  %v6537_v40 = vld [vmem:[%s7266_s29 + $0x370] sm:$0xff]  ;;  %v5305_v41 = vld [vmem:[%s8357_s0 + $0x20] sm:$0xf] }
 0x200   : > { %4519 = vmatmul.bf16.gmra.mxu3 %v5558_v47  ;;  %4786 = vmatpush.bf16.msrb.mxu1 %v6537_v40 }
 0x202   : > { %v4275_v54 = vpop.f32.mrf.mxu2  ;;  %v4179_v57 = vpop.f32.mrf.mxu0 }
 0x203   : > { %v4324_v55 = vpop.f32.mrf.mxu3  ;;  %v4276_v56 = vadd.f32 %v4275_v54, %v4227_v48  ;;  %v4228_v58 = vpop.f32.mrf.mxu1 }
 0x204   : > { %v4229_v59 = vadd.f32 %v4228_v58, %v4179_v57  ;;  %v6554_v57 = vld [vmem:[%s7266_s29 + $0x3f8] sm:$0xff] }
 0x205   : > { %v7687_v61 = vadd.f32 %v4324_v55, %v4276_v56  ;;  %v6546_v55 = vld [vmem:[%s7266_s29 + $0x3b8] sm:$0xff]  ;;  %4883 = vmatpush.bf16.msrb.mxu3 %v6554_v57 }
 0x206   : > { %v6530_v56 = vld [vmem:[%s7266_s29 + $0x338] sm:$0xff]  ;;  %4834 = vmatpush.bf16.msrb.mxu2 %v6546_v55 }
 0x207   : > { %4736 = vmatpush.bf16.msrb.mxu0 %v6530_v56 }
 0x20a   : > { %v4277_v8 = vpop.f32.mrf.mxu2  ;;  %v4182_v13 = vpop.f32.mrf.mxu0 }
 0x20b   : > { %v4326_v9 = vpop.f32.mrf.mxu3  ;;  %v4278_v12 = vadd.f32 %v4277_v8, %v4229_v59  ;;  %v4231_v14 = vpop.f32.mrf.mxu1  ;;  %v5739_v8 = vld [vmem:[%s8357_s0 + $0x3d0] sm:$0xf0] }
 0x20c   : > { %v4232_v18 = vadd.f32 %v4231_v14, %v4182_v13 }
 0x20d   : > { %v7714_v19 = vadd.f32 %v4326_v9, %v4278_v12  ;;  %4377 = vmatmul.bf16.gmra.mxu0 %v5610_v10  ;;  %v5745_v9 = vld [vmem:[%s8357_s0 + $0x398] sm:$0xf]  ;;  %v5747_v12 = vld [vmem:[%s8357_s0 + $0x3d8] sm:$0xf0] }
 0x20e   : > { %4426 = vmatmul.bf16.gmra.mxu1 %v5614_v11  ;;  %v6422_v10 = vld [vmem:[%s8357_s0 + $0x3d4] sm:$0xf0]  ;;  %v6414_v11 = vld [vmem:[%s8357_s0 + $0x39c] sm:$0xf] }
 0x20f   : > { %4475 = vmatmul.bf16.gmra.mxu2 %v5618_v15  ;;  %v5738_v15 = vor.u32 %v6421_v6, %v5737_v5  ;;  %v5746_v23 = vor.u32 %v6422_v10, %v5745_v9  ;;  %v6528_v5 = vld [vmem:[%s7266_s29 + $0x328] sm:$0xff] }
 0x210   : > { %4524 = vmatmul.bf16.gmra.mxu3 %v5622_v16  ;;  %v5742_v16 = vor.u32 %v6413_v7, %v5739_v8  ;;  %v6552_v6 = vld [vmem:[%s7266_s29 + $0x3e8] sm:$0xff] }
 0x212   : > { %v4280_v24 = vpop.f32.mrf.mxu2  ;;  %v4184_v27 = vpop.f32.mrf.mxu0 }
 0x213   : > { %v4329_v25 = vpop.f32.mrf.mxu3  ;;  %v4281_v26 = vadd.f32 %v4280_v24, %v4232_v18  ;;  %v4233_v29 = vpop.f32.mrf.mxu1  ;;  %v5750_v24 = vor.u32 %v6414_v11, %v5747_v12 }
 0x214   : > { %v4234_v31 = vadd.f32 %v4233_v29, %v4184_v27  ;;  %v6545_v27 = vld [vmem:[%s7266_s29 + $0x3b0] sm:$0xff] }
 0x215   : > { %v7719_v32 = vadd.f32 %v4329_v25, %v4281_v26  ;;  %v6529_v29 = vld [vmem:[%s7266_s29 + $0x330] sm:$0xff]  ;;  %4835 = vmatpush.bf16.msrb.mxu2 %v6545_v27 }
 0x216   : > { %4737 = vmatpush.bf16.msrb.mxu0 %v6529_v29 }
 0x219   : > { %4836 = vmatpush.bf16.msrb.mxu2 %v6544_v4 }
 0x21a   : > { %v4282_v42 = vpop.f32.mrf.mxu2  ;;  %v4187_v47 = vpop.f32.mrf.mxu0  ;;  %4738 = vmatpush.bf16.msrb.mxu0 %v6528_v5 }
 0x21b   : > { %v4331_v43 = vpop.f32.mrf.mxu3  ;;  %v4283_v46 = vadd.f32 %v4282_v42, %v4234_v31  ;;  %v4236_v48 = vpop.f32.mrf.mxu1  ;;  %v6553_v31 = vld [vmem:[%s7266_s29 + $0x3f0] sm:$0xff]  ;;  %v6311_v42 = vld [vmem:[%s8357_s0 + $0x5c] sm:$0xf0] }
 0x21c   : > { %v4237_v53 = vadd.f32 %v4236_v48, %v4187_v47  ;;  %4884 = vmatpush.bf16.msrb.mxu3 %v6553_v31  ;;  %v6304_v47 = vld [vmem:[%s8357_s0 + $0x2c] sm:$0xf] }
 0x21d   : > { %v7746_v54 = vadd.f32 %v4331_v43, %v4283_v46  ;;  %4382 = vmatmul.bf16.gmra.mxu0 %v5674_v44  ;;  %v6303_v43 = vld [vmem:[%s8357_s0 + $0x24] sm:$0xf]  ;;  %v6312_v46 = vld [vmem:[%s8357_s0 + $0x64] sm:$0xf0]  ;;  %v5315_v48 = vld [vmem:[%s8357_s0 + $0x68] sm:$0xf0] }
 0x21e   : > { %4431 = vmatmul.bf16.gmra.mxu1 %v5678_v45  ;;  %v5307_v44 = vld [vmem:[%s8357_s0 + $0x60] sm:$0xf0]  ;;  %v5313_v45 = vld [vmem:[%s8357_s0 + $0x28] sm:$0xf] }
 0x21f   : > { %4480 = vmatmul.bf16.gmra.mxu2 %v5682_v51  ;;  %v5310_v55 = vor.u32 %v6303_v43, %v5307_v44  ;;  %v6527_v43 = vld [vmem:[%s7266_s29 + $0x320] sm:$0xff] }
 0x220   : > { %4529 = vmatmul.bf16.gmra.mxu3 %v5686_v52  ;;  %v6551_v44 = vld [vmem:[%s7266_s29 + $0x3e0] sm:$0xff]  ;;  %4739 = vmatpush.bf16.msrb.mxu0 %v6527_v43 }
 0x221   : > { %4885 = vmatpush.bf16.msrb.mxu3 %v6552_v6 }
 0x222   : > { %v4285_v58 = vpop.f32.mrf.mxu2  ;;  %v4189_v63 = vpop.f32.mrf.mxu0 }
 0x223   : > { %v4334_v59 = vpop.f32.mrf.mxu3  ;;  %v4286_v62 = vadd.f32 %v4285_v58, %v4237_v53  ;;  %v4238_v1 = vpop.f32.mrf.mxu1  ;;  %v5306_v53 = vor.u32 %v6311_v42, %v5305_v41  ;;  %v6543_v42 = vld [vmem:[%s7266_s29 + $0x3a0] sm:$0xff] }
 0x224   : > { %v4239_v2 = vadd.f32 %v4238_v1, %v4189_v63  ;;  %4837 = vmatpush.bf16.msrb.mxu2 %v6543_v42 }
 0x225   : > { %v7751_v3 = vadd.f32 %v4334_v59, %v4286_v62  ;;  %v5314_v59 = vor.u32 %v6312_v46, %v5313_v45  ;;  %v5318_v62 = vor.u32 %v6304_v47, %v5315_v48  ;;  %4886 = vmatpush.bf16.msrb.mxu3 %v6551_v44 }
 0x22a   : > { %v4287_v13 = vpop.f32.mrf.mxu2  ;;  %v4192_v21 = vpop.f32.mrf.mxu0 }
 0x22b   : > { %v4336_v14 = vpop.f32.mrf.mxu3  ;;  %v4288_v18 = vadd.f32 %v4287_v13, %v4239_v2  ;;  %v4241_v22 = vpop.f32.mrf.mxu1  ;;  %v6536_v13 = vld [vmem:[%s7266_s29 + $0x368] sm:$0xff] }
 0x22c   : > { %v4242_v25 = vadd.f32 %v4241_v22, %v4192_v21  ;;  %v5377_v21 = vld [vmem:[%s8357_s0 + $0xa8] sm:$0xf]  ;;  %4787 = vmatpush.bf16.msrb.mxu1 %v6536_v13 }
 0x22d   : > { %v7778_v26 = vadd.f32 %v4336_v14, %v4288_v18  ;;  %4387 = vmatmul.bf16.gmra.mxu0 %v5738_v15  ;;  %v5369_v15 = vld [vmem:[%s8357_s0 + $0xa0] sm:$0xf]  ;;  %v6319_v18 = vld [vmem:[%s8357_s0 + $0xa4] sm:$0xf]  ;;  %v6328_v22 = vld [vmem:[%s8357_s0 + $0xe4] sm:$0xf0] }
 0x22e   : > { %4436 = vmatmul.bf16.gmra.mxu1 %v5742_v16  ;;  %v6327_v16 = vld [vmem:[%s8357_s0 + $0xdc] sm:$0xf0] }
 0x22f   : > { %4485 = vmatmul.bf16.gmra.mxu2 %v5746_v23  ;;  %v6320_v23 = vld [vmem:[%s8357_s0 + $0xac] sm:$0xf]  ;;  %v5370_v29 = vor.u32 %v6327_v16, %v5369_v15  ;;  %v6542_v16 = vld [vmem:[%s7266_s29 + $0x398] sm:$0xff] }
 0x230   : > { %4534 = vmatmul.bf16.gmra.mxu3 %v5750_v24  ;;  %v5379_v24 = vld [vmem:[%s8357_s0 + $0xe8] sm:$0xf0]  ;;  %4838 = vmatpush.bf16.msrb.mxu2 %v6542_v16 }
 0x232   : > { %v4290_v33 = vpop.f32.mrf.mxu2  ;;  %v4194_v36 = vpop.f32.mrf.mxu0 }
 0x233   : > { %v4339_v34 = vpop.f32.mrf.mxu3  ;;  %v4291_v35 = vadd.f32 %v4290_v33, %v4242_v25  ;;  %v4243_v37 = vpop.f32.mrf.mxu1 }
 0x234   : > { %v4244_v38 = vadd.f32 %v4243_v37, %v4194_v36  ;;  %v5378_v36 = vor.u32 %v6328_v22, %v5377_v21  ;;  %v5382_v37 = vor.u32 %v6320_v23, %v5379_v24 }
 0x235   : > { %v7783_v39 = vadd.f32 %v4339_v34, %v4291_v35 }
 0x23a   : > { %v4292_v51 = vpop.f32.mrf.mxu2  ;;  %v4353_v57 = vpop.f32.mrf.mxu0 }
 0x23b   : > { %v4341_v52 = vpop.f32.mrf.mxu3  ;;  %v4293_v56 = vadd.f32 %v4292_v51, %v4244_v38  ;;  %v4402_v58 = vpop.f32.mrf.mxu1  ;;  %v4354_v63 = vadd.f32 %v4353_v57, %v7559_v0  ;;  %v6343_v57 = vld [vmem:[%s8357_s0 + $0x15c] sm:$0xf0] }
 0x23d   : > { %v7811_v1 = vadd.f32 %v4341_v52, %v4293_v56  ;;  %v4403_v2 = vadd.f32 %v4402_v58, %v4354_v63  ;;  %4548 = vmatmul.bf16.vlgmr.msra.gmra.mxu0 %v5306_v53  ;;  %v6535_v53 = vld [vmem:[%s7266_s29 + $0x360] sm:$0xff]  ;;  %v6336_v63 = vld [vmem:[%s8357_s0 + $0x12c] sm:$0xf] }
 0x23e   : > { %4597 = vmatmul.bf16.vlgmr.msra.gmra.mxu1 %v5310_v55  ;;  %v5433_v56 = vld [vmem:[%s8357_s0 + $0x120] sm:$0xf]  ;;  %v6335_v58 = vld [vmem:[%s8357_s0 + $0x124] sm:$0xf] }
 0x23f   : > { %4646 = vmatmul.bf16.vlgmr.msra.gmra.mxu2 %v5314_v59  ;;  %v5441_v59 = vld [vmem:[%s8357_s0 + $0x128] sm:$0xf]  ;;  %4788 = vmatpush.bf16.msrb.mxu1 %v6535_v53  ;;  %v5434_v6 = vor.u32 %v6343_v57, %v5433_v56  ;;  %v6541_v57 = vld [vmem:[%s7266_s29 + $0x390] sm:$0xff] }
 0x240   : > { %4695 = vmatmul.bf16.vlgmr.msra.gmra.mxu3 %v5318_v62  ;;  %v6344_v62 = vld [vmem:[%s8357_s0 + $0x164] sm:$0xf0]  ;;  %4839 = vmatpush.bf16.msrb.mxu2 %v6541_v57 }
 0x242   : > { %v4451_v7 = vpop.f32.mrf.mxu2  ;;  %v4355_v10 = vpop.f32.mrf.mxu0 }
 0x243   : > { %v4500_v8 = vpop.f32.mrf.mxu3  ;;  %v4452_v9 = vadd.f32 %v4451_v7, %v4403_v2  ;;  %v4404_v11 = vpop.f32.mrf.mxu1  ;;  %v4356_v0 = vadd.f32 %v4355_v10, %v7586_v20  ;;  %v5371_v20 = vld [vmem:[%s8357_s0 + $0xe0] sm:$0xf0]  ;;  %v5443_v2 = vld [vmem:[%s8357_s0 + $0x168] sm:$0xf0] }
 0x244   : > { %v5374_v31 = vor.u32 %v6319_v18, %v5371_v20  ;;  %v6526_v18 = vld [vmem:[%s7266_s29 + $0x318] sm:$0xff] }
 0x245   : > { %v7817_v12 = vadd.f32 %v4500_v8, %v4452_v9  ;;  %v4405_v14 = vadd.f32 %v4404_v11, %v4356_v0  ;;  %v5442_v11 = vor.u32 %v6344_v62, %v5441_v59  ;;  %v5446_v0 = vor.u32 %v6336_v63, %v5443_v2  ;;  %v6550_v20 = vld [vmem:[%s7266_s29 + $0x3d8] sm:$0xff]  ;;  %4740 = vmatpush.bf16.msrb.mxu0 %v6526_v18 }
 0x246   : > { %4887 = vmatpush.bf16.msrb.mxu3 %v6550_v20 }
 0x24a   : > { %v4453_v25 = vpop.f32.mrf.mxu2  ;;  %v4358_v34 = vpop.f32.mrf.mxu0 }
 0x24b   : > { %v4502_v27 = vpop.f32.mrf.mxu3  ;;  %v4454_v33 = vadd.f32 %v4453_v25, %v4405_v14  ;;  %v4407_v35 = vpop.f32.mrf.mxu1  ;;  %v4359_v38 = vadd.f32 %v4358_v34, %v7591_v30  ;;  %v6359_v34 = vld [vmem:[%s8357_s0 + $0x1dc] sm:$0xf0] }
 0x24d   : > { %v7845_v40 = vadd.f32 %v4502_v27, %v4454_v33  ;;  %v4408_v41 = vadd.f32 %v4407_v35, %v4359_v38  ;;  %4553 = vmatmul.bf16.gmra.mxu0 %v5370_v29  ;;  %v6534_v29 = vld [vmem:[%s7266_s29 + $0x358] sm:$0xff]  ;;  %v5497_v33 = vld [vmem:[%s8357_s0 + $0x1a0] sm:$0xf]  ;;  %v6351_v35 = vld [vmem:[%s8357_s0 + $0x1a4] sm:$0xf] }
 0x24e   : > { %4602 = vmatmul.bf16.gmra.mxu1 %v5374_v31  ;;  %v6352_v38 = vld [vmem:[%s8357_s0 + $0x1ac] sm:$0xf]  ;;  %v5498_v44 = vor.u32 %v6359_v34, %v5497_v33 }
 0x24f   : > { %4651 = vmatmul.bf16.gmra.mxu2 %v5378_v36  ;;  %v5505_v36 = vld [vmem:[%s8357_s0 + $0x1a8] sm:$0xf]  ;;  %4789 = vmatpush.bf16.msrb.mxu1 %v6534_v29 }
 0x250   : > { %4700 = vmatmul.bf16.gmra.mxu3 %v5382_v37  ;;  %v6360_v37 = vld [vmem:[%s8357_s0 + $0x1e4] sm:$0xf0] }
 0x251   : > { %v6540_v34 = vld [vmem:[%s7266_s29 + $0x388] sm:$0xff] }
 0x252   : > { %v4456_v45 = vpop.f32.mrf.mxu2  ;;  %v4360_v48 = vpop.f32.mrf.mxu0  ;;  %4840 = vmatpush.bf16.msrb.mxu2 %v6540_v34 }
 0x253   : > { %v4505_v46 = vpop.f32.mrf.mxu3  ;;  %v4457_v47 = vadd.f32 %v4456_v45, %v4408_v41  ;;  %v4409_v51 = vpop.f32.mrf.mxu1  ;;  %v4361_v30 = vadd.f32 %v4360_v48, %v7618_v50  ;;  %v5435_v50 = vld [vmem:[%s8357_s0 + $0x160] sm:$0xf0]  ;;  %v5507_v41 = vld [vmem:[%s8357_s0 + $0x1e8] sm:$0xf0] }
 0x254   : > { %v5438_v7 = vor.u32 %v6335_v58, %v5435_v50  ;;  %v6525_v58 = vld [vmem:[%s7266_s29 + $0x310] sm:$0xff] }
 0x255   : > { %v7851_v52 = vadd.f32 %v4505_v46, %v4457_v47  ;;  %v4410_v55 = vadd.f32 %v4409_v51, %v4361_v30  ;;  %v5506_v51 = vor.u32 %v6360_v37, %v5505_v36  ;;  %v5510_v30 = vor.u32 %v6352_v38, %v5507_v41  ;;  %v6549_v50 = vld [vmem:[%s7266_s29 + $0x3d0] sm:$0xff]  ;;  %4741 = vmatpush.bf16.msrb.mxu0 %v6525_v58 }
 0x256   : > { %4888 = vmatpush.bf16.msrb.mxu3 %v6549_v50 }
 0x25a   : > { %v4458_v4 = vpop.f32.mrf.mxu2  ;;  %v4363_v9 = vpop.f32.mrf.mxu0 }
 0x25b   : > { %v4507_v5 = vpop.f32.mrf.mxu3  ;;  %v4459_v8 = vadd.f32 %v4458_v4, %v4410_v55  ;;  %v4412_v10 = vpop.f32.mrf.mxu1  ;;  %v4364_v13 = vadd.f32 %v4363_v9, %v7623_v60  ;;  %v6375_v9 = vld [vmem:[%s8357_s0 + $0x25c] sm:$0xf0] }
 0x25d   : > { %v7879_v14 = vadd.f32 %v4507_v5, %v4459_v8  ;;  %v4413_v15 = vadd.f32 %v4412_v10, %v4364_v13  ;;  %4558 = vmatmul.bf16.gmra.mxu0 %v5434_v6  ;;  %v6533_v6 = vld [vmem:[%s7266_s29 + $0x350] sm:$0xff]  ;;  %v5561_v8 = vld [vmem:[%s8357_s0 + $0x220] sm:$0xf]  ;;  %v6367_v10 = vld [vmem:[%s8357_s0 + $0x224] sm:$0xf] }
 0x25e   : > { %4607 = vmatmul.bf16.gmra.mxu1 %v5438_v7  ;;  %v6368_v13 = vld [vmem:[%s8357_s0 + $0x22c] sm:$0xf]  ;;  %v5562_v20 = vor.u32 %v6375_v9, %v5561_v8  ;;  %v6539_v9 = vld [vmem:[%s7266_s29 + $0x380] sm:$0xff] }
 0x25f   : > { %4656 = vmatmul.bf16.gmra.mxu2 %v5442_v11  ;;  %v5569_v11 = vld [vmem:[%s8357_s0 + $0x228] sm:$0xf]  ;;  %4790 = vmatpush.bf16.msrb.mxu1 %v6533_v6 }
 0x260   : > { %4705 = vmatmul.bf16.gmra.mxu3 %v5446_v0  ;;  %v6376_v0 = vld [vmem:[%s8357_s0 + $0x264] sm:$0xf0]  ;;  %4841 = vmatpush.bf16.msrb.mxu2 %v6539_v9 }
 0x262   : > { %v4461_v21 = vpop.f32.mrf.mxu2  ;;  %v4365_v24 = vpop.f32.mrf.mxu0 }
 0x263   : > { %v4510_v22 = vpop.f32.mrf.mxu3  ;;  %v4462_v23 = vadd.f32 %v4461_v21, %v4413_v15  ;;  %v4414_v25 = vpop.f32.mrf.mxu1  ;;  %v4366_v60 = vadd.f32 %v4365_v24, %v7650_v17  ;;  %v5499_v17 = vld [vmem:[%s8357_s0 + $0x1e0] sm:$0xf0]  ;;  %v5571_v15 = vld [vmem:[%s8357_s0 + $0x268] sm:$0xf0] }
 0x264   : > { %v5502_v45 = vor.u32 %v6351_v35, %v5499_v17  ;;  %v6524_v35 = vld [vmem:[%s7266_s29 + $0x308] sm:$0xff] }
 0x265   : > { %v7885_v27 = vadd.f32 %v4510_v22, %v4462_v23  ;;  %v4415_v31 = vadd.f32 %v4414_v25, %v4366_v60  ;;  %v5570_v25 = vor.u32 %v6376_v0, %v5569_v11  ;;  %v5574_v60 = vor.u32 %v6368_v13, %v5571_v15  ;;  %v6548_v17 = vld [vmem:[%s7266_s29 + $0x3c8] sm:$0xff]  ;;  %4742 = vmatpush.bf16.msrb.mxu0 %v6524_v35 }
 0x266   : > { %4889 = vmatpush.bf16.msrb.mxu3 %v6548_v17 }
 0x26a   : > { %v4463_v42 = vpop.f32.mrf.mxu2  ;;  %v4368_v47 = vpop.f32.mrf.mxu0 }
 0x26b   : > { %v4512_v43 = vpop.f32.mrf.mxu3  ;;  %v4464_v46 = vadd.f32 %v4463_v42, %v4415_v31  ;;  %v4417_v48 = vpop.f32.mrf.mxu1  ;;  %v4369_v53 = vadd.f32 %v4368_v47, %v7655_v28  ;;  %v6391_v47 = vld [vmem:[%s8357_s0 + $0x2dc] sm:$0xf0] }
 0x26d   : > { %v7913_v55 = vadd.f32 %v4512_v43, %v4464_v46  ;;  %v4418_v56 = vadd.f32 %v4417_v48, %v4369_v53  ;;  %4563 = vmatmul.bf16.gmra.mxu0 %v5498_v44  ;;  %v6532_v44 = vld [vmem:[%s7266_s29 + $0x348] sm:$0xff]  ;;  %v5625_v46 = vld [vmem:[%s8357_s0 + $0x2a0] sm:$0xf]  ;;  %v6383_v48 = vld [vmem:[%s8357_s0 + $0x2a4] sm:$0xf] }
 0x26e   : > { %4612 = vmatmul.bf16.gmra.mxu1 %v5502_v45  ;;  %v6384_v53 = vld [vmem:[%s8357_s0 + $0x2ac] sm:$0xf]  ;;  %v5626_v50 = vor.u32 %v6391_v47, %v5625_v46 }
 0x26f   : > { %4661 = vmatmul.bf16.gmra.mxu2 %v5506_v51  ;;  %v5633_v51 = vld [vmem:[%s8357_s0 + $0x2a8] sm:$0xf]  ;;  %4791 = vmatpush.bf16.msrb.mxu1 %v6532_v44 }
 0x270   : > { %4710 = vmatmul.bf16.gmra.mxu3 %v5510_v30  ;;  %v6392_v30 = vld [vmem:[%s8357_s0 + $0x2e4] sm:$0xf0] }
 0x272   : > { %v4466_v59 = vpop.f32.mrf.mxu2  ;;  %v4370_v2 = vpop.f32.mrf.mxu0 }
 0x273   : > { %v4515_v62 = vpop.f32.mrf.mxu3  ;;  %v4467_v63 = vadd.f32 %v4466_v59, %v4418_v56  ;;  %v4419_v4 = vpop.f32.mrf.mxu1  ;;  %v4371_v28 = vadd.f32 %v4370_v2, %v7682_v49  ;;  %v5563_v49 = vld [vmem:[%s8357_s0 + $0x260] sm:$0xf0]  ;;  %v5635_v56 = vld [vmem:[%s8357_s0 + $0x2e8] sm:$0xf0] }
 0x274   : > { %v5566_v21 = vor.u32 %v6367_v10, %v5563_v49  ;;  %v6523_v10 = vld [vmem:[%s7266_s29 + $0x300] sm:$0xff] }
 0x275   : > { %v7919_v5 = vadd.f32 %v4515_v62, %v4467_v63  ;;  %v4420_v7 = vadd.f32 %v4419_v4, %v4371_v28  ;;  %v5634_v4 = vor.u32 %v6392_v30, %v5633_v51  ;;  %v5638_v28 = vor.u32 %v6384_v53, %v5635_v56  ;;  %v6547_v49 = vld [vmem:[%s7266_s29 + $0x3c0] sm:$0xff]  ;;  %4743 = vmatpush.bf16.msrb.mxu0 %v6523_v10 }
 0x276   : > { %4890 = vmatpush.bf16.msrb.mxu3 %v6547_v49 }
 0x27a   : > { %v4468_v16 = vpop.f32.mrf.mxu2  ;;  %v4373_v23 = vpop.f32.mrf.mxu0 }
 0x27b   : > { %v4517_v18 = vpop.f32.mrf.mxu3  ;;  %v4469_v22 = vadd.f32 %v4468_v16, %v4420_v7  ;;  %v4422_v24 = vpop.f32.mrf.mxu1  ;;  %v4374_v29 = vadd.f32 %v4373_v23, %v7687_v61  ;;  %v6407_v23 = vld [vmem:[%s8357_s0 + $0x35c] sm:$0xf0] }
 0x27d   : > { %v7947_v31 = vadd.f32 %v4517_v18, %v4469_v22  ;;  %v4423_v33 = vadd.f32 %v4422_v24, %v4374_v29  ;;  %4568 = vmatmul.bf16.gmra.mxu0 %v5562_v20  ;;  %v6531_v20 = vld [vmem:[%s7266_s29 + $0x340] sm:$0xff]  ;;  %v6400_v29 = vld [vmem:[%s8357_s0 + $0x32c] sm:$0xf] }
 0x27e   : > { %4617 = vmatmul.bf16.gmra.mxu1 %v5566_v21  ;;  %v5689_v22 = vld [vmem:[%s8357_s0 + $0x320] sm:$0xf]  ;;  %v6399_v24 = vld [vmem:[%s8357_s0 + $0x324] sm:$0xf] }
 0x27f   : > { %4666 = vmatmul.bf16.gmra.mxu2 %v5570_v25  ;;  %v5697_v25 = vld [vmem:[%s8357_s0 + $0x328] sm:$0xf]  ;;  %4792 = vmatpush.bf16.msrb.mxu1 %v6531_v20  ;;  %v5690_v17 = vor.u32 %v6407_v23, %v5689_v22 }
 0x280   : > { %4715 = vmatmul.bf16.gmra.mxu3 %v5574_v60  ;;  %v6408_v60 = vld [vmem:[%s8357_s0 + $0x364] sm:$0xf0] }
 0x282   : > { %v4471_v36 = vpop.f32.mrf.mxu2  ;;  %v4375_v41 = vpop.f32.mrf.mxu0 }
 0x283   : > { %v4520_v37 = vpop.f32.mrf.mxu3  ;;  %v4472_v38 = vadd.f32 %v4471_v36, %v4423_v33  ;;  %v4424_v42 = vpop.f32.mrf.mxu1  ;;  %v4376_v61 = vadd.f32 %v4375_v41, %v7714_v19  ;;  %v5627_v19 = vld [vmem:[%s8357_s0 + $0x2e0] sm:$0xf0]  ;;  %v5699_v33 = vld [vmem:[%s8357_s0 + $0x368] sm:$0xf0] }
 0x284   : > { %v5630_v59 = vor.u32 %v6383_v48, %v5627_v19 }
 0x285   : > { %v7953_v43 = vadd.f32 %v4520_v37, %v4472_v38  ;;  %v4425_v45 = vadd.f32 %v4424_v42, %v4376_v61  ;;  %v5698_v42 = vor.u32 %v6408_v60, %v5697_v25  ;;  %v5702_v61 = vor.u32 %v6400_v29, %v5699_v33  ;;  %v6313_v60 = vld [vmem:[%s8357_s0 + $0x6c] sm:$0xf0]  ;;  %v6305_v29 = vld [vmem:[%s8357_s0 + $0x34] sm:$0xf] }
 0x286   : > { %v5323_v33 = vld [vmem:[%s8357_s0 + $0x70] sm:$0xf0] }
 0x28a   : > { %v4473_v57 = vpop.f32.mrf.mxu2  ;;  %v4378_v63 = vpop.f32.mrf.mxu0 }
 0x28b   : > { %v4522_v58 = vpop.f32.mrf.mxu3  ;;  %v4474_v62 = vadd.f32 %v4473_v57, %v4425_v45  ;;  %v4427_v2 = vpop.f32.mrf.mxu1  ;;  %v4379_v6 = vadd.f32 %v4378_v63, %v7719_v32  ;;  %v6416_v63 = vld [vmem:[%s8357_s0 + $0x3ac] sm:$0xf] }
 0x28d   : > { %v7981_v7 = vadd.f32 %v4522_v58, %v4474_v62  ;;  %v4428_v8 = vadd.f32 %v4427_v2, %v4379_v6  ;;  %4573 = vmatmul.bf16.gmra.mxu0 %v5626_v50  ;;  %v6423_v58 = vld [vmem:[%s8357_s0 + $0x3dc] sm:$0xf0]  ;;  %v6415_v50 = vld [vmem:[%s8357_s0 + $0x3a4] sm:$0xf]  ;;  %v6424_v62 = vld [vmem:[%s8357_s0 + $0x3e4] sm:$0xf0] }
 0x28e   : > { %4622 = vmatmul.bf16.gmra.mxu1 %v5630_v59  ;;  %v5755_v59 = vld [vmem:[%s8357_s0 + $0x3e0] sm:$0xf0]  ;;  %v5763_v2 = vld [vmem:[%s8357_s0 + $0x3e8] sm:$0xf0] }
 0x28f   : > { %4671 = vmatmul.bf16.gmra.mxu2 %v5634_v4 }
 0x290   : > { %4720 = vmatmul.bf16.gmra.mxu3 %v5638_v28 }
 0x292   : > { %v4476_v11 = vpop.f32.mrf.mxu2  ;;  %v4380_v15 = vpop.f32.mrf.mxu0 }
 0x293   : > { %v4525_v0 = vpop.f32.mrf.mxu3  ;;  %v4477_v13 = vadd.f32 %v4476_v11, %v4428_v8  ;;  %v4429_v16 = vpop.f32.mrf.mxu1  ;;  %v4381_v32 = vadd.f32 %v4380_v15, %v7746_v54  ;;  %v5691_v54 = vld [vmem:[%s8357_s0 + $0x360] sm:$0xf0]  ;;  %v5758_v8 = vor.u32 %v6415_v50, %v5755_v59 }
 0x294   : > { %v5694_v36 = vor.u32 %v6399_v24, %v5691_v54 }
 0x295   : > { %v7987_v18 = vadd.f32 %v4525_v0, %v4477_v13  ;;  %v4430_v21 = vadd.f32 %v4429_v16, %v4381_v32  ;;  %v5766_v0 = vor.u32 %v6416_v63, %v5763_v2  ;;  %v6321_v63 = vld [vmem:[%s8357_s0 + $0xb4] sm:$0xf] }
 0x296   : > { %v5387_v2 = vld [vmem:[%s8357_s0 + $0xf0] sm:$0xf0] }
 0x29a   : > { %v4478_v34 = vpop.f32.mrf.mxu2  ;;  %v4383_v38 = vpop.f32.mrf.mxu0 }
 0x29b   : > { %v4527_v35 = vpop.f32.mrf.mxu3  ;;  %v4479_v37 = vadd.f32 %v4478_v34, %v4430_v21  ;;  %v4432_v41 = vpop.f32.mrf.mxu1  ;;  %v4384_v44 = vadd.f32 %v4383_v38, %v7751_v3  ;;  %v5753_v3 = vld [vmem:[%s8357_s0 + $0x3a0] sm:$0xf]  ;;  %v6314_v34 = vld [vmem:[%s8357_s0 + $0x74] sm:$0xf0] }
 0x29c   : > { %v5754_v6 = vor.u32 %v6423_v58, %v5753_v3 }
 0x29d   : > { %v8015_v45 = vadd.f32 %v4527_v35, %v4479_v37  ;;  %v4433_v46 = vadd.f32 %v4432_v41, %v4384_v44  ;;  %4578 = vmatmul.bf16.gmra.mxu0 %v5690_v17  ;;  %v6306_v35 = vld [vmem:[%s8357_s0 + $0x3c] sm:$0xf]  ;;  %v5326_v41 = vor.u32 %v6305_v29, %v5323_v33 }
 0x29e   : > { %4627 = vmatmul.bf16.gmra.mxu1 %v5694_v36  ;;  %v5331_v17 = vld [vmem:[%s8357_s0 + $0x78] sm:$0xf0] }
 0x29f   : > { %4676 = vmatmul.bf16.gmra.mxu2 %v5698_v42 }
 0x2a0   : > { %4725 = vmatmul.bf16.gmra.mxu3 %v5702_v61 }
 0x2a2   : > { %v4481_v47 = vpop.f32.mrf.mxu2  ;;  %v4385_v51 = vpop.f32.mrf.mxu0 }
 0x2a3   : > { %v4530_v48 = vpop.f32.mrf.mxu3  ;;  %v4482_v19 = vadd.f32 %v4481_v47, %v4433_v46  ;;  %v4434_v30 = vpop.f32.mrf.mxu1  ;;  %v4386_v53 = vadd.f32 %v4385_v51, %v7778_v26  ;;  %v5761_v26 = vld [vmem:[%s8357_s0 + $0x3a8] sm:$0xf]  ;;  %v5334_v47 = vor.u32 %v6306_v35, %v5331_v17  ;;  %v6337_v35 = vld [vmem:[%s8357_s0 + $0x134] sm:$0xf] }
 0x2a4   : > { %v5762_v11 = vor.u32 %v6424_v62, %v5761_v26  ;;  %v6329_v62 = vld [vmem:[%s8357_s0 + $0xec] sm:$0xf0]  ;;  %v5451_v17 = vld [vmem:[%s8357_s0 + $0x170] sm:$0xf0] }
 0x2a5   : > { %v8018_v56 = vadd.f32 %v4530_v48, %v4482_v19  ;;  %v4435_v57 = vadd.f32 %v4434_v30, %v4386_v53 }
 0x2aa   : > { %v4483_v4 = vpop.f32.mrf.mxu2  ;;  %v4388_v10 = vpop.f32.mrf.mxu0 }
 0x2ab   : > { %v4532_v28 = vpop.f32.mrf.mxu3  ;;  %v4484_v9 = vadd.f32 %v4483_v4, %v4435_v57  ;;  %v4437_v49 = vpop.f32.mrf.mxu1  ;;  %v4389_v13 = vadd.f32 %v4388_v10, %v7783_v39  ;;  %v5321_v39 = vld [vmem:[%s8357_s0 + $0x30] sm:$0xf]  ;;  %v6330_v4 = vld [vmem:[%s8357_s0 + $0xf4] sm:$0xf0] }
 0x2ac   : > { %v5322_v38 = vor.u32 %v6313_v60, %v5321_v39 }
 0x2ad   : > { %v8045_v15 = vadd.f32 %v4532_v28, %v4484_v9  ;;  %v4438_v16 = vadd.f32 %v4437_v49, %v4389_v13  ;;  %4583 = vmatmul.bf16.gmra.mxu0 %v5754_v6  ;;  %v6322_v28 = vld [vmem:[%s8357_s0 + $0xbc] sm:$0xf]  ;;  %v5390_v49 = vor.u32 %v6321_v63, %v5387_v2 }
 0x2ae   : > { %4632 = vmatmul.bf16.gmra.mxu1 %v5758_v8  ;;  %v5395_v6 = vld [vmem:[%s8357_s0 + $0xf8] sm:$0xf0] }
 0x2af   : > { %4681 = vmatmul.bf16.gmra.mxu2 %v5762_v11 }
 0x2b0   : > { %4730 = vmatmul.bf16.gmra.mxu3 %v5766_v0 }
 0x2b2   : > { %v4486_v32 = vpop.f32.mrf.mxu2  ;;  %v4390_v22 = vpop.f32.mrf.mxu0 }
 0x2b3   : > { %v4535_v20 = vpop.f32.mrf.mxu3  ;;  %v4487_v21 = vadd.f32 %v4486_v32, %v4438_v16  ;;  %v4439_v23 = vpop.f32.mrf.mxu1  ;;  %v4391_v24 = vadd.f32 %v4390_v22, %v7811_v1  ;;  %v5329_v1 = vld [vmem:[%s8357_s0 + $0x38] sm:$0xf]  ;;  %v5398_v32 = vor.u32 %v6322_v28, %v5395_v6  ;;  %v6353_v28 = vld [vmem:[%s8357_s0 + $0x1b4] sm:$0xf] }
 0x2b4   : > { %v5330_v46 = vor.u32 %v6314_v34, %v5329_v1  ;;  %v6345_v34 = vld [vmem:[%s8357_s0 + $0x16c] sm:$0xf0]  ;;  %v5515_v6 = vld [vmem:[%s8357_s0 + $0x1f0] sm:$0xf0] }
 0x2b5   : > { %v8048_v54 = vadd.f32 %v4535_v20, %v4487_v21  ;;  %v4440_v25 = vadd.f32 %v4439_v23, %v4391_v24 }
 0x2ba   : > { %v4488_v36 = vpop.f32.mrf.mxu2  ;;  %v4549_v61 = vpop.f32.mrf.mxu0 }
 0x2bb   : > { %v4537_v37 = vpop.f32.mrf.mxu3  ;;  %v4489_v42 = vadd.f32 %v4488_v36, %v4440_v25  ;;  %v4598_v44 = vpop.f32.mrf.mxu1  ;;  %v4550_v48 = vadd.f32 %v4549_v61, %v7817_v12  ;;  %v5385_v12 = vld [vmem:[%s8357_s0 + $0xb0] sm:$0xf]  ;;  %v6346_v36 = vld [vmem:[%s8357_s0 + $0x174] sm:$0xf0] }
 0x2bc   : > { %v5386_v10 = vor.u32 %v6329_v62, %v5385_v12 }
 0x2bd   : > { %v8075_v19 = vadd.f32 %v4537_v37, %v4489_v42  ;;  %v4599_v51 = vadd.f32 %v4598_v44, %v4550_v48  ;;  %4744 = vmatmul.bf16.vlgmr.msrb.gmra.mxu0 %v5322_v38  ;;  %v6338_v37 = vld [vmem:[%s8357_s0 + $0x13c] sm:$0xf]  ;;  %v5454_v44 = vor.u32 %v6337_v35, %v5451_v17 }
 0x2be   : > { %4793 = vmatmul.bf16.vlgmr.msrb.gmra.mxu1 %v5326_v41  ;;  %v5459_v38 = vld [vmem:[%s8357_s0 + $0x178] sm:$0xf0] }
 0x2bf   : > { %4842 = vmatmul.bf16.vlgmr.msrb.gmra.mxu2 %v5330_v46 }
 0x2c0   : > { %4891 = vmatmul.bf16.vlgmr.msrb.gmra.mxu3 %v5334_v47 }
 0x2c2   : > { %v4647_v30 = vpop.f32.mrf.mxu2  ;;  %v4551_v3 = vpop.f32.mrf.mxu0 }
 0x2c3   : > { %v4696_v53 = vpop.f32.mrf.mxu3  ;;  %v4648_v57 = vadd.f32 %v4647_v30, %v4599_v51  ;;  %v4600_v58 = vpop.f32.mrf.mxu1  ;;  %v4552_v50 = vadd.f32 %v4551_v3, %v7845_v40  ;;  %v5393_v40 = vld [vmem:[%s8357_s0 + $0xb8] sm:$0xf]  ;;  %v5462_v30 = vor.u32 %v6338_v37, %v5459_v38  ;;  %v6369_v37 = vld [vmem:[%s8357_s0 + $0x234] sm:$0xf] }
 0x2c4   : > { %v5394_v16 = vor.u32 %v6330_v4, %v5393_v40  ;;  %v6361_v4 = vld [vmem:[%s8357_s0 + $0x1ec] sm:$0xf0]  ;;  %v5579_v38 = vld [vmem:[%s8357_s0 + $0x270] sm:$0xf0] }
 0x2c5   : > { %v8078_v59 = vadd.f32 %v4696_v53, %v4648_v57  ;;  %v4601_v26 = vadd.f32 %v4600_v58, %v4552_v50 }
 0x2ca   : > { %v4649_v8 = vpop.f32.mrf.mxu2  ;;  %v4554_v0 = vpop.f32.mrf.mxu0 }
 0x2cb   : > { %v4698_v9 = vpop.f32.mrf.mxu3  ;;  %v4650_v11 = vadd.f32 %v4649_v8, %v4601_v26  ;;  %v4603_v13 = vpop.f32.mrf.mxu1  ;;  %v4555_v20 = vadd.f32 %v4554_v0, %v7851_v52  ;;  %v5449_v52 = vld [vmem:[%s8357_s0 + $0x130] sm:$0xf]  ;;  %v6362_v8 = vld [vmem:[%s8357_s0 + $0x1f4] sm:$0xf0] }
 0x2cc   : > { %v5450_v61 = vor.u32 %v6345_v34, %v5449_v52 }
 0x2cd   : > { %v8105_v21 = vadd.f32 %v4698_v9, %v4650_v11  ;;  %v4604_v22 = vadd.f32 %v4603_v13, %v4555_v20  ;;  %4749 = vmatmul.bf16.gmra.mxu0 %v5386_v10  ;;  %v6354_v9 = vld [vmem:[%s8357_s0 + $0x1bc] sm:$0xf]  ;;  %v5518_v13 = vor.u32 %v6353_v28, %v5515_v6 }
 0x2ce   : > { %4798 = vmatmul.bf16.gmra.mxu1 %v5390_v49  ;;  %v5523_v10 = vld [vmem:[%s8357_s0 + $0x1f8] sm:$0xf0] }
 0x2cf   : > { %4847 = vmatmul.bf16.gmra.mxu2 %v5394_v16 }
 0x2d0   : > { %4896 = vmatmul.bf16.gmra.mxu3 %v5398_v32 }
 0x2d2   : > { %v4652_v23 = vpop.f32.mrf.mxu2  ;;  %v4556_v39 = vpop.f32.mrf.mxu0 }
 0x2d3   : > { %v4701_v24 = vpop.f32.mrf.mxu3  ;;  %v4653_v25 = vadd.f32 %v4652_v23, %v4604_v22  ;;  %v4605_v60 = vpop.f32.mrf.mxu1  ;;  %v4557_v29 = vadd.f32 %v4556_v39, %v7879_v14  ;;  %v5457_v14 = vld [vmem:[%s8357_s0 + $0x138] sm:$0xf]  ;;  %v5526_v23 = vor.u32 %v6354_v9, %v5523_v10  ;;  %v6385_v9 = vld [vmem:[%s8357_s0 + $0x2b4] sm:$0xf] }
 0x2d4   : > { %v5458_v51 = vor.u32 %v6346_v36, %v5457_v14  ;;  %v6377_v36 = vld [vmem:[%s8357_s0 + $0x26c] sm:$0xf0]  ;;  %v5643_v10 = vld [vmem:[%s8357_s0 + $0x2f0] sm:$0xf0] }
 0x2d5   : > { %v8108_v33 = vadd.f32 %v4701_v24, %v4653_v25  ;;  %v4606_v1 = vadd.f32 %v4605_v60, %v4557_v29 }
 0x2da   : > { %v4654_v41 = vpop.f32.mrf.mxu2  ;;  %v4559_v47 = vpop.f32.mrf.mxu0 }
 0x2db   : > { %v4703_v42 = vpop.f32.mrf.mxu3  ;;  %v4655_v46 = vadd.f32 %v4654_v41, %v4606_v1  ;;  %v4608_v48 = vpop.f32.mrf.mxu1  ;;  %v4560_v53 = vadd.f32 %v4559_v47, %v7885_v27  ;;  %v5513_v27 = vld [vmem:[%s8357_s0 + $0x1b0] sm:$0xf]  ;;  %v6378_v41 = vld [vmem:[%s8357_s0 + $0x274] sm:$0xf0] }
 0x2dc   : > { %v5514_v0 = vor.u32 %v6361_v4, %v5513_v27 }
 0x2dd   : > { %v8135_v57 = vadd.f32 %v4703_v42, %v4655_v46  ;;  %v4609_v3 = vadd.f32 %v4608_v48, %v4560_v53  ;;  %4754 = vmatmul.bf16.gmra.mxu0 %v5450_v61  ;;  %v6370_v42 = vld [vmem:[%s8357_s0 + $0x23c] sm:$0xf]  ;;  %v5582_v48 = vor.u32 %v6369_v37, %v5579_v38 }
 0x2de   : > { %4803 = vmatmul.bf16.gmra.mxu1 %v5454_v44  ;;  %v5587_v61 = vld [vmem:[%s8357_s0 + $0x278] sm:$0xf0] }
 0x2df   : > { %4852 = vmatmul.bf16.gmra.mxu2 %v5458_v51 }
 0x2e0   : > { %4901 = vmatmul.bf16.gmra.mxu3 %v5462_v30 }
 0x2e2   : > { %v4657_v58 = vpop.f32.mrf.mxu2  ;;  %v4561_v12 = vpop.f32.mrf.mxu0 }
 0x2e3   : > { %v4706_v50 = vpop.f32.mrf.mxu3  ;;  %v4658_v26 = vadd.f32 %v4657_v58, %v4609_v3  ;;  %v4610_v62 = vpop.f32.mrf.mxu1  ;;  %v4562_v63 = vadd.f32 %v4561_v12, %v7913_v55  ;;  %v5521_v55 = vld [vmem:[%s8357_s0 + $0x1b8] sm:$0xf]  ;;  %v5590_v58 = vor.u32 %v6370_v42, %v5587_v61  ;;  %v6401_v42 = vld [vmem:[%s8357_s0 + $0x334] sm:$0xf] }
 0x2e4   : > { %v5522_v22 = vor.u32 %v6362_v8, %v5521_v55  ;;  %v6393_v8 = vld [vmem:[%s8357_s0 + $0x2ec] sm:$0xf0]  ;;  %v5707_v61 = vld [vmem:[%s8357_s0 + $0x370] sm:$0xf0] }
 0x2e5   : > { %v8138_v2 = vadd.f32 %v4706_v50, %v4658_v26  ;;  %v4611_v40 = vadd.f32 %v4610_v62, %v4562_v63 }
 0x2ea   : > { %v4659_v49 = vpop.f32.mrf.mxu2  ;;  %v4564_v32 = vpop.f32.mrf.mxu0 }
 0x2eb   : > { %v4708_v11 = vpop.f32.mrf.mxu3  ;;  %v4660_v16 = vadd.f32 %v4659_v49, %v4611_v40  ;;  %v4613_v20 = vpop.f32.mrf.mxu1  ;;  %v4565_v24 = vadd.f32 %v4564_v32, %v7919_v5  ;;  %v5577_v5 = vld [vmem:[%s8357_s0 + $0x230] sm:$0xf]  ;;  %v6394_v49 = vld [vmem:[%s8357_s0 + $0x2f4] sm:$0xf0] }
 0x2ec   : > { %v5578_v47 = vor.u32 %v6377_v36, %v5577_v5 }
 0x2ed   : > { %v8165_v25 = vadd.f32 %v4708_v11, %v4660_v16  ;;  %v4614_v39 = vadd.f32 %v4613_v20, %v4565_v24  ;;  %4759 = vmatmul.bf16.gmra.mxu0 %v5514_v0  ;;  %v6386_v11 = vld [vmem:[%s8357_s0 + $0x2bc] sm:$0xf]  ;;  %v5646_v20 = vor.u32 %v6385_v9, %v5643_v10 }
 0x2ee   : > { %4808 = vmatmul.bf16.gmra.mxu1 %v5518_v13  ;;  %v5651_v0 = vld [vmem:[%s8357_s0 + $0x2f8] sm:$0xf0] }
 0x2ef   : > { %4857 = vmatmul.bf16.gmra.mxu2 %v5522_v22 }
 0x2f0   : > { %4906 = vmatmul.bf16.gmra.mxu3 %v5526_v23 }
 0x2f2   : > { %v4662_v60 = vpop.f32.mrf.mxu2  ;;  %v4566_v52 = vpop.f32.mrf.mxu0 }
 0x2f3   : > { %v4711_v29 = vpop.f32.mrf.mxu3  ;;  %v4663_v1 = vadd.f32 %v4662_v60, %v4614_v39  ;;  %v4615_v34 = vpop.f32.mrf.mxu1  ;;  %v4567_v35 = vadd.f32 %v4566_v52, %v7947_v31  ;;  %v5585_v31 = vld [vmem:[%s8357_s0 + $0x238] sm:$0xf]  ;;  %v5654_v60 = vor.u32 %v6386_v11, %v5651_v0  ;;  %v6417_v11 = vld [vmem:[%s8357_s0 + $0x3b4] sm:$0xf] }
 0x2f4   : > { %v5586_v3 = vor.u32 %v6378_v41, %v5585_v31  ;;  %v6409_v41 = vld [vmem:[%s8357_s0 + $0x36c] sm:$0xf0]  ;;  %v5771_v0 = vld [vmem:[%s8357_s0 + $0x3f0] sm:$0xf0] }
 0x2f5   : > { %v8168_v17 = vadd.f32 %v4711_v29, %v4663_v1  ;;  %v4616_v14 = vadd.f32 %v4615_v34, %v4567_v35 }
 0x2fa   : > { %v4664_v44 = vpop.f32.mrf.mxu2  ;;  %v4569_v30 = vpop.f32.mrf.mxu0 }
 0x2fb   : > { %v4713_v46 = vpop.f32.mrf.mxu3  ;;  %v4665_v51 = vadd.f32 %v4664_v44, %v4616_v14  ;;  %v4618_v53 = vpop.f32.mrf.mxu1  ;;  %v4570_v50 = vadd.f32 %v4569_v30, %v7953_v43  ;;  %v5641_v43 = vld [vmem:[%s8357_s0 + $0x2b0] sm:$0xf]  ;;  %v6410_v44 = vld [vmem:[%s8357_s0 + $0x374] sm:$0xf0] }
 0x2fc   : > { %v5642_v32 = vor.u32 %v6393_v8, %v5641_v43 }
 0x2fd   : > { %v8195_v26 = vadd.f32 %v4713_v46, %v4665_v51  ;;  %v4619_v12 = vadd.f32 %v4618_v53, %v4570_v50  ;;  %4764 = vmatmul.bf16.gmra.mxu0 %v5578_v47  ;;  %v6402_v46 = vld [vmem:[%s8357_s0 + $0x33c] sm:$0xf]  ;;  %v5710_v53 = vor.u32 %v6401_v42, %v5707_v61 }
 0x2fe   : > { %4813 = vmatmul.bf16.gmra.mxu1 %v5582_v48  ;;  %v5715_v47 = vld [vmem:[%s8357_s0 + $0x378] sm:$0xf0] }
 0x2ff   : > { %4862 = vmatmul.bf16.gmra.mxu2 %v5586_v3 }
 0x300   : > { %4911 = vmatmul.bf16.gmra.mxu3 %v5590_v58 }
 0x302   : > { %v4667_v62 = vpop.f32.mrf.mxu2  ;;  %v4571_v27 = vpop.f32.mrf.mxu0 }
 0x303   : > { %v4716_v63 = vpop.f32.mrf.mxu3  ;;  %v4668_v40 = vadd.f32 %v4667_v62, %v4619_v12  ;;  %v4620_v4 = vpop.f32.mrf.mxu1  ;;  %v4572_v28 = vadd.f32 %v4571_v27, %v7981_v7  ;;  %v5649_v7 = vld [vmem:[%s8357_s0 + $0x2b8] sm:$0xf]  ;;  %v5718_v62 = vor.u32 %v6402_v46, %v5715_v47 }
 0x304   : > { %v5650_v39 = vor.u32 %v6394_v49, %v5649_v7  ;;  %v6425_v49 = vld [vmem:[%s8357_s0 + $0x3ec] sm:$0xf0] }
 0x305   : > { %v8198_v6 = vadd.f32 %v4716_v63, %v4668_v40  ;;  %v4621_v55 = vadd.f32 %v4620_v4, %v4572_v28 }
 0x30a   : > { %v4669_v13 = vpop.f32.mrf.mxu2  ;;  %v4574_v23 = vpop.f32.mrf.mxu0 }
 0x30b   : > { %v4718_v16 = vpop.f32.mrf.mxu3  ;;  %v4670_v22 = vadd.f32 %v4669_v13, %v4621_v55  ;;  %v4623_v24 = vpop.f32.mrf.mxu1  ;;  %v4575_v29 = vadd.f32 %v4574_v23, %v7987_v18  ;;  %v5705_v18 = vld [vmem:[%s8357_s0 + $0x330] sm:$0xf]  ;;  %v6426_v13 = vld [vmem:[%s8357_s0 + $0x3f4] sm:$0xf0] }
 0x30c   : > { %v5706_v30 = vor.u32 %v6409_v41, %v5705_v18 }
 0x30d   : > { %v8225_v1 = vadd.f32 %v4718_v16, %v4670_v22  ;;  %v4624_v52 = vadd.f32 %v4623_v24, %v4575_v29  ;;  %4769 = vmatmul.bf16.gmra.mxu0 %v5642_v32  ;;  %v6418_v16 = vld [vmem:[%s8357_s0 + $0x3bc] sm:$0xf]  ;;  %v5774_v24 = vor.u32 %v6417_v11, %v5771_v0 }
 0x30e   : > { %4818 = vmatmul.bf16.gmra.mxu1 %v5646_v20  ;;  %v5779_v32 = vld [vmem:[%s8357_s0 + $0x3f8] sm:$0xf0] }
 0x30f   : > { %4867 = vmatmul.bf16.gmra.mxu2 %v5650_v39 }
 0x310   : > { %4916 = vmatmul.bf16.gmra.mxu3 %v5654_v60 }
 0x312   : > { %v4672_v34 = vpop.f32.mrf.mxu2  ;;  %v4576_v5 = vpop.f32.mrf.mxu0 }
 0x313   : > { %v4721_v35 = vpop.f32.mrf.mxu3  ;;  %v4673_v14 = vadd.f32 %v4672_v34, %v4624_v52  ;;  %v4625_v36 = vpop.f32.mrf.mxu1  ;;  %v4577_v37 = vadd.f32 %v4576_v5, %v8015_v45  ;;  %v5713_v45 = vld [vmem:[%s8357_s0 + $0x338] sm:$0xf]  ;;  %v5782_v34 = vor.u32 %v6418_v16, %v5779_v32 }
 0x314   : > { %v5714_v12 = vor.u32 %v6410_v44, %v5713_v45 }
 0x315   : > { %v8228_v38 = vadd.f32 %v4721_v35, %v4673_v14  ;;  %v4626_v31 = vadd.f32 %v4625_v36, %v4577_v37 }
 0x31a   : > { %v4674_v48 = vpop.f32.mrf.mxu2  ;;  %v4579_v58 = vpop.f32.mrf.mxu0 }
 0x31b   : > { %v4723_v51 = vpop.f32.mrf.mxu3  ;;  %v4675_v3 = vadd.f32 %v4674_v48, %v4626_v31  ;;  %v4628_v50 = vpop.f32.mrf.mxu1  ;;  %v4580_v63 = vadd.f32 %v4579_v58, %v8018_v56  ;;  %v5769_v56 = vld [vmem:[%s8357_s0 + $0x3b0] sm:$0xf] }
 0x31c   : > { %v5770_v23 = vor.u32 %v6425_v49, %v5769_v56 }
 0x31d   : > { %v8255_v40 = vadd.f32 %v4723_v51, %v4675_v3  ;;  %v4629_v27 = vadd.f32 %v4628_v50, %v4580_v63  ;;  %4774 = vmatmul.bf16.gmra.mxu0 %v5706_v30 }
 0x31e   : > { %4823 = vmatmul.bf16.gmra.mxu1 %v5710_v53 }
 0x31f   : > { %4872 = vmatmul.bf16.gmra.mxu2 %v5714_v12 }
 0x320   : > { %4921 = vmatmul.bf16.gmra.mxu3 %v5718_v62 }
 0x322   : > { %v4677_v4 = vpop.f32.mrf.mxu2  ;;  %v4581_v43 = vpop.f32.mrf.mxu0 }
 0x323   : > { %v4726_v28 = vpop.f32.mrf.mxu3  ;;  %v4678_v55 = vadd.f32 %v4677_v4, %v4629_v27  ;;  %v4630_v8 = vpop.f32.mrf.mxu1  ;;  %v4582_v9 = vadd.f32 %v4581_v43, %v8045_v15  ;;  %v5777_v15 = vld [vmem:[%s8357_s0 + $0x3b8] sm:$0xf] }
 0x324   : > { %v5778_v52 = vor.u32 %v6426_v13, %v5777_v15 }
 0x325   : > { %v8258_v10 = vadd.f32 %v4726_v28, %v4678_v55  ;;  %v4631_v7 = vadd.f32 %v4630_v8, %v4582_v9 }
 0x32a   : > { %v4679_v20 = vpop.f32.mrf.mxu2  ;;  %v4584_v60 = vpop.f32.mrf.mxu0 }
 0x32b   : > { %v4728_v22 = vpop.f32.mrf.mxu3  ;;  %v4680_v39 = vadd.f32 %v4679_v20, %v4631_v7  ;;  %v4633_v29 = vpop.f32.mrf.mxu1  ;;  %v4585_v35 = vadd.f32 %v4584_v60, %v8048_v54 }
 0x32d   : > { %v8285_v14 = vadd.f32 %v4728_v22, %v4680_v39  ;;  %v4634_v5 = vadd.f32 %v4633_v29, %v4585_v35  ;;  %4779 = vmatmul.bf16.gmra.mxu0 %v5770_v23 }
 0x32e   : > { %4828 = vmatmul.bf16.gmra.mxu1 %v5774_v24 }
 0x32f   : > { %4877 = vmatmul.bf16.gmra.mxu2 %v5778_v52 }
 0x330   : > { %4926 = vmatmul.bf16.gmra.mxu3 %v5782_v34 }
 0x332   : > { %v4682_v36 = vpop.f32.mrf.mxu2  ;;  %v4586_v18 = vpop.f32.mrf.mxu0 }
 0x333   : > { %v4731_v37 = vpop.f32.mrf.mxu3  ;;  %v4683_v31 = vadd.f32 %v4682_v36, %v4634_v5  ;;  %v4635_v41 = vpop.f32.mrf.mxu1  ;;  %v4587_v42 = vadd.f32 %v4586_v18, %v8075_v19 }
 0x335   : > { %v8288_v61 = vadd.f32 %v4731_v37, %v4683_v31  ;;  %v4636_v45 = vadd.f32 %v4635_v41, %v4587_v42 }
 0x33a   : > { %v4684_v44 = vpop.f32.mrf.mxu2  ;;  %v4745_v47 = vpop.f32.mrf.mxu0 }
 0x33b   : > { %v4733_v46 = vpop.f32.mrf.mxu3  ;;  %v4685_v54 = vadd.f32 %v4684_v44, %v4636_v45  ;;  %v4794_v48 = vpop.f32.mrf.mxu1  ;;  %v4746_v30 = vadd.f32 %v4745_v47, %v8078_v59 }
 0x33d   : > { %v8290_v51 = vadd.f32 %v4733_v46, %v4685_v54  ;;  %v4795_v58 = vadd.f32 %v4794_v48, %v4746_v30 }
 0x342   : > { %v4843_v53 = vpop.f32.mrf.mxu2  ;;  %v4747_v50 = vpop.f32.mrf.mxu0 }
 0x343   : > { %v4892_v3 = vpop.f32.mrf.mxu3  ;;  %v4796_v12 = vpop.f32.mrf.mxu1  ;;  %v4844_v62 = vadd.f32 %v4843_v53, %v4795_v58  ;;  %v4748_v19 = vadd.f32 %v4747_v50, %v8105_v21 }
 0x345   : > { %v4893_v63 = vadd.f32 %v4892_v3, %v4844_v62  ;;  %v4797_v27 = vadd.f32 %v4796_v12, %v4748_v19 }
 0x347   : > { %v4983_v9 = vmul.f32 0.2, %v4893_v63 }
 0x349   : > { %v4999_v49 = vmax.f32 %v4893_v63, %v4983_v9 }
 0x34a   : > { %v4845_v4 = vpop.f32.mrf.mxu2  ;;  %v4750_v43 = vpop.f32.mrf.mxu0 }
 0x34b   : > { %v4894_v28 = vpop.f32.mrf.mxu3  ;;  %v4846_v55 = vadd.f32 %v4845_v4, %v4797_v27  ;;  %v4799_v8 = vpop.f32.mrf.mxu1  ;;  %v4751_v56 = vadd.f32 %v4750_v43, %v8108_v33 }
 0x34d   : > { %v4895_v7 = vadd.f32 %v4894_v28, %v4846_v55  ;;  %v4800_v21 = vadd.f32 %v4799_v8, %v4751_v56 }
 0x34f   : > { %v4984_v59 = vmul.f32 0.2, %v4895_v7 }
 0x351   : > { %v5000_v11 = vmax.f32 %v4895_v7, %v4984_v59 }
 0x352   : > { %v4848_v0 = vpop.f32.mrf.mxu2  ;;  %v4752_v16 = vpop.f32.mrf.mxu0 }
 0x353   : > { %v4897_v15 = vpop.f32.mrf.mxu3  ;;  %v6558_v13 = vpack.c.bf16 %v5000_v11, %v4999_v49  ;;  %v4801_v32 = vpop.f32.mrf.mxu1  ;;  %v4849_v20 = vadd.f32 %v4848_v0, %v4800_v21  ;;  %v4753_v22 = vadd.f32 %v4752_v16, %v8135_v57 }
 0x355   : > { %6559 = vst [vmem:[%s8297_s3] sm:$0xff] %v6558_v13   ;;  %v4898_v23 = vadd.f32 %v4897_v15, %v4849_v20  ;;  %v4802_v24 = vadd.f32 %v4801_v32, %v4753_v22 }
 0x357   : > { %v4985_v34 = vmul.f32 0.2, %v4898_v23 }
 0x359   : > { %v5001_v37 = vmax.f32 %v4898_v23, %v4985_v34 }
 0x35a   : > { %v4850_v39 = vpop.f32.mrf.mxu2  ;;  %v4755_v29 = vpop.f32.mrf.mxu0 }
 0x35b   : > { %v4899_v60 = vpop.f32.mrf.mxu3  ;;  %v4851_v33 = vadd.f32 %v4850_v39, %v4802_v24  ;;  %v4804_v52 = vpop.f32.mrf.mxu1  ;;  %v4756_v36 = vadd.f32 %v4755_v29, %v8138_v2 }
 0x35d   : > { %v4900_v35 = vadd.f32 %v4899_v60, %v4851_v33  ;;  %v4805_v45 = vadd.f32 %v4804_v52, %v4756_v36 }
 0x35f   : > { %v4986_v5 = vmul.f32 0.2, %v4900_v35 }
 0x361   : > { %v5002_v31 = vmax.f32 %v4900_v35, %v4986_v5 }
 0x362   : > { %v4853_v18 = vpop.f32.mrf.mxu2  ;;  %v4757_v57 = vpop.f32.mrf.mxu0 }
 0x363   : > { %v4902_v41 = vpop.f32.mrf.mxu3  ;;  %v6563_v42 = vpack.c.bf16 %v5002_v31, %v5001_v37  ;;  %v4806_v44 = vpop.f32.mrf.mxu1  ;;  %v4854_v46 = vadd.f32 %v4853_v18, %v4805_v45  ;;  %v4758_v54 = vadd.f32 %v4757_v57, %v8165_v25 }
 0x365   : > { %6595 = vst [vmem:[%s8297_s3 + $0x8] sm:$0xff] %v6563_v42   ;;  %v4903_v47 = vadd.f32 %v4902_v41, %v4854_v46  ;;  %v4807_v48 = vadd.f32 %v4806_v44, %v4758_v54 }
 0x367   : > { %v4987_v50 = vmul.f32 0.2, %v4903_v47 }
 0x369   : > { %v5003_v63 = vmax.f32 %v4903_v47, %v4987_v50 }
 0x36a   : > { %v4855_v30 = vpop.f32.mrf.mxu2  ;;  %v4760_v58 = vpop.f32.mrf.mxu0 }
 0x36b   : > { %v4904_v53 = vpop.f32.mrf.mxu3  ;;  %v4856_v3 = vadd.f32 %v4855_v30, %v4807_v48  ;;  %v4809_v2 = vpop.f32.mrf.mxu1  ;;  %v4761_v19 = vadd.f32 %v4760_v58, %v8168_v17 }
 0x36d   : > { %v4905_v12 = vadd.f32 %v4904_v53, %v4856_v3  ;;  %v4810_v43 = vadd.f32 %v4809_v2, %v4761_v19 }
 0x36f   : > { %v4988_v62 = vmul.f32 0.2, %v4905_v12 }
 0x371   : > { %v5004_v27 = vmax.f32 %v4905_v12, %v4988_v62 }
 0x372   : > { %v4858_v4 = vpop.f32.mrf.mxu2  ;;  %v4762_v25 = vpop.f32.mrf.mxu0 }
 0x373   : > { %v4907_v28 = vpop.f32.mrf.mxu3  ;;  %v6568_v55 = vpack.c.bf16 %v5004_v27, %v5003_v63  ;;  %v4811_v8 = vpop.f32.mrf.mxu1  ;;  %v4859_v9 = vadd.f32 %v4858_v4, %v4810_v43  ;;  %v4763_v7 = vadd.f32 %v4762_v25, %v8195_v26 }
 0x375   : > { %6596 = vst [vmem:[%s8297_s3 + $0x10] sm:$0xff] %v6568_v55   ;;  %v4908_v59 = vadd.f32 %v4907_v28, %v4859_v9  ;;  %v4812_v56 = vadd.f32 %v4811_v8, %v4763_v7 }
 0x377   : > { %v4989_v13 = vmul.f32 0.2, %v4908_v59 }
 0x379   : > { %v5005_v20 = vmax.f32 %v4908_v59, %v4989_v13 }
 0x37a   : > { %v4860_v49 = vpop.f32.mrf.mxu2  ;;  %v4765_v15 = vpop.f32.mrf.mxu0 }
 0x37b   : > { %v4909_v11 = vpop.f32.mrf.mxu3  ;;  %v4861_v0 = vadd.f32 %v4860_v49, %v4812_v56  ;;  %v4814_v17 = vpop.f32.mrf.mxu1  ;;  %v4766_v32 = vadd.f32 %v4765_v15, %v8198_v6 }
 0x37d   : > { %v4910_v21 = vadd.f32 %v4909_v11, %v4861_v0  ;;  %v4815_v60 = vadd.f32 %v4814_v17, %v4766_v32 }
 0x37f   : > { %v4990_v16 = vmul.f32 0.2, %v4910_v21 }
 0x381   : > { %v5006_v22 = vmax.f32 %v4910_v21, %v4990_v16 }
 0x382   : > { %v4863_v23 = vpop.f32.mrf.mxu2  ;;  %v4767_v26 = vpop.f32.mrf.mxu0 }
 0x383   : > { %v4912_v24 = vpop.f32.mrf.mxu3  ;;  %v6573_v39 = vpack.c.bf16 %v5006_v22, %v5005_v20  ;;  %v4816_v33 = vpop.f32.mrf.mxu1  ;;  %v4864_v29 = vadd.f32 %v4863_v23, %v4815_v60  ;;  %v4768_v52 = vadd.f32 %v4767_v26, %v8225_v1 }
 0x385   : > { %6597 = vst [vmem:[%s8297_s3 + $0x18] sm:$0xff] %v6573_v39   ;;  %v4913_v34 = vadd.f32 %v4912_v24, %v4864_v29  ;;  %v4817_v35 = vadd.f32 %v4816_v33, %v4768_v52 }
 0x387   : > { %v4991_v18 = vmul.f32 0.2, %v4913_v34 }
 0x389   : > { %v5007_v57 = vmax.f32 %v4913_v34, %v4991_v18 }
 0x38a   : > { %v4865_v5 = vpop.f32.mrf.mxu2  ;;  %v4770_v31 = vpop.f32.mrf.mxu0 }
 0x38b   : > { %v4914_v36 = vpop.f32.mrf.mxu3  ;;  %v4866_v37 = vadd.f32 %v4865_v5, %v4817_v35  ;;  %v4819_v6 = vpop.f32.mrf.mxu1  ;;  %v4771_v45 = vadd.f32 %v4770_v31, %v8228_v38 }
 0x38d   : > { %v4915_v41 = vadd.f32 %v4914_v36, %v4866_v37  ;;  %v4820_v48 = vadd.f32 %v4819_v6, %v4771_v45 }
 0x38f   : > { %v4992_v42 = vmul.f32 0.2, %v4915_v41 }
 0x391   : > { %v5008_v44 = vmax.f32 %v4915_v41, %v4992_v42 }
 0x392   : > { %v4868_v46 = vpop.f32.mrf.mxu2  ;;  %v4772_v1 = vpop.f32.mrf.mxu0 }
 0x393   : > { %v4917_v54 = vpop.f32.mrf.mxu3  ;;  %v6578_v47 = vpack.c.bf16 %v5008_v44, %v5007_v57  ;;  %v4821_v30 = vpop.f32.mrf.mxu1  ;;  %v4869_v53 = vadd.f32 %v4868_v46, %v4820_v48  ;;  %v4773_v3 = vadd.f32 %v4772_v1, %v8255_v40  ;;  %v5077_v57 = vld [vmem:[%s8297_s3 + $0x4] sm:$0xf] (%p6732_p6)  ;;  %v5079_v44 = vld [vmem:[%s8297_s3 + $0x8] sm:$0xf] (%p6732_p6)  ;;  %v5081_v46 = vld [vmem:[%s8297_s3 + $0xc] sm:$0xf] (%p6732_p6) }
 0x394   : > { %5078 = vst [vmem:[%s5058_s4 + $0x8] sm:$0xf] (%p6732_p6), %v5077_v57  ;;  %v5087_v48 = vld [vmem:[%s8297_s3 + $0x18] sm:$0xf] (%p6732_p6)  ;;  %v5089_v1 = vld [vmem:[%s8297_s3 + $0x1c] sm:$0xf] (%p6732_p6) }
 0x395   : > { %6598 = vst [vmem:[%s8297_s3 + $0x20] sm:$0xff] %v6578_v47   ;;  %v4918_v58 = vadd.f32 %v4917_v54, %v4869_v53  ;;  %v4822_v2 = vadd.f32 %v4821_v30, %v4773_v3  ;;  %v5083_v54 = vld [vmem:[%s8297_s3 + $0x10] sm:$0xf] (%p6732_p6)  ;;  %v5085_v47 = vld [vmem:[%s8297_s3 + $0x14] sm:$0xf] (%p6732_p6) }
 0x396   : > { %5080 = vst [vmem:[%s5058_s4 + $0x10] sm:$0xf] (%p6732_p6), %v5079_v44 }
 0x397   : > { %v4993_v63 = vmul.f32 0.2, %v4918_v58  ;;  %5082 = vst [vmem:[%s5058_s4 + $0x18] sm:$0xf] (%p6732_p6), %v5081_v46 }
 0x398   : > { %5084 = vst [vmem:[%s5058_s4 + $0x20] sm:$0xf] (%p6732_p6), %v5083_v54 }
 0x399   : > { %v5009_v55 = vmax.f32 %v4918_v58, %v4993_v63  ;;  %5086 = vst [vmem:[%s5058_s4 + $0x28] sm:$0xf] (%p6732_p6), %v5085_v47 }
 0x39a   : > { %v4870_v50 = vpop.f32.mrf.mxu2  ;;  %v4775_v19 = vpop.f32.mrf.mxu0  ;;  %5088 = vst [vmem:[%s5058_s4 + $0x30] sm:$0xf] (%p6732_p6), %v5087_v48 }
 0x39b   : > { %v4919_v12 = vpop.f32.mrf.mxu3  ;;  %v4871_v62 = vadd.f32 %v4870_v50, %v4822_v2  ;;  %v4824_v38 = vpop.f32.mrf.mxu1  ;;  %v4776_v28 = vadd.f32 %v4775_v19, %v8258_v10  ;;  %5090 = vst [vmem:[%s5058_s4 + $0x38] sm:$0xf] (%p6732_p6), %v5089_v1 }
 0x39c   : > { %v5091_v30 = vld [vmem:[%s8297_s3 + $0x20] sm:$0xf] (%p6732_p6)  ;;  %v5093_v53 = vld [vmem:[%s8297_s3 + $0x24] sm:$0xf] (%p6732_p6) }
 0x39d   : > { %v4920_v27 = vadd.f32 %v4919_v12, %v4871_v62  ;;  %v4825_v7 = vadd.f32 %v4824_v38, %v4776_v28  ;;  %5092 = vst [vmem:[%s5058_s4 + $0x40] sm:$0xf] (%p6732_p6), %v5091_v30 }
 0x39e   : > { %5094 = vst [vmem:[%s5058_s4 + $0x48] sm:$0xf] (%p6732_p6), %v5093_v53 }
 0x39f   : > { %v4994_v4 = vmul.f32 0.2, %v4920_v27 }
 0x3a1   : > { %v5010_v43 = vmax.f32 %v4920_v27, %v4994_v4 }
 0x3a2   : > { %v4873_v25 = vpop.f32.mrf.mxu2  ;;  %v4777_v40 = vpop.f32.mrf.mxu0 }
 0x3a3   : > { %v4922_v8 = vpop.f32.mrf.mxu3  ;;  %v6583_v9 = vpack.c.bf16 %v5010_v43, %v5009_v55  ;;  %v4826_v59 = vpop.f32.mrf.mxu1  ;;  %v4874_v56 = vadd.f32 %v4873_v25, %v4825_v7  ;;  %v4778_v49 = vadd.f32 %v4777_v40, %v8285_v14 }
 0x3a5   : > { %6599 = vst [vmem:[%s8297_s3 + $0x28] sm:$0xff] %v6583_v9   ;;  %v4923_v11 = vadd.f32 %v4922_v8, %v4874_v56  ;;  %v4827_v0 = vadd.f32 %v4826_v59, %v4778_v49 }
 0x3a7   : > { %v4995_v10 = vmul.f32 0.2, %v4923_v11 }
 0x3a9   : > { %v5011_v23 = vmax.f32 %v4923_v11, %v4995_v10 }
 0x3aa   : > { %v4875_v15 = vpop.f32.mrf.mxu2  ;;  %v4780_v21 = vpop.f32.mrf.mxu0 }
 0x3ab   : > { %v4924_v17 = vpop.f32.mrf.mxu3  ;;  %v4876_v13 = vadd.f32 %v4875_v15, %v4827_v0  ;;  %v4829_v32 = vpop.f32.mrf.mxu1  ;;  %v4781_v22 = vadd.f32 %v4780_v21, %v8288_v61 }
 0x3ac   : > { %v5095_v3 = vld [vmem:[%s8297_s3 + $0x28] sm:$0xf] (%p6732_p6)  ;;  %v5097_v58 = vld [vmem:[%s8297_s3 + $0x2c] sm:$0xf] (%p6732_p6) }
 0x3ad   : > { %v4925_v16 = vadd.f32 %v4924_v17, %v4876_v13  ;;  %v4830_v33 = vadd.f32 %v4829_v32, %v4781_v22  ;;  %5096 = vst [vmem:[%s5058_s4 + $0x50] sm:$0xf] (%p6732_p6), %v5095_v3 }
 0x3ae   : > { %5098 = vst [vmem:[%s5058_s4 + $0x58] sm:$0xf] (%p6732_p6), %v5097_v58 }
 0x3af   : > { %v4996_v20 = vmul.f32 0.2, %v4925_v16 }
 0x3b1   : > { %v5012_v24 = vmax.f32 %v4925_v16, %v4996_v20 }
 0x3b2   : > { %v4878_v39 = vpop.f32.mrf.mxu2  ;;  %v4782_v14 = vpop.f32.mrf.mxu0 }
 0x3b3   : > { %v4927_v60 = vpop.f32.mrf.mxu3  ;;  %v6588_v26 = vpack.c.bf16 %v5012_v24, %v5011_v23  ;;  %v4879_v29 = vadd.f32 %v4878_v39, %v4830_v33  ;;  %v4783_v52 = vadd.f32 %v4782_v14, %v8290_v51  ;;  %v4831_v34 = vpop.f32.mrf.mxu1  ;;  %v5075_v51 = vld [vmem:[%s8297_s3] sm:$0xf] (%p6732_p6) }
 0x3b4   : > { %5076 = vst [vmem:[%s5058_s4] sm:$0xf] (%p6732_p6), %v5075_v51 }
 0x3b5   : > { %6600 = vst [vmem:[%s8297_s3 + $0x30] sm:$0xff] %v6588_v26   ;;  %v4928_v35 = vadd.f32 %v4927_v60, %v4879_v29  ;;  %v4832_v5 = vadd.f32 %v4831_v34, %v4783_v52 }
 0x3b7   : > { %v4997_v6 = vmul.f32 0.2, %v4928_v35 }
 0x3b9   : > { %v5013_v41 = vmax.f32 %v4928_v35, %v4997_v6 }
 0x3ba   : > { %v4880_v36 = vpop.f32.mrf.mxu2 }
 0x3bb   : > { %v4881_v37 = vadd.f32 %v4880_v36, %v4832_v5  ;;  %v4929_v31 = vpop.f32.mrf.mxu3 }
 0x3bc   : > { %v5099_v2 = vld [vmem:[%s8297_s3 + $0x30] sm:$0xf] (%p6732_p6)  ;;  %v5101_v50 = vld [vmem:[%s8297_s3 + $0x34] sm:$0xf] (%p6732_p6) }
 0x3bd   : > { %v4930_v61 = vadd.f32 %v4929_v31, %v4881_v37  ;;  %5100 = vst [vmem:[%s5058_s4 + $0x60] sm:$0xf] (%p6732_p6), %v5099_v2 }
 0x3be   : > { %5102 = vst [vmem:[%s5058_s4 + $0x68] sm:$0xf] (%p6732_p6), %v5101_v50 }
 0x3bf   : > { %v4998_v18 = vmul.f32 0.2, %v4930_v61 }
 0x3c1   : > { %v5014_v42 = vmax.f32 %v4930_v61, %v4998_v18  ;;  %5053 = sbr.rel (!%p6732_p6) target bundleno = 975 (0x3cf), region = 92 }
 0x3c3   : > { %v6593_v45 = vpack.c.bf16 %v5014_v42, %v5013_v41 }
 0x3c5   : > { %6601 = vst [vmem:[%s8297_s3 + $0x38] sm:$0xff] %v6593_v45  }
 0x3cc   : > { %v5103_v12 = vld [vmem:[%s8297_s3 + $0x38] sm:$0xf]  ;;  %v5105_v62 = vld [vmem:[%s8297_s3 + $0x3c] sm:$0xf] }
 0x3cd   : > { %5104 = vst [vmem:[%s5058_s4 + $0x70] sm:$0xf] %v5103_v12 }
 0x3ce   : > { %5106 = vst [vmem:[%s5058_s4 + $0x78] sm:$0xf] %v5105_v62 }
 0x3cf PF: > { %s12_s13 = sadd.s32 1, %s6680_s13   ;;  %s8361_s9 = smov %s6668_s10 }
 0x3d0   : > { %p9_p11 = scmp.ge.s32.totalorder %s12_s13, 4   ;;  %s8362_s10 = smov %s6737_s19 }
 0x3d1   : > { %s8363_s11 = smov %s6676_s12  ;;  %s8364_s12 = smov %s8366_s14 }
 0x3d2   :  { %11 = sbr.rel (!%p9_p11) target bundleno = 3 (0x3), region = 171 }

// kernel: _lambda_.7
= control target key start
LH: loop header
LB: loop body
LE: loop exit
PB: predicated region body
PF: predicated region fallthrough
CT: control target
= control target key end

     0   :  { %s9337_s9 = smov 0   ;;  %s9339_s10 = smov 0   ;;  %s11110_s0 = inlined_call_operand.vmem [shape: bf16[32,4096], index: 0, kind: input, shape index: {}]   ;;  %s11111_s1 = inlined_call_operand.vmem [shape: bf16[4096,512], index: 1, kind: input, shape index: {}]   ;;  %s11112_s2 = inlined_call_operand.vmem [shape: bf16[32,512], index: 2, kind: output, shape index: {}]  }
   0x1   :  { %s9341_s11 = smov 0   ;;  %s9343_s12 = smov 0  }
   0x2   :  { %s9345_s13 = smov 0  }
   0x3 LB: > { %s27_s14 = sadd.s32 1, %s9316_s12  ;;  %s7617_s15 = sadd.s32 4294967295, %s9320_s13   ;;  %s9320_s13 = sphi %s9345_s13, %s12_s13   ;;  %s9316_s12 = sphi %s9343_s12, %s11117_s12   ;;  %s9312_s11 = sphi %s9341_s11, %s11116_s11   ;;  %s9308_s10 = sphi %s9339_s10, %s11115_s10   ;;  %s9304_s9 = sphi %s9337_s9, %s11114_s9  }
   0x4   : > { %p29_p0 = scmp.ge.s32.totalorder %s27_s14, 4  ;;  %p75_p1 = scmp.ne.s32.totalorder %s9308_s10, %s9304_s9 }
   0x5   : > { %p76_p2 = scmp.eq.s32.totalorder %s9320_s13, 0  ;;  %p107_p4 = scmp.eq.s32.totalorder %s7617_s15, 3 }
   0x6   : > { %s11119_s14 = smov (%p29_p0, %s27_s14), 0  ;;  %s68_s17 = sadd.s32 1, %s9308_s10 }
   0x7   : > { %p77_p3 = por %p76_p2, %p75_p1  ;;  %s64_s16 = ssub.s32 %s9316_s12, %s11119_s14 }
   0x8   : > { %p66_p5 = scmp.eq.s32.totalorder %s64_s16, 0  ;;  %p9372_p6 = por %p107_p4, %p75_p1 }
   0x9   : > { %p7621_p7 = scmp.ge.s32.totalorder %s9320_s13, 4 }
   0xa   : > { %s9377_s19 = scalar_select %p66_p5, %s9308_s10, %s68_s17  }
   0xb   : > { %144 = sbr.rel (%p7621_p7) target bundleno = 532 (0x214), region = 20 }
  0x10   : > { %147 = sbr.rel (!%p77_p3) target bundleno = 532 (0x214), region = 24  ;;  %s149_s20 = sand.u32 (%p77_p3), 1, %s9308_s10  }
  0x11   : > { %s7623_s21 = sshll.u32 (%p77_p3), %s9316_s12, 2  ;;  %s7622_s22 = sshll.u32 (%p77_p3), %s149_s20, 11 }
  0x12   : > { %s9385_s25 = scalar_lea.vmem (%p77_p3), %s11111_s1, %s7623_s21  ;;  %s9389_s26 = scalar_lea.vmem (%p77_p3), [#allocation3], %s7622_s22 }
  0x13   : > { %v173_v0 = vld [vmem:[%s9385_s25] sm:$0xf] (%p77_p3)  ;;  %v175_v1 = vld [vmem:[%s9385_s25 + $0x10] sm:$0xf] (%p77_p3) }
  0x14   : > { %174 = vst [vmem:[%s9389_s26] sm:$0xf] (%p77_p3), %v173_v0  ;;  %v177_v2 = vld [vmem:[%s9385_s25 + $0x20] sm:$0xf] (%p77_p3)  ;;  %v179_v3 = vld [vmem:[%s9385_s25 + $0x30] sm:$0xf] (%p77_p3) }
  0x15   : > { %176 = vst [vmem:[%s9389_s26 + $0x4] sm:$0xf] %v175_v1  ;;  %v181_v4 = vld [vmem:[%s9385_s25 + $0x40] sm:$0xf]  ;;  %v183_v5 = vld [vmem:[%s9385_s25 + $0x50] sm:$0xf] }
  0x16   : > { %178 = vst [vmem:[%s9389_s26 + $0x8] sm:$0xf] %v177_v2  ;;  %v185_v6 = vld [vmem:[%s9385_s25 + $0x60] sm:$0xf]  ;;  %v187_v7 = vld [vmem:[%s9385_s25 + $0x70] sm:$0xf] }
  0x17   : > { %180 = vst [vmem:[%s9389_s26 + $0xc] sm:$0xf] %v179_v3  ;;  %v189_v8 = vld [vmem:[%s9385_s25 + $0x80] sm:$0xf]  ;;  %v191_v9 = vld [vmem:[%s9385_s25 + $0x90] sm:$0xf] }
  0x18   : > { %182 = vst [vmem:[%s9389_s26 + $0x10] sm:$0xf] %v181_v4  ;;  %v193_v10 = vld [vmem:[%s9385_s25 + $0xa0] sm:$0xf]  ;;  %v195_v11 = vld [vmem:[%s9385_s25 + $0xb0] sm:$0xf] }
  0x19   : > { %184 = vst [vmem:[%s9389_s26 + $0x14] sm:$0xf] %v183_v5  ;;  %v197_v12 = vld [vmem:[%s9385_s25 + $0xc0] sm:$0xf]  ;;  %v199_v13 = vld [vmem:[%s9385_s25 + $0xd0] sm:$0xf] }
  0x1a   : > { %186 = vst [vmem:[%s9389_s26 + $0x18] sm:$0xf] %v185_v6  ;;  %v201_v14 = vld [vmem:[%s9385_s25 + $0xe0] sm:$0xf]  ;;  %v203_v15 = vld [vmem:[%s9385_s25 + $0xf0] sm:$0xf] }
  0x1b   : > { %188 = vst [vmem:[%s9389_s26 + $0x1c] sm:$0xf] %v187_v7  ;;  %v205_v16 = vld [vmem:[%s9385_s25 + $0x100] sm:$0xf]  ;;  %v207_v17 = vld [vmem:[%s9385_s25 + $0x110] sm:$0xf] }
  0x1c   : > { %190 = vst [vmem:[%s9389_s26 + $0x20] sm:$0xf] %v189_v8  ;;  %v209_v18 = vld [vmem:[%s9385_s25 + $0x120] sm:$0xf]  ;;  %v211_v19 = vld [vmem:[%s9385_s25 + $0x130] sm:$0xf] }
  0x1d   : > { %192 = vst [vmem:[%s9389_s26 + $0x24] sm:$0xf] %v191_v9  ;;  %v213_v20 = vld [vmem:[%s9385_s25 + $0x140] sm:$0xf]  ;;  %v215_v21 = vld [vmem:[%s9385_s25 + $0x150] sm:$0xf] }
  0x1e   : > { %194 = vst [vmem:[%s9389_s26 + $0x28] sm:$0xf] %v193_v10  ;;  %v217_v22 = vld [vmem:[%s9385_s25 + $0x160] sm:$0xf]  ;;  %v219_v23 = vld [vmem:[%s9385_s25 + $0x170] sm:$0xf] }
  0x1f   : > { %196 = vst [vmem:[%s9389_s26 + $0x2c] sm:$0xf] %v195_v11  ;;  %v221_v24 = vld [vmem:[%s9385_s25 + $0x180] sm:$0xf]  ;;  %v223_v25 = vld [vmem:[%s9385_s25 + $0x190] sm:$0xf] }
  0x20   : > { %198 = vst [vmem:[%s9389_s26 + $0x30] sm:$0xf] %v197_v12  ;;  %v225_v26 = vld [vmem:[%s9385_s25 + $0x1a0] sm:$0xf]  ;;  %v227_v27 = vld [vmem:[%s9385_s25 + $0x1b0] sm:$0xf] }
  0x21   : > { %200 = vst [vmem:[%s9389_s26 + $0x34] sm:$0xf] %v199_v13  ;;  %v229_v28 = vld [vmem:[%s9385_s25 + $0x1c0] sm:$0xf]  ;;  %v231_v29 = vld [vmem:[%s9385_s25 + $0x1d0] sm:$0xf] }
  0x22   : > { %202 = vst [vmem:[%s9389_s26 + $0x38] sm:$0xf] %v201_v14  ;;  %v233_v30 = vld [vmem:[%s9385_s25 + $0x1e0] sm:$0xf]  ;;  %v235_v31 = vld [vmem:[%s9385_s25 + $0x1f0] sm:$0xf] }
  0x23   : > { %204 = vst [vmem:[%s9389_s26 + $0x3c] sm:$0xf] %v203_v15  ;;  %v237_v32 = vld [vmem:[%s9385_s25 + $0x200] sm:$0xf]  ;;  %v239_v33 = vld [vmem:[%s9385_s25 + $0x210] sm:$0xf] }
  0x24   : > { %206 = vst [vmem:[%s9389_s26 + $0x40] sm:$0xf] %v205_v16  ;;  %v241_v34 = vld [vmem:[%s9385_s25 + $0x220] sm:$0xf]  ;;  %v243_v35 = vld [vmem:[%s9385_s25 + $0x230] sm:$0xf] }
  0x25   : > { %208 = vst [vmem:[%s9389_s26 + $0x44] sm:$0xf] %v207_v17  ;;  %v245_v36 = vld [vmem:[%s9385_s25 + $0x240] sm:$0xf]  ;;  %v247_v37 = vld [vmem:[%s9385_s25 + $0x250] sm:$0xf] }
  0x26   : > { %210 = vst [vmem:[%s9389_s26 + $0x48] sm:$0xf] %v209_v18  ;;  %v249_v38 = vld [vmem:[%s9385_s25 + $0x260] sm:$0xf]  ;;  %v251_v39 = vld [vmem:[%s9385_s25 + $0x270] sm:$0xf] }
  0x27   : > { %212 = vst [vmem:[%s9389_s26 + $0x4c] sm:$0xf] %v211_v19  ;;  %v253_v40 = vld [vmem:[%s9385_s25 + $0x280] sm:$0xf]  ;;  %v255_v41 = vld [vmem:[%s9385_s25 + $0x290] sm:$0xf] }
  0x28   : > { %214 = vst [vmem:[%s9389_s26 + $0x50] sm:$0xf] %v213_v20  ;;  %v257_v42 = vld [vmem:[%s9385_s25 + $0x2a0] sm:$0xf]  ;;  %v259_v43 = vld [vmem:[%s9385_s25 + $0x2b0] sm:$0xf] }
  0x29   : > { %216 = vst [vmem:[%s9389_s26 + $0x54] sm:$0xf] %v215_v21  ;;  %v261_v44 = vld [vmem:[%s9385_s25 + $0x2c0] sm:$0xf]  ;;  %v263_v45 = vld [vmem:[%s9385_s25 + $0x2d0] sm:$0xf] }
  0x2a   : > { %218 = vst [vmem:[%s9389_s26 + $0x58] sm:$0xf] %v217_v22  ;;  %v265_v46 = vld [vmem:[%s9385_s25 + $0x2e0] sm:$0xf]  ;;  %v267_v47 = vld [vmem:[%s9385_s25 + $0x2f0] sm:$0xf] }
  0x2b   : > { %220 = vst [vmem:[%s9389_s26 + $0x5c] sm:$0xf] %v219_v23  ;;  %v269_v48 = vld [vmem:[%s9385_s25 + $0x300] sm:$0xf]  ;;  %v271_v49 = vld [vmem:[%s9385_s25 + $0x310] sm:$0xf] }
  0x2c   : > { %222 = vst [vmem:[%s9389_s26 + $0x60] sm:$0xf] %v221_v24  ;;  %v273_v50 = vld [vmem:[%s9385_s25 + $0x320] sm:$0xf]  ;;  %v275_v51 = vld [vmem:[%s9385_s25 + $0x330] sm:$0xf] }
  0x2d   : > { %224 = vst [vmem:[%s9389_s26 + $0x64] sm:$0xf] %v223_v25  ;;  %v277_v52 = vld [vmem:[%s9385_s25 + $0x340] sm:$0xf]  ;;  %v279_v53 = vld [vmem:[%s9385_s25 + $0x350] sm:$0xf] }
  0x2e   : > { %226 = vst [vmem:[%s9389_s26 + $0x68] sm:$0xf] %v225_v26  ;;  %v281_v54 = vld [vmem:[%s9385_s25 + $0x360] sm:$0xf]  ;;  %v283_v55 = vld [vmem:[%s9385_s25 + $0x370] sm:$0xf] }
  0x2f   : > { %228 = vst [vmem:[%s9389_s26 + $0x6c] sm:$0xf] %v227_v27  ;;  %v285_v56 = vld [vmem:[%s9385_s25 + $0x380] sm:$0xf]  ;;  %v287_v57 = vld [vmem:[%s9385_s25 + $0x390] sm:$0xf] }
  0x30   : > { %230 = vst [vmem:[%s9389_s26 + $0x70] sm:$0xf] %v229_v28  ;;  %v289_v58 = vld [vmem:[%s9385_s25 + $0x3a0] sm:$0xf]  ;;  %v291_v59 = vld [vmem:[%s9385_s25 + $0x3b0] sm:$0xf] }
  0x31   : > { %232 = vst [vmem:[%s9389_s26 + $0x74] sm:$0xf] %v231_v29  ;;  %v293_v60 = vld [vmem:[%s9385_s25 + $0x3c0] sm:$0xf]  ;;  %v295_v61 = vld [vmem:[%s9385_s25 + $0x3d0] sm:$0xf] }
  0x32   : > { %234 = vst [vmem:[%s9389_s26 + $0x78] sm:$0xf] %v233_v30  ;;  %v297_v62 = vld [vmem:[%s9385_s25 + $0x3e0] sm:$0xf]  ;;  %v299_v63 = vld [vmem:[%s9385_s25 + $0x3f0] sm:$0xf] }
  0x33   : > { %236 = vst [vmem:[%s9389_s26 + $0x7c] sm:$0xf] %v235_v31  ;;  %v301_v0 = vld [vmem:[%s9385_s25 + $0x400] sm:$0xf]  ;;  %v303_v1 = vld [vmem:[%s9385_s25 + $0x410] sm:$0xf] }
  0x34   : > { %238 = vst [vmem:[%s9389_s26 + $0x80] sm:$0xf] %v237_v32  ;;  %v305_v2 = vld [vmem:[%s9385_s25 + $0x420] sm:$0xf]  ;;  %v307_v3 = vld [vmem:[%s9385_s25 + $0x430] sm:$0xf] }
  0x35   : > { %240 = vst [vmem:[%s9389_s26 + $0x84] sm:$0xf] %v239_v33  ;;  %v309_v4 = vld [vmem:[%s9385_s25 + $0x440] sm:$0xf]  ;;  %v311_v5 = vld [vmem:[%s9385_s25 + $0x450] sm:$0xf] }
  0x36   : > { %242 = vst [vmem:[%s9389_s26 + $0x88] sm:$0xf] %v241_v34  ;;  %v313_v6 = vld [vmem:[%s9385_s25 + $0x460] sm:$0xf]  ;;  %v315_v7 = vld [vmem:[%s9385_s25 + $0x470] sm:$0xf] }
  0x37   : > { %244 = vst [vmem:[%s9389_s26 + $0x8c] sm:$0xf] %v243_v35  ;;  %v317_v8 = vld [vmem:[%s9385_s25 + $0x480] sm:$0xf]  ;;  %v319_v9 = vld [vmem:[%s9385_s25 + $0x490] sm:$0xf] }
  0x38   : > { %246 = vst [vmem:[%s9389_s26 + $0x90] sm:$0xf] %v245_v36  ;;  %v321_v10 = vld [vmem:[%s9385_s25 + $0x4a0] sm:$0xf]  ;;  %v323_v11 = vld [vmem:[%s9385_s25 + $0x4b0] sm:$0xf] }
  0x39   : > { %248 = vst [vmem:[%s9389_s26 + $0x94] sm:$0xf] %v247_v37  ;;  %v325_v12 = vld [vmem:[%s9385_s25 + $0x4c0] sm:$0xf]  ;;  %v327_v13 = vld [vmem:[%s9385_s25 + $0x4d0] sm:$0xf] }
  0x3a   : > { %250 = vst [vmem:[%s9389_s26 + $0x98] sm:$0xf] %v249_v38  ;;  %v329_v14 = vld [vmem:[%s9385_s25 + $0x4e0] sm:$0xf]  ;;  %v331_v15 = vld [vmem:[%s9385_s25 + $0x4f0] sm:$0xf] }
  0x3b   : > { %252 = vst [vmem:[%s9389_s26 + $0x9c] sm:$0xf] %v251_v39  ;;  %v333_v16 = vld [vmem:[%s9385_s25 + $0x500] sm:$0xf]  ;;  %v335_v17 = vld [vmem:[%s9385_s25 + $0x510] sm:$0xf] }
  0x3c   : > { %254 = vst [vmem:[%s9389_s26 + $0xa0] sm:$0xf] %v253_v40  ;;  %v337_v18 = vld [vmem:[%s9385_s25 + $0x520] sm:$0xf]  ;;  %v339_v19 = vld [vmem:[%s9385_s25 + $0x530] sm:$0xf] }
  0x3d   : > { %256 = vst [vmem:[%s9389_s26 + $0xa4] sm:$0xf] %v255_v41  ;;  %v341_v20 = vld [vmem:[%s9385_s25 + $0x540] sm:$0xf]  ;;  %v343_v21 = vld [vmem:[%s9385_s25 + $0x550] sm:$0xf] }
  0x3e   : > { %258 = vst [vmem:[%s9389_s26 + $0xa8] sm:$0xf] %v257_v42  ;;  %v345_v22 = vld [vmem:[%s9385_s25 + $0x560] sm:$0xf]  ;;  %v347_v23 = vld [vmem:[%s9385_s25 + $0x570] sm:$0xf] }
  0x3f   : > { %260 = vst [vmem:[%s9389_s26 + $0xac] sm:$0xf] %v259_v43  ;;  %v349_v24 = vld [vmem:[%s9385_s25 + $0x580] sm:$0xf]  ;;  %v351_v25 = vld [vmem:[%s9385_s25 + $0x590] sm:$0xf] }
  0x40   : > { %262 = vst [vmem:[%s9389_s26 + $0xb0] sm:$0xf] %v261_v44  ;;  %v353_v26 = vld [vmem:[%s9385_s25 + $0x5a0] sm:$0xf]  ;;  %v355_v27 = vld [vmem:[%s9385_s25 + $0x5b0] sm:$0xf] }
  0x41   : > { %264 = vst [vmem:[%s9389_s26 + $0xb4] sm:$0xf] %v263_v45  ;;  %v357_v28 = vld [vmem:[%s9385_s25 + $0x5c0] sm:$0xf]  ;;  %v359_v29 = vld [vmem:[%s9385_s25 + $0x5d0] sm:$0xf] }
  0x42   : > { %266 = vst [vmem:[%s9389_s26 + $0xb8] sm:$0xf] %v265_v46  ;;  %v361_v30 = vld [vmem:[%s9385_s25 + $0x5e0] sm:$0xf]  ;;  %v363_v31 = vld [vmem:[%s9385_s25 + $0x5f0] sm:$0xf] }
  0x43   : > { %268 = vst [vmem:[%s9389_s26 + $0xbc] sm:$0xf] %v267_v47  ;;  %v365_v32 = vld [vmem:[%s9385_s25 + $0x600] sm:$0xf]  ;;  %v367_v33 = vld [vmem:[%s9385_s25 + $0x610] sm:$0xf] }
  0x44   : > { %270 = vst [vmem:[%s9389_s26 + $0xc0] sm:$0xf] %v269_v48  ;;  %v369_v34 = vld [vmem:[%s9385_s25 + $0x620] sm:$0xf]  ;;  %v371_v35 = vld [vmem:[%s9385_s25 + $0x630] sm:$0xf] }
  0x45   : > { %272 = vst [vmem:[%s9389_s26 + $0xc4] sm:$0xf] %v271_v49  ;;  %v373_v36 = vld [vmem:[%s9385_s25 + $0x640] sm:$0xf]  ;;  %v375_v37 = vld [vmem:[%s9385_s25 + $0x650] sm:$0xf] }
  0x46   : > { %274 = vst [vmem:[%s9389_s26 + $0xc8] sm:$0xf] %v273_v50  ;;  %v377_v38 = vld [vmem:[%s9385_s25 + $0x660] sm:$0xf]  ;;  %v379_v39 = vld [vmem:[%s9385_s25 + $0x670] sm:$0xf] }
  0x47   : > { %276 = vst [vmem:[%s9389_s26 + $0xcc] sm:$0xf] %v275_v51  ;;  %v381_v40 = vld [vmem:[%s9385_s25 + $0x680] sm:$0xf]  ;;  %v383_v41 = vld [vmem:[%s9385_s25 + $0x690] sm:$0xf] }
  0x48   : > { %278 = vst [vmem:[%s9389_s26 + $0xd0] sm:$0xf] %v277_v52  ;;  %v385_v42 = vld [vmem:[%s9385_s25 + $0x6a0] sm:$0xf]  ;;  %v387_v43 = vld [vmem:[%s9385_s25 + $0x6b0] sm:$0xf] }
  0x49   : > { %280 = vst [vmem:[%s9389_s26 + $0xd4] sm:$0xf] %v279_v53  ;;  %v389_v44 = vld [vmem:[%s9385_s25 + $0x6c0] sm:$0xf]  ;;  %v391_v45 = vld [vmem:[%s9385_s25 + $0x6d0] sm:$0xf] }
  0x4a   : > { %282 = vst [vmem:[%s9389_s26 + $0xd8] sm:$0xf] %v281_v54  ;;  %v393_v46 = vld [vmem:[%s9385_s25 + $0x6e0] sm:$0xf]  ;;  %v395_v47 = vld [vmem:[%s9385_s25 + $0x6f0] sm:$0xf] }
  0x4b   : > { %284 = vst [vmem:[%s9389_s26 + $0xdc] sm:$0xf] %v283_v55  ;;  %v397_v48 = vld [vmem:[%s9385_s25 + $0x700] sm:$0xf]  ;;  %v399_v49 = vld [vmem:[%s9385_s25 + $0x710] sm:$0xf] }
  0x4c   : > { %286 = vst [vmem:[%s9389_s26 + $0xe0] sm:$0xf] %v285_v56  ;;  %v401_v50 = vld [vmem:[%s9385_s25 + $0x720] sm:$0xf]  ;;  %v403_v51 = vld [vmem:[%s9385_s25 + $0x730] sm:$0xf] }
  0x4d   : > { %288 = vst [vmem:[%s9389_s26 + $0xe4] sm:$0xf] %v287_v57  ;;  %v405_v52 = vld [vmem:[%s9385_s25 + $0x740] sm:$0xf]  ;;  %v407_v53 = vld [vmem:[%s9385_s25 + $0x750] sm:$0xf] }
  0x4e   : > { %290 = vst [vmem:[%s9389_s26 + $0xe8] sm:$0xf] %v289_v58  ;;  %v409_v54 = vld [vmem:[%s9385_s25 + $0x760] sm:$0xf]  ;;  %v411_v55 = vld [vmem:[%s9385_s25 + $0x770] sm:$0xf] }
  0x4f   : > { %292 = vst [vmem:[%s9389_s26 + $0xec] sm:$0xf] %v291_v59  ;;  %v413_v56 = vld [vmem:[%s9385_s25 + $0x780] sm:$0xf]  ;;  %v415_v57 = vld [vmem:[%s9385_s25 + $0x790] sm:$0xf] }
  0x50   : > { %294 = vst [vmem:[%s9389_s26 + $0xf0] sm:$0xf] %v293_v60  ;;  %v417_v58 = vld [vmem:[%s9385_s25 + $0x7a0] sm:$0xf]  ;;  %v419_v59 = vld [vmem:[%s9385_s25 + $0x7b0] sm:$0xf] }
  0x51   : > { %296 = vst [vmem:[%s9389_s26 + $0xf4] sm:$0xf] %v295_v61  ;;  %v421_v60 = vld [vmem:[%s9385_s25 + $0x7c0] sm:$0xf]  ;;  %v423_v61 = vld [vmem:[%s9385_s25 + $0x7d0] sm:$0xf] }
  0x52   : > { %298 = vst [vmem:[%s9389_s26 + $0xf8] sm:$0xf] %v297_v62  ;;  %v425_v62 = vld [vmem:[%s9385_s25 + $0x7e0] sm:$0xf] }
  0x53   : > { %300 = vst [vmem:[%s9389_s26 + $0xfc] sm:$0xf] %v299_v63  ;;  %v427_v63 = vld [vmem:[%s9385_s25 + $0x7f0] sm:$0xf] }
  0x54   : > { %302 = vst [vmem:[%s9389_s26 + $0x100] sm:$0xf] %v301_v0  ;;  %v429_v0 = vld [vmem:[%s9385_s25 + $0x800] sm:$0xf] }
  0x55   : > { %304 = vst [vmem:[%s9389_s26 + $0x104] sm:$0xf] %v303_v1  ;;  %v431_v1 = vld [vmem:[%s9385_s25 + $0x810] sm:$0xf] }
  0x56   : > { %306 = vst [vmem:[%s9389_s26 + $0x108] sm:$0xf] %v305_v2  ;;  %v433_v2 = vld [vmem:[%s9385_s25 + $0x820] sm:$0xf] }
  0x57   : > { %308 = vst [vmem:[%s9389_s26 + $0x10c] sm:$0xf] %v307_v3  ;;  %v435_v3 = vld [vmem:[%s9385_s25 + $0x830] sm:$0xf] }
  0x58   : > { %310 = vst [vmem:[%s9389_s26 + $0x110] sm:$0xf] %v309_v4  ;;  %v437_v4 = vld [vmem:[%s9385_s25 + $0x840] sm:$0xf] }
  0x59   : > { %312 = vst [vmem:[%s9389_s26 + $0x114] sm:$0xf] %v311_v5  ;;  %v439_v5 = vld [vmem:[%s9385_s25 + $0x850] sm:$0xf] }
  0x5a   : > { %314 = vst [vmem:[%s9389_s26 + $0x118] sm:$0xf] %v313_v6  ;;  %v441_v6 = vld [vmem:[%s9385_s25 + $0x860] sm:$0xf] }
  0x5b   : > { %316 = vst [vmem:[%s9389_s26 + $0x11c] sm:$0xf] %v315_v7  ;;  %v443_v7 = vld [vmem:[%s9385_s25 + $0x870] sm:$0xf] }
  0x5c   : > { %318 = vst [vmem:[%s9389_s26 + $0x120] sm:$0xf] %v317_v8  ;;  %v445_v8 = vld [vmem:[%s9385_s25 + $0x880] sm:$0xf] }
  0x5d   : > { %320 = vst [vmem:[%s9389_s26 + $0x124] sm:$0xf] %v319_v9  ;;  %v447_v9 = vld [vmem:[%s9385_s25 + $0x890] sm:$0xf] }
  0x5e   : > { %322 = vst [vmem:[%s9389_s26 + $0x128] sm:$0xf] %v321_v10  ;;  %v449_v10 = vld [vmem:[%s9385_s25 + $0x8a0] sm:$0xf] }
  0x5f   : > { %324 = vst [vmem:[%s9389_s26 + $0x12c] sm:$0xf] %v323_v11  ;;  %v451_v11 = vld [vmem:[%s9385_s25 + $0x8b0] sm:$0xf] }
  0x60   : > { %326 = vst [vmem:[%s9389_s26 + $0x130] sm:$0xf] %v325_v12  ;;  %v453_v12 = vld [vmem:[%s9385_s25 + $0x8c0] sm:$0xf] }
  0x61   : > { %328 = vst [vmem:[%s9389_s26 + $0x134] sm:$0xf] %v327_v13  ;;  %v455_v13 = vld [vmem:[%s9385_s25 + $0x8d0] sm:$0xf] }
  0x62   : > { %330 = vst [vmem:[%s9389_s26 + $0x138] sm:$0xf] %v329_v14  ;;  %v457_v14 = vld [vmem:[%s9385_s25 + $0x8e0] sm:$0xf] }
  0x63   : > { %332 = vst [vmem:[%s9389_s26 + $0x13c] sm:$0xf] %v331_v15  ;;  %v459_v15 = vld [vmem:[%s9385_s25 + $0x8f0] sm:$0xf] }
  0x64   : > { %334 = vst [vmem:[%s9389_s26 + $0x140] sm:$0xf] %v333_v16  ;;  %v461_v16 = vld [vmem:[%s9385_s25 + $0x900] sm:$0xf] }
  0x65   : > { %336 = vst [vmem:[%s9389_s26 + $0x144] sm:$0xf] %v335_v17  ;;  %v463_v17 = vld [vmem:[%s9385_s25 + $0x910] sm:$0xf] }
  0x66   : > { %338 = vst [vmem:[%s9389_s26 + $0x148] sm:$0xf] %v337_v18  ;;  %v465_v18 = vld [vmem:[%s9385_s25 + $0x920] sm:$0xf] }
  0x67   : > { %340 = vst [vmem:[%s9389_s26 + $0x14c] sm:$0xf] %v339_v19  ;;  %v467_v19 = vld [vmem:[%s9385_s25 + $0x930] sm:$0xf] }
  0x68   : > { %342 = vst [vmem:[%s9389_s26 + $0x150] sm:$0xf] %v341_v20  ;;  %v469_v20 = vld [vmem:[%s9385_s25 + $0x940] sm:$0xf] }
  0x69   : > { %344 = vst [vmem:[%s9389_s26 + $0x154] sm:$0xf] %v343_v21  ;;  %v471_v21 = vld [vmem:[%s9385_s25 + $0x950] sm:$0xf] }
  0x6a   : > { %346 = vst [vmem:[%s9389_s26 + $0x158] sm:$0xf] %v345_v22  ;;  %v473_v22 = vld [vmem:[%s9385_s25 + $0x960] sm:$0xf] }
  0x6b   : > { %348 = vst [vmem:[%s9389_s26 + $0x15c] sm:$0xf] %v347_v23  ;;  %v475_v23 = vld [vmem:[%s9385_s25 + $0x970] sm:$0xf] }
  0x6c   : > { %350 = vst [vmem:[%s9389_s26 + $0x160] sm:$0xf] %v349_v24  ;;  %v477_v24 = vld [vmem:[%s9385_s25 + $0x980] sm:$0xf] }
  0x6d   : > { %352 = vst [vmem:[%s9389_s26 + $0x164] sm:$0xf] %v351_v25  ;;  %v479_v25 = vld [vmem:[%s9385_s25 + $0x990] sm:$0xf] }
  0x6e   : > { %354 = vst [vmem:[%s9389_s26 + $0x168] sm:$0xf] %v353_v26  ;;  %v481_v26 = vld [vmem:[%s9385_s25 + $0x9a0] sm:$0xf] }
  0x6f   : > { %356 = vst [vmem:[%s9389_s26 + $0x16c] sm:$0xf] %v355_v27  ;;  %v483_v27 = vld [vmem:[%s9385_s25 + $0x9b0] sm:$0xf] }
  0x70   : > { %358 = vst [vmem:[%s9389_s26 + $0x170] sm:$0xf] %v357_v28  ;;  %v485_v28 = vld [vmem:[%s9385_s25 + $0x9c0] sm:$0xf] }
  0x71   : > { %360 = vst [vmem:[%s9389_s26 + $0x174] sm:$0xf] %v359_v29  ;;  %v487_v29 = vld [vmem:[%s9385_s25 + $0x9d0] sm:$0xf] }
  0x72   : > { %362 = vst [vmem:[%s9389_s26 + $0x178] sm:$0xf] %v361_v30  ;;  %v489_v30 = vld [vmem:[%s9385_s25 + $0x9e0] sm:$0xf] }
  0x73   : > { %364 = vst [vmem:[%s9389_s26 + $0x17c] sm:$0xf] %v363_v31  ;;  %v491_v31 = vld [vmem:[%s9385_s25 + $0x9f0] sm:$0xf] }
  0x74   : > { %366 = vst [vmem:[%s9389_s26 + $0x180] sm:$0xf] %v365_v32  ;;  %v493_v32 = vld [vmem:[%s9385_s25 + $0xa00] sm:$0xf] }
  0x75   : > { %368 = vst [vmem:[%s9389_s26 + $0x184] sm:$0xf] %v367_v33  ;;  %v495_v33 = vld [vmem:[%s9385_s25 + $0xa10] sm:$0xf] }
  0x76   : > { %370 = vst [vmem:[%s9389_s26 + $0x188] sm:$0xf] %v369_v34  ;;  %v497_v34 = vld [vmem:[%s9385_s25 + $0xa20] sm:$0xf] }
  0x77   : > { %372 = vst [vmem:[%s9389_s26 + $0x18c] sm:$0xf] %v371_v35  ;;  %v499_v35 = vld [vmem:[%s9385_s25 + $0xa30] sm:$0xf] }
  0x78   : > { %374 = vst [vmem:[%s9389_s26 + $0x190] sm:$0xf] %v373_v36  ;;  %v501_v36 = vld [vmem:[%s9385_s25 + $0xa40] sm:$0xf] }
  0x79   : > { %376 = vst [vmem:[%s9389_s26 + $0x194] sm:$0xf] %v375_v37  ;;  %v503_v37 = vld [vmem:[%s9385_s25 + $0xa50] sm:$0xf] }
  0x7a   : > { %378 = vst [vmem:[%s9389_s26 + $0x198] sm:$0xf] %v377_v38  ;;  %v505_v38 = vld [vmem:[%s9385_s25 + $0xa60] sm:$0xf] }
  0x7b   : > { %380 = vst [vmem:[%s9389_s26 + $0x19c] sm:$0xf] %v379_v39  ;;  %v507_v39 = vld [vmem:[%s9385_s25 + $0xa70] sm:$0xf] }
  0x7c   : > { %382 = vst [vmem:[%s9389_s26 + $0x1a0] sm:$0xf] %v381_v40  ;;  %v509_v40 = vld [vmem:[%s9385_s25 + $0xa80] sm:$0xf] }
  0x7d   : > { %384 = vst [vmem:[%s9389_s26 + $0x1a4] sm:$0xf] %v383_v41  ;;  %v511_v41 = vld [vmem:[%s9385_s25 + $0xa90] sm:$0xf] }
  0x7e   : > { %386 = vst [vmem:[%s9389_s26 + $0x1a8] sm:$0xf] %v385_v42  ;;  %v513_v42 = vld [vmem:[%s9385_s25 + $0xaa0] sm:$0xf] }
  0x7f   : > { %388 = vst [vmem:[%s9389_s26 + $0x1ac] sm:$0xf] %v387_v43  ;;  %v515_v43 = vld [vmem:[%s9385_s25 + $0xab0] sm:$0xf] }
  0x80   : > { %390 = vst [vmem:[%s9389_s26 + $0x1b0] sm:$0xf] %v389_v44  ;;  %v517_v44 = vld [vmem:[%s9385_s25 + $0xac0] sm:$0xf] }
  0x81   : > { %392 = vst [vmem:[%s9389_s26 + $0x1b4] sm:$0xf] %v391_v45  ;;  %v519_v45 = vld [vmem:[%s9385_s25 + $0xad0] sm:$0xf] }
  0x82   : > { %394 = vst [vmem:[%s9389_s26 + $0x1b8] sm:$0xf] %v393_v46  ;;  %v521_v46 = vld [vmem:[%s9385_s25 + $0xae0] sm:$0xf] }
  0x83   : > { %396 = vst [vmem:[%s9389_s26 + $0x1bc] sm:$0xf] %v395_v47  ;;  %v523_v47 = vld [vmem:[%s9385_s25 + $0xaf0] sm:$0xf] }
  0x84   : > { %398 = vst [vmem:[%s9389_s26 + $0x1c0] sm:$0xf] %v397_v48  ;;  %v525_v48 = vld [vmem:[%s9385_s25 + $0xb00] sm:$0xf] }
  0x85   : > { %400 = vst [vmem:[%s9389_s26 + $0x1c4] sm:$0xf] %v399_v49  ;;  %v527_v49 = vld [vmem:[%s9385_s25 + $0xb10] sm:$0xf] }
  0x86   : > { %402 = vst [vmem:[%s9389_s26 + $0x1c8] sm:$0xf] %v401_v50  ;;  %v529_v50 = vld [vmem:[%s9385_s25 + $0xb20] sm:$0xf] }
  0x87   : > { %404 = vst [vmem:[%s9389_s26 + $0x1cc] sm:$0xf] %v403_v51  ;;  %v531_v51 = vld [vmem:[%s9385_s25 + $0xb30] sm:$0xf] }
  0x88   : > { %406 = vst [vmem:[%s9389_s26 + $0x1d0] sm:$0xf] %v405_v52  ;;  %v533_v52 = vld [vmem:[%s9385_s25 + $0xb40] sm:$0xf] }
  0x89   : > { %408 = vst [vmem:[%s9389_s26 + $0x1d4] sm:$0xf] %v407_v53  ;;  %v535_v53 = vld [vmem:[%s9385_s25 + $0xb50] sm:$0xf] }
  0x8a   : > { %410 = vst [vmem:[%s9389_s26 + $0x1d8] sm:$0xf] %v409_v54  ;;  %v537_v54 = vld [vmem:[%s9385_s25 + $0xb60] sm:$0xf] }
  0x8b   : > { %412 = vst [vmem:[%s9389_s26 + $0x1dc] sm:$0xf] %v411_v55  ;;  %v539_v55 = vld [vmem:[%s9385_s25 + $0xb70] sm:$0xf] }
  0x8c   : > { %414 = vst [vmem:[%s9389_s26 + $0x1e0] sm:$0xf] %v413_v56  ;;  %v541_v56 = vld [vmem:[%s9385_s25 + $0xb80] sm:$0xf] }
  0x8d   : > { %416 = vst [vmem:[%s9389_s26 + $0x1e4] sm:$0xf] %v415_v57  ;;  %v543_v57 = vld [vmem:[%s9385_s25 + $0xb90] sm:$0xf] }
  0x8e   : > { %418 = vst [vmem:[%s9389_s26 + $0x1e8] sm:$0xf] %v417_v58  ;;  %v545_v58 = vld [vmem:[%s9385_s25 + $0xba0] sm:$0xf] }
  0x8f   : > { %420 = vst [vmem:[%s9389_s26 + $0x1ec] sm:$0xf] %v419_v59  ;;  %v547_v59 = vld [vmem:[%s9385_s25 + $0xbb0] sm:$0xf] }
  0x90   : > { %422 = vst [vmem:[%s9389_s26 + $0x1f0] sm:$0xf] %v421_v60  ;;  %v549_v60 = vld [vmem:[%s9385_s25 + $0xbc0] sm:$0xf] }
  0x91   : > { %424 = vst [vmem:[%s9389_s26 + $0x1f4] sm:$0xf] %v423_v61  ;;  %v551_v61 = vld [vmem:[%s9385_s25 + $0xbd0] sm:$0xf] }
  0x92   : > { %426 = vst [vmem:[%s9389_s26 + $0x1f8] sm:$0xf] %v425_v62  ;;  %v553_v62 = vld [vmem:[%s9385_s25 + $0xbe0] sm:$0xf] }
  0x93   : > { %428 = vst [vmem:[%s9389_s26 + $0x1fc] sm:$0xf] %v427_v63  ;;  %v555_v63 = vld [vmem:[%s9385_s25 + $0xbf0] sm:$0xf] }
  0x94   : > { %430 = vst [vmem:[%s9389_s26 + $0x200] sm:$0xf] %v429_v0  ;;  %v557_v0 = vld [vmem:[%s9385_s25 + $0xc00] sm:$0xf] }
  0x95   : > { %432 = vst [vmem:[%s9389_s26 + $0x204] sm:$0xf] %v431_v1  ;;  %v559_v1 = vld [vmem:[%s9385_s25 + $0xc10] sm:$0xf] }
  0x96   : > { %434 = vst [vmem:[%s9389_s26 + $0x208] sm:$0xf] %v433_v2  ;;  %v561_v2 = vld [vmem:[%s9385_s25 + $0xc20] sm:$0xf] }
  0x97   : > { %436 = vst [vmem:[%s9389_s26 + $0x20c] sm:$0xf] %v435_v3  ;;  %v563_v3 = vld [vmem:[%s9385_s25 + $0xc30] sm:$0xf] }
  0x98   : > { %438 = vst [vmem:[%s9389_s26 + $0x210] sm:$0xf] %v437_v4  ;;  %v565_v4 = vld [vmem:[%s9385_s25 + $0xc40] sm:$0xf] }
  0x99   : > { %440 = vst [vmem:[%s9389_s26 + $0x214] sm:$0xf] %v439_v5  ;;  %v567_v5 = vld [vmem:[%s9385_s25 + $0xc50] sm:$0xf] }
  0x9a   : > { %442 = vst [vmem:[%s9389_s26 + $0x218] sm:$0xf] %v441_v6  ;;  %v569_v6 = vld [vmem:[%s9385_s25 + $0xc60] sm:$0xf] }
  0x9b   : > { %444 = vst [vmem:[%s9389_s26 + $0x21c] sm:$0xf] %v443_v7  ;;  %v571_v7 = vld [vmem:[%s9385_s25 + $0xc70] sm:$0xf] }
  0x9c   : > { %446 = vst [vmem:[%s9389_s26 + $0x220] sm:$0xf] %v445_v8  ;;  %v573_v8 = vld [vmem:[%s9385_s25 + $0xc80] sm:$0xf] }
  0x9d   : > { %448 = vst [vmem:[%s9389_s26 + $0x224] sm:$0xf] %v447_v9  ;;  %v575_v9 = vld [vmem:[%s9385_s25 + $0xc90] sm:$0xf] }
  0x9e   : > { %450 = vst [vmem:[%s9389_s26 + $0x228] sm:$0xf] %v449_v10  ;;  %v577_v10 = vld [vmem:[%s9385_s25 + $0xca0] sm:$0xf] }
  0x9f   : > { %452 = vst [vmem:[%s9389_s26 + $0x22c] sm:$0xf] %v451_v11  ;;  %v579_v11 = vld [vmem:[%s9385_s25 + $0xcb0] sm:$0xf] }
  0xa0   : > { %454 = vst [vmem:[%s9389_s26 + $0x230] sm:$0xf] %v453_v12  ;;  %v581_v12 = vld [vmem:[%s9385_s25 + $0xcc0] sm:$0xf] }
  0xa1   : > { %456 = vst [vmem:[%s9389_s26 + $0x234] sm:$0xf] %v455_v13  ;;  %v583_v13 = vld [vmem:[%s9385_s25 + $0xcd0] sm:$0xf] }
  0xa2   : > { %458 = vst [vmem:[%s9389_s26 + $0x238] sm:$0xf] %v457_v14  ;;  %v585_v14 = vld [vmem:[%s9385_s25 + $0xce0] sm:$0xf] }
  0xa3   : > { %460 = vst [vmem:[%s9389_s26 + $0x23c] sm:$0xf] %v459_v15  ;;  %v587_v15 = vld [vmem:[%s9385_s25 + $0xcf0] sm:$0xf] }
  0xa4   : > { %462 = vst [vmem:[%s9389_s26 + $0x240] sm:$0xf] %v461_v16  ;;  %v589_v16 = vld [vmem:[%s9385_s25 + $0xd00] sm:$0xf] }
  0xa5   : > { %464 = vst [vmem:[%s9389_s26 + $0x244] sm:$0xf] %v463_v17  ;;  %v591_v17 = vld [vmem:[%s9385_s25 + $0xd10] sm:$0xf] }
  0xa6   : > { %466 = vst [vmem:[%s9389_s26 + $0x248] sm:$0xf] %v465_v18  ;;  %v593_v18 = vld [vmem:[%s9385_s25 + $0xd20] sm:$0xf] }
  0xa7   : > { %468 = vst [vmem:[%s9389_s26 + $0x24c] sm:$0xf] %v467_v19  ;;  %v595_v19 = vld [vmem:[%s9385_s25 + $0xd30] sm:$0xf] }
  0xa8   : > { %470 = vst [vmem:[%s9389_s26 + $0x250] sm:$0xf] %v469_v20  ;;  %v597_v20 = vld [vmem:[%s9385_s25 + $0xd40] sm:$0xf] }
  0xa9   : > { %472 = vst [vmem:[%s9389_s26 + $0x254] sm:$0xf] %v471_v21  ;;  %v599_v21 = vld [vmem:[%s9385_s25 + $0xd50] sm:$0xf] }
  0xaa   : > { %474 = vst [vmem:[%s9389_s26 + $0x258] sm:$0xf] %v473_v22  ;;  %v601_v22 = vld [vmem:[%s9385_s25 + $0xd60] sm:$0xf] }
  0xab   : > { %476 = vst [vmem:[%s9389_s26 + $0x25c] sm:$0xf] %v475_v23  ;;  %v603_v23 = vld [vmem:[%s9385_s25 + $0xd70] sm:$0xf] }
  0xac   : > { %478 = vst [vmem:[%s9389_s26 + $0x260] sm:$0xf] %v477_v24  ;;  %v605_v24 = vld [vmem:[%s9385_s25 + $0xd80] sm:$0xf] }
  0xad   : > { %480 = vst [vmem:[%s9389_s26 + $0x264] sm:$0xf] %v479_v25  ;;  %v607_v25 = vld [vmem:[%s9385_s25 + $0xd90] sm:$0xf] }
  0xae   : > { %482 = vst [vmem:[%s9389_s26 + $0x268] sm:$0xf] %v481_v26  ;;  %v609_v26 = vld [vmem:[%s9385_s25 + $0xda0] sm:$0xf] }
  0xaf   : > { %484 = vst [vmem:[%s9389_s26 + $0x26c] sm:$0xf] %v483_v27  ;;  %v611_v27 = vld [vmem:[%s9385_s25 + $0xdb0] sm:$0xf] }
  0xb0   : > { %486 = vst [vmem:[%s9389_s26 + $0x270] sm:$0xf] %v485_v28  ;;  %v613_v28 = vld [vmem:[%s9385_s25 + $0xdc0] sm:$0xf] }
  0xb1   : > { %488 = vst [vmem:[%s9389_s26 + $0x274] sm:$0xf] %v487_v29  ;;  %v615_v29 = vld [vmem:[%s9385_s25 + $0xdd0] sm:$0xf] }
  0xb2   : > { %490 = vst [vmem:[%s9389_s26 + $0x278] sm:$0xf] %v489_v30  ;;  %v617_v30 = vld [vmem:[%s9385_s25 + $0xde0] sm:$0xf] }
  0xb3   : > { %492 = vst [vmem:[%s9389_s26 + $0x27c] sm:$0xf] %v491_v31  ;;  %v619_v31 = vld [vmem:[%s9385_s25 + $0xdf0] sm:$0xf] }
  0xb4   : > { %494 = vst [vmem:[%s9389_s26 + $0x280] sm:$0xf] %v493_v32  ;;  %v621_v32 = vld [vmem:[%s9385_s25 + $0xe00] sm:$0xf] }
  0xb5   : > { %496 = vst [vmem:[%s9389_s26 + $0x284] sm:$0xf] %v495_v33  ;;  %v623_v33 = vld [vmem:[%s9385_s25 + $0xe10] sm:$0xf] }
  0xb6   : > { %498 = vst [vmem:[%s9389_s26 + $0x288] sm:$0xf] %v497_v34  ;;  %v625_v34 = vld [vmem:[%s9385_s25 + $0xe20] sm:$0xf] }
  0xb7   : > { %500 = vst [vmem:[%s9389_s26 + $0x28c] sm:$0xf] %v499_v35  ;;  %v627_v35 = vld [vmem:[%s9385_s25 + $0xe30] sm:$0xf] }
  0xb8   : > { %502 = vst [vmem:[%s9389_s26 + $0x290] sm:$0xf] %v501_v36  ;;  %v629_v36 = vld [vmem:[%s9385_s25 + $0xe40] sm:$0xf] }
  0xb9   : > { %504 = vst [vmem:[%s9389_s26 + $0x294] sm:$0xf] %v503_v37  ;;  %v631_v37 = vld [vmem:[%s9385_s25 + $0xe50] sm:$0xf] }
  0xba   : > { %506 = vst [vmem:[%s9389_s26 + $0x298] sm:$0xf] %v505_v38  ;;  %v633_v38 = vld [vmem:[%s9385_s25 + $0xe60] sm:$0xf] }
  0xbb   : > { %508 = vst [vmem:[%s9389_s26 + $0x29c] sm:$0xf] %v507_v39  ;;  %v635_v39 = vld [vmem:[%s9385_s25 + $0xe70] sm:$0xf] }
  0xbc   : > { %510 = vst [vmem:[%s9389_s26 + $0x2a0] sm:$0xf] %v509_v40  ;;  %v637_v40 = vld [vmem:[%s9385_s25 + $0xe80] sm:$0xf] }
  0xbd   : > { %512 = vst [vmem:[%s9389_s26 + $0x2a4] sm:$0xf] %v511_v41  ;;  %v639_v41 = vld [vmem:[%s9385_s25 + $0xe90] sm:$0xf] }
  0xbe   : > { %514 = vst [vmem:[%s9389_s26 + $0x2a8] sm:$0xf] %v513_v42  ;;  %v641_v42 = vld [vmem:[%s9385_s25 + $0xea0] sm:$0xf] }
  0xbf   : > { %516 = vst [vmem:[%s9389_s26 + $0x2ac] sm:$0xf] %v515_v43  ;;  %v643_v43 = vld [vmem:[%s9385_s25 + $0xeb0] sm:$0xf] }
  0xc0   : > { %518 = vst [vmem:[%s9389_s26 + $0x2b0] sm:$0xf] %v517_v44  ;;  %v645_v44 = vld [vmem:[%s9385_s25 + $0xec0] sm:$0xf] }
  0xc1   : > { %520 = vst [vmem:[%s9389_s26 + $0x2b4] sm:$0xf] %v519_v45  ;;  %v647_v45 = vld [vmem:[%s9385_s25 + $0xed0] sm:$0xf] }
  0xc2   : > { %522 = vst [vmem:[%s9389_s26 + $0x2b8] sm:$0xf] %v521_v46  ;;  %v649_v46 = vld [vmem:[%s9385_s25 + $0xee0] sm:$0xf] }
  0xc3   : > { %524 = vst [vmem:[%s9389_s26 + $0x2bc] sm:$0xf] %v523_v47  ;;  %v651_v47 = vld [vmem:[%s9385_s25 + $0xef0] sm:$0xf] }
  0xc4   : > { %526 = vst [vmem:[%s9389_s26 + $0x2c0] sm:$0xf] %v525_v48  ;;  %v653_v48 = vld [vmem:[%s9385_s25 + $0xf00] sm:$0xf] }
  0xc5   : > { %528 = vst [vmem:[%s9389_s26 + $0x2c4] sm:$0xf] %v527_v49  ;;  %v655_v49 = vld [vmem:[%s9385_s25 + $0xf10] sm:$0xf] }
  0xc6   : > { %530 = vst [vmem:[%s9389_s26 + $0x2c8] sm:$0xf] %v529_v50  ;;  %v657_v50 = vld [vmem:[%s9385_s25 + $0xf20] sm:$0xf] }
  0xc7   : > { %532 = vst [vmem:[%s9389_s26 + $0x2cc] sm:$0xf] %v531_v51  ;;  %v659_v51 = vld [vmem:[%s9385_s25 + $0xf30] sm:$0xf] }
  0xc8   : > { %534 = vst [vmem:[%s9389_s26 + $0x2d0] sm:$0xf] %v533_v52  ;;  %v661_v52 = vld [vmem:[%s9385_s25 + $0xf40] sm:$0xf] }
  0xc9   : > { %536 = vst [vmem:[%s9389_s26 + $0x2d4] sm:$0xf] %v535_v53  ;;  %v663_v53 = vld [vmem:[%s9385_s25 + $0xf50] sm:$0xf] }
  0xca   : > { %538 = vst [vmem:[%s9389_s26 + $0x2d8] sm:$0xf] %v537_v54  ;;  %v665_v54 = vld [vmem:[%s9385_s25 + $0xf60] sm:$0xf] }
  0xcb   : > { %540 = vst [vmem:[%s9389_s26 + $0x2dc] sm:$0xf] %v539_v55  ;;  %v667_v55 = vld [vmem:[%s9385_s25 + $0xf70] sm:$0xf] }
  0xcc   : > { %542 = vst [vmem:[%s9389_s26 + $0x2e0] sm:$0xf] %v541_v56  ;;  %v669_v56 = vld [vmem:[%s9385_s25 + $0xf80] sm:$0xf] }
  0xcd   : > { %544 = vst [vmem:[%s9389_s26 + $0x2e4] sm:$0xf] %v543_v57  ;;  %v671_v57 = vld [vmem:[%s9385_s25 + $0xf90] sm:$0xf] }
  0xce   : > { %546 = vst [vmem:[%s9389_s26 + $0x2e8] sm:$0xf] %v545_v58  ;;  %v673_v58 = vld [vmem:[%s9385_s25 + $0xfa0] sm:$0xf] }
  0xcf   : > { %548 = vst [vmem:[%s9389_s26 + $0x2ec] sm:$0xf] %v547_v59  ;;  %v675_v59 = vld [vmem:[%s9385_s25 + $0xfb0] sm:$0xf] }
  0xd0   : > { %550 = vst [vmem:[%s9389_s26 + $0x2f0] sm:$0xf] %v549_v60  ;;  %v677_v60 = vld [vmem:[%s9385_s25 + $0xfc0] sm:$0xf] }
  0xd1   : > { %552 = vst [vmem:[%s9389_s26 + $0x2f4] sm:$0xf] %v551_v61  ;;  %v679_v61 = vld [vmem:[%s9385_s25 + $0xfd0] sm:$0xf] }
  0xd2   : > { %554 = vst [vmem:[%s9389_s26 + $0x2f8] sm:$0xf] %v553_v62  ;;  %v681_v62 = vld [vmem:[%s9385_s25 + $0xfe0] sm:$0xf] }
  0xd3   : > { %556 = vst [vmem:[%s9389_s26 + $0x2fc] sm:$0xf] %v555_v63  ;;  %v683_v63 = vld [vmem:[%s9385_s25 + $0xff0] sm:$0xf] }
  0xd4   : > { %558 = vst [vmem:[%s9389_s26 + $0x300] sm:$0xf] %v557_v0  ;;  %v685_v0 = vld [vmem:[%s9385_s25 + $0x1000] sm:$0xf] }
  0xd5   : > { %560 = vst [vmem:[%s9389_s26 + $0x304] sm:$0xf] %v559_v1  ;;  %v687_v1 = vld [vmem:[%s9385_s25 + $0x1010] sm:$0xf] }
  0xd6   : > { %562 = vst [vmem:[%s9389_s26 + $0x308] sm:$0xf] %v561_v2  ;;  %v689_v2 = vld [vmem:[%s9385_s25 + $0x1020] sm:$0xf] }
  0xd7   : > { %564 = vst [vmem:[%s9389_s26 + $0x30c] sm:$0xf] %v563_v3  ;;  %v691_v3 = vld [vmem:[%s9385_s25 + $0x1030] sm:$0xf] }
  0xd8   : > { %566 = vst [vmem:[%s9389_s26 + $0x310] sm:$0xf] %v565_v4  ;;  %v693_v4 = vld [vmem:[%s9385_s25 + $0x1040] sm:$0xf] }
  0xd9   : > { %568 = vst [vmem:[%s9389_s26 + $0x314] sm:$0xf] %v567_v5  ;;  %v695_v5 = vld [vmem:[%s9385_s25 + $0x1050] sm:$0xf] }
  0xda   : > { %570 = vst [vmem:[%s9389_s26 + $0x318] sm:$0xf] %v569_v6  ;;  %v697_v6 = vld [vmem:[%s9385_s25 + $0x1060] sm:$0xf] }
  0xdb   : > { %572 = vst [vmem:[%s9389_s26 + $0x31c] sm:$0xf] %v571_v7  ;;  %v699_v7 = vld [vmem:[%s9385_s25 + $0x1070] sm:$0xf] }
  0xdc   : > { %574 = vst [vmem:[%s9389_s26 + $0x320] sm:$0xf] %v573_v8  ;;  %v701_v8 = vld [vmem:[%s9385_s25 + $0x1080] sm:$0xf] }
  0xdd   : > { %576 = vst [vmem:[%s9389_s26 + $0x324] sm:$0xf] %v575_v9  ;;  %v703_v9 = vld [vmem:[%s9385_s25 + $0x1090] sm:$0xf] }
  0xde   : > { %578 = vst [vmem:[%s9389_s26 + $0x328] sm:$0xf] %v577_v10  ;;  %v705_v10 = vld [vmem:[%s9385_s25 + $0x10a0] sm:$0xf] }
  0xdf   : > { %580 = vst [vmem:[%s9389_s26 + $0x32c] sm:$0xf] %v579_v11  ;;  %v707_v11 = vld [vmem:[%s9385_s25 + $0x10b0] sm:$0xf] }
  0xe0   : > { %582 = vst [vmem:[%s9389_s26 + $0x330] sm:$0xf] %v581_v12  ;;  %v709_v12 = vld [vmem:[%s9385_s25 + $0x10c0] sm:$0xf] }
  0xe1   : > { %584 = vst [vmem:[%s9389_s26 + $0x334] sm:$0xf] %v583_v13  ;;  %v711_v13 = vld [vmem:[%s9385_s25 + $0x10d0] sm:$0xf] }
  0xe2   : > { %586 = vst [vmem:[%s9389_s26 + $0x338] sm:$0xf] %v585_v14  ;;  %v713_v14 = vld [vmem:[%s9385_s25 + $0x10e0] sm:$0xf] }
  0xe3   : > { %588 = vst [vmem:[%s9389_s26 + $0x33c] sm:$0xf] %v587_v15  ;;  %v715_v15 = vld [vmem:[%s9385_s25 + $0x10f0] sm:$0xf] }
  0xe4   : > { %590 = vst [vmem:[%s9389_s26 + $0x340] sm:$0xf] %v589_v16  ;;  %v717_v16 = vld [vmem:[%s9385_s25 + $0x1100] sm:$0xf] }
  0xe5   : > { %592 = vst [vmem:[%s9389_s26 + $0x344] sm:$0xf] %v591_v17  ;;  %v719_v17 = vld [vmem:[%s9385_s25 + $0x1110] sm:$0xf] }
  0xe6   : > { %594 = vst [vmem:[%s9389_s26 + $0x348] sm:$0xf] %v593_v18  ;;  %v721_v18 = vld [vmem:[%s9385_s25 + $0x1120] sm:$0xf] }
  0xe7   : > { %596 = vst [vmem:[%s9389_s26 + $0x34c] sm:$0xf] %v595_v19  ;;  %v723_v19 = vld [vmem:[%s9385_s25 + $0x1130] sm:$0xf] }
  0xe8   : > { %598 = vst [vmem:[%s9389_s26 + $0x350] sm:$0xf] %v597_v20  ;;  %v725_v20 = vld [vmem:[%s9385_s25 + $0x1140] sm:$0xf] }
  0xe9   : > { %600 = vst [vmem:[%s9389_s26 + $0x354] sm:$0xf] %v599_v21  ;;  %v727_v21 = vld [vmem:[%s9385_s25 + $0x1150] sm:$0xf] }
  0xea   : > { %602 = vst [vmem:[%s9389_s26 + $0x358] sm:$0xf] %v601_v22  ;;  %v729_v22 = vld [vmem:[%s9385_s25 + $0x1160] sm:$0xf] }
  0xeb   : > { %604 = vst [vmem:[%s9389_s26 + $0x35c] sm:$0xf] %v603_v23  ;;  %v731_v23 = vld [vmem:[%s9385_s25 + $0x1170] sm:$0xf] }
  0xec   : > { %606 = vst [vmem:[%s9389_s26 + $0x360] sm:$0xf] %v605_v24  ;;  %v733_v24 = vld [vmem:[%s9385_s25 + $0x1180] sm:$0xf] }
  0xed   : > { %608 = vst [vmem:[%s9389_s26 + $0x364] sm:$0xf] %v607_v25  ;;  %v735_v25 = vld [vmem:[%s9385_s25 + $0x1190] sm:$0xf] }
  0xee   : > { %610 = vst [vmem:[%s9389_s26 + $0x368] sm:$0xf] %v609_v26  ;;  %v737_v26 = vld [vmem:[%s9385_s25 + $0x11a0] sm:$0xf] }
  0xef   : > { %612 = vst [vmem:[%s9389_s26 + $0x36c] sm:$0xf] %v611_v27  ;;  %v739_v27 = vld [vmem:[%s9385_s25 + $0x11b0] sm:$0xf] }
  0xf0   : > { %614 = vst [vmem:[%s9389_s26 + $0x370] sm:$0xf] %v613_v28  ;;  %v741_v28 = vld [vmem:[%s9385_s25 + $0x11c0] sm:$0xf] }
  0xf1   : > { %616 = vst [vmem:[%s9389_s26 + $0x374] sm:$0xf] %v615_v29  ;;  %v743_v29 = vld [vmem:[%s9385_s25 + $0x11d0] sm:$0xf] }
  0xf2   : > { %618 = vst [vmem:[%s9389_s26 + $0x378] sm:$0xf] %v617_v30  ;;  %v745_v30 = vld [vmem:[%s9385_s25 + $0x11e0] sm:$0xf] }
  0xf3   : > { %620 = vst [vmem:[%s9389_s26 + $0x37c] sm:$0xf] %v619_v31  ;;  %v747_v31 = vld [vmem:[%s9385_s25 + $0x11f0] sm:$0xf] }
  0xf4   : > { %622 = vst [vmem:[%s9389_s26 + $0x380] sm:$0xf] %v621_v32  ;;  %v749_v32 = vld [vmem:[%s9385_s25 + $0x1200] sm:$0xf] }
  0xf5   : > { %624 = vst [vmem:[%s9389_s26 + $0x384] sm:$0xf] %v623_v33  ;;  %v751_v33 = vld [vmem:[%s9385_s25 + $0x1210] sm:$0xf] }
  0xf6   : > { %626 = vst [vmem:[%s9389_s26 + $0x388] sm:$0xf] %v625_v34  ;;  %v753_v34 = vld [vmem:[%s9385_s25 + $0x1220] sm:$0xf] }
  0xf7   : > { %628 = vst [vmem:[%s9389_s26 + $0x38c] sm:$0xf] %v627_v35  ;;  %v755_v35 = vld [vmem:[%s9385_s25 + $0x1230] sm:$0xf] }
  0xf8   : > { %630 = vst [vmem:[%s9389_s26 + $0x390] sm:$0xf] %v629_v36  ;;  %v757_v36 = vld [vmem:[%s9385_s25 + $0x1240] sm:$0xf] }
  0xf9   : > { %632 = vst [vmem:[%s9389_s26 + $0x394] sm:$0xf] %v631_v37  ;;  %v759_v37 = vld [vmem:[%s9385_s25 + $0x1250] sm:$0xf] }
  0xfa   : > { %634 = vst [vmem:[%s9389_s26 + $0x398] sm:$0xf] %v633_v38  ;;  %v761_v38 = vld [vmem:[%s9385_s25 + $0x1260] sm:$0xf] }
  0xfb   : > { %636 = vst [vmem:[%s9389_s26 + $0x39c] sm:$0xf] %v635_v39  ;;  %v763_v39 = vld [vmem:[%s9385_s25 + $0x1270] sm:$0xf] }
  0xfc   : > { %638 = vst [vmem:[%s9389_s26 + $0x3a0] sm:$0xf] %v637_v40  ;;  %v765_v40 = vld [vmem:[%s9385_s25 + $0x1280] sm:$0xf] }
  0xfd   : > { %640 = vst [vmem:[%s9389_s26 + $0x3a4] sm:$0xf] %v639_v41  ;;  %v767_v41 = vld [vmem:[%s9385_s25 + $0x1290] sm:$0xf] }
  0xfe   : > { %642 = vst [vmem:[%s9389_s26 + $0x3a8] sm:$0xf] %v641_v42  ;;  %v769_v42 = vld [vmem:[%s9385_s25 + $0x12a0] sm:$0xf] }
  0xff   : > { %644 = vst [vmem:[%s9389_s26 + $0x3ac] sm:$0xf] %v643_v43  ;;  %v771_v43 = vld [vmem:[%s9385_s25 + $0x12b0] sm:$0xf] }
 0x100   : > { %646 = vst [vmem:[%s9389_s26 + $0x3b0] sm:$0xf] %v645_v44  ;;  %v773_v44 = vld [vmem:[%s9385_s25 + $0x12c0] sm:$0xf] }
 0x101   : > { %648 = vst [vmem:[%s9389_s26 + $0x3b4] sm:$0xf] %v647_v45  ;;  %v775_v45 = vld [vmem:[%s9385_s25 + $0x12d0] sm:$0xf] }
 0x102   : > { %650 = vst [vmem:[%s9389_s26 + $0x3b8] sm:$0xf] %v649_v46  ;;  %v777_v46 = vld [vmem:[%s9385_s25 + $0x12e0] sm:$0xf] }
 0x103   : > { %652 = vst [vmem:[%s9389_s26 + $0x3bc] sm:$0xf] %v651_v47  ;;  %v779_v47 = vld [vmem:[%s9385_s25 + $0x12f0] sm:$0xf] }
 0x104   : > { %654 = vst [vmem:[%s9389_s26 + $0x3c0] sm:$0xf] %v653_v48  ;;  %v781_v48 = vld [vmem:[%s9385_s25 + $0x1300] sm:$0xf] }
 0x105   : > { %656 = vst [vmem:[%s9389_s26 + $0x3c4] sm:$0xf] %v655_v49  ;;  %v783_v49 = vld [vmem:[%s9385_s25 + $0x1310] sm:$0xf] }
 0x106   : > { %658 = vst [vmem:[%s9389_s26 + $0x3c8] sm:$0xf] %v657_v50  ;;  %v785_v50 = vld [vmem:[%s9385_s25 + $0x1320] sm:$0xf] }
 0x107   : > { %660 = vst [vmem:[%s9389_s26 + $0x3cc] sm:$0xf] %v659_v51  ;;  %v787_v51 = vld [vmem:[%s9385_s25 + $0x1330] sm:$0xf] }
 0x108   : > { %662 = vst [vmem:[%s9389_s26 + $0x3d0] sm:$0xf] %v661_v52  ;;  %v789_v52 = vld [vmem:[%s9385_s25 + $0x1340] sm:$0xf] }
 0x109   : > { %664 = vst [vmem:[%s9389_s26 + $0x3d4] sm:$0xf] %v663_v53  ;;  %v791_v53 = vld [vmem:[%s9385_s25 + $0x1350] sm:$0xf] }
 0x10a   : > { %666 = vst [vmem:[%s9389_s26 + $0x3d8] sm:$0xf] %v665_v54  ;;  %v793_v54 = vld [vmem:[%s9385_s25 + $0x1360] sm:$0xf] }
 0x10b   : > { %668 = vst [vmem:[%s9389_s26 + $0x3dc] sm:$0xf] %v667_v55  ;;  %v795_v55 = vld [vmem:[%s9385_s25 + $0x1370] sm:$0xf] }
 0x10c   : > { %670 = vst [vmem:[%s9389_s26 + $0x3e0] sm:$0xf] %v669_v56  ;;  %v797_v56 = vld [vmem:[%s9385_s25 + $0x1380] sm:$0xf] }
 0x10d   : > { %672 = vst [vmem:[%s9389_s26 + $0x3e4] sm:$0xf] %v671_v57  ;;  %v799_v57 = vld [vmem:[%s9385_s25 + $0x1390] sm:$0xf] }
 0x10e   : > { %674 = vst [vmem:[%s9389_s26 + $0x3e8] sm:$0xf] %v673_v58  ;;  %v801_v58 = vld [vmem:[%s9385_s25 + $0x13a0] sm:$0xf] }
 0x10f   : > { %676 = vst [vmem:[%s9389_s26 + $0x3ec] sm:$0xf] %v675_v59  ;;  %v803_v59 = vld [vmem:[%s9385_s25 + $0x13b0] sm:$0xf] }
 0x110   : > { %678 = vst [vmem:[%s9389_s26 + $0x3f0] sm:$0xf] %v677_v60  ;;  %v805_v60 = vld [vmem:[%s9385_s25 + $0x13c0] sm:$0xf] }
 0x111   : > { %680 = vst [vmem:[%s9389_s26 + $0x3f4] sm:$0xf] %v679_v61  ;;  %v807_v61 = vld [vmem:[%s9385_s25 + $0x13d0] sm:$0xf] }
 0x112   : > { %682 = vst [vmem:[%s9389_s26 + $0x3f8] sm:$0xf] %v681_v62  ;;  %v809_v62 = vld [vmem:[%s9385_s25 + $0x13e0] sm:$0xf] }
 0x113   : > { %684 = vst [vmem:[%s9389_s26 + $0x3fc] sm:$0xf] %v683_v63  ;;  %v811_v63 = vld [vmem:[%s9385_s25 + $0x13f0] sm:$0xf] }
 0x114   : > { %686 = vst [vmem:[%s9389_s26 + $0x400] sm:$0xf] %v685_v0  ;;  %v813_v0 = vld [vmem:[%s9385_s25 + $0x1400] sm:$0xf] }
 0x115   : > { %688 = vst [vmem:[%s9389_s26 + $0x404] sm:$0xf] %v687_v1  ;;  %v815_v1 = vld [vmem:[%s9385_s25 + $0x1410] sm:$0xf] }
 0x116   : > { %690 = vst [vmem:[%s9389_s26 + $0x408] sm:$0xf] %v689_v2  ;;  %v817_v2 = vld [vmem:[%s9385_s25 + $0x1420] sm:$0xf] }
 0x117   : > { %692 = vst [vmem:[%s9389_s26 + $0x40c] sm:$0xf] %v691_v3  ;;  %v819_v3 = vld [vmem:[%s9385_s25 + $0x1430] sm:$0xf] }
 0x118   : > { %694 = vst [vmem:[%s9389_s26 + $0x410] sm:$0xf] %v693_v4  ;;  %v821_v4 = vld [vmem:[%s9385_s25 + $0x1440] sm:$0xf] }
 0x119   : > { %696 = vst [vmem:[%s9389_s26 + $0x414] sm:$0xf] %v695_v5  ;;  %v823_v5 = vld [vmem:[%s9385_s25 + $0x1450] sm:$0xf] }
 0x11a   : > { %698 = vst [vmem:[%s9389_s26 + $0x418] sm:$0xf] %v697_v6  ;;  %v825_v6 = vld [vmem:[%s9385_s25 + $0x1460] sm:$0xf] }
 0x11b   : > { %700 = vst [vmem:[%s9389_s26 + $0x41c] sm:$0xf] %v699_v7  ;;  %v827_v7 = vld [vmem:[%s9385_s25 + $0x1470] sm:$0xf] }
 0x11c   : > { %702 = vst [vmem:[%s9389_s26 + $0x420] sm:$0xf] %v701_v8  ;;  %v829_v8 = vld [vmem:[%s9385_s25 + $0x1480] sm:$0xf] }
 0x11d   : > { %704 = vst [vmem:[%s9389_s26 + $0x424] sm:$0xf] %v703_v9  ;;  %v831_v9 = vld [vmem:[%s9385_s25 + $0x1490] sm:$0xf] }
 0x11e   : > { %706 = vst [vmem:[%s9389_s26 + $0x428] sm:$0xf] %v705_v10  ;;  %v833_v10 = vld [vmem:[%s9385_s25 + $0x14a0] sm:$0xf] }
 0x11f   : > { %708 = vst [vmem:[%s9389_s26 + $0x42c] sm:$0xf] %v707_v11  ;;  %v835_v11 = vld [vmem:[%s9385_s25 + $0x14b0] sm:$0xf] }
 0x120   : > { %710 = vst [vmem:[%s9389_s26 + $0x430] sm:$0xf] %v709_v12  ;;  %v837_v12 = vld [vmem:[%s9385_s25 + $0x14c0] sm:$0xf] }
 0x121   : > { %712 = vst [vmem:[%s9389_s26 + $0x434] sm:$0xf] %v711_v13  ;;  %v839_v13 = vld [vmem:[%s9385_s25 + $0x14d0] sm:$0xf] }
 0x122   : > { %714 = vst [vmem:[%s9389_s26 + $0x438] sm:$0xf] %v713_v14  ;;  %v841_v14 = vld [vmem:[%s9385_s25 + $0x14e0] sm:$0xf] }
 0x123   : > { %716 = vst [vmem:[%s9389_s26 + $0x43c] sm:$0xf] %v715_v15  ;;  %v843_v15 = vld [vmem:[%s9385_s25 + $0x14f0] sm:$0xf] }
 0x124   : > { %718 = vst [vmem:[%s9389_s26 + $0x440] sm:$0xf] %v717_v16  ;;  %v845_v16 = vld [vmem:[%s9385_s25 + $0x1500] sm:$0xf] }
 0x125   : > { %720 = vst [vmem:[%s9389_s26 + $0x444] sm:$0xf] %v719_v17  ;;  %v847_v17 = vld [vmem:[%s9385_s25 + $0x1510] sm:$0xf] }
 0x126   : > { %722 = vst [vmem:[%s9389_s26 + $0x448] sm:$0xf] %v721_v18  ;;  %v849_v18 = vld [vmem:[%s9385_s25 + $0x1520] sm:$0xf] }
 0x127   : > { %724 = vst [vmem:[%s9389_s26 + $0x44c] sm:$0xf] %v723_v19  ;;  %v851_v19 = vld [vmem:[%s9385_s25 + $0x1530] sm:$0xf] }
 0x128   : > { %726 = vst [vmem:[%s9389_s26 + $0x450] sm:$0xf] %v725_v20  ;;  %v853_v20 = vld [vmem:[%s9385_s25 + $0x1540] sm:$0xf] }
 0x129   : > { %728 = vst [vmem:[%s9389_s26 + $0x454] sm:$0xf] %v727_v21  ;;  %v855_v21 = vld [vmem:[%s9385_s25 + $0x1550] sm:$0xf] }
 0x12a   : > { %730 = vst [vmem:[%s9389_s26 + $0x458] sm:$0xf] %v729_v22  ;;  %v857_v22 = vld [vmem:[%s9385_s25 + $0x1560] sm:$0xf] }
 0x12b   : > { %732 = vst [vmem:[%s9389_s26 + $0x45c] sm:$0xf] %v731_v23  ;;  %v859_v23 = vld [vmem:[%s9385_s25 + $0x1570] sm:$0xf] }
 0x12c   : > { %734 = vst [vmem:[%s9389_s26 + $0x460] sm:$0xf] %v733_v24  ;;  %v861_v24 = vld [vmem:[%s9385_s25 + $0x1580] sm:$0xf] }
 0x12d   : > { %736 = vst [vmem:[%s9389_s26 + $0x464] sm:$0xf] %v735_v25  ;;  %v863_v25 = vld [vmem:[%s9385_s25 + $0x1590] sm:$0xf] }
 0x12e   : > { %738 = vst [vmem:[%s9389_s26 + $0x468] sm:$0xf] %v737_v26  ;;  %v865_v26 = vld [vmem:[%s9385_s25 + $0x15a0] sm:$0xf] }
 0x12f   : > { %740 = vst [vmem:[%s9389_s26 + $0x46c] sm:$0xf] %v739_v27  ;;  %v867_v27 = vld [vmem:[%s9385_s25 + $0x15b0] sm:$0xf] }
 0x130   : > { %742 = vst [vmem:[%s9389_s26 + $0x470] sm:$0xf] %v741_v28  ;;  %v869_v28 = vld [vmem:[%s9385_s25 + $0x15c0] sm:$0xf] }
 0x131   : > { %744 = vst [vmem:[%s9389_s26 + $0x474] sm:$0xf] %v743_v29  ;;  %v871_v29 = vld [vmem:[%s9385_s25 + $0x15d0] sm:$0xf] }
 0x132   : > { %746 = vst [vmem:[%s9389_s26 + $0x478] sm:$0xf] %v745_v30  ;;  %v873_v30 = vld [vmem:[%s9385_s25 + $0x15e0] sm:$0xf] }
 0x133   : > { %748 = vst [vmem:[%s9389_s26 + $0x47c] sm:$0xf] %v747_v31  ;;  %v875_v31 = vld [vmem:[%s9385_s25 + $0x15f0] sm:$0xf] }
 0x134   : > { %750 = vst [vmem:[%s9389_s26 + $0x480] sm:$0xf] %v749_v32  ;;  %v877_v32 = vld [vmem:[%s9385_s25 + $0x1600] sm:$0xf] }
 0x135   : > { %752 = vst [vmem:[%s9389_s26 + $0x484] sm:$0xf] %v751_v33  ;;  %v879_v33 = vld [vmem:[%s9385_s25 + $0x1610] sm:$0xf] }
 0x136   : > { %754 = vst [vmem:[%s9389_s26 + $0x488] sm:$0xf] %v753_v34  ;;  %v881_v34 = vld [vmem:[%s9385_s25 + $0x1620] sm:$0xf] }
 0x137   : > { %756 = vst [vmem:[%s9389_s26 + $0x48c] sm:$0xf] %v755_v35  ;;  %v883_v35 = vld [vmem:[%s9385_s25 + $0x1630] sm:$0xf] }
 0x138   : > { %758 = vst [vmem:[%s9389_s26 + $0x490] sm:$0xf] %v757_v36  ;;  %v885_v36 = vld [vmem:[%s9385_s25 + $0x1640] sm:$0xf] }
 0x139   : > { %760 = vst [vmem:[%s9389_s26 + $0x494] sm:$0xf] %v759_v37  ;;  %v887_v37 = vld [vmem:[%s9385_s25 + $0x1650] sm:$0xf] }
 0x13a   : > { %762 = vst [vmem:[%s9389_s26 + $0x498] sm:$0xf] %v761_v38  ;;  %v889_v38 = vld [vmem:[%s9385_s25 + $0x1660] sm:$0xf] }
 0x13b   : > { %764 = vst [vmem:[%s9389_s26 + $0x49c] sm:$0xf] %v763_v39  ;;  %v891_v39 = vld [vmem:[%s9385_s25 + $0x1670] sm:$0xf] }
 0x13c   : > { %766 = vst [vmem:[%s9389_s26 + $0x4a0] sm:$0xf] %v765_v40  ;;  %v893_v40 = vld [vmem:[%s9385_s25 + $0x1680] sm:$0xf] }
 0x13d   : > { %768 = vst [vmem:[%s9389_s26 + $0x4a4] sm:$0xf] %v767_v41  ;;  %v895_v41 = vld [vmem:[%s9385_s25 + $0x1690] sm:$0xf] }
 0x13e   : > { %770 = vst [vmem:[%s9389_s26 + $0x4a8] sm:$0xf] %v769_v42  ;;  %v897_v42 = vld [vmem:[%s9385_s25 + $0x16a0] sm:$0xf] }
 0x13f   : > { %772 = vst [vmem:[%s9389_s26 + $0x4ac] sm:$0xf] %v771_v43  ;;  %v899_v43 = vld [vmem:[%s9385_s25 + $0x16b0] sm:$0xf] }
 0x140   : > { %774 = vst [vmem:[%s9389_s26 + $0x4b0] sm:$0xf] %v773_v44  ;;  %v901_v44 = vld [vmem:[%s9385_s25 + $0x16c0] sm:$0xf] }
 0x141   : > { %776 = vst [vmem:[%s9389_s26 + $0x4b4] sm:$0xf] %v775_v45  ;;  %v903_v45 = vld [vmem:[%s9385_s25 + $0x16d0] sm:$0xf] }
 0x142   : > { %778 = vst [vmem:[%s9389_s26 + $0x4b8] sm:$0xf] %v777_v46  ;;  %v905_v46 = vld [vmem:[%s9385_s25 + $0x16e0] sm:$0xf] }
 0x143   : > { %780 = vst [vmem:[%s9389_s26 + $0x4bc] sm:$0xf] %v779_v47  ;;  %v907_v47 = vld [vmem:[%s9385_s25 + $0x16f0] sm:$0xf] }
 0x144   : > { %782 = vst [vmem:[%s9389_s26 + $0x4c0] sm:$0xf] %v781_v48  ;;  %v909_v48 = vld [vmem:[%s9385_s25 + $0x1700] sm:$0xf] }
 0x145   : > { %784 = vst [vmem:[%s9389_s26 + $0x4c4] sm:$0xf] %v783_v49  ;;  %v911_v49 = vld [vmem:[%s9385_s25 + $0x1710] sm:$0xf] }
 0x146   : > { %786 = vst [vmem:[%s9389_s26 + $0x4c8] sm:$0xf] %v785_v50  ;;  %v913_v50 = vld [vmem:[%s9385_s25 + $0x1720] sm:$0xf] }
 0x147   : > { %788 = vst [vmem:[%s9389_s26 + $0x4cc] sm:$0xf] %v787_v51  ;;  %v915_v51 = vld [vmem:[%s9385_s25 + $0x1730] sm:$0xf] }
 0x148   : > { %790 = vst [vmem:[%s9389_s26 + $0x4d0] sm:$0xf] %v789_v52  ;;  %v917_v52 = vld [vmem:[%s9385_s25 + $0x1740] sm:$0xf] }
 0x149   : > { %792 = vst [vmem:[%s9389_s26 + $0x4d4] sm:$0xf] %v791_v53  ;;  %v919_v53 = vld [vmem:[%s9385_s25 + $0x1750] sm:$0xf] }
 0x14a   : > { %794 = vst [vmem:[%s9389_s26 + $0x4d8] sm:$0xf] %v793_v54  ;;  %v921_v54 = vld [vmem:[%s9385_s25 + $0x1760] sm:$0xf] }
 0x14b   : > { %796 = vst [vmem:[%s9389_s26 + $0x4dc] sm:$0xf] %v795_v55  ;;  %v923_v55 = vld [vmem:[%s9385_s25 + $0x1770] sm:$0xf] }
 0x14c   : > { %798 = vst [vmem:[%s9389_s26 + $0x4e0] sm:$0xf] %v797_v56  ;;  %v925_v56 = vld [vmem:[%s9385_s25 + $0x1780] sm:$0xf] }
 0x14d   : > { %800 = vst [vmem:[%s9389_s26 + $0x4e4] sm:$0xf] %v799_v57  ;;  %v927_v57 = vld [vmem:[%s9385_s25 + $0x1790] sm:$0xf] }
 0x14e   : > { %802 = vst [vmem:[%s9389_s26 + $0x4e8] sm:$0xf] %v801_v58  ;;  %v929_v58 = vld [vmem:[%s9385_s25 + $0x17a0] sm:$0xf] }
 0x14f   : > { %804 = vst [vmem:[%s9389_s26 + $0x4ec] sm:$0xf] %v803_v59  ;;  %v931_v59 = vld [vmem:[%s9385_s25 + $0x17b0] sm:$0xf] }
 0x150   : > { %806 = vst [vmem:[%s9389_s26 + $0x4f0] sm:$0xf] %v805_v60  ;;  %v933_v60 = vld [vmem:[%s9385_s25 + $0x17c0] sm:$0xf] }
 0x151   : > { %808 = vst [vmem:[%s9389_s26 + $0x4f4] sm:$0xf] %v807_v61  ;;  %v935_v61 = vld [vmem:[%s9385_s25 + $0x17d0] sm:$0xf] }
 0x152   : > { %810 = vst [vmem:[%s9389_s26 + $0x4f8] sm:$0xf] %v809_v62  ;;  %v937_v62 = vld [vmem:[%s9385_s25 + $0x17e0] sm:$0xf] }
 0x153   : > { %812 = vst [vmem:[%s9389_s26 + $0x4fc] sm:$0xf] %v811_v63  ;;  %v939_v63 = vld [vmem:[%s9385_s25 + $0x17f0] sm:$0xf] }
 0x154   : > { %814 = vst [vmem:[%s9389_s26 + $0x500] sm:$0xf] %v813_v0  ;;  %v941_v0 = vld [vmem:[%s9385_s25 + $0x1800] sm:$0xf] }
 0x155   : > { %816 = vst [vmem:[%s9389_s26 + $0x504] sm:$0xf] %v815_v1  ;;  %v943_v1 = vld [vmem:[%s9385_s25 + $0x1810] sm:$0xf] }
 0x156   : > { %818 = vst [vmem:[%s9389_s26 + $0x508] sm:$0xf] %v817_v2  ;;  %v945_v2 = vld [vmem:[%s9385_s25 + $0x1820] sm:$0xf] }
 0x157   : > { %820 = vst [vmem:[%s9389_s26 + $0x50c] sm:$0xf] %v819_v3  ;;  %v947_v3 = vld [vmem:[%s9385_s25 + $0x1830] sm:$0xf] }
 0x158   : > { %822 = vst [vmem:[%s9389_s26 + $0x510] sm:$0xf] %v821_v4  ;;  %v949_v4 = vld [vmem:[%s9385_s25 + $0x1840] sm:$0xf] }
 0x159   : > { %824 = vst [vmem:[%s9389_s26 + $0x514] sm:$0xf] %v823_v5  ;;  %v951_v5 = vld [vmem:[%s9385_s25 + $0x1850] sm:$0xf] }
 0x15a   : > { %826 = vst [vmem:[%s9389_s26 + $0x518] sm:$0xf] %v825_v6  ;;  %v953_v6 = vld [vmem:[%s9385_s25 + $0x1860] sm:$0xf] }
 0x15b   : > { %828 = vst [vmem:[%s9389_s26 + $0x51c] sm:$0xf] %v827_v7  ;;  %v955_v7 = vld [vmem:[%s9385_s25 + $0x1870] sm:$0xf] }
 0x15c   : > { %830 = vst [vmem:[%s9389_s26 + $0x520] sm:$0xf] %v829_v8  ;;  %v957_v8 = vld [vmem:[%s9385_s25 + $0x1880] sm:$0xf] }
 0x15d   : > { %832 = vst [vmem:[%s9389_s26 + $0x524] sm:$0xf] %v831_v9  ;;  %v959_v9 = vld [vmem:[%s9385_s25 + $0x1890] sm:$0xf] }
 0x15e   : > { %834 = vst [vmem:[%s9389_s26 + $0x528] sm:$0xf] %v833_v10  ;;  %v961_v10 = vld [vmem:[%s9385_s25 + $0x18a0] sm:$0xf] }
 0x15f   : > { %836 = vst [vmem:[%s9389_s26 + $0x52c] sm:$0xf] %v835_v11  ;;  %v963_v11 = vld [vmem:[%s9385_s25 + $0x18b0] sm:$0xf] }
 0x160   : > { %838 = vst [vmem:[%s9389_s26 + $0x530] sm:$0xf] %v837_v12  ;;  %v965_v12 = vld [vmem:[%s9385_s25 + $0x18c0] sm:$0xf] }
 0x161   : > { %840 = vst [vmem:[%s9389_s26 + $0x534] sm:$0xf] %v839_v13  ;;  %v967_v13 = vld [vmem:[%s9385_s25 + $0x18d0] sm:$0xf] }
 0x162   : > { %842 = vst [vmem:[%s9389_s26 + $0x538] sm:$0xf] %v841_v14  ;;  %v969_v14 = vld [vmem:[%s9385_s25 + $0x18e0] sm:$0xf] }
 0x163   : > { %844 = vst [vmem:[%s9389_s26 + $0x53c] sm:$0xf] %v843_v15  ;;  %v971_v15 = vld [vmem:[%s9385_s25 + $0x18f0] sm:$0xf] }
 0x164   : > { %846 = vst [vmem:[%s9389_s26 + $0x540] sm:$0xf] %v845_v16  ;;  %v973_v16 = vld [vmem:[%s9385_s25 + $0x1900] sm:$0xf] }
 0x165   : > { %848 = vst [vmem:[%s9389_s26 + $0x544] sm:$0xf] %v847_v17  ;;  %v975_v17 = vld [vmem:[%s9385_s25 + $0x1910] sm:$0xf] }
 0x166   : > { %850 = vst [vmem:[%s9389_s26 + $0x548] sm:$0xf] %v849_v18  ;;  %v977_v18 = vld [vmem:[%s9385_s25 + $0x1920] sm:$0xf] }
 0x167   : > { %852 = vst [vmem:[%s9389_s26 + $0x54c] sm:$0xf] %v851_v19  ;;  %v979_v19 = vld [vmem:[%s9385_s25 + $0x1930] sm:$0xf] }
 0x168   : > { %854 = vst [vmem:[%s9389_s26 + $0x550] sm:$0xf] %v853_v20  ;;  %v981_v20 = vld [vmem:[%s9385_s25 + $0x1940] sm:$0xf] }
 0x169   : > { %856 = vst [vmem:[%s9389_s26 + $0x554] sm:$0xf] %v855_v21  ;;  %v983_v21 = vld [vmem:[%s9385_s25 + $0x1950] sm:$0xf] }
 0x16a   : > { %858 = vst [vmem:[%s9389_s26 + $0x558] sm:$0xf] %v857_v22  ;;  %v985_v22 = vld [vmem:[%s9385_s25 + $0x1960] sm:$0xf] }
 0x16b   : > { %860 = vst [vmem:[%s9389_s26 + $0x55c] sm:$0xf] %v859_v23  ;;  %v987_v23 = vld [vmem:[%s9385_s25 + $0x1970] sm:$0xf] }
 0x16c   : > { %862 = vst [vmem:[%s9389_s26 + $0x560] sm:$0xf] %v861_v24  ;;  %v989_v24 = vld [vmem:[%s9385_s25 + $0x1980] sm:$0xf] }
 0x16d   : > { %864 = vst [vmem:[%s9389_s26 + $0x564] sm:$0xf] %v863_v25  ;;  %v991_v25 = vld [vmem:[%s9385_s25 + $0x1990] sm:$0xf] }
 0x16e   : > { %866 = vst [vmem:[%s9389_s26 + $0x568] sm:$0xf] %v865_v26  ;;  %v993_v26 = vld [vmem:[%s9385_s25 + $0x19a0] sm:$0xf] }
 0x16f   : > { %868 = vst [vmem:[%s9389_s26 + $0x56c] sm:$0xf] %v867_v27  ;;  %v995_v27 = vld [vmem:[%s9385_s25 + $0x19b0] sm:$0xf] }
 0x170   : > { %870 = vst [vmem:[%s9389_s26 + $0x570] sm:$0xf] %v869_v28  ;;  %v997_v28 = vld [vmem:[%s9385_s25 + $0x19c0] sm:$0xf] }
 0x171   : > { %872 = vst [vmem:[%s9389_s26 + $0x574] sm:$0xf] %v871_v29  ;;  %v999_v29 = vld [vmem:[%s9385_s25 + $0x19d0] sm:$0xf] }
 0x172   : > { %874 = vst [vmem:[%s9389_s26 + $0x578] sm:$0xf] %v873_v30  ;;  %v1001_v30 = vld [vmem:[%s9385_s25 + $0x19e0] sm:$0xf] }
 0x173   : > { %876 = vst [vmem:[%s9389_s26 + $0x57c] sm:$0xf] %v875_v31  ;;  %v1003_v31 = vld [vmem:[%s9385_s25 + $0x19f0] sm:$0xf] }
 0x174   : > { %878 = vst [vmem:[%s9389_s26 + $0x580] sm:$0xf] %v877_v32  ;;  %v1005_v32 = vld [vmem:[%s9385_s25 + $0x1a00] sm:$0xf] }
 0x175   : > { %880 = vst [vmem:[%s9389_s26 + $0x584] sm:$0xf] %v879_v33  ;;  %v1007_v33 = vld [vmem:[%s9385_s25 + $0x1a10] sm:$0xf] }
 0x176   : > { %882 = vst [vmem:[%s9389_s26 + $0x588] sm:$0xf] %v881_v34  ;;  %v1009_v34 = vld [vmem:[%s9385_s25 + $0x1a20] sm:$0xf] }
 0x177   : > { %884 = vst [vmem:[%s9389_s26 + $0x58c] sm:$0xf] %v883_v35  ;;  %v1011_v35 = vld [vmem:[%s9385_s25 + $0x1a30] sm:$0xf] }
 0x178   : > { %886 = vst [vmem:[%s9389_s26 + $0x590] sm:$0xf] %v885_v36  ;;  %v1013_v36 = vld [vmem:[%s9385_s25 + $0x1a40] sm:$0xf] }
 0x179   : > { %888 = vst [vmem:[%s9389_s26 + $0x594] sm:$0xf] %v887_v37  ;;  %v1015_v37 = vld [vmem:[%s9385_s25 + $0x1a50] sm:$0xf] }
 0x17a   : > { %890 = vst [vmem:[%s9389_s26 + $0x598] sm:$0xf] %v889_v38  ;;  %v1017_v38 = vld [vmem:[%s9385_s25 + $0x1a60] sm:$0xf] }
 0x17b   : > { %892 = vst [vmem:[%s9389_s26 + $0x59c] sm:$0xf] %v891_v39  ;;  %v1019_v39 = vld [vmem:[%s9385_s25 + $0x1a70] sm:$0xf] }
 0x17c   : > { %894 = vst [vmem:[%s9389_s26 + $0x5a0] sm:$0xf] %v893_v40  ;;  %v1021_v40 = vld [vmem:[%s9385_s25 + $0x1a80] sm:$0xf] }
 0x17d   : > { %896 = vst [vmem:[%s9389_s26 + $0x5a4] sm:$0xf] %v895_v41  ;;  %v1023_v41 = vld [vmem:[%s9385_s25 + $0x1a90] sm:$0xf] }
 0x17e   : > { %898 = vst [vmem:[%s9389_s26 + $0x5a8] sm:$0xf] %v897_v42  ;;  %v1025_v42 = vld [vmem:[%s9385_s25 + $0x1aa0] sm:$0xf] }
 0x17f   : > { %900 = vst [vmem:[%s9389_s26 + $0x5ac] sm:$0xf] %v899_v43  ;;  %v1027_v43 = vld [vmem:[%s9385_s25 + $0x1ab0] sm:$0xf] }
 0x180   : > { %902 = vst [vmem:[%s9389_s26 + $0x5b0] sm:$0xf] %v901_v44  ;;  %v1029_v44 = vld [vmem:[%s9385_s25 + $0x1ac0] sm:$0xf] }
 0x181   : > { %904 = vst [vmem:[%s9389_s26 + $0x5b4] sm:$0xf] %v903_v45  ;;  %v1031_v45 = vld [vmem:[%s9385_s25 + $0x1ad0] sm:$0xf] }
 0x182   : > { %906 = vst [vmem:[%s9389_s26 + $0x5b8] sm:$0xf] %v905_v46  ;;  %v1033_v46 = vld [vmem:[%s9385_s25 + $0x1ae0] sm:$0xf] }
 0x183   : > { %908 = vst [vmem:[%s9389_s26 + $0x5bc] sm:$0xf] %v907_v47  ;;  %v1035_v47 = vld [vmem:[%s9385_s25 + $0x1af0] sm:$0xf] }
 0x184   : > { %910 = vst [vmem:[%s9389_s26 + $0x5c0] sm:$0xf] %v909_v48  ;;  %v1037_v48 = vld [vmem:[%s9385_s25 + $0x1b00] sm:$0xf] }
 0x185   : > { %912 = vst [vmem:[%s9389_s26 + $0x5c4] sm:$0xf] %v911_v49  ;;  %v1039_v49 = vld [vmem:[%s9385_s25 + $0x1b10] sm:$0xf] }
 0x186   : > { %914 = vst [vmem:[%s9389_s26 + $0x5c8] sm:$0xf] %v913_v50  ;;  %v1041_v50 = vld [vmem:[%s9385_s25 + $0x1b20] sm:$0xf] }
 0x187   : > { %916 = vst [vmem:[%s9389_s26 + $0x5cc] sm:$0xf] %v915_v51  ;;  %v1043_v51 = vld [vmem:[%s9385_s25 + $0x1b30] sm:$0xf] }
 0x188   : > { %918 = vst [vmem:[%s9389_s26 + $0x5d0] sm:$0xf] %v917_v52  ;;  %v1045_v52 = vld [vmem:[%s9385_s25 + $0x1b40] sm:$0xf] }
 0x189   : > { %920 = vst [vmem:[%s9389_s26 + $0x5d4] sm:$0xf] %v919_v53  ;;  %v1047_v53 = vld [vmem:[%s9385_s25 + $0x1b50] sm:$0xf] }
 0x18a   : > { %922 = vst [vmem:[%s9389_s26 + $0x5d8] sm:$0xf] %v921_v54  ;;  %v1049_v54 = vld [vmem:[%s9385_s25 + $0x1b60] sm:$0xf] }
 0x18b   : > { %924 = vst [vmem:[%s9389_s26 + $0x5dc] sm:$0xf] %v923_v55  ;;  %v1051_v55 = vld [vmem:[%s9385_s25 + $0x1b70] sm:$0xf] }
 0x18c   : > { %926 = vst [vmem:[%s9389_s26 + $0x5e0] sm:$0xf] %v925_v56  ;;  %v1053_v56 = vld [vmem:[%s9385_s25 + $0x1b80] sm:$0xf] }
 0x18d   : > { %928 = vst [vmem:[%s9389_s26 + $0x5e4] sm:$0xf] %v927_v57  ;;  %v1055_v57 = vld [vmem:[%s9385_s25 + $0x1b90] sm:$0xf] }
 0x18e   : > { %930 = vst [vmem:[%s9389_s26 + $0x5e8] sm:$0xf] %v929_v58  ;;  %v1057_v58 = vld [vmem:[%s9385_s25 + $0x1ba0] sm:$0xf] }
 0x18f   : > { %932 = vst [vmem:[%s9389_s26 + $0x5ec] sm:$0xf] %v931_v59  ;;  %v1059_v59 = vld [vmem:[%s9385_s25 + $0x1bb0] sm:$0xf] }
 0x190   : > { %934 = vst [vmem:[%s9389_s26 + $0x5f0] sm:$0xf] %v933_v60  ;;  %v1061_v60 = vld [vmem:[%s9385_s25 + $0x1bc0] sm:$0xf] }
 0x191   : > { %936 = vst [vmem:[%s9389_s26 + $0x5f4] sm:$0xf] %v935_v61  ;;  %v1063_v61 = vld [vmem:[%s9385_s25 + $0x1bd0] sm:$0xf] }
 0x192   : > { %938 = vst [vmem:[%s9389_s26 + $0x5f8] sm:$0xf] %v937_v62  ;;  %v1065_v62 = vld [vmem:[%s9385_s25 + $0x1be0] sm:$0xf] }
 0x193   : > { %940 = vst [vmem:[%s9389_s26 + $0x5fc] sm:$0xf] %v939_v63  ;;  %v1067_v63 = vld [vmem:[%s9385_s25 + $0x1bf0] sm:$0xf] }
 0x194   : > { %942 = vst [vmem:[%s9389_s26 + $0x600] sm:$0xf] %v941_v0  ;;  %v1069_v0 = vld [vmem:[%s9385_s25 + $0x1c00] sm:$0xf] }
 0x195   : > { %944 = vst [vmem:[%s9389_s26 + $0x604] sm:$0xf] %v943_v1  ;;  %v1071_v1 = vld [vmem:[%s9385_s25 + $0x1c10] sm:$0xf] }
 0x196   : > { %946 = vst [vmem:[%s9389_s26 + $0x608] sm:$0xf] %v945_v2  ;;  %v1073_v2 = vld [vmem:[%s9385_s25 + $0x1c20] sm:$0xf] }
 0x197   : > { %948 = vst [vmem:[%s9389_s26 + $0x60c] sm:$0xf] %v947_v3  ;;  %v1075_v3 = vld [vmem:[%s9385_s25 + $0x1c30] sm:$0xf] }
 0x198   : > { %950 = vst [vmem:[%s9389_s26 + $0x610] sm:$0xf] %v949_v4  ;;  %v1077_v4 = vld [vmem:[%s9385_s25 + $0x1c40] sm:$0xf] }
 0x199   : > { %952 = vst [vmem:[%s9389_s26 + $0x614] sm:$0xf] %v951_v5  ;;  %v1079_v5 = vld [vmem:[%s9385_s25 + $0x1c50] sm:$0xf] }
 0x19a   : > { %954 = vst [vmem:[%s9389_s26 + $0x618] sm:$0xf] %v953_v6  ;;  %v1081_v6 = vld [vmem:[%s9385_s25 + $0x1c60] sm:$0xf] }
 0x19b   : > { %956 = vst [vmem:[%s9389_s26 + $0x61c] sm:$0xf] %v955_v7  ;;  %v1083_v7 = vld [vmem:[%s9385_s25 + $0x1c70] sm:$0xf] }
 0x19c   : > { %958 = vst [vmem:[%s9389_s26 + $0x620] sm:$0xf] %v957_v8  ;;  %v1085_v8 = vld [vmem:[%s9385_s25 + $0x1c80] sm:$0xf] }
 0x19d   : > { %960 = vst [vmem:[%s9389_s26 + $0x624] sm:$0xf] %v959_v9  ;;  %v1087_v9 = vld [vmem:[%s9385_s25 + $0x1c90] sm:$0xf] }
 0x19e   : > { %962 = vst [vmem:[%s9389_s26 + $0x628] sm:$0xf] %v961_v10  ;;  %v1089_v10 = vld [vmem:[%s9385_s25 + $0x1ca0] sm:$0xf] }
 0x19f   : > { %964 = vst [vmem:[%s9389_s26 + $0x62c] sm:$0xf] %v963_v11  ;;  %v1091_v11 = vld [vmem:[%s9385_s25 + $0x1cb0] sm:$0xf] }
 0x1a0   : > { %966 = vst [vmem:[%s9389_s26 + $0x630] sm:$0xf] %v965_v12  ;;  %v1093_v12 = vld [vmem:[%s9385_s25 + $0x1cc0] sm:$0xf] }
 0x1a1   : > { %968 = vst [vmem:[%s9389_s26 + $0x634] sm:$0xf] %v967_v13  ;;  %v1095_v13 = vld [vmem:[%s9385_s25 + $0x1cd0] sm:$0xf] }
 0x1a2   : > { %970 = vst [vmem:[%s9389_s26 + $0x638] sm:$0xf] %v969_v14  ;;  %v1097_v14 = vld [vmem:[%s9385_s25 + $0x1ce0] sm:$0xf] }
 0x1a3   : > { %972 = vst [vmem:[%s9389_s26 + $0x63c] sm:$0xf] %v971_v15  ;;  %v1099_v15 = vld [vmem:[%s9385_s25 + $0x1cf0] sm:$0xf] }
 0x1a4   : > { %974 = vst [vmem:[%s9389_s26 + $0x640] sm:$0xf] %v973_v16  ;;  %v1101_v16 = vld [vmem:[%s9385_s25 + $0x1d00] sm:$0xf] }
 0x1a5   : > { %976 = vst [vmem:[%s9389_s26 + $0x644] sm:$0xf] %v975_v17  ;;  %v1103_v17 = vld [vmem:[%s9385_s25 + $0x1d10] sm:$0xf] }
 0x1a6   : > { %978 = vst [vmem:[%s9389_s26 + $0x648] sm:$0xf] %v977_v18  ;;  %v1105_v18 = vld [vmem:[%s9385_s25 + $0x1d20] sm:$0xf] }
 0x1a7   : > { %980 = vst [vmem:[%s9389_s26 + $0x64c] sm:$0xf] %v979_v19  ;;  %v1107_v19 = vld [vmem:[%s9385_s25 + $0x1d30] sm:$0xf] }
 0x1a8   : > { %982 = vst [vmem:[%s9389_s26 + $0x650] sm:$0xf] %v981_v20  ;;  %v1109_v20 = vld [vmem:[%s9385_s25 + $0x1d40] sm:$0xf] }
 0x1a9   : > { %984 = vst [vmem:[%s9389_s26 + $0x654] sm:$0xf] %v983_v21  ;;  %v1111_v21 = vld [vmem:[%s9385_s25 + $0x1d50] sm:$0xf] }
 0x1aa   : > { %986 = vst [vmem:[%s9389_s26 + $0x658] sm:$0xf] %v985_v22  ;;  %v1113_v22 = vld [vmem:[%s9385_s25 + $0x1d60] sm:$0xf] }
 0x1ab   : > { %988 = vst [vmem:[%s9389_s26 + $0x65c] sm:$0xf] %v987_v23  ;;  %v1115_v23 = vld [vmem:[%s9385_s25 + $0x1d70] sm:$0xf] }
 0x1ac   : > { %990 = vst [vmem:[%s9389_s26 + $0x660] sm:$0xf] %v989_v24  ;;  %v1117_v24 = vld [vmem:[%s9385_s25 + $0x1d80] sm:$0xf] }
 0x1ad   : > { %992 = vst [vmem:[%s9389_s26 + $0x664] sm:$0xf] %v991_v25  ;;  %v1119_v25 = vld [vmem:[%s9385_s25 + $0x1d90] sm:$0xf] }
 0x1ae   : > { %994 = vst [vmem:[%s9389_s26 + $0x668] sm:$0xf] %v993_v26  ;;  %v1121_v26 = vld [vmem:[%s9385_s25 + $0x1da0] sm:$0xf] }
 0x1af   : > { %996 = vst [vmem:[%s9389_s26 + $0x66c] sm:$0xf] %v995_v27  ;;  %v1123_v27 = vld [vmem:[%s9385_s25 + $0x1db0] sm:$0xf] }
 0x1b0   : > { %998 = vst [vmem:[%s9389_s26 + $0x670] sm:$0xf] %v997_v28  ;;  %v1125_v28 = vld [vmem:[%s9385_s25 + $0x1dc0] sm:$0xf] }
 0x1b1   : > { %1000 = vst [vmem:[%s9389_s26 + $0x674] sm:$0xf] %v999_v29  ;;  %v1127_v29 = vld [vmem:[%s9385_s25 + $0x1dd0] sm:$0xf] }
 0x1b2   : > { %1002 = vst [vmem:[%s9389_s26 + $0x678] sm:$0xf] %v1001_v30  ;;  %v1129_v30 = vld [vmem:[%s9385_s25 + $0x1de0] sm:$0xf] }
 0x1b3   : > { %1004 = vst [vmem:[%s9389_s26 + $0x67c] sm:$0xf] %v1003_v31  ;;  %v1131_v31 = vld [vmem:[%s9385_s25 + $0x1df0] sm:$0xf] }
 0x1b4   : > { %1006 = vst [vmem:[%s9389_s26 + $0x680] sm:$0xf] %v1005_v32  ;;  %v1133_v32 = vld [vmem:[%s9385_s25 + $0x1e00] sm:$0xf] }
 0x1b5   : > { %1008 = vst [vmem:[%s9389_s26 + $0x684] sm:$0xf] %v1007_v33  ;;  %v1135_v33 = vld [vmem:[%s9385_s25 + $0x1e10] sm:$0xf] }
 0x1b6   : > { %1010 = vst [vmem:[%s9389_s26 + $0x688] sm:$0xf] %v1009_v34  ;;  %v1137_v34 = vld [vmem:[%s9385_s25 + $0x1e20] sm:$0xf] }
 0x1b7   : > { %1012 = vst [vmem:[%s9389_s26 + $0x68c] sm:$0xf] %v1011_v35  ;;  %v1139_v35 = vld [vmem:[%s9385_s25 + $0x1e30] sm:$0xf] }
 0x1b8   : > { %1014 = vst [vmem:[%s9389_s26 + $0x690] sm:$0xf] %v1013_v36  ;;  %v1141_v36 = vld [vmem:[%s9385_s25 + $0x1e40] sm:$0xf] }
 0x1b9   : > { %1016 = vst [vmem:[%s9389_s26 + $0x694] sm:$0xf] %v1015_v37  ;;  %v1143_v37 = vld [vmem:[%s9385_s25 + $0x1e50] sm:$0xf] }
 0x1ba   : > { %1018 = vst [vmem:[%s9389_s26 + $0x698] sm:$0xf] %v1017_v38  ;;  %v1145_v38 = vld [vmem:[%s9385_s25 + $0x1e60] sm:$0xf] }
 0x1bb   : > { %1020 = vst [vmem:[%s9389_s26 + $0x69c] sm:$0xf] %v1019_v39  ;;  %v1147_v39 = vld [vmem:[%s9385_s25 + $0x1e70] sm:$0xf] }
 0x1bc   : > { %1022 = vst [vmem:[%s9389_s26 + $0x6a0] sm:$0xf] %v1021_v40  ;;  %v1149_v40 = vld [vmem:[%s9385_s25 + $0x1e80] sm:$0xf] }
 0x1bd   : > { %1024 = vst [vmem:[%s9389_s26 + $0x6a4] sm:$0xf] %v1023_v41  ;;  %v1151_v41 = vld [vmem:[%s9385_s25 + $0x1e90] sm:$0xf] }
 0x1be   : > { %1026 = vst [vmem:[%s9389_s26 + $0x6a8] sm:$0xf] %v1025_v42  ;;  %v1153_v42 = vld [vmem:[%s9385_s25 + $0x1ea0] sm:$0xf] }
 0x1bf   : > { %1028 = vst [vmem:[%s9389_s26 + $0x6ac] sm:$0xf] %v1027_v43  ;;  %v1155_v43 = vld [vmem:[%s9385_s25 + $0x1eb0] sm:$0xf] }
 0x1c0   : > { %1030 = vst [vmem:[%s9389_s26 + $0x6b0] sm:$0xf] %v1029_v44  ;;  %v1157_v44 = vld [vmem:[%s9385_s25 + $0x1ec0] sm:$0xf] }
 0x1c1   : > { %1032 = vst [vmem:[%s9389_s26 + $0x6b4] sm:$0xf] %v1031_v45  ;;  %v1159_v45 = vld [vmem:[%s9385_s25 + $0x1ed0] sm:$0xf] }
 0x1c2   : > { %1034 = vst [vmem:[%s9389_s26 + $0x6b8] sm:$0xf] %v1033_v46  ;;  %v1161_v46 = vld [vmem:[%s9385_s25 + $0x1ee0] sm:$0xf] }
 0x1c3   : > { %1036 = vst [vmem:[%s9389_s26 + $0x6bc] sm:$0xf] %v1035_v47  ;;  %v1163_v47 = vld [vmem:[%s9385_s25 + $0x1ef0] sm:$0xf] }
 0x1c4   : > { %1038 = vst [vmem:[%s9389_s26 + $0x6c0] sm:$0xf] %v1037_v48  ;;  %v1165_v48 = vld [vmem:[%s9385_s25 + $0x1f00] sm:$0xf] }
 0x1c5   : > { %1040 = vst [vmem:[%s9389_s26 + $0x6c4] sm:$0xf] %v1039_v49  ;;  %v1167_v49 = vld [vmem:[%s9385_s25 + $0x1f10] sm:$0xf] }
 0x1c6   : > { %1042 = vst [vmem:[%s9389_s26 + $0x6c8] sm:$0xf] %v1041_v50  ;;  %v1169_v50 = vld [vmem:[%s9385_s25 + $0x1f20] sm:$0xf] }
 0x1c7   : > { %1044 = vst [vmem:[%s9389_s26 + $0x6cc] sm:$0xf] %v1043_v51  ;;  %v1171_v51 = vld [vmem:[%s9385_s25 + $0x1f30] sm:$0xf] }
 0x1c8   : > { %1046 = vst [vmem:[%s9389_s26 + $0x6d0] sm:$0xf] %v1045_v52  ;;  %v1173_v52 = vld [vmem:[%s9385_s25 + $0x1f40] sm:$0xf] }
 0x1c9   : > { %1048 = vst [vmem:[%s9389_s26 + $0x6d4] sm:$0xf] %v1047_v53  ;;  %v1175_v53 = vld [vmem:[%s9385_s25 + $0x1f50] sm:$0xf] }
 0x1ca   : > { %1050 = vst [vmem:[%s9389_s26 + $0x6d8] sm:$0xf] %v1049_v54  ;;  %v1177_v54 = vld [vmem:[%s9385_s25 + $0x1f60] sm:$0xf] }
 0x1cb   : > { %1052 = vst [vmem:[%s9389_s26 + $0x6dc] sm:$0xf] %v1051_v55  ;;  %v1179_v55 = vld [vmem:[%s9385_s25 + $0x1f70] sm:$0xf] }
 0x1cc   : > { %1054 = vst [vmem:[%s9389_s26 + $0x6e0] sm:$0xf] %v1053_v56  ;;  %v1181_v56 = vld [vmem:[%s9385_s25 + $0x1f80] sm:$0xf] }
 0x1cd   : > { %1056 = vst [vmem:[%s9389_s26 + $0x6e4] sm:$0xf] %v1055_v57  ;;  %v1183_v57 = vld [vmem:[%s9385_s25 + $0x1f90] sm:$0xf] }
 0x1ce   : > { %1058 = vst [vmem:[%s9389_s26 + $0x6e8] sm:$0xf] %v1057_v58  ;;  %v1185_v58 = vld [vmem:[%s9385_s25 + $0x1fa0] sm:$0xf] }
 0x1cf   : > { %1060 = vst [vmem:[%s9389_s26 + $0x6ec] sm:$0xf] %v1059_v59  ;;  %v1187_v59 = vld [vmem:[%s9385_s25 + $0x1fb0] sm:$0xf] }
 0x1d0   : > { %1062 = vst [vmem:[%s9389_s26 + $0x6f0] sm:$0xf] %v1061_v60  ;;  %v1189_v60 = vld [vmem:[%s9385_s25 + $0x1fc0] sm:$0xf] }
 0x1d1   : > { %1064 = vst [vmem:[%s9389_s26 + $0x6f4] sm:$0xf] %v1063_v61  ;;  %v1191_v61 = vld [vmem:[%s9385_s25 + $0x1fd0] sm:$0xf] }
 0x1d2   : > { %1066 = vst [vmem:[%s9389_s26 + $0x6f8] sm:$0xf] %v1065_v62  ;;  %v1193_v62 = vld [vmem:[%s9385_s25 + $0x1fe0] sm:$0xf] }
 0x1d3   : > { %1068 = vst [vmem:[%s9389_s26 + $0x6fc] sm:$0xf] %v1067_v63  ;;  %v1195_v63 = vld [vmem:[%s9385_s25 + $0x1ff0] sm:$0xf] }
 0x1d4   : > { %1070 = vst [vmem:[%s9389_s26 + $0x700] sm:$0xf] %v1069_v0 }
 0x1d5   : > { %1072 = vst [vmem:[%s9389_s26 + $0x704] sm:$0xf] %v1071_v1 }
 0x1d6   : > { %1074 = vst [vmem:[%s9389_s26 + $0x708] sm:$0xf] %v1073_v2 }
 0x1d7   : > { %1076 = vst [vmem:[%s9389_s26 + $0x70c] sm:$0xf] %v1075_v3 }
 0x1d8   : > { %1078 = vst [vmem:[%s9389_s26 + $0x710] sm:$0xf] %v1077_v4 }
 0x1d9   : > { %1080 = vst [vmem:[%s9389_s26 + $0x714] sm:$0xf] %v1079_v5 }
 0x1da   : > { %1082 = vst [vmem:[%s9389_s26 + $0x718] sm:$0xf] %v1081_v6 }
 0x1db   : > { %1084 = vst [vmem:[%s9389_s26 + $0x71c] sm:$0xf] %v1083_v7 }
 0x1dc   : > { %1086 = vst [vmem:[%s9389_s26 + $0x720] sm:$0xf] %v1085_v8 }
 0x1dd   : > { %1088 = vst [vmem:[%s9389_s26 + $0x724] sm:$0xf] %v1087_v9 }
 0x1de   : > { %1090 = vst [vmem:[%s9389_s26 + $0x728] sm:$0xf] %v1089_v10 }
 0x1df   : > { %1092 = vst [vmem:[%s9389_s26 + $0x72c] sm:$0xf] %v1091_v11 }
 0x1e0   : > { %1094 = vst [vmem:[%s9389_s26 + $0x730] sm:$0xf] %v1093_v12 }
 0x1e1   : > { %1096 = vst [vmem:[%s9389_s26 + $0x734] sm:$0xf] %v1095_v13 }
 0x1e2   : > { %1098 = vst [vmem:[%s9389_s26 + $0x738] sm:$0xf] %v1097_v14 }
 0x1e3   : > { %1100 = vst [vmem:[%s9389_s26 + $0x73c] sm:$0xf] %v1099_v15 }
 0x1e4   : > { %1102 = vst [vmem:[%s9389_s26 + $0x740] sm:$0xf] %v1101_v16 }
 0x1e5   : > { %1104 = vst [vmem:[%s9389_s26 + $0x744] sm:$0xf] %v1103_v17 }
 0x1e6   : > { %1106 = vst [vmem:[%s9389_s26 + $0x748] sm:$0xf] %v1105_v18 }
 0x1e7   : > { %1108 = vst [vmem:[%s9389_s26 + $0x74c] sm:$0xf] %v1107_v19 }
 0x1e8   : > { %1110 = vst [vmem:[%s9389_s26 + $0x750] sm:$0xf] %v1109_v20 }
 0x1e9   : > { %1112 = vst [vmem:[%s9389_s26 + $0x754] sm:$0xf] %v1111_v21 }
 0x1ea   : > { %1114 = vst [vmem:[%s9389_s26 + $0x758] sm:$0xf] %v1113_v22 }
 0x1eb   : > { %1116 = vst [vmem:[%s9389_s26 + $0x75c] sm:$0xf] %v1115_v23 }
 0x1ec   : > { %1118 = vst [vmem:[%s9389_s26 + $0x760] sm:$0xf] %v1117_v24 }
 0x1ed   : > { %1120 = vst [vmem:[%s9389_s26 + $0x764] sm:$0xf] %v1119_v25 }
 0x1ee   : > { %1122 = vst [vmem:[%s9389_s26 + $0x768] sm:$0xf] %v1121_v26 }
 0x1ef   : > { %1124 = vst [vmem:[%s9389_s26 + $0x76c] sm:$0xf] %v1123_v27 }
 0x1f0   : > { %1126 = vst [vmem:[%s9389_s26 + $0x770] sm:$0xf] %v1125_v28 }
 0x1f1   : > { %1128 = vst [vmem:[%s9389_s26 + $0x774] sm:$0xf] %v1127_v29 }
 0x1f2   : > { %1130 = vst [vmem:[%s9389_s26 + $0x778] sm:$0xf] %v1129_v30 }
 0x1f3   : > { %1132 = vst [vmem:[%s9389_s26 + $0x77c] sm:$0xf] %v1131_v31 }
 0x1f4   : > { %1134 = vst [vmem:[%s9389_s26 + $0x780] sm:$0xf] %v1133_v32 }
 0x1f5   : > { %1136 = vst [vmem:[%s9389_s26 + $0x784] sm:$0xf] %v1135_v33 }
 0x1f6   : > { %1138 = vst [vmem:[%s9389_s26 + $0x788] sm:$0xf] %v1137_v34 }
 0x1f7   : > { %1140 = vst [vmem:[%s9389_s26 + $0x78c] sm:$0xf] %v1139_v35 }
 0x1f8   : > { %1142 = vst [vmem:[%s9389_s26 + $0x790] sm:$0xf] %v1141_v36 }
 0x1f9   : > { %1144 = vst [vmem:[%s9389_s26 + $0x794] sm:$0xf] %v1143_v37 }
 0x1fa   : > { %1146 = vst [vmem:[%s9389_s26 + $0x798] sm:$0xf] %v1145_v38 }
 0x1fb   : > { %1148 = vst [vmem:[%s9389_s26 + $0x79c] sm:$0xf] %v1147_v39 }
 0x1fc   : > { %1150 = vst [vmem:[%s9389_s26 + $0x7a0] sm:$0xf] %v1149_v40 }
 0x1fd   : > { %1152 = vst [vmem:[%s9389_s26 + $0x7a4] sm:$0xf] %v1151_v41 }
 0x1fe   : > { %1154 = vst [vmem:[%s9389_s26 + $0x7a8] sm:$0xf] %v1153_v42 }
 0x1ff   : > { %1156 = vst [vmem:[%s9389_s26 + $0x7ac] sm:$0xf] %v1155_v43 }
 0x200   : > { %1158 = vst [vmem:[%s9389_s26 + $0x7b0] sm:$0xf] %v1157_v44 }
 0x201   : > { %1160 = vst [vmem:[%s9389_s26 + $0x7b4] sm:$0xf] %v1159_v45 }
 0x202   : > { %1162 = vst [vmem:[%s9389_s26 + $0x7b8] sm:$0xf] %v1161_v46 }
 0x203   : > { %1164 = vst [vmem:[%s9389_s26 + $0x7bc] sm:$0xf] %v1163_v47 }
 0x204   : > { %1166 = vst [vmem:[%s9389_s26 + $0x7c0] sm:$0xf] %v1165_v48 }
 0x205   : > { %1168 = vst [vmem:[%s9389_s26 + $0x7c4] sm:$0xf] %v1167_v49 }
 0x206   : > { %1170 = vst [vmem:[%s9389_s26 + $0x7c8] sm:$0xf] %v1169_v50 }
 0x207   : > { %1172 = vst [vmem:[%s9389_s26 + $0x7cc] sm:$0xf] %v1171_v51 }
 0x208   : > { %1174 = vst [vmem:[%s9389_s26 + $0x7d0] sm:$0xf] %v1173_v52 }
 0x209   : > { %1176 = vst [vmem:[%s9389_s26 + $0x7d4] sm:$0xf] %v1175_v53 }
 0x20a   : > { %1178 = vst [vmem:[%s9389_s26 + $0x7d8] sm:$0xf] %v1177_v54 }
 0x20b   : > { %1180 = vst [vmem:[%s9389_s26 + $0x7dc] sm:$0xf] %v1179_v55 }
 0x20c   : > { %1182 = vst [vmem:[%s9389_s26 + $0x7e0] sm:$0xf] %v1181_v56 }
 0x20d   : > { %1184 = vst [vmem:[%s9389_s26 + $0x7e4] sm:$0xf] %v1183_v57 }
 0x20e   : > { %1186 = vst [vmem:[%s9389_s26 + $0x7e8] sm:$0xf] %v1185_v58 }
 0x20f   : > { %1188 = vst [vmem:[%s9389_s26 + $0x7ec] sm:$0xf] %v1187_v59 }
 0x210   : > { %1190 = vst [vmem:[%s9389_s26 + $0x7f0] sm:$0xf] %v1189_v60 }
 0x211   : > { %1192 = vst [vmem:[%s9389_s26 + $0x7f4] sm:$0xf] %v1191_v61 }
 0x212   : > { %1194 = vst [vmem:[%s9389_s26 + $0x7f8] sm:$0xf] %v1193_v62 }
 0x213   : > { %1196 = vst [vmem:[%s9389_s26 + $0x7fc] sm:$0xf] %v1195_v63 }
 0x214 PF: > { %p7624_p8 = scmp.ge.s32.totalorder %s9320_s13, 1  ;;  %p4317_p9 = scmp.lt.s32.totalorder %s9320_s13, 5 }
 0x216   : > { %p4318_p10 = pnand %p7624_p8, %p4317_p9 }
 0x217   : > { %s4324_s27 = sand.u32 (!%p4318_p10), 1, %s9304_s9  }
 0x218   : > { %4321 = sbr.rel (%p4318_p10) target bundleno = 975 (0x3cf), region = 76  ;;  %s7625_s28 = sshll.u32 (!%p4318_p10), %s4324_s27, 11 }
 0x219   : > { %s10418_s29 = scalar_lea.vmem (!%p4318_p10), [#allocation3], %s7625_s28  ;;  %s7626_s4 = sshll.u32 (!%p4318_p10), %s4324_s27, 4 }
 0x21a   : > { %s4353_s5 = scalar_lea.vmem (!%p4318_p10), [#allocation4], %s7626_s4 }
 0x21d   : > { %v8982_v0 = vld [vmem:[%s10418_s29 + $0x38] sm:$0xff]  ;;  %v8981_v4 = vld [vmem:[%s10418_s29 + $0x30] sm:$0xff]  ;;  %v8980_v8 = vld [vmem:[%s10418_s29 + $0x28] sm:$0xff]  ;;  %s8908_s9 = sshll.u32 (%p9372_p6), %s9312_s11, 2 }
 0x21e   : > { %v8990_v1 = vld [vmem:[%s10418_s29 + $0x78] sm:$0xff]  ;;  %6812 = vmatpush.bf16.msra.mxu0 %v8982_v0  ;;  %v8989_v5 = vld [vmem:[%s10418_s29 + $0x70] sm:$0xff]  ;;  %v8988_v9 = vld [vmem:[%s10418_s29 + $0x68] sm:$0xff]  ;;  %s7462_s7 = scalar_lea.vmem (%p9372_p6), %s11112_s2, %s8908_s9 }
 0x21f   : > { %v8998_v2 = vld [vmem:[%s10418_s29 + $0xb8] sm:$0xff]  ;;  %6831 = vmatpush.bf16.msra.mxu1 %v8990_v1  ;;  %v8997_v6 = vld [vmem:[%s10418_s29 + $0xb0] sm:$0xff]  ;;  %v8996_v10 = vld [vmem:[%s10418_s29 + $0xa8] sm:$0xff] }
 0x220   : > { %v9006_v3 = vld [vmem:[%s10418_s29 + $0xf8] sm:$0xff]  ;;  %6850 = vmatpush.bf16.msra.mxu2 %v8998_v2  ;;  %v9005_v7 = vld [vmem:[%s10418_s29 + $0xf0] sm:$0xff]  ;;  %v9004_v11 = vld [vmem:[%s10418_s29 + $0xe8] sm:$0xff] }
 0x221   : > { %6869 = vmatpush.bf16.msra.mxu3 %v9006_v3  ;;  %v8979_v12 = vld [vmem:[%s10418_s29 + $0x20] sm:$0xff]  ;;  %v8978_v16 = vld [vmem:[%s10418_s29 + $0x18] sm:$0xff]  ;;  %v8977_v20 = vld [vmem:[%s10418_s29 + $0x10] sm:$0xff] }
 0x222   : > { %6813 = vmatpush.bf16.msra.mxu0 %v8981_v4  ;;  %v8987_v13 = vld [vmem:[%s10418_s29 + $0x60] sm:$0xff]  ;;  %v8986_v17 = vld [vmem:[%s10418_s29 + $0x58] sm:$0xff]  ;;  %v8985_v21 = vld [vmem:[%s10418_s29 + $0x50] sm:$0xff] }
 0x223   : > { %6832 = vmatpush.bf16.msra.mxu1 %v8989_v5  ;;  %v8995_v14 = vld [vmem:[%s10418_s29 + $0xa0] sm:$0xff]  ;;  %v8994_v18 = vld [vmem:[%s10418_s29 + $0x98] sm:$0xff]  ;;  %v8993_v22 = vld [vmem:[%s10418_s29 + $0x90] sm:$0xff] }
 0x224   : > { %6851 = vmatpush.bf16.msra.mxu2 %v8997_v6  ;;  %v9003_v15 = vld [vmem:[%s10418_s29 + $0xe0] sm:$0xff]  ;;  %v9002_v19 = vld [vmem:[%s10418_s29 + $0xd8] sm:$0xff]  ;;  %v9001_v23 = vld [vmem:[%s10418_s29 + $0xd0] sm:$0xff] }
 0x225   : > { %6870 = vmatpush.bf16.msra.mxu3 %v9005_v7  ;;  %v8976_v24 = vld [vmem:[%s10418_s29 + $0x8] sm:$0xff]  ;;  %v8975_v28 = vld [vmem:[%s10418_s29] sm:$0xff]  ;;  %v9030_v40 = vld [vmem:[%s10418_s29 + $0x1b8] sm:$0xff] }
 0x226   : > { %6814 = vmatpush.bf16.msra.mxu0 %v8980_v8  ;;  %v8984_v25 = vld [vmem:[%s10418_s29 + $0x48] sm:$0xff]  ;;  %v7629_v29 = vld [vmem:[%s11110_s0] sm:$0xf]  ;;  %v8911_v34 = vld [vmem:[%s11110_s0 + $0x4] sm:$0xf] }
 0x227   : > { %6833 = vmatpush.bf16.msra.mxu1 %v8988_v9  ;;  %v8992_v26 = vld [vmem:[%s10418_s29 + $0x88] sm:$0xff]  ;;  %v8927_v30 = vld [vmem:[%s11110_s0 + $0x7c] sm:$0xf0]  ;;  %v7631_v35 = vld [vmem:[%s11110_s0 + $0x80] sm:$0xf0] }
 0x228   : > { %6852 = vmatpush.bf16.msra.mxu2 %v8996_v10  ;;  %v9000_v27 = vld [vmem:[%s10418_s29 + $0xc8] sm:$0xff]  ;;  %v8983_v31 = vld [vmem:[%s10418_s29 + $0x40] sm:$0xff]  ;;  %v9014_v41 = vld [vmem:[%s10418_s29 + $0x138] sm:$0xff]  ;;  %v7630_v42 = vor.u32 %v8927_v30, %v7629_v29  ;;  %v7634_v43 = vor.u32 %v8911_v34, %v7631_v35 }
 0x229   : > { %6871 = vmatpush.bf16.msra.mxu3 %v9004_v11  ;;  %v8991_v32 = vld [vmem:[%s10418_s29 + $0x80] sm:$0xff]  ;;  %v7637_v36 = vld [vmem:[%s11110_s0 + $0x8] sm:$0xf]  ;;  %v8912_v38 = vld [vmem:[%s11110_s0 + $0xc] sm:$0xf] }
 0x22a   : > { %6815 = vmatpush.bf16.msra.mxu0 %v8979_v12  ;;  %v8999_v33 = vld [vmem:[%s10418_s29 + $0xc0] sm:$0xff]  ;;  %v8928_v37 = vld [vmem:[%s11110_s0 + $0x84] sm:$0xf0]  ;;  %v7639_v39 = vld [vmem:[%s11110_s0 + $0x88] sm:$0xf0] }
 0x22b   : > { %6834 = vmatpush.bf16.msra.mxu1 %v8987_v13  ;;  %v7638_v44 = vor.u32 %v8928_v37, %v7637_v36  ;;  %v7642_v45 = vor.u32 %v8912_v38, %v7639_v39  ;;  %v9022_v46 = vld [vmem:[%s10418_s29 + $0x178] sm:$0xff]  ;;  %v9029_v48 = vld [vmem:[%s10418_s29 + $0x1b0] sm:$0xff]  ;;  %v9028_v52 = vld [vmem:[%s10418_s29 + $0x1a8] sm:$0xff] }
 0x22c   : > { %6853 = vmatpush.bf16.msra.mxu2 %v8995_v14  ;;  %v9038_v47 = vld [vmem:[%s10418_s29 + $0x1f8] sm:$0xff]  ;;  %v9013_v49 = vld [vmem:[%s10418_s29 + $0x130] sm:$0xff]  ;;  %v9012_v53 = vld [vmem:[%s10418_s29 + $0x128] sm:$0xff] }
 0x22d   : > { %6872 = vmatpush.bf16.msra.mxu3 %v9003_v15  ;;  %v9021_v50 = vld [vmem:[%s10418_s29 + $0x170] sm:$0xff]  ;;  %v9020_v54 = vld [vmem:[%s10418_s29 + $0x168] sm:$0xff]  ;;  %v9027_v56 = vld [vmem:[%s10418_s29 + $0x1a0] sm:$0xff] }
 0x22e   : > { %6816 = vmatpush.bf16.msra.mxu0 %v8978_v16  ;;  %v9037_v51 = vld [vmem:[%s10418_s29 + $0x1f0] sm:$0xff]  ;;  %v9036_v55 = vld [vmem:[%s10418_s29 + $0x1e8] sm:$0xff]  ;;  %v9011_v57 = vld [vmem:[%s10418_s29 + $0x120] sm:$0xff] }
 0x22f   : > { %6835 = vmatpush.bf16.msra.mxu1 %v8986_v17  ;;  %v9019_v58 = vld [vmem:[%s10418_s29 + $0x160] sm:$0xff]  ;;  %v7765_v0 = vld [vmem:[%s11110_s0 + $0x108] sm:$0xf]  ;;  %v8944_v2 = vld [vmem:[%s11110_s0 + $0x10c] sm:$0xf] }
 0x230   : > { %6854 = vmatpush.bf16.msra.mxu2 %v8994_v18  ;;  %v9035_v59 = vld [vmem:[%s10418_s29 + $0x1e0] sm:$0xff]  ;;  %v8960_v1 = vld [vmem:[%s11110_s0 + $0x184] sm:$0xf0]  ;;  %v7767_v3 = vld [vmem:[%s11110_s0 + $0x188] sm:$0xf0] }
 0x231   : > { %6873 = vmatpush.bf16.msra.mxu3 %v9002_v19  ;;  %v7757_v60 = vld [vmem:[%s11110_s0 + $0x100] sm:$0xf]  ;;  %v8943_v62 = vld [vmem:[%s11110_s0 + $0x104] sm:$0xf]  ;;  %v9026_v4 = vld [vmem:[%s10418_s29 + $0x198] sm:$0xff]  ;;  %v7766_v8 = vor.u32 %v8960_v1, %v7765_v0  ;;  %v7770_v9 = vor.u32 %v8944_v2, %v7767_v3 }
 0x232   : > { %6817 = vmatpush.bf16.msra.mxu0 %v8977_v20  ;;  %v8959_v61 = vld [vmem:[%s11110_s0 + $0x17c] sm:$0xf0]  ;;  %v7759_v63 = vld [vmem:[%s11110_s0 + $0x180] sm:$0xf0]  ;;  %v9010_v5 = vld [vmem:[%s10418_s29 + $0x118] sm:$0xff] }
 0x233   : > { %6836 = vmatpush.bf16.msra.mxu1 %v8985_v21  ;;  %v7758_v6 = vor.u32 %v8959_v61, %v7757_v60  ;;  %v7762_v7 = vor.u32 %v8943_v62, %v7759_v63  ;;  %v9018_v10 = vld [vmem:[%s10418_s29 + $0x158] sm:$0xff]  ;;  %v9025_v12 = vld [vmem:[%s10418_s29 + $0x190] sm:$0xff]  ;;  %v9024_v16 = vld [vmem:[%s10418_s29 + $0x188] sm:$0xff] }
 0x234   : > { %6855 = vmatpush.bf16.msra.mxu2 %v8993_v22  ;;  %v9034_v11 = vld [vmem:[%s10418_s29 + $0x1d8] sm:$0xff]  ;;  %v9009_v13 = vld [vmem:[%s10418_s29 + $0x110] sm:$0xff]  ;;  %v9008_v17 = vld [vmem:[%s10418_s29 + $0x108] sm:$0xff] }
 0x235   : > { %6874 = vmatpush.bf16.msra.mxu3 %v9001_v23  ;;  %v9017_v14 = vld [vmem:[%s10418_s29 + $0x150] sm:$0xff]  ;;  %v9016_v18 = vld [vmem:[%s10418_s29 + $0x148] sm:$0xff]  ;;  %v9023_v20 = vld [vmem:[%s10418_s29 + $0x180] sm:$0xff] }
 0x236   : > { %6818 = vmatpush.bf16.msra.mxu0 %v8976_v24  ;;  %v9033_v15 = vld [vmem:[%s10418_s29 + $0x1d0] sm:$0xff]  ;;  %v9032_v19 = vld [vmem:[%s10418_s29 + $0x1c8] sm:$0xff]  ;;  %v9007_v21 = vld [vmem:[%s10418_s29 + $0x100] sm:$0xff] }
 0x237   : > { %6837 = vmatpush.bf16.msra.mxu1 %v8984_v25  ;;  %v9015_v22 = vld [vmem:[%s10418_s29 + $0x140] sm:$0xff]  ;;  %v7645_v24 = vld [vmem:[%s11110_s0 + $0x10] sm:$0xf]  ;;  %v9062_v25 = vld [vmem:[%s10418_s29 + $0x2b8] sm:$0xff] }
 0x238   : > { %6856 = vmatpush.bf16.msra.mxu2 %v8992_v26  ;;  %v9031_v23 = vld [vmem:[%s10418_s29 + $0x1c0] sm:$0xff]  ;;  %v9046_v26 = vld [vmem:[%s10418_s29 + $0x238] sm:$0xff]  ;;  %v7647_v29 = vld [vmem:[%s11110_s0 + $0x90] sm:$0xf0] }
 0x239   : > { %6875 = vmatpush.bf16.msra.mxu3 %v9000_v27  ;;  %v8929_v27 = vld [vmem:[%s11110_s0 + $0x8c] sm:$0xf0]  ;;  %v7653_v30 = vld [vmem:[%s11110_s0 + $0x18] sm:$0xf]  ;;  %v7783_v61 = vld [vmem:[%s11110_s0 + $0x198] sm:$0xf0] }
 0x23a   : > { %6819 = vmatpush.bf16.msra.mxu0 %v8975_v28  ;;  %v8913_v28 = vld [vmem:[%s11110_s0 + $0x14] sm:$0xf]  ;;  %v9054_v34 = vld [vmem:[%s10418_s29 + $0x278] sm:$0xff]  ;;  %v7646_v36 = vor.u32 %v8929_v27, %v7645_v24  ;;  %v7663_v24 = vld [vmem:[%s11110_s0 + $0xa0] sm:$0xf0] }
 0x23b   : > { %6838 = vmatpush.bf16.msra.mxu1 %v8983_v31  ;;  %v8930_v31 = vld [vmem:[%s11110_s0 + $0x94] sm:$0xf0]  ;;  %v9061_v37 = vld [vmem:[%s10418_s29 + $0x2b0] sm:$0xff]  ;;  %v7650_v38 = vor.u32 %v8913_v28, %v7647_v29  ;;  %v8916_v27 = vld [vmem:[%s11110_s0 + $0x2c] sm:$0xf] }
 0x23c   : > { %6857 = vmatpush.bf16.msra.mxu2 %v8991_v32  ;;  %v8914_v32 = vld [vmem:[%s11110_s0 + $0x1c] sm:$0xf]  ;;  %v7654_v39 = vor.u32 %v8930_v31, %v7653_v30  ;;  %v9057_v1 = vld [vmem:[%s10418_s29 + $0x290] sm:$0xff]  ;;  %v7671_v28 = vld [vmem:[%s11110_s0 + $0xa8] sm:$0xf0] }
 0x23d   : > { %6876 = vmatpush.bf16.msra.mxu3 %v8999_v33  ;;  %6820 = vmatmul.bf16.vlgmr.msra.gmra.mxu0 %v7630_v42  ;;  %v7655_v33 = vld [vmem:[%s11110_s0 + $0x98] sm:$0xf0]  ;;  %v9053_v42 = vld [vmem:[%s10418_s29 + $0x270] sm:$0xff] }
 0x23e   : > { %6888 = vmatpush.bf16.msrb.mxu0 %v9014_v41  ;;  %6839 = vmatmul.bf16.vlgmr.msra.gmra.mxu1 %v7634_v43  ;;  %v9070_v35 = vld [vmem:[%s10418_s29 + $0x2f8] sm:$0xff]  ;;  %v9045_v41 = vld [vmem:[%s10418_s29 + $0x230] sm:$0xff] }
 0x23f   : > { %6858 = vmatmul.bf16.vlgmr.msra.gmra.mxu2 %v7638_v44  ;;  %6907 = vmatpush.bf16.msrb.mxu1 %v9022_v46  ;;  %v9069_v43 = vld [vmem:[%s10418_s29 + $0x2f0] sm:$0xff]  ;;  %v9060_v44 = vld [vmem:[%s10418_s29 + $0x2a8] sm:$0xff]  ;;  %v9042_v60 = vld [vmem:[%s10418_s29 + $0x218] sm:$0xff] }
 0x240   : > { %6926 = vmatpush.bf16.msrb.mxu2 %v9030_v40  ;;  %6877 = vmatmul.bf16.vlgmr.msra.gmra.mxu3 %v7642_v45  ;;  %v7658_v40 = vor.u32 %v8914_v32, %v7655_v33  ;;  %v9044_v45 = vld [vmem:[%s10418_s29 + $0x228] sm:$0xff]  ;;  %v9050_v62 = vld [vmem:[%s10418_s29 + $0x258] sm:$0xff]  ;;  %v9085_v30 = vld [vmem:[%s10418_s29 + $0x370] sm:$0xff]  ;;  %v7674_v33 = vor.u32 %v8916_v27, %v7671_v28 }
 0x241   : > { %6945 = vmatpush.bf16.msrb.mxu3 %v9038_v47  ;;  %v9052_v46 = vld [vmem:[%s10418_s29 + $0x268] sm:$0xff]  ;;  %v9066_v63 = vld [vmem:[%s10418_s29 + $0x2d8] sm:$0xff] }
 0x242   : > { %6889 = vmatpush.bf16.msrb.mxu0 %v9013_v49  ;;  %v9068_v47 = vld [vmem:[%s10418_s29 + $0x2e8] sm:$0xff]  ;;  %v9043_v49 = vld [vmem:[%s10418_s29 + $0x220] sm:$0xff] }
 0x243   : > { %6908 = vmatpush.bf16.msrb.mxu1 %v9021_v50  ;;  %v9051_v50 = vld [vmem:[%s10418_s29 + $0x260] sm:$0xff]  ;;  %v9124_v28 = vld [vmem:[%s10418_s29 + $0x4a8] sm:$0xff] }
 0x244   : > { %6927 = vmatpush.bf16.msrb.mxu2 %v9029_v48  ;;  %v9059_v48 = vld [vmem:[%s10418_s29 + $0x2a0] sm:$0xff] }
 0x245   : > { %6946 = vmatpush.bf16.msrb.mxu3 %v9037_v51  ;;  %v9067_v51 = vld [vmem:[%s10418_s29 + $0x2e0] sm:$0xff] }
 0x246   : > { %6890 = vmatpush.bf16.msrb.mxu0 %v9012_v53  ;;  %v8961_v53 = vld [vmem:[%s11110_s0 + $0x18c] sm:$0xf0] }
 0x247   : > { %6909 = vmatpush.bf16.msrb.mxu1 %v9020_v54  ;;  %v9058_v54 = vld [vmem:[%s10418_s29 + $0x298] sm:$0xff] }
 0x248   : > { %6928 = vmatpush.bf16.msrb.mxu2 %v9028_v52  ;;  %v7773_v52 = vld [vmem:[%s11110_s0 + $0x110] sm:$0xf] }
 0x249   : > { %6947 = vmatpush.bf16.msrb.mxu3 %v9036_v55  ;;  %v8945_v55 = vld [vmem:[%s11110_s0 + $0x114] sm:$0xf]  ;;  %v7774_v0 = vor.u32 %v8961_v53, %v7773_v52  ;;  %v8948_v52 = vld [vmem:[%s11110_s0 + $0x12c] sm:$0xf]  ;;  %v9074_v53 = vld [vmem:[%s10418_s29 + $0x318] sm:$0xff] }
 0x24a   : > { %6891 = vmatpush.bf16.msrb.mxu0 %v9011_v57  ;;  %v7781_v57 = vld [vmem:[%s11110_s0 + $0x118] sm:$0xf] }
 0x24b   : > { %6910 = vmatpush.bf16.msrb.mxu1 %v9019_v58  ;;  %v8962_v58 = vld [vmem:[%s11110_s0 + $0x194] sm:$0xf0] }
 0x24c   : > { %6929 = vmatpush.bf16.msrb.mxu2 %v9027_v56  ;;  %v7775_v56 = vld [vmem:[%s11110_s0 + $0x190] sm:$0xf0]  ;;  %v7782_v3 = vor.u32 %v8962_v58, %v7781_v57 }
 0x24d   : > { %6948 = vmatpush.bf16.msrb.mxu3 %v9035_v59  ;;  %6825 = vmatmul.bf16.gmra.mxu0 %v7758_v6  ;;  %v8946_v59 = vld [vmem:[%s11110_s0 + $0x11c] sm:$0xf]  ;;  %v7778_v2 = vor.u32 %v8945_v55, %v7775_v56  ;;  %v9049_v6 = vld [vmem:[%s10418_s29 + $0x250] sm:$0xff] }
 0x24e   : > { %6892 = vmatpush.bf16.msrb.mxu0 %v9010_v5  ;;  %6844 = vmatmul.bf16.gmra.mxu1 %v7762_v7  ;;  %v9041_v5 = vld [vmem:[%s10418_s29 + $0x210] sm:$0xff]  ;;  %v9098_v55 = vld [vmem:[%s10418_s29 + $0x3d8] sm:$0xff] }
 0x24f   : > { %6863 = vmatmul.bf16.gmra.mxu2 %v7766_v8  ;;  %6911 = vmatpush.bf16.msrb.mxu1 %v9018_v10  ;;  %v9065_v7 = vld [vmem:[%s10418_s29 + $0x2d0] sm:$0xff]  ;;  %v9056_v8 = vld [vmem:[%s10418_s29 + $0x288] sm:$0xff] }
 0x250   : > { %6930 = vmatpush.bf16.msrb.mxu2 %v9026_v4  ;;  %6882 = vmatmul.bf16.gmra.mxu3 %v7770_v9  ;;  %v7786_v4 = vor.u32 %v8946_v59, %v7783_v61  ;;  %v9040_v9 = vld [vmem:[%s10418_s29 + $0x208] sm:$0xff]  ;;  %v9089_v56 = vld [vmem:[%s10418_s29 + $0x390] sm:$0xff] }
 0x251   : > { %6949 = vmatpush.bf16.msrb.mxu3 %v9034_v11  ;;  %v9048_v10 = vld [vmem:[%s10418_s29 + $0x248] sm:$0xff]  ;;  %v9081_v58 = vld [vmem:[%s10418_s29 + $0x350] sm:$0xff] }
 0x252   : > { %6893 = vmatpush.bf16.msrb.mxu0 %v9009_v13  ;;  %v9064_v11 = vld [vmem:[%s10418_s29 + $0x2c8] sm:$0xff]  ;;  %v9094_v13 = vld [vmem:[%s10418_s29 + $0x3b8] sm:$0xff] }
 0x253   : > { %6912 = vmatpush.bf16.msrb.mxu1 %v9017_v14  ;;  %v9039_v14 = vld [vmem:[%s10418_s29 + $0x200] sm:$0xff] }
 0x254   : > { %6931 = vmatpush.bf16.msrb.mxu2 %v9025_v12  ;;  %v9055_v12 = vld [vmem:[%s10418_s29 + $0x280] sm:$0xff] }
 0x255   : > { %6950 = vmatpush.bf16.msrb.mxu3 %v9033_v15  ;;  %v9047_v15 = vld [vmem:[%s10418_s29 + $0x240] sm:$0xff] }
 0x256   : > { %6894 = vmatpush.bf16.msrb.mxu0 %v9008_v17  ;;  %v7661_v17 = vld [vmem:[%s11110_s0 + $0x20] sm:$0xf] }
 0x257   : > { %6913 = vmatpush.bf16.msrb.mxu1 %v9016_v18  ;;  %v8931_v18 = vld [vmem:[%s11110_s0 + $0x9c] sm:$0xf0] }
 0x258   : > { %6932 = vmatpush.bf16.msrb.mxu2 %v9024_v16  ;;  %v9063_v16 = vld [vmem:[%s10418_s29 + $0x2c0] sm:$0xff]  ;;  %v7662_v29 = vor.u32 %v8931_v18, %v7661_v17  ;;  %v7679_v17 = vld [vmem:[%s11110_s0 + $0xb0] sm:$0xf0]  ;;  %v7685_v18 = vld [vmem:[%s11110_s0 + $0x38] sm:$0xf] }
 0x259   : > { %6951 = vmatpush.bf16.msrb.mxu3 %v9032_v19  ;;  %v9078_v19 = vld [vmem:[%s10418_s29 + $0x338] sm:$0xff] }
 0x25a   : > { %6895 = vmatpush.bf16.msrb.mxu0 %v9007_v21  ;;  %v8915_v21 = vld [vmem:[%s11110_s0 + $0x24] sm:$0xf] }
 0x25b   : > { %6914 = vmatpush.bf16.msrb.mxu1 %v9015_v22  ;;  %v9102_v22 = vld [vmem:[%s10418_s29 + $0x3f8] sm:$0xff]  ;;  %v7666_v31 = vor.u32 %v8915_v21, %v7663_v24  ;;  %v9133_v24 = vld [vmem:[%s10418_s29 + $0x4f0] sm:$0xff] }
 0x25c   : > { %6933 = vmatpush.bf16.msrb.mxu2 %v9023_v20  ;;  %v9086_v20 = vld [vmem:[%s10418_s29 + $0x378] sm:$0xff] }
 0x25d   : > { %6952 = vmatpush.bf16.msrb.mxu3 %v9031_v23  ;;  %6896 = vmatmul.bf16.vlgmr.msrb.gmra.mxu0 %v7646_v36  ;;  %v9093_v23 = vld [vmem:[%s10418_s29 + $0x3b0] sm:$0xff]  ;;  %v9092_v36 = vld [vmem:[%s10418_s29 + $0x3a8] sm:$0xff]  ;;  %v7687_v21 = vld [vmem:[%s11110_s0 + $0xb8] sm:$0xf0] }
 0x25e   : > { %6964 = vmatpush.bf16.msra.mxu0 %v9046_v26  ;;  %6915 = vmatmul.bf16.vlgmr.msrb.gmra.mxu1 %v7650_v38  ;;  %v8932_v26 = vld [vmem:[%s11110_s0 + $0xa4] sm:$0xf0] }
 0x25f   : > { %6983 = vmatpush.bf16.msra.mxu1 %v9054_v34  ;;  %6934 = vmatmul.bf16.vlgmr.msrb.gmra.mxu2 %v7654_v39  ;;  %v9077_v34 = vld [vmem:[%s10418_s29 + $0x330] sm:$0xff]  ;;  %v9076_v38 = vld [vmem:[%s10418_s29 + $0x328] sm:$0xff] }
 0x260   : > { %7002 = vmatpush.bf16.msra.mxu2 %v9062_v25  ;;  %6953 = vmatmul.bf16.vlgmr.msrb.gmra.mxu3 %v7658_v40  ;;  %v7669_v25 = vld [vmem:[%s11110_s0 + $0x28] sm:$0xf]  ;;  %v9091_v40 = vld [vmem:[%s10418_s29 + $0x3a0] sm:$0xff] }
 0x261   : > { %7021 = vmatpush.bf16.msra.mxu3 %v9070_v35  ;;  %v7670_v32 = vor.u32 %v8932_v26, %v7669_v25  ;;  %v9101_v35 = vld [vmem:[%s10418_s29 + $0x3f0] sm:$0xff]  ;;  %v9100_v39 = vld [vmem:[%s10418_s29 + $0x3e8] sm:$0xff] }
 0x262   : > { %6965 = vmatpush.bf16.msra.mxu0 %v9045_v41  ;;  %v9083_v41 = vld [vmem:[%s10418_s29 + $0x360] sm:$0xff] }
 0x263   : > { %6984 = vmatpush.bf16.msra.mxu1 %v9053_v42  ;;  %v9075_v42 = vld [vmem:[%s10418_s29 + $0x320] sm:$0xff] }
 0x264   : > { %7003 = vmatpush.bf16.msra.mxu2 %v9061_v37  ;;  %v9084_v37 = vld [vmem:[%s10418_s29 + $0x368] sm:$0xff] }
 0x265   : > { %7022 = vmatpush.bf16.msra.mxu3 %v9069_v43  ;;  %v9099_v43 = vld [vmem:[%s10418_s29 + $0x3e0] sm:$0xff] }
 0x266   : > { %6966 = vmatpush.bf16.msra.mxu0 %v9044_v45  ;;  %v7789_v45 = vld [vmem:[%s11110_s0 + $0x120] sm:$0xf] }
 0x267   : > { %6985 = vmatpush.bf16.msra.mxu1 %v9052_v46  ;;  %v8963_v46 = vld [vmem:[%s11110_s0 + $0x19c] sm:$0xf0] }
 0x268   : > { %7004 = vmatpush.bf16.msra.mxu2 %v9060_v44  ;;  %v9090_v44 = vld [vmem:[%s10418_s29 + $0x398] sm:$0xff]  ;;  %v7790_v57 = vor.u32 %v8963_v46, %v7789_v45 }
 0x269   : > { %7023 = vmatpush.bf16.msra.mxu3 %v9068_v47  ;;  %v9082_v47 = vld [vmem:[%s10418_s29 + $0x358] sm:$0xff] }
 0x26a   : > { %6967 = vmatpush.bf16.msra.mxu0 %v9043_v49  ;;  %v7791_v49 = vld [vmem:[%s11110_s0 + $0x1a0] sm:$0xf0]  ;;  %v8966_v45 = vld [vmem:[%s11110_s0 + $0x1b4] sm:$0xf0]  ;;  %v8950_v46 = vld [vmem:[%s11110_s0 + $0x13c] sm:$0xf] }
 0x26b   : > { %6986 = vmatpush.bf16.msra.mxu1 %v9051_v50  ;;  %v7797_v50 = vld [vmem:[%s11110_s0 + $0x128] sm:$0xf] }
 0x26c   : > { %7005 = vmatpush.bf16.msra.mxu2 %v9059_v48  ;;  %v8947_v48 = vld [vmem:[%s11110_s0 + $0x124] sm:$0xf] }
 0x26d   : > { %7024 = vmatpush.bf16.msra.mxu3 %v9067_v51  ;;  %6901 = vmatmul.bf16.gmra.mxu0 %v7774_v0  ;;  %v8964_v51 = vld [vmem:[%s11110_s0 + $0x1a4] sm:$0xf0]  ;;  %v7794_v59 = vor.u32 %v8947_v48, %v7791_v49  ;;  %v7815_v48 = vld [vmem:[%s11110_s0 + $0x1b8] sm:$0xf0]  ;;  %v9105_v49 = vld [vmem:[%s10418_s29 + $0x410] sm:$0xff] }
 0x26e   : > { %6968 = vmatpush.bf16.msra.mxu0 %v9042_v60  ;;  %6920 = vmatmul.bf16.gmra.mxu1 %v7778_v2  ;;  %v7798_v60 = vor.u32 %v8964_v51, %v7797_v50  ;;  %v9088_v0 = vld [vmem:[%s10418_s29 + $0x388] sm:$0xff]  ;;  %v9113_v50 = vld [vmem:[%s10418_s29 + $0x450] sm:$0xff] }
 0x26f   : > { %6987 = vmatpush.bf16.msra.mxu1 %v9050_v62  ;;  %6939 = vmatmul.bf16.gmra.mxu2 %v7782_v3  ;;  %v9073_v62 = vld [vmem:[%s10418_s29 + $0x310] sm:$0xff]  ;;  %v9072_v2 = vld [vmem:[%s10418_s29 + $0x308] sm:$0xff] }
 0x270   : > { %7006 = vmatpush.bf16.msra.mxu2 %v9058_v54  ;;  %6958 = vmatmul.bf16.gmra.mxu3 %v7786_v4  ;;  %v7799_v54 = vld [vmem:[%s11110_s0 + $0x1a8] sm:$0xf0]  ;;  %v9087_v4 = vld [vmem:[%s10418_s29 + $0x380] sm:$0xff] }
 0x271   : > { %7025 = vmatpush.bf16.msra.mxu3 %v9066_v63  ;;  %v7802_v61 = vor.u32 %v8948_v52, %v7799_v54  ;;  %v9097_v63 = vld [vmem:[%s10418_s29 + $0x3d0] sm:$0xff]  ;;  %v9096_v3 = vld [vmem:[%s10418_s29 + $0x3c8] sm:$0xff] }
 0x272   : > { %6969 = vmatpush.bf16.msra.mxu0 %v9041_v5  ;;  %v9079_v5 = vld [vmem:[%s10418_s29 + $0x340] sm:$0xff]  ;;  %v9129_v52 = vld [vmem:[%s10418_s29 + $0x4d0] sm:$0xff] }
 0x273   : > { %6988 = vmatpush.bf16.msra.mxu1 %v9049_v6  ;;  %v9126_v6 = vld [vmem:[%s10418_s29 + $0x4b8] sm:$0xff] }
 0x274   : > { %7007 = vmatpush.bf16.msra.mxu2 %v9057_v1  ;;  %v9080_v1 = vld [vmem:[%s10418_s29 + $0x348] sm:$0xff] }
 0x275   : > { %7026 = vmatpush.bf16.msra.mxu3 %v9065_v7  ;;  %v9118_v7 = vld [vmem:[%s10418_s29 + $0x478] sm:$0xff] }
 0x276   : > { %6970 = vmatpush.bf16.msra.mxu0 %v9040_v9  ;;  %v9095_v9 = vld [vmem:[%s10418_s29 + $0x3c0] sm:$0xff] }
 0x277   : > { %6989 = vmatpush.bf16.msra.mxu1 %v9048_v10  ;;  %v9110_v10 = vld [vmem:[%s10418_s29 + $0x438] sm:$0xff] }
 0x278   : > { %7008 = vmatpush.bf16.msra.mxu2 %v9056_v8  ;;  %v9071_v8 = vld [vmem:[%s10418_s29 + $0x300] sm:$0xff] }
 0x279   : > { %7027 = vmatpush.bf16.msra.mxu3 %v9064_v11  ;;  %v7677_v11 = vld [vmem:[%s11110_s0 + $0x30] sm:$0xf] }
 0x27a   : > { %6971 = vmatpush.bf16.msra.mxu0 %v9039_v14  ;;  %v8933_v14 = vld [vmem:[%s11110_s0 + $0xac] sm:$0xf0] }
 0x27b   : > { %6990 = vmatpush.bf16.msra.mxu1 %v9047_v15  ;;  %v8917_v15 = vld [vmem:[%s11110_s0 + $0x34] sm:$0xf] }
 0x27c   : > { %7009 = vmatpush.bf16.msra.mxu2 %v9055_v12  ;;  %v9134_v12 = vld [vmem:[%s10418_s29 + $0x4f8] sm:$0xff]  ;;  %v7682_v25 = vor.u32 %v8917_v15, %v7679_v17  ;;  %v7703_v15 = vld [vmem:[%s11110_s0 + $0xc8] sm:$0xf0] }
 0x27d   : > { %7028 = vmatpush.bf16.msra.mxu3 %v9063_v16  ;;  %6972 = vmatmul.bf16.vlgmr.msra.gmra.mxu0 %v7662_v29  ;;  %v9117_v16 = vld [vmem:[%s10418_s29 + $0x470] sm:$0xff]  ;;  %v9108_v29 = vld [vmem:[%s10418_s29 + $0x428] sm:$0xff] }
 0x27e   : > { %7040 = vmatpush.bf16.msrb.mxu0 %v9078_v19  ;;  %6991 = vmatmul.bf16.vlgmr.msra.gmra.mxu1 %v7666_v31  ;;  %v8934_v19 = vld [vmem:[%s11110_s0 + $0xb4] sm:$0xf0]  ;;  %v9132_v31 = vld [vmem:[%s10418_s29 + $0x4e8] sm:$0xff] }
 0x27f   : > { %7059 = vmatpush.bf16.msrb.mxu1 %v9086_v20  ;;  %7010 = vmatmul.bf16.vlgmr.msra.gmra.mxu2 %v7670_v32  ;;  %v8918_v20 = vld [vmem:[%s11110_s0 + $0x3c] sm:$0xf]  ;;  %v7686_v26 = vor.u32 %v8934_v19, %v7685_v18  ;;  %v9123_v32 = vld [vmem:[%s10418_s29 + $0x4a0] sm:$0xff]  ;;  %v9156_v17 = vld [vmem:[%s10418_s29 + $0x5a8] sm:$0xff] }
 0x280   : > { %7078 = vmatpush.bf16.msrb.mxu2 %v9094_v13  ;;  %7029 = vmatmul.bf16.vlgmr.msra.gmra.mxu3 %v7674_v33  ;;  %v9125_v13 = vld [vmem:[%s10418_s29 + $0x4b0] sm:$0xff]  ;;  %v7690_v27 = vor.u32 %v8918_v20, %v7687_v21  ;;  %v9107_v33 = vld [vmem:[%s10418_s29 + $0x420] sm:$0xff] }
 0x281   : > { %7097 = vmatpush.bf16.msrb.mxu3 %v9102_v22  ;;  %v9109_v22 = vld [vmem:[%s10418_s29 + $0x430] sm:$0xff] }
 0x282   : > { %7041 = vmatpush.bf16.msrb.mxu0 %v9077_v34  ;;  %v9115_v34 = vld [vmem:[%s10418_s29 + $0x460] sm:$0xff] }
 0x283   : > { %7060 = vmatpush.bf16.msrb.mxu1 %v9085_v30  ;;  %v9116_v30 = vld [vmem:[%s10418_s29 + $0x468] sm:$0xff] }
 0x284   : > { %7079 = vmatpush.bf16.msrb.mxu2 %v9093_v23  ;;  %v7678_v23 = vor.u32 %v8933_v14, %v7677_v11  ;;  %v7701_v11 = vld [vmem:[%s11110_s0 + $0x48] sm:$0xf]  ;;  %v8920_v14 = vld [vmem:[%s11110_s0 + $0x4c] sm:$0xf] }
 0x285   : > { %7098 = vmatpush.bf16.msrb.mxu3 %v9101_v35  ;;  %v9131_v35 = vld [vmem:[%s10418_s29 + $0x4e0] sm:$0xff] }
 0x286   : > { %7042 = vmatpush.bf16.msrb.mxu0 %v9076_v38  ;;  %v9114_v38 = vld [vmem:[%s10418_s29 + $0x458] sm:$0xff] }
 0x287   : > { %7061 = vmatpush.bf16.msrb.mxu1 %v9084_v37  ;;  %v9106_v37 = vld [vmem:[%s10418_s29 + $0x418] sm:$0xff] }
 0x288   : > { %7080 = vmatpush.bf16.msrb.mxu2 %v9092_v36  ;;  %v9122_v36 = vld [vmem:[%s10418_s29 + $0x498] sm:$0xff] }
 0x289   : > { %7099 = vmatpush.bf16.msrb.mxu3 %v9100_v39  ;;  %v7805_v39 = vld [vmem:[%s11110_s0 + $0x130] sm:$0xf] }
 0x28a   : > { %7043 = vmatpush.bf16.msrb.mxu0 %v9075_v42  ;;  %v8949_v42 = vld [vmem:[%s11110_s0 + $0x134] sm:$0xf] }
 0x28b   : > { %7062 = vmatpush.bf16.msrb.mxu1 %v9083_v41  ;;  %v9130_v41 = vld [vmem:[%s10418_s29 + $0x4d8] sm:$0xff] }
 0x28c   : > { %7081 = vmatpush.bf16.msrb.mxu2 %v9091_v40  ;;  %v8965_v40 = vld [vmem:[%s11110_s0 + $0x1ac] sm:$0xf0] }
 0x28d   : > { %7100 = vmatpush.bf16.msrb.mxu3 %v9099_v43  ;;  %6977 = vmatmul.bf16.gmra.mxu0 %v7790_v57  ;;  %v7807_v43 = vld [vmem:[%s11110_s0 + $0x1b0] sm:$0xf0]  ;;  %v7806_v51 = vor.u32 %v8965_v40, %v7805_v39  ;;  %v9104_v57 = vld [vmem:[%s10418_s29 + $0x408] sm:$0xff]  ;;  %v9146_v40 = vld [vmem:[%s10418_s29 + $0x558] sm:$0xff] }
 0x28e   : > { %7044 = vmatpush.bf16.msrb.mxu0 %v9074_v53  ;;  %6996 = vmatmul.bf16.gmra.mxu1 %v7794_v59  ;;  %v7810_v53 = vor.u32 %v8949_v42, %v7807_v43  ;;  %v9128_v59 = vld [vmem:[%s10418_s29 + $0x4c8] sm:$0xff]  ;;  %v7821_v42 = vld [vmem:[%s11110_s0 + $0x140] sm:$0xf] }
 0x28f   : > { %7063 = vmatpush.bf16.msrb.mxu1 %v9082_v47  ;;  %7015 = vmatmul.bf16.gmra.mxu2 %v7798_v60  ;;  %v9121_v47 = vld [vmem:[%s10418_s29 + $0x490] sm:$0xff]  ;;  %v9119_v60 = vld [vmem:[%s10418_s29 + $0x480] sm:$0xff] }
 0x290   : > { %7082 = vmatpush.bf16.msrb.mxu2 %v9090_v44  ;;  %7034 = vmatmul.bf16.gmra.mxu3 %v7802_v61  ;;  %v7813_v44 = vld [vmem:[%s11110_s0 + $0x138] sm:$0xf]  ;;  %v9103_v61 = vld [vmem:[%s10418_s29 + $0x400] sm:$0xff] }
 0x291   : > { %7101 = vmatpush.bf16.msrb.mxu3 %v9098_v55  ;;  %v7814_v54 = vor.u32 %v8966_v45, %v7813_v44  ;;  %v7818_v55 = vor.u32 %v8950_v46, %v7815_v48  ;;  %v8967_v43 = vld [vmem:[%s11110_s0 + $0x1bc] sm:$0xf0]  ;;  %v9153_v44 = vld [vmem:[%s10418_s29 + $0x590] sm:$0xff]  ;;  %v8951_v45 = vld [vmem:[%s11110_s0 + $0x144] sm:$0xf] }
 0x292   : > { %7045 = vmatpush.bf16.msrb.mxu0 %v9073_v62  ;;  %v9111_v62 = vld [vmem:[%s10418_s29 + $0x440] sm:$0xff]  ;;  %v8968_v48 = vld [vmem:[%s11110_s0 + $0x1c4] sm:$0xf0] }
 0x293   : > { %7064 = vmatpush.bf16.msrb.mxu1 %v9081_v58  ;;  %v9112_v58 = vld [vmem:[%s10418_s29 + $0x448] sm:$0xff]  ;;  %v7823_v46 = vld [vmem:[%s11110_s0 + $0x1c0] sm:$0xf0] }
 0x294   : > { %7083 = vmatpush.bf16.msrb.mxu2 %v9089_v56  ;;  %v9120_v56 = vld [vmem:[%s10418_s29 + $0x488] sm:$0xff] }
 0x295   : > { %7102 = vmatpush.bf16.msrb.mxu3 %v9097_v63  ;;  %v9127_v63 = vld [vmem:[%s10418_s29 + $0x4c0] sm:$0xff] }
 0x296   : > { %7046 = vmatpush.bf16.msrb.mxu0 %v9072_v2  ;;  %v9150_v2 = vld [vmem:[%s10418_s29 + $0x578] sm:$0xff] }
 0x297   : > { %7065 = vmatpush.bf16.msrb.mxu1 %v9080_v1  ;;  %v9142_v1 = vld [vmem:[%s10418_s29 + $0x538] sm:$0xff] }
 0x298   : > { %7084 = vmatpush.bf16.msrb.mxu2 %v9088_v0  ;;  %v9158_v0 = vld [vmem:[%s10418_s29 + $0x5b8] sm:$0xff] }
 0x299   : > { %7103 = vmatpush.bf16.msrb.mxu3 %v9096_v3  ;;  %v9166_v3 = vld [vmem:[%s10418_s29 + $0x5f8] sm:$0xff] }
 0x29a   : > { %7047 = vmatpush.bf16.msrb.mxu0 %v9071_v8  ;;  %v7695_v8 = vld [vmem:[%s11110_s0 + $0xc0] sm:$0xf0] }
 0x29b   : > { %7066 = vmatpush.bf16.msrb.mxu1 %v9079_v5  ;;  %v8935_v5 = vld [vmem:[%s11110_s0 + $0xbc] sm:$0xf0] }
 0x29c   : > { %7085 = vmatpush.bf16.msrb.mxu2 %v9087_v4  ;;  %v7693_v4 = vld [vmem:[%s11110_s0 + $0x40] sm:$0xf] }
 0x29d   : > { %7104 = vmatpush.bf16.msrb.mxu3 %v9095_v9  ;;  %7048 = vmatmul.bf16.vlgmr.msrb.gmra.mxu0 %v7678_v23  ;;  %v9141_v9 = vld [vmem:[%s10418_s29 + $0x530] sm:$0xff]  ;;  %v7706_v23 = vor.u32 %v8920_v14, %v7703_v15 }
 0x29e   : > { %7116 = vmatpush.bf16.msra.mxu0 %v9110_v10  ;;  %7067 = vmatmul.bf16.vlgmr.msrb.gmra.mxu1 %v7682_v25  ;;  %v9149_v10 = vld [vmem:[%s10418_s29 + $0x570] sm:$0xff]  ;;  %v9148_v25 = vld [vmem:[%s10418_s29 + $0x568] sm:$0xff] }
 0x29f   : > { %7135 = vmatpush.bf16.msra.mxu1 %v9118_v7  ;;  %7086 = vmatmul.bf16.vlgmr.msrb.gmra.mxu2 %v7686_v26  ;;  %v9157_v7 = vld [vmem:[%s10418_s29 + $0x5b0] sm:$0xff]  ;;  %v9164_v26 = vld [vmem:[%s10418_s29 + $0x5e8] sm:$0xff] }
 0x2a0   : > { %7154 = vmatpush.bf16.msra.mxu2 %v9126_v6  ;;  %7105 = vmatmul.bf16.vlgmr.msrb.gmra.mxu3 %v7690_v27  ;;  %v8919_v6 = vld [vmem:[%s11110_s0 + $0x44] sm:$0xf] }
 0x2a1   : > { %7173 = vmatpush.bf16.msra.mxu3 %v9134_v12  ;;  %v8936_v12 = vld [vmem:[%s11110_s0 + $0xc4] sm:$0xf0]  ;;  %v7698_v20 = vor.u32 %v8919_v6, %v7695_v8  ;;  %v9155_v27 = vld [vmem:[%s10418_s29 + $0x5a0] sm:$0xff]  ;;  %v9190_v6 = vld [vmem:[%s10418_s29 + $0x6b8] sm:$0xff] }
 0x2a2   : > { %7117 = vmatpush.bf16.msra.mxu0 %v9109_v22  ;;  %v7702_v21 = vor.u32 %v8936_v12, %v7701_v11  ;;  %v9143_v8 = vld [vmem:[%s10418_s29 + $0x540] sm:$0xff]  ;;  %v9174_v12 = vld [vmem:[%s10418_s29 + $0x638] sm:$0xff] }
 0x2a3   : > { %7136 = vmatpush.bf16.msra.mxu1 %v9117_v16  ;;  %v7694_v16 = vor.u32 %v8935_v5, %v7693_v4  ;;  %v9160_v4 = vld [vmem:[%s10418_s29 + $0x5c8] sm:$0xff]  ;;  %v9151_v5 = vld [vmem:[%s10418_s29 + $0x580] sm:$0xff] }
 0x2a4   : > { %7155 = vmatpush.bf16.msra.mxu2 %v9125_v13  ;;  %v9165_v13 = vld [vmem:[%s10418_s29 + $0x5f0] sm:$0xff] }
 0x2a5   : > { %7174 = vmatpush.bf16.msra.mxu3 %v9133_v24  ;;  %v9140_v24 = vld [vmem:[%s10418_s29 + $0x528] sm:$0xff] }
 0x2a6   : > { %7118 = vmatpush.bf16.msra.mxu0 %v9108_v29  ;;  %v9147_v29 = vld [vmem:[%s10418_s29 + $0x560] sm:$0xff] }
 0x2a7   : > { %7137 = vmatpush.bf16.msra.mxu1 %v9116_v30  ;;  %v9163_v30 = vld [vmem:[%s10418_s29 + $0x5e0] sm:$0xff] }
 0x2a8   : > { %7156 = vmatpush.bf16.msra.mxu2 %v9124_v28  ;;  %v9139_v28 = vld [vmem:[%s10418_s29 + $0x520] sm:$0xff] }
 0x2a9   : > { %7175 = vmatpush.bf16.msra.mxu3 %v9132_v31 }
 0x2aa   : > { %7119 = vmatpush.bf16.msra.mxu0 %v9107_v33  ;;  %v9154_v33 = vld [vmem:[%s10418_s29 + $0x598] sm:$0xff] }
 0x2ab   : > { %7138 = vmatpush.bf16.msra.mxu1 %v9115_v34 }
 0x2ac   : > { %7157 = vmatpush.bf16.msra.mxu2 %v9123_v32 }
 0x2ad   : > { %7176 = vmatpush.bf16.msra.mxu3 %v9131_v35  ;;  %7053 = vmatmul.bf16.gmra.mxu0 %v7806_v51  ;;  %v7831_v51 = vld [vmem:[%s11110_s0 + $0x1c8] sm:$0xf0] }
 0x2ae   : > { %7120 = vmatpush.bf16.msra.mxu0 %v9106_v37  ;;  %7072 = vmatmul.bf16.gmra.mxu1 %v7810_v53  ;;  %v9161_v53 = vld [vmem:[%s10418_s29 + $0x5d0] sm:$0xff] }
 0x2af   : > { %7139 = vmatpush.bf16.msra.mxu1 %v9114_v38  ;;  %7091 = vmatmul.bf16.gmra.mxu2 %v7814_v54  ;;  %v9138_v38 = vld [vmem:[%s10418_s29 + $0x518] sm:$0xff] }
 0x2b0   : > { %7158 = vmatpush.bf16.msra.mxu2 %v9122_v36  ;;  %7110 = vmatmul.bf16.gmra.mxu3 %v7818_v55 }
 0x2b1   : > { %7177 = vmatpush.bf16.msra.mxu3 %v9130_v41  ;;  %v9162_v41 = vld [vmem:[%s10418_s29 + $0x5d8] sm:$0xff] }
 0x2b2   : > { %7121 = vmatpush.bf16.msra.mxu0 %v9105_v49  ;;  %v8952_v49 = vld [vmem:[%s11110_s0 + $0x14c] sm:$0xf] }
 0x2b3   : > { %7140 = vmatpush.bf16.msra.mxu1 %v9113_v50  ;;  %v9137_v50 = vld [vmem:[%s10418_s29 + $0x510] sm:$0xff] }
 0x2b4   : > { %7159 = vmatpush.bf16.msra.mxu2 %v9121_v47  ;;  %v7829_v47 = vld [vmem:[%s11110_s0 + $0x148] sm:$0xf] }
 0x2b5   : > { %7178 = vmatpush.bf16.msra.mxu3 %v9129_v52  ;;  %v9145_v52 = vld [vmem:[%s10418_s29 + $0x550] sm:$0xff] }
 0x2b6   : > { %7122 = vmatpush.bf16.msra.mxu0 %v9104_v57  ;;  %v9152_v57 = vld [vmem:[%s10418_s29 + $0x588] sm:$0xff] }
 0x2b7   : > { %7141 = vmatpush.bf16.msra.mxu1 %v9112_v58 }
 0x2b8   : > { %7160 = vmatpush.bf16.msra.mxu2 %v9120_v56  ;;  %v7822_v56 = vor.u32 %v8967_v43, %v7821_v42 }
 0x2b9   : > { %7179 = vmatpush.bf16.msra.mxu3 %v9128_v59 }
 0x2ba   : > { %7123 = vmatpush.bf16.msra.mxu0 %v9103_v61  ;;  %v6821_v18 = vpop.f32.mrf.mxu0  ;;  %v7826_v61 = vor.u32 %v8951_v45, %v7823_v46  ;;  %v9172_v45 = vld [vmem:[%s10418_s29 + $0x628] sm:$0xff] }
 0x2bb   : > { %7142 = vmatpush.bf16.msra.mxu1 %v9111_v62  ;;  %v6840_v19 = vpop.f32.mrf.mxu1  ;;  %v7830_v62 = vor.u32 %v8968_v48, %v7829_v47  ;;  %v9196_v47 = vld [vmem:[%s10418_s29 + $0x6e8] sm:$0xff]  ;;  %v9187_v48 = vld [vmem:[%s10418_s29 + $0x6a0] sm:$0xff] }
 0x2bc   : > { %7161 = vmatpush.bf16.msra.mxu2 %v9119_v60  ;;  %v6841_v22 = vadd.f32 %v6840_v19, %v6821_v18  ;;  %v9189_v18 = vld [vmem:[%s10418_s29 + $0x6b0] sm:$0xff] }
 0x2bd   : > { %7180 = vmatpush.bf16.msra.mxu3 %v9127_v63  ;;  %7124 = vmatmul.bf16.vlgmr.msra.gmra.mxu0 %v7694_v16 }
 0x2be   : > { %7192 = vmatpush.bf16.msrb.mxu0 %v9142_v1  ;;  %7143 = vmatmul.bf16.vlgmr.msra.gmra.mxu1 %v7698_v20  ;;  %v9136_v1 = vld [vmem:[%s10418_s29 + $0x508] sm:$0xff] }
 0x2bf   : > { %7211 = vmatpush.bf16.msrb.mxu1 %v9150_v2  ;;  %7162 = vmatmul.bf16.vlgmr.msra.gmra.mxu2 %v7702_v21  ;;  %v7709_v21 = vld [vmem:[%s11110_s0 + $0x50] sm:$0xf] }
 0x2c0   : > { %7230 = vmatpush.bf16.msrb.mxu2 %v9158_v0  ;;  %7181 = vmatmul.bf16.vlgmr.msra.gmra.mxu3 %v7706_v23  ;;  %v7834_v0 = vor.u32 %v8952_v49, %v7831_v51  ;;  %v9173_v23 = vld [vmem:[%s10418_s29 + $0x630] sm:$0xff]  ;;  %v9195_v51 = vld [vmem:[%s10418_s29 + $0x6e0] sm:$0xff] }
 0x2c1   : > { %7249 = vmatpush.bf16.msrb.mxu3 %v9166_v3  ;;  %v9144_v3 = vld [vmem:[%s10418_s29 + $0x548] sm:$0xff] }
 0x2c2   : > { %7193 = vmatpush.bf16.msrb.mxu0 %v9141_v9  ;;  %v6859_v31 = vpop.f32.mrf.mxu2  ;;  %v6823_v35 = vpop.f32.mrf.mxu0  ;;  %v9159_v9 = vld [vmem:[%s10418_s29 + $0x5c0] sm:$0xff] }
 0x2c3   : > { %7212 = vmatpush.bf16.msrb.mxu1 %v9149_v10  ;;  %v6878_v32 = vpop.f32.mrf.mxu3  ;;  %v6860_v34 = vadd.f32 %v6859_v31, %v6841_v22  ;;  %v6842_v36 = vpop.f32.mrf.mxu1  ;;  %v8937_v22 = vld [vmem:[%s11110_s0 + $0xcc] sm:$0xf0]  ;;  %v8922_v31 = vld [vmem:[%s11110_s0 + $0x5c] sm:$0xf] }
 0x2c4   : > { %7231 = vmatpush.bf16.msrb.mxu2 %v9157_v7  ;;  %v6843_v37 = vadd.f32 %v6842_v36, %v6823_v35  ;;  %v9135_v7 = vld [vmem:[%s10418_s29 + $0x500] sm:$0xff]  ;;  %v7710_v35 = vor.u32 %v8937_v22, %v7709_v21  ;;  %v9180_v36 = vld [vmem:[%s10418_s29 + $0x668] sm:$0xff] }
 0x2c5   : > { %7250 = vmatpush.bf16.msrb.mxu3 %v9165_v13  ;;  %v10814_v39 = vadd.f32 %v6878_v32, %v6860_v34  ;;  %v9182_v13 = vld [vmem:[%s10418_s29 + $0x678] sm:$0xff] }
 0x2c6   : > { %7194 = vmatpush.bf16.msrb.mxu0 %v9140_v24  ;;  %v9181_v24 = vld [vmem:[%s10418_s29 + $0x670] sm:$0xff]  ;;  %v7719_v32 = vld [vmem:[%s11110_s0 + $0xd8] sm:$0xf0] }
 0x2c7   : > { %7213 = vmatpush.bf16.msrb.mxu1 %v9148_v25  ;;  %v8921_v25 = vld [vmem:[%s11110_s0 + $0x54] sm:$0xf] }
 0x2c8   : > { %7232 = vmatpush.bf16.msrb.mxu2 %v9156_v17  ;;  %v9198_v17 = vld [vmem:[%s10418_s29 + $0x6f8] sm:$0xff] }
 0x2c9   : > { %7251 = vmatpush.bf16.msrb.mxu3 %v9164_v26  ;;  %v9197_v26 = vld [vmem:[%s10418_s29 + $0x6f0] sm:$0xff] }
 0x2ca   : > { %7195 = vmatpush.bf16.msrb.mxu0 %v9139_v28  ;;  %v6861_v54 = vpop.f32.mrf.mxu2  ;;  %v6826_v59 = vpop.f32.mrf.mxu0  ;;  %v7711_v28 = vld [vmem:[%s11110_s0 + $0xd0] sm:$0xf0] }
 0x2cb   : > { %7214 = vmatpush.bf16.msrb.mxu1 %v9147_v29  ;;  %v6880_v55 = vpop.f32.mrf.mxu3  ;;  %v6862_v58 = vadd.f32 %v6861_v54, %v6843_v37  ;;  %v6845_v60 = vpop.f32.mrf.mxu1  ;;  %v7717_v29 = vld [vmem:[%s11110_s0 + $0x58] sm:$0xf] }
 0x2cc   : > { %7233 = vmatpush.bf16.msrb.mxu2 %v9155_v27  ;;  %v6846_v63 = vadd.f32 %v6845_v60, %v6826_v59  ;;  %v9188_v27 = vld [vmem:[%s10418_s29 + $0x6a8] sm:$0xff]  ;;  %v9178_v54 = vld [vmem:[%s10418_s29 + $0x658] sm:$0xff] }
 0x2cd   : > { %7252 = vmatpush.bf16.msrb.mxu3 %v9163_v30  ;;  %v10848_v2 = vadd.f32 %v6880_v55, %v6862_v58  ;;  %7129 = vmatmul.bf16.gmra.mxu0 %v7822_v56  ;;  %v8938_v30 = vld [vmem:[%s11110_s0 + $0xd4] sm:$0xf0] }
 0x2ce   : > { %7196 = vmatpush.bf16.msrb.mxu0 %v9138_v38  ;;  %7148 = vmatmul.bf16.gmra.mxu1 %v7826_v61  ;;  %v9170_v60 = vld [vmem:[%s10418_s29 + $0x618] sm:$0xff] }
 0x2cf   : > { %7215 = vmatpush.bf16.msrb.mxu1 %v9146_v40  ;;  %7167 = vmatmul.bf16.gmra.mxu2 %v7830_v62  ;;  %v7714_v40 = vor.u32 %v8921_v25, %v7711_v28  ;;  %v9194_v62 = vld [vmem:[%s10418_s29 + $0x6d8] sm:$0xff]  ;;  %v9168_v25 = vld [vmem:[%s10418_s29 + $0x608] sm:$0xff]  ;;  %v9183_v28 = vld [vmem:[%s10418_s29 + $0x680] sm:$0xff] }
 0x2d0   : > { %7234 = vmatpush.bf16.msrb.mxu2 %v9154_v33  ;;  %7186 = vmatmul.bf16.gmra.mxu3 %v7834_v0 }
 0x2d1   : > { %7253 = vmatpush.bf16.msrb.mxu3 %v9162_v41  ;;  %v7718_v41 = vor.u32 %v8938_v30, %v7717_v29  ;;  %v9175_v30 = vld [vmem:[%s10418_s29 + $0x640] sm:$0xff] }
 0x2d2   : > { %7197 = vmatpush.bf16.msrb.mxu0 %v9137_v50  ;;  %v6864_v10 = vpop.f32.mrf.mxu2  ;;  %v6828_v15 = vpop.f32.mrf.mxu0  ;;  %v9179_v50 = vld [vmem:[%s10418_s29 + $0x660] sm:$0xff] }
 0x2d3   : > { %7216 = vmatpush.bf16.msrb.mxu1 %v9145_v52  ;;  %v6883_v11 = vpop.f32.mrf.mxu3  ;;  %v6865_v14 = vadd.f32 %v6864_v10, %v6846_v63  ;;  %v6847_v16 = vpop.f32.mrf.mxu1  ;;  %v9186_v52 = vld [vmem:[%s10418_s29 + $0x698] sm:$0xff]  ;;  %v9185_v63 = vld [vmem:[%s10418_s29 + $0x690] sm:$0xff] }
 0x2d4   : > { %7235 = vmatpush.bf16.msrb.mxu2 %v9153_v44  ;;  %v6848_v19 = vadd.f32 %v6847_v16, %v6828_v15  ;;  %v7722_v44 = vor.u32 %v8922_v31, %v7719_v32  ;;  %v7847_v10 = vld [vmem:[%s11110_s0 + $0x1d8] sm:$0xf0]  ;;  %v9176_v15 = vld [vmem:[%s10418_s29 + $0x648] sm:$0xff]  ;;  %v9167_v32 = vld [vmem:[%s10418_s29 + $0x600] sm:$0xff] }
 0x2d5   : > { %7254 = vmatpush.bf16.msrb.mxu3 %v9161_v53  ;;  %v10861_v20 = vadd.f32 %v6883_v11, %v6865_v14  ;;  %v9193_v11 = vld [vmem:[%s10418_s29 + $0x6d0] sm:$0xff]  ;;  %v9214_v31 = vld [vmem:[%s10418_s29 + $0x778] sm:$0xff] }
 0x2d6   : > { %7198 = vmatpush.bf16.msrb.mxu0 %v9136_v1  ;;  %v7837_v1 = vld [vmem:[%s11110_s0 + $0x150] sm:$0xf] }
 0x2d7   : > { %7217 = vmatpush.bf16.msrb.mxu1 %v9144_v3  ;;  %v9177_v3 = vld [vmem:[%s10418_s29 + $0x650] sm:$0xff] }
 0x2d8   : > { %7236 = vmatpush.bf16.msrb.mxu2 %v9152_v57 }
 0x2d9   : > { %7255 = vmatpush.bf16.msrb.mxu3 %v9160_v4  ;;  %v8953_v4 = vld [vmem:[%s11110_s0 + $0x154] sm:$0xf] }
 0x2da   : > { %7199 = vmatpush.bf16.msrb.mxu0 %v9135_v7  ;;  %v6866_v33 = vpop.f32.mrf.mxu2  ;;  %v6897_v38 = vpop.f32.mrf.mxu0  ;;  %v8970_v7 = vld [vmem:[%s11110_s0 + $0x1d4] sm:$0xf0] }
 0x2db   : > { %7218 = vmatpush.bf16.msrb.mxu1 %v9143_v8  ;;  %v6885_v34 = vpop.f32.mrf.mxu3  ;;  %v6867_v37 = vadd.f32 %v6866_v33, %v6848_v19  ;;  %v6898_v42 = vadd.f32 %v6897_v38, %v10814_v39  ;;  %v6916_v43 = vpop.f32.mrf.mxu1  ;;  %v9171_v39 = vld [vmem:[%s10418_s29 + $0x620] sm:$0xff]  ;;  %v8954_v8 = vld [vmem:[%s11110_s0 + $0x15c] sm:$0xf] }
 0x2dc   : > { %7237 = vmatpush.bf16.msrb.mxu2 %v9151_v5  ;;  %v7839_v5 = vld [vmem:[%s11110_s0 + $0x1d0] sm:$0xf0]  ;;  %v9191_v33 = vld [vmem:[%s10418_s29 + $0x6c0] sm:$0xff] }
 0x2dd   : > { %7256 = vmatpush.bf16.msrb.mxu3 %v9159_v9  ;;  %v10894_v46 = vadd.f32 %v6885_v34, %v6867_v37  ;;  %v6917_v49 = vadd.f32 %v6916_v43, %v6898_v42  ;;  %7200 = vmatmul.bf16.vlgmr.msrb.gmra.mxu0 %v7710_v35  ;;  %v9169_v9 = vld [vmem:[%s10418_s29 + $0x610] sm:$0xff]  ;;  %v7842_v19 = vor.u32 %v8953_v4, %v7839_v5  ;;  %v9206_v34 = vld [vmem:[%s10418_s29 + $0x738] sm:$0xff] }
 0x2de   : > { %7268 = vmatpush.bf16.msra.mxu0 %v9174_v12  ;;  %7219 = vmatmul.bf16.vlgmr.msrb.gmra.mxu1 %v7714_v40  ;;  %v9184_v12 = vld [vmem:[%s10418_s29 + $0x688] sm:$0xff]  ;;  %v9221_v37 = vld [vmem:[%s10418_s29 + $0x7b0] sm:$0xff] }
 0x2df   : > { %7287 = vmatpush.bf16.msra.mxu1 %v9182_v13  ;;  %7238 = vmatmul.bf16.vlgmr.msrb.gmra.mxu2 %v7718_v41  ;;  %v9213_v42 = vld [vmem:[%s10418_s29 + $0x770] sm:$0xff] }
 0x2e0   : > { %7306 = vmatpush.bf16.msra.mxu2 %v9190_v6  ;;  %7257 = vmatmul.bf16.vlgmr.msrb.gmra.mxu3 %v7722_v44  ;;  %v7845_v6 = vld [vmem:[%s11110_s0 + $0x158] sm:$0xf] }
 0x2e1   : > { %7325 = vmatpush.bf16.msra.mxu3 %v9198_v17  ;;  %v7846_v21 = vor.u32 %v8970_v7, %v7845_v6  ;;  %v9219_v7 = vld [vmem:[%s10418_s29 + $0x7a0] sm:$0xff] }
 0x2e2   : > { %7269 = vmatpush.bf16.msra.mxu0 %v9173_v23  ;;  %v6935_v53 = vpop.f32.mrf.mxu2  ;;  %v6899_v57 = vpop.f32.mrf.mxu0 }
 0x2e3   : > { %7288 = vmatpush.bf16.msra.mxu1 %v9181_v24  ;;  %v6936_v55 = vadd.f32 %v6935_v53, %v6917_v49  ;;  %v6954_v56 = vpop.f32.mrf.mxu3  ;;  %v6900_v58 = vadd.f32 %v6899_v57, %v10848_v2  ;;  %v6918_v59 = vpop.f32.mrf.mxu1  ;;  %v8969_v2 = vld [vmem:[%s11110_s0 + $0x1cc] sm:$0xf0]  ;;  %v7850_v24 = vor.u32 %v8954_v8, %v7847_v10  ;;  %v7725_v49 = vld [vmem:[%s11110_s0 + $0x60] sm:$0xf]  ;;  %v7727_v53 = vld [vmem:[%s11110_s0 + $0xe0] sm:$0xf0] }
 0x2e4   : > { %7307 = vmatpush.bf16.msra.mxu2 %v9189_v18  ;;  %v7838_v14 = vor.u32 %v8969_v2, %v7837_v1  ;;  %v7735_v57 = vld [vmem:[%s11110_s0 + $0xe8] sm:$0xf0]  ;;  %v9211_v10 = vld [vmem:[%s10418_s29 + $0x760] sm:$0xff] }
 0x2e5   : > { %7326 = vmatpush.bf16.msra.mxu3 %v9197_v26  ;;  %v10905_v61 = vadd.f32 %v6954_v56, %v6936_v55  ;;  %v6919_v0 = vadd.f32 %v6918_v59, %v6900_v58  ;;  %v8940_v55 = vld [vmem:[%s11110_s0 + $0xe4] sm:$0xf0]  ;;  %v8924_v56 = vld [vmem:[%s11110_s0 + $0x6c] sm:$0xf] }
 0x2e6   : > { %7270 = vmatpush.bf16.msra.mxu0 %v9172_v45  ;;  %v9204_v58 = vld [vmem:[%s10418_s29 + $0x728] sm:$0xff]  ;;  %v7738_v6 = vor.u32 %v8924_v56, %v7735_v57  ;;  %v9223_v56 = vld [vmem:[%s10418_s29 + $0x7c0] sm:$0xff] }
 0x2e7   : > { %7289 = vmatpush.bf16.msra.mxu1 %v9180_v36  ;;  %v9230_v36 = vld [vmem:[%s10418_s29 + $0x7f8] sm:$0xff] }
 0x2e8   : > { %7308 = vmatpush.bf16.msra.mxu2 %v9188_v27  ;;  %v9192_v27 = vld [vmem:[%s10418_s29 + $0x6c8] sm:$0xff] }
 0x2e9   : > { %7327 = vmatpush.bf16.msra.mxu3 %v9196_v47  ;;  %v9205_v47 = vld [vmem:[%s10418_s29 + $0x730] sm:$0xff] }
 0x2ea   : > { %7271 = vmatpush.bf16.msra.mxu0 %v9171_v39  ;;  %v6937_v13 = vpop.f32.mrf.mxu2  ;;  %v6902_v18 = vpop.f32.mrf.mxu0  ;;  %v9220_v39 = vld [vmem:[%s10418_s29 + $0x7a8] sm:$0xff] }
 0x2eb   : > { %7290 = vmatpush.bf16.msra.mxu1 %v9179_v50  ;;  %v6938_v16 = vadd.f32 %v6937_v13, %v6919_v0  ;;  %v6956_v17 = vpop.f32.mrf.mxu3  ;;  %v6903_v22 = vadd.f32 %v6902_v18, %v10861_v20  ;;  %v6921_v23 = vpop.f32.mrf.mxu1  ;;  %v9222_v20 = vld [vmem:[%s10418_s29 + $0x7b8] sm:$0xff]  ;;  %v9229_v50 = vld [vmem:[%s10418_s29 + $0x7f0] sm:$0xff] }
 0x2ec   : > { %7309 = vmatpush.bf16.msra.mxu2 %v9187_v48  ;;  %v9202_v13 = vld [vmem:[%s10418_s29 + $0x718] sm:$0xff] }
 0x2ed   : > { %7328 = vmatpush.bf16.msra.mxu3 %v9195_v51  ;;  %v10940_v26 = vadd.f32 %v6956_v17, %v6938_v16  ;;  %v6922_v29 = vadd.f32 %v6921_v23, %v6903_v22  ;;  %7205 = vmatmul.bf16.gmra.mxu0 %v7838_v14  ;;  %v8923_v51 = vld [vmem:[%s11110_s0 + $0x64] sm:$0xf]  ;;  %v9210_v14 = vld [vmem:[%s10418_s29 + $0x758] sm:$0xff]  ;;  %v9217_v23 = vld [vmem:[%s10418_s29 + $0x790] sm:$0xff] }
 0x2ee   : > { %7272 = vmatpush.bf16.msra.mxu0 %v9170_v60  ;;  %7224 = vmatmul.bf16.gmra.mxu1 %v7842_v19  ;;  %v7730_v2 = vor.u32 %v8923_v51, %v7727_v53  ;;  %v9226_v16 = vld [vmem:[%s10418_s29 + $0x7d8] sm:$0xff]  ;;  %v9215_v51 = vld [vmem:[%s10418_s29 + $0x780] sm:$0xff] }
 0x2ef   : > { %7291 = vmatpush.bf16.msra.mxu1 %v9178_v54  ;;  %7243 = vmatmul.bf16.gmra.mxu2 %v7846_v21  ;;  %v7733_v54 = vld [vmem:[%s11110_s0 + $0x68] sm:$0xf]  ;;  %v9199_v53 = vld [vmem:[%s10418_s29 + $0x700] sm:$0xff] }
 0x2f0   : > { %7310 = vmatpush.bf16.msra.mxu2 %v9186_v52  ;;  %7262 = vmatmul.bf16.gmra.mxu3 %v7850_v24  ;;  %v9212_v52 = vld [vmem:[%s10418_s29 + $0x768] sm:$0xff] }
 0x2f1   : > { %7329 = vmatpush.bf16.msra.mxu3 %v9194_v62  ;;  %v9228_v62 = vld [vmem:[%s10418_s29 + $0x7e8] sm:$0xff] }
 0x2f2   : > { %7273 = vmatpush.bf16.msra.mxu0 %v9169_v9  ;;  %v6940_v35 = vpop.f32.mrf.mxu2  ;;  %v6904_v41 = vpop.f32.mrf.mxu0  ;;  %v9203_v9 = vld [vmem:[%s10418_s29 + $0x720] sm:$0xff] }
 0x2f3   : > { %7292 = vmatpush.bf16.msra.mxu1 %v9177_v3  ;;  %v6941_v38 = vadd.f32 %v6940_v35, %v6922_v29  ;;  %v6959_v40 = vpop.f32.mrf.mxu3  ;;  %v6905_v43 = vadd.f32 %v6904_v41, %v10894_v46  ;;  %v6923_v44 = vpop.f32.mrf.mxu1  ;;  %v8939_v46 = vld [vmem:[%s11110_s0 + $0xdc] sm:$0xf0]  ;;  %v7734_v3 = vor.u32 %v8940_v55, %v7733_v54  ;;  %v9216_v35 = vld [vmem:[%s10418_s29 + $0x788] sm:$0xff] }
 0x2f4   : > { %7311 = vmatpush.bf16.msra.mxu2 %v9185_v63  ;;  %v7726_v60 = vor.u32 %v8939_v46, %v7725_v49  ;;  %v7853_v29 = vld [vmem:[%s11110_s0 + $0x160] sm:$0xf] }
 0x2f5   : > { %7330 = vmatpush.bf16.msra.mxu3 %v9193_v11  ;;  %v10954_v45 = vadd.f32 %v6959_v40, %v6941_v38  ;;  %v6924_v48 = vadd.f32 %v6923_v44, %v6905_v43  ;;  %v9208_v38 = vld [vmem:[%s10418_s29 + $0x748] sm:$0xff]  ;;  %v9207_v54 = vld [vmem:[%s10418_s29 + $0x740] sm:$0xff] }
 0x2f6   : > { %7274 = vmatpush.bf16.msra.mxu0 %v9168_v25  ;;  %v9201_v25 = vld [vmem:[%s10418_s29 + $0x710] sm:$0xff] }
 0x2f7   : > { %7293 = vmatpush.bf16.msra.mxu1 %v9176_v15 }
 0x2f8   : > { %7312 = vmatpush.bf16.msra.mxu2 %v9184_v12  ;;  %v9227_v12 = vld [vmem:[%s10418_s29 + $0x7e0] sm:$0xff] }
 0x2f9   : > { %7331 = vmatpush.bf16.msra.mxu3 %v9192_v27  ;;  %v9209_v27 = vld [vmem:[%s10418_s29 + $0x750] sm:$0xff] }
 0x2fa   : > { %7275 = vmatpush.bf16.msra.mxu0 %v9167_v32  ;;  %v6942_v59 = vpop.f32.mrf.mxu2  ;;  %v6973_v1 = vpop.f32.mrf.mxu0  ;;  %v7861_v32 = vld [vmem:[%s11110_s0 + $0x168] sm:$0xf] }
 0x2fb   : > { %7294 = vmatpush.bf16.msra.mxu1 %v9175_v30  ;;  %v6943_v63 = vadd.f32 %v6942_v59, %v6924_v48  ;;  %v6961_v0 = vpop.f32.mrf.mxu3  ;;  %v6974_v4 = vadd.f32 %v6973_v1, %v10905_v61  ;;  %v6992_v5 = vpop.f32.mrf.mxu1  ;;  %v9218_v61 = vld [vmem:[%s10418_s29 + $0x798] sm:$0xff]  ;;  %v9225_v30 = vld [vmem:[%s10418_s29 + $0x7d0] sm:$0xff] }
 0x2fc   : > { %7313 = vmatpush.bf16.msra.mxu2 %v9183_v28  ;;  %v7741_v1 = vld [vmem:[%s11110_s0 + $0x70] sm:$0xf] }
 0x2fd   : > { %7332 = vmatpush.bf16.msra.mxu3 %v9191_v33  ;;  %v10988_v8 = vadd.f32 %v6961_v0, %v6943_v63  ;;  %v6993_v11 = vadd.f32 %v6992_v5, %v6974_v4  ;;  %7276 = vmatmul.bf16.vlgmr.msra.gmra.mxu0 %v7726_v60  ;;  %v8972_v33 = vld [vmem:[%s11110_s0 + $0x1e4] sm:$0xf0]  ;;  %v7743_v4 = vld [vmem:[%s11110_s0 + $0xf0] sm:$0xf0]  ;;  %v7749_v5 = vld [vmem:[%s11110_s0 + $0x78] sm:$0xf] }
 0x2fe   : > { %7344 = vmatpush.bf16.msrb.mxu0 %v9206_v34  ;;  %7295 = vmatmul.bf16.vlgmr.msra.gmra.mxu1 %v7730_v2  ;;  %v8956_v34 = vld [vmem:[%s11110_s0 + $0x16c] sm:$0xf]  ;;  %v7862_v49 = vor.u32 %v8972_v33, %v7861_v32  ;;  %v8941_v2 = vld [vmem:[%s11110_s0 + $0xec] sm:$0xf0]  ;;  %v7877_v32 = vld [vmem:[%s11110_s0 + $0x178] sm:$0xf] }
 0x2ff   : > { %7363 = vmatpush.bf16.msrb.mxu1 %v9214_v31  ;;  %7314 = vmatmul.bf16.vlgmr.msra.gmra.mxu2 %v7734_v3  ;;  %v7855_v31 = vld [vmem:[%s11110_s0 + $0x1e0] sm:$0xf0]  ;;  %v8925_v3 = vld [vmem:[%s11110_s0 + $0x74] sm:$0xf]  ;;  %v8974_v33 = vld [vmem:[%s11110_s0 + $0x1f4] sm:$0xf0] }
 0x300   : > { %7382 = vmatpush.bf16.msrb.mxu2 %v9222_v20  ;;  %7333 = vmatmul.bf16.vlgmr.msra.gmra.mxu3 %v7738_v6  ;;  %v8955_v20 = vld [vmem:[%s11110_s0 + $0x164] sm:$0xf]  ;;  %v8942_v6 = vld [vmem:[%s11110_s0 + $0xf4] sm:$0xf0] }
 0x301   : > { %7401 = vmatpush.bf16.msrb.mxu3 %v9230_v36  ;;  %v7863_v36 = vld [vmem:[%s11110_s0 + $0x1e8] sm:$0xf0]  ;;  %v7858_v48 = vor.u32 %v8955_v20, %v7855_v31  ;;  %v8957_v20 = vld [vmem:[%s11110_s0 + $0x174] sm:$0xf] }
 0x302   : > { %7345 = vmatpush.bf16.msrb.mxu0 %v9205_v47  ;;  %v7011_v15 = vpop.f32.mrf.mxu2  ;;  %v6975_v19 = vpop.f32.mrf.mxu0  ;;  %v7866_v46 = vor.u32 %v8956_v34, %v7863_v36  ;;  %v7871_v31 = vld [vmem:[%s11110_s0 + $0x1f0] sm:$0xf0]  ;;  %v8958_v34 = vld [vmem:[%s11110_s0 + $0x17c] sm:$0xf] }
 0x303   : > { %7364 = vmatpush.bf16.msrb.mxu1 %v9213_v42  ;;  %v7012_v17 = vadd.f32 %v7011_v15, %v6993_v11  ;;  %v7030_v18 = vpop.f32.mrf.mxu3  ;;  %v6976_v21 = vadd.f32 %v6975_v19, %v10940_v26  ;;  %v6994_v22 = vpop.f32.mrf.mxu1  ;;  %v8971_v26 = vld [vmem:[%s11110_s0 + $0x1dc] sm:$0xf0]  ;;  %v9224_v42 = vld [vmem:[%s10418_s29 + $0x7c8] sm:$0xff] }
 0x304   : > { %7383 = vmatpush.bf16.msrb.mxu2 %v9221_v37  ;;  %v9200_v37 = vld [vmem:[%s10418_s29 + $0x708] sm:$0xff]  ;;  %v7854_v41 = vor.u32 %v8971_v26, %v7853_v29 }
 0x305   : > { %7402 = vmatpush.bf16.msrb.mxu3 %v9229_v50  ;;  %v10999_v24 = vadd.f32 %v7030_v18, %v7012_v17  ;;  %v6995_v28 = vadd.f32 %v6994_v22, %v6976_v21 }
 0x306   : > { %7346 = vmatpush.bf16.msrb.mxu0 %v9204_v58 }
 0x307   : > { %7365 = vmatpush.bf16.msrb.mxu1 %v9212_v52 }
 0x308   : > { %7384 = vmatpush.bf16.msrb.mxu2 %v9220_v39 }
 0x309   : > { %7403 = vmatpush.bf16.msrb.mxu3 %v9228_v62 }
 0x30a   : > { %7347 = vmatpush.bf16.msrb.mxu0 %v9203_v9  ;;  %v7013_v40 = vpop.f32.mrf.mxu2  ;;  %v6978_v47 = vpop.f32.mrf.mxu0 }
 0x30b   : > { %7366 = vmatpush.bf16.msrb.mxu1 %v9211_v10  ;;  %v7014_v43 = vadd.f32 %v7013_v40, %v6995_v28  ;;  %v7032_v44 = vpop.f32.mrf.mxu3  ;;  %v6979_v50 = vadd.f32 %v6978_v47, %v10954_v45  ;;  %v6997_v39 = vpop.f32.mrf.mxu1  ;;  %v7742_v10 = vor.u32 %v8941_v2, %v7741_v1 }
 0x30c   : > { %7385 = vmatpush.bf16.msrb.mxu2 %v9219_v7  ;;  %v8926_v7 = vld [vmem:[%s11110_s0 + $0x7c] sm:$0xf] }
 0x30d   : > { %7404 = vmatpush.bf16.msrb.mxu3 %v9227_v12  ;;  %v7033_v52 = vadd.f32 %v7032_v44, %v7014_v43  ;;  %v6998_v55 = vadd.f32 %v6997_v39, %v6979_v50  ;;  %7281 = vmatmul.bf16.gmra.mxu0 %v7854_v41  ;;  %v7878_v43 = vor.u32 %v8974_v33, %v7877_v32 }
 0x30e   : > { %7348 = vmatpush.bf16.msrb.mxu0 %v9202_v13  ;;  %7300 = vmatmul.bf16.gmra.mxu1 %v7858_v48  ;;  %v7746_v13 = vor.u32 %v8925_v3, %v7743_v4 }
 0x30f   : > { %7367 = vmatpush.bf16.msrb.mxu1 %v9210_v14  ;;  %7319 = vmatmul.bf16.gmra.mxu2 %v7862_v49  ;;  %v7750_v14 = vor.u32 %v8942_v6, %v7749_v5 }
 0x310   : > { %7386 = vmatpush.bf16.msrb.mxu2 %v9218_v61  ;;  %7338 = vmatmul.bf16.gmra.mxu3 %v7866_v46 }
 0x311   : > { %7405 = vmatpush.bf16.msrb.mxu3 %v9226_v16 }
 0x312   : > { %7349 = vmatpush.bf16.msrb.mxu0 %v9201_v25  ;;  %v7016_v45 = vpop.f32.mrf.mxu2  ;;  %v6980_v59 = vpop.f32.mrf.mxu0 }
 0x313   : > { %7368 = vmatpush.bf16.msrb.mxu1 %v9209_v27  ;;  %v7017_v57 = vadd.f32 %v7016_v45, %v6998_v55  ;;  %v7035_v58 = vpop.f32.mrf.mxu3  ;;  %v6981_v60 = vadd.f32 %v6980_v59, %v10988_v8  ;;  %v6999_v62 = vpop.f32.mrf.mxu1  ;;  %v7751_v8 = vld [vmem:[%s11110_s0 + $0xf8] sm:$0xf0] }
 0x314   : > { %7387 = vmatpush.bf16.msrb.mxu2 %v9217_v23  ;;  %v7754_v17 = vor.u32 %v8926_v7, %v7751_v8 }
 0x315   : > { %7406 = vmatpush.bf16.msrb.mxu3 %v9225_v30  ;;  %v7036_v63 = vadd.f32 %v7035_v58, %v7017_v57  ;;  %v7000_v0 = vadd.f32 %v6999_v62, %v6981_v60  ;;  %v8973_v30 = vld [vmem:[%s11110_s0 + $0x1ec] sm:$0xf0] }
 0x316   : > { %7350 = vmatpush.bf16.msrb.mxu0 %v9200_v37 }
 0x317   : > { %7369 = vmatpush.bf16.msrb.mxu1 %v9208_v38 }
 0x318   : > { %7388 = vmatpush.bf16.msrb.mxu2 %v9216_v35  ;;  %v7879_v35 = vld [vmem:[%s11110_s0 + $0x1f8] sm:$0xf0] }
 0x319   : > { %7407 = vmatpush.bf16.msrb.mxu3 %v9224_v42  ;;  %v7874_v42 = vor.u32 %v8957_v20, %v7871_v31  ;;  %v7882_v48 = vor.u32 %v8958_v34, %v7879_v35 }
 0x31a   : > { %7351 = vmatpush.bf16.msrb.mxu0 %v9199_v53  ;;  %v7018_v9 = vpop.f32.mrf.mxu2  ;;  %v7049_v61 = vpop.f32.mrf.mxu0 }
 0x31b   : > { %7370 = vmatpush.bf16.msrb.mxu1 %v9207_v54  ;;  %v7019_v11 = vadd.f32 %v7018_v9, %v7000_v0  ;;  %v7037_v12 = vpop.f32.mrf.mxu3  ;;  %v7050_v15 = vadd.f32 %v7049_v61, %v10999_v24  ;;  %v7068_v16 = vpop.f32.mrf.mxu1  ;;  %v7869_v24 = vld [vmem:[%s11110_s0 + $0x170] sm:$0xf] }
 0x31c   : > { %7389 = vmatpush.bf16.msrb.mxu2 %v9215_v51  ;;  %v7870_v37 = vor.u32 %v8973_v30, %v7869_v24 }
 0x31d   : > { %7408 = vmatpush.bf16.msrb.mxu3 %v9223_v56  ;;  %v7038_v18 = vadd.f32 %v7037_v12, %v7019_v11  ;;  %v7069_v19 = vadd.f32 %v7068_v16, %v7050_v15  ;;  %7352 = vmatmul.bf16.vlgmr.msrb.gmra.mxu0 %v7742_v10 }
 0x31e   : > { %7371 = vmatmul.bf16.vlgmr.msrb.gmra.mxu1 %v7746_v13 }
 0x31f   : > { %7390 = vmatmul.bf16.vlgmr.msrb.gmra.mxu2 %v7750_v14 }
 0x320   : > { %7409 = vmatmul.bf16.vlgmr.msrb.gmra.mxu3 %v7754_v17 }
 0x322   : > { %v7087_v21 = vpop.f32.mrf.mxu2  ;;  %v7051_v25 = vpop.f32.mrf.mxu0 }
 0x323   : > { %v7088_v22 = vadd.f32 %v7087_v21, %v7069_v19  ;;  %v7106_v23 = vpop.f32.mrf.mxu3  ;;  %v7052_v27 = vadd.f32 %v7051_v25, %v7033_v52  ;;  %v7070_v28 = vpop.f32.mrf.mxu1 }
 0x325   : > { %v7107_v29 = vadd.f32 %v7106_v23, %v7088_v22  ;;  %v7071_v26 = vadd.f32 %v7070_v28, %v7052_v27 }
 0x32a   : > { %v7089_v36 = vpop.f32.mrf.mxu2  ;;  %v7054_v41 = vpop.f32.mrf.mxu0 }
 0x32b   : > { %v7090_v38 = vadd.f32 %v7089_v36, %v7071_v26  ;;  %v7108_v40 = vpop.f32.mrf.mxu3  ;;  %v7055_v44 = vadd.f32 %v7054_v41, %v7036_v63  ;;  %v7073_v47 = vpop.f32.mrf.mxu1 }
 0x32d   : > { %v7109_v49 = vadd.f32 %v7108_v40, %v7090_v38  ;;  %v7074_v50 = vadd.f32 %v7073_v47, %v7055_v44  ;;  %7357 = vmatmul.bf16.gmra.mxu0 %v7870_v37 }
 0x32e   : > { %7376 = vmatmul.bf16.gmra.mxu1 %v7874_v42 }
 0x32f   : > { %7395 = vmatmul.bf16.gmra.mxu2 %v7878_v43 }
 0x330   : > { %7414 = vmatmul.bf16.gmra.mxu3 %v7882_v48 }
 0x332   : > { %v7092_v39 = vpop.f32.mrf.mxu2  ;;  %v7056_v52 = vpop.f32.mrf.mxu0 }
 0x333   : > { %v7093_v46 = vadd.f32 %v7092_v39, %v7074_v50  ;;  %v7111_v51 = vpop.f32.mrf.mxu3  ;;  %v7057_v53 = vadd.f32 %v7056_v52, %v7038_v18  ;;  %v7075_v54 = vpop.f32.mrf.mxu1 }
 0x335   : > { %v7112_v55 = vadd.f32 %v7111_v51, %v7093_v46  ;;  %v7076_v56 = vadd.f32 %v7075_v54, %v7057_v53 }
 0x33a   : > { %v7094_v45 = vpop.f32.mrf.mxu2  ;;  %v7125_v59 = vpop.f32.mrf.mxu0 }
 0x33b   : > { %v7095_v57 = vadd.f32 %v7094_v45, %v7076_v56  ;;  %v7113_v58 = vpop.f32.mrf.mxu3  ;;  %v7126_v60 = vadd.f32 %v7125_v59, %v7107_v29  ;;  %v7144_v62 = vpop.f32.mrf.mxu1 }
 0x33d   : > { %v7114_v63 = vadd.f32 %v7113_v58, %v7095_v57  ;;  %v7145_v0 = vadd.f32 %v7144_v62, %v7126_v60 }
 0x342   : > { %v7163_v1 = vpop.f32.mrf.mxu2  ;;  %v7127_v4 = vpop.f32.mrf.mxu0 }
 0x343   : > { %v7164_v2 = vadd.f32 %v7163_v1, %v7145_v0  ;;  %v7182_v3 = vpop.f32.mrf.mxu3  ;;  %v7128_v5 = vadd.f32 %v7127_v4, %v7109_v49  ;;  %v7146_v6 = vpop.f32.mrf.mxu1 }
 0x345   : > { %v7183_v7 = vadd.f32 %v7182_v3, %v7164_v2  ;;  %v7147_v8 = vadd.f32 %v7146_v6, %v7128_v5 }
 0x34a   : > { %v7165_v9 = vpop.f32.mrf.mxu2  ;;  %v7130_v12 = vpop.f32.mrf.mxu0 }
 0x34b   : > { %v7166_v10 = vadd.f32 %v7165_v9, %v7147_v8  ;;  %v7184_v11 = vpop.f32.mrf.mxu3  ;;  %v7131_v61 = vadd.f32 %v7130_v12, %v7112_v55  ;;  %v7149_v13 = vpop.f32.mrf.mxu1 }
 0x34d   : > { %v7185_v14 = vadd.f32 %v7184_v11, %v7166_v10  ;;  %v7150_v15 = vadd.f32 %v7149_v13, %v7131_v61 }
 0x352   : > { %v7168_v16 = vpop.f32.mrf.mxu2  ;;  %v7132_v19 = vpop.f32.mrf.mxu0 }
 0x353   : > { %v7169_v17 = vadd.f32 %v7168_v16, %v7150_v15  ;;  %v7187_v18 = vpop.f32.mrf.mxu3  ;;  %v7133_v21 = vadd.f32 %v7132_v19, %v7114_v63  ;;  %v7151_v22 = vpop.f32.mrf.mxu1 }
 0x355   : > { %v7188_v23 = vadd.f32 %v7187_v18, %v7169_v17  ;;  %v7152_v25 = vadd.f32 %v7151_v22, %v7133_v21 }
 0x35a   : > { %v7170_v27 = vpop.f32.mrf.mxu2  ;;  %v7201_v26 = vpop.f32.mrf.mxu0 }
 0x35b   : > { %v7171_v28 = vadd.f32 %v7170_v27, %v7152_v25  ;;  %v7189_v29 = vpop.f32.mrf.mxu3  ;;  %v7220_v24 = vpop.f32.mrf.mxu1  ;;  %v7202_v51 = vadd.f32 %v7201_v26, %v7183_v7 }
 0x35d   : > { %v7190_v30 = vadd.f32 %v7189_v29, %v7171_v28  ;;  %v7221_v53 = vadd.f32 %v7220_v24, %v7202_v51 }
 0x362   : > { %v7239_v20 = vpop.f32.mrf.mxu2  ;;  %v7203_v32 = vpop.f32.mrf.mxu0 }
 0x363   : > { %v7258_v31 = vpop.f32.mrf.mxu3  ;;  %v7222_v33 = vpop.f32.mrf.mxu1  ;;  %v7240_v45 = vadd.f32 %v7239_v20, %v7221_v53  ;;  %v7204_v57 = vadd.f32 %v7203_v32, %v7185_v14 }
 0x365   : > { %v7259_v58 = vadd.f32 %v7258_v31, %v7240_v45  ;;  %v7223_v59 = vadd.f32 %v7222_v33, %v7204_v57 }
 0x36a   : > { %v7241_v34 = vpop.f32.mrf.mxu2  ;;  %v7206_v36 = vpop.f32.mrf.mxu0 }
 0x36b   : > { %v7260_v35 = vpop.f32.mrf.mxu3  ;;  %v7225_v37 = vpop.f32.mrf.mxu1  ;;  %v7242_v62 = vadd.f32 %v7241_v34, %v7223_v59  ;;  %v7207_v4 = vadd.f32 %v7206_v36, %v7188_v23 }
 0x36d   : > { %v7261_v3 = vadd.f32 %v7260_v35, %v7242_v62  ;;  %v7226_v9 = vadd.f32 %v7225_v37, %v7207_v4 }
 0x372   : > { %v7244_v38 = vpop.f32.mrf.mxu2  ;;  %v7208_v41 = vpop.f32.mrf.mxu0 }
 0x373   : > { %v7263_v40 = vpop.f32.mrf.mxu3  ;;  %v7227_v42 = vpop.f32.mrf.mxu1  ;;  %v7245_v61 = vadd.f32 %v7244_v38, %v7226_v9  ;;  %v7209_v13 = vadd.f32 %v7208_v41, %v7190_v30 }
 0x375   : > { %v7264_v18 = vadd.f32 %v7263_v40, %v7245_v61  ;;  %v7228_v19 = vadd.f32 %v7227_v42, %v7209_v13 }
 0x37a   : > { %v7246_v43 = vpop.f32.mrf.mxu2  ;;  %v7277_v47 = vpop.f32.mrf.mxu0 }
 0x37b   : > { %v7265_v44 = vpop.f32.mrf.mxu3  ;;  %v7296_v48 = vpop.f32.mrf.mxu1  ;;  %v7278_v63 = vadd.f32 %v7277_v47, %v7259_v58  ;;  %v7247_v22 = vadd.f32 %v7246_v43, %v7228_v19 }
 0x37d   : > { %v7297_v5 = vadd.f32 %v7296_v48, %v7278_v63  ;;  %v7266_v31 = vadd.f32 %v7265_v44, %v7247_v22 }
 0x382   : > { %v7315_v49 = vpop.f32.mrf.mxu2  ;;  %v7279_v39 = vpop.f32.mrf.mxu0 }
 0x383   : > { %v7334_v50 = vpop.f32.mrf.mxu3  ;;  %v7298_v46 = vpop.f32.mrf.mxu1  ;;  %v7316_v6 = vadd.f32 %v7315_v49, %v7297_v5  ;;  %v7280_v7 = vadd.f32 %v7279_v39, %v7261_v3 }
 0x385   : > { %v7335_v14 = vadd.f32 %v7334_v50, %v7316_v6  ;;  %v7299_v15 = vadd.f32 %v7298_v46, %v7280_v7 }
 0x38a   : > { %v7317_v52 = vpop.f32.mrf.mxu2  ;;  %v7282_v55 = vpop.f32.mrf.mxu0 }
 0x38b   : > { %v7336_v54 = vpop.f32.mrf.mxu3  ;;  %v7301_v56 = vpop.f32.mrf.mxu1  ;;  %v7318_v16 = vadd.f32 %v7317_v52, %v7299_v15  ;;  %v7283_v23 = vadd.f32 %v7282_v55, %v7264_v18 }
 0x38d   : > { %v7337_v25 = vadd.f32 %v7336_v54, %v7318_v16  ;;  %v7302_v32 = vadd.f32 %v7301_v56, %v7283_v23 }
 0x392   : > { %v7320_v60 = vpop.f32.mrf.mxu2  ;;  %v7284_v1 = vpop.f32.mrf.mxu0 }
 0x393   : > { %v7339_v0 = vpop.f32.mrf.mxu3  ;;  %v7303_v2 = vpop.f32.mrf.mxu1  ;;  %v7321_v30 = vadd.f32 %v7320_v60, %v7302_v32  ;;  %v7285_v33 = vadd.f32 %v7284_v1, %v7266_v31 }
 0x395   : > { %v7340_v41 = vadd.f32 %v7339_v0, %v7321_v30  ;;  %v7304_v42 = vadd.f32 %v7303_v2, %v7285_v33 }
 0x39a   : > { %v7322_v8 = vpop.f32.mrf.mxu2  ;;  %v7353_v11 = vpop.f32.mrf.mxu0 }
 0x39b   : > { %v7341_v10 = vpop.f32.mrf.mxu3  ;;  %v7372_v12 = vpop.f32.mrf.mxu1  ;;  %v7354_v17 = vadd.f32 %v7353_v11, %v7335_v14  ;;  %v7323_v49 = vadd.f32 %v7322_v8, %v7304_v42 }
 0x39d   : > { %v7373_v27 = vadd.f32 %v7372_v12, %v7354_v17  ;;  %v7342_v52 = vadd.f32 %v7341_v10, %v7323_v49 }
 0x3a2   : > { %v7391_v21 = vpop.f32.mrf.mxu2  ;;  %v7355_v29 = vpop.f32.mrf.mxu0 }
 0x3a3   : > { %v7410_v28 = vpop.f32.mrf.mxu3  ;;  %v7374_v26 = vpop.f32.mrf.mxu1  ;;  %v7392_v24 = vadd.f32 %v7391_v21, %v7373_v27  ;;  %v7356_v20 = vadd.f32 %v7355_v29, %v7337_v25 }
 0x3a5   : > { %v7411_v34 = vadd.f32 %v7410_v28, %v7392_v24  ;;  %v7375_v35 = vadd.f32 %v7374_v26, %v7356_v20 }
 0x3a7   : > { %v7435_v43 = vmul.f32 0.2, %v7411_v34 }
 0x3a9   : > { %v7439_v39 = vmax.f32 %v7411_v34, %v7435_v43 }
 0x3aa   : > { %v7393_v36 = vpop.f32.mrf.mxu2  ;;  %v7358_v40 = vpop.f32.mrf.mxu0 }
 0x3ab   : > { %v7394_v37 = vadd.f32 %v7393_v36, %v7375_v35  ;;  %v7412_v38 = vpop.f32.mrf.mxu3  ;;  %v7377_v48 = vpop.f32.mrf.mxu1  ;;  %v7359_v44 = vadd.f32 %v7358_v40, %v7340_v41 }
 0x3ad   : > { %v7413_v47 = vadd.f32 %v7412_v38, %v7394_v37  ;;  %v7378_v54 = vadd.f32 %v7377_v48, %v7359_v44 }
 0x3af   : > { %v7436_v50 = vmul.f32 0.2, %v7413_v47 }
 0x3b1   : > { %v7440_v46 = vmax.f32 %v7413_v47, %v7436_v50 }
 0x3b2   : > { %v7396_v51 = vpop.f32.mrf.mxu2  ;;  %v7360_v56 = vpop.f32.mrf.mxu0 }
 0x3b3   : > { %v9234_v53 = vpack.c.bf16 %v7440_v46, %v7439_v39  ;;  %v7415_v55 = vpop.f32.mrf.mxu3  ;;  %v7397_v45 = vadd.f32 %v7396_v51, %v7378_v54  ;;  %v7361_v57 = vadd.f32 %v7360_v56, %v7342_v52  ;;  %v7379_v58 = vpop.f32.mrf.mxu1 }
 0x3b5   : > { %9235 = vst [vmem:[%s4353_s5] sm:$0xff] %v9234_v53   ;;  %v7416_v59 = vadd.f32 %v7415_v55, %v7397_v45  ;;  %v7380_v60 = vadd.f32 %v7379_v58, %v7361_v57 }
 0x3b7   : > { %v7437_v1 = vmul.f32 0.2, %v7416_v59 }
 0x3b9   : > { %v7441_v4 = vmax.f32 %v7416_v59, %v7437_v1 }
 0x3ba   : > { %v7398_v62 = vpop.f32.mrf.mxu2 }
 0x3bb   : > { %v7399_v63 = vadd.f32 %v7398_v62, %v7380_v60  ;;  %v7417_v0 = vpop.f32.mrf.mxu3 }
 0x3bc   : > { %v7479_v7 = vld [vmem:[%s4353_s5] sm:$0xf] (%p9372_p6)  ;;  %v7481_v8 = vld [vmem:[%s4353_s5 + $0x4] sm:$0xf] (%p9372_p6) }
 0x3bd   : > { %v7418_v2 = vadd.f32 %v7417_v0, %v7399_v63  ;;  %7480 = vst [vmem:[%s7462_s7] sm:$0xf] (%p9372_p6), %v7479_v7 }
 0x3be   : > { %7482 = vst [vmem:[%s7462_s7 + $0x10] sm:$0xf] (%p9372_p6), %v7481_v8 }
 0x3bf   : > { %v7438_v3 = vmul.f32 0.2, %v7418_v2 }
 0x3c1   : > { %v7442_v5 = vmax.f32 %v7418_v2, %v7438_v3  ;;  %7457 = sbr.rel (!%p9372_p6) target bundleno = 975 (0x3cf), region = 92 }
 0x3c3   : > { %v9239_v6 = vpack.c.bf16 %v7442_v5, %v7441_v4 }
 0x3c5   : > { %9241 = vst [vmem:[%s4353_s5 + $0x8] sm:$0xff] %v9239_v6  }
 0x3cc   : > { %v7483_v9 = vld [vmem:[%s4353_s5 + $0x8] sm:$0xf]  ;;  %v7485_v10 = vld [vmem:[%s4353_s5 + $0xc] sm:$0xf] }
 0x3cd   : > { %7484 = vst [vmem:[%s7462_s7 + $0x20] sm:$0xf] %v7483_v9 }
 0x3ce   : > { %7486 = vst [vmem:[%s7462_s7 + $0x30] sm:$0xf] %v7485_v10 }
 0x3cf PF: > { %s12_s13 = sadd.s32 1, %s9320_s13   ;;  %s11114_s9 = smov %s9308_s10 }
 0x3d0   : > { %p9_p11 = scmp.ge.s32.totalorder %s12_s13, 6   ;;  %s11115_s10 = smov %s9377_s19 }
 0x3d1   : > { %s11116_s11 = smov %s9316_s12  ;;  %s11117_s12 = smov %s11119_s14 }
 0x3d2   :  { %11 = sbr.rel (!%p9_p11) target bundleno = 3 (0x3), region = 171 }

</bundles_post_ra>
